<compile_context>
chip_gen: v7x
topology: tpu7x:2x2x1
jax: 0.10.0
libtpu: 0.0.40
codegen_flags: <defaults>
</compile_context>

<pallas_src>
import functools
import math

import jax
import jax.numpy as jnp
from jax import lax
from jax.experimental import pallas as pl
from jax.experimental.pallas import tpu as pltpu


# Order of the per-layer weight refs passed to the fused kernel.
_LAYER_PARAM_NAMES = (
    "sa_wqkv", "sa_bqkv", "sa_wo", "sa_bo",
    "ca_wq", "ca_bq", "ca_wkv", "ca_bkv", "ca_wo", "ca_bo",
    "ff_w1", "ff_b1", "ff_w2", "ff_b2",
    "ln1_g", "ln1_b", "ln2_g", "ln2_b", "ln3_g", "ln3_b",
)


# ----------------------------------------------------------------------------
# Fused kernel: whole decoder forward (last layer + vocab proj) in one call.
# ----------------------------------------------------------------------------
def _glat_forward_kernel(*refs, batch, tq, tk, n_heads, head_dim, eps):
    tgt_ref, mem_ref, *rest = refs
    w_refs = rest[:len(_LAYER_PARAM_NAMES)]
    out_w_ref, out_b_ref, o_ref = rest[len(_LAYER_PARAM_NAMES):]
    w = dict(zip(_LAYER_PARAM_NAMES, w_refs))

    D = n_heads * head_dim
    x_glance = tgt_ref[...]            # (B*T, D)  flattened tgt_glance
    mem = mem_ref[...]                 # (B*S, D)  flattened encoder memory

    def layer_norm(x, g_ref, b_ref):
        mean = jnp.mean(x, axis=-1, keepdims=True)
        c = x - mean
        var = jnp.mean(c * c, axis=-1, keepdims=True)
        return c * lax.rsqrt(var + eps) * g_ref[...] + b_ref[...]

    def mh_context(q, k, v, lq, lk):
        """Per-batch, per-head scaled-dot-product attention contexts.

        q: (B*lq, D); k, v: (B*lk, D).  The 1/sqrt(head_dim) scale is already
        folded into the q projection weights.  Returns the concatenated
        per-head contexts as one (B*lq, D) slab (output projection applied
        ONCE outside, over all rows).
        """
        per_batch = []
        for b in range(batch):
            q0, k0 = b * lq, b * lk
            qb = q[q0:q0 + lq, :]
            kb = k[k0:k0 + lk, :]
            vb = v[k0:k0 + lk, :]
            heads = []
            for h in range(n_heads):
                lo = h * head_dim
                hi = lo + head_dim
                s = lax.dot_general(qb[:, lo:hi], kb[:, lo:hi],
                                    (((1,), (1,)), ((), ())),
                                    preferred_element_type=jnp.float32)
                s = s - jnp.max(s, axis=-1, keepdims=True)
                p = jnp.exp(s)
                p = p * pl.reciprocal(jnp.sum(p, axis=-1, keepdims=True),
                                      approx=True)
                heads.append(jnp.dot(p, vb[:, lo:hi],
                                     preferred_element_type=jnp.float32))
            per_batch.append(jnp.concatenate(heads, axis=1))     # (lq, D)
        return jnp.concatenate(per_batch, axis=0)                # (B*lq, D)

    # --- self-attention block (fused QKV projection over all B*T rows) ---
    qkv = jnp.dot(x_glance, w["sa_wqkv"][...],
                  preferred_element_type=jnp.float32) + w["sa_bqkv"][...]
    ctx = mh_context(qkv[:, :D], qkv[:, D:2 * D], qkv[:, 2 * D:], tq, tq)
    sa = jnp.dot(ctx, w["sa_wo"][...],
                 preferred_element_type=jnp.float32) + w["sa_bo"][...]
    h1 = layer_norm(x_glance + sa, w["ln1_g"], w["ln1_b"])

    # --- cross-attention block (fused KV projection on memory) ---
    qc = jnp.dot(h1, w["ca_wq"][...],
                 preferred_element_type=jnp.float32) + w["ca_bq"][...]
    kv = jnp.dot(mem, w["ca_wkv"][...],
                 preferred_element_type=jnp.float32) + w["ca_bkv"][...]
    ctx = mh_context(qc, kv[:, :D], kv[:, D:], tq, tk)
    ca = jnp.dot(ctx, w["ca_wo"][...],
                 preferred_element_type=jnp.float32) + w["ca_bo"][...]
    h2 = layer_norm(h1 + ca, w["ln2_g"], w["ln2_b"])

    # --- feed-forward block (ReLU) ---
    ff = jnp.maximum(
        jnp.dot(h2, w["ff_w1"][...],
                preferred_element_type=jnp.float32) + w["ff_b1"][...], 0.0)
    ff = jnp.dot(ff, w["ff_w2"][...],
                 preferred_element_type=jnp.float32) + w["ff_b2"][...]
    x = layer_norm(h2 + ff, w["ln3_g"], w["ln3_b"])

    # --- vocab projection, padded to a lane-dense (multiple of 128) width ---
    logits = jnp.dot(x, out_w_ref[...],
                     preferred_element_type=jnp.float32) + out_b_ref[...]
    o_ref[...] = logits.astype(o_ref.dtype)


# ----------------------------------------------------------------------------
# Glue (plain JAX) + wrapper around the fused kernel
# ----------------------------------------------------------------------------
def positional_encoding_table(seq_len, model_dim, dtype=jnp.float32):
    position = jnp.arange(seq_len, dtype=jnp.float32)[:, None]            # (T,1)
    div_term = jnp.exp(jnp.arange(0, model_dim, 2, dtype=jnp.float32)
                       * (-math.log(10000.0) / model_dim))                # (D/2,)
    sin = jnp.sin(position * div_term)
    cos = jnp.cos(position * div_term)
    pe = jnp.stack([sin, cos], axis=-1).reshape(seq_len, model_dim)       # interleave
    return pe.astype(dtype)


def _prepare_inputs(packed, t2u_output, target_units, mask_key, alpha):
    """Embedding gather + positional encoding + glance mask, batch-major."""
    B, T = target_units.shape
    S = t2u_output.shape[0]
    D = packed["embedding"].shape[1]

    # gather is already batch-major (B, T, D) -- no (T,B,D) round trip.
    tgt = jnp.take(packed["embedding"], target_units, axis=0)
    tgt = tgt + positional_encoding_table(T, D)[None, :, :]

    # glance mask: (torch.rand(B, T) < alpha).long()
    glance_mask = (jax.random.uniform(mask_key, (B, T)) < alpha).astype(tgt.dtype)
    # Literal PyTorch broadcast (T,B,D) * (B,T,1) -> tgt[t,b,:] *= mask[t,b].
    # In batch-major that is tgt_b[b,t,:] *= mask[t,b] == mask.T[b,t] (needs B==T).
    tgt_glance = tgt * glance_mask.T[:, :, None]                 # (B, T, D)

    mem_b = jnp.transpose(t2u_output, (1, 0, 2))                 # (B, S, D)
    return tgt_glance, mem_b


def glat_unit_decoder_forward(packed, t2u_output, target_units, mask_key,
                              alpha=0.5, n_heads=4):
    B, T = target_units.shape
    S = t2u_output.shape[0]
    D = packed["embedding"].shape[1]
    V = packed["out_w"].shape[1]
    head_dim = D // n_heads
    Vp = ((V + 127) // 128) * 128          # lane-dense padded vocab width

    tgt_b, mem_b = _prepare_inputs(packed, t2u_output, target_units,
                                   mask_key, alpha)
    tgt_flat = tgt_b.reshape(B * T, D)
    mem_flat = mem_b.reshape(B * S, D)

    # Dead-layer skip: only the LAST layer's output reaches the vocab
    # projection (every layer consumes tgt_glance), so pass only that layer.
    layer_w = [packed[n][-1] for n in _LAYER_PARAM_NAMES]

    out_w = packed["out_w"]
    out_b = packed["out_b"]
    if Vp != V:
        out_w = jnp.pad(out_w, ((0, 0), (0, Vp - V)))
        out_b = jnp.pad(out_b, ((0, 0), (0, Vp - V)))

    inputs = [tgt_flat, mem_flat] + layer_w + [out_w, out_b]

    def full_spec(arr):
        nd = arr.ndim
        return pl.BlockSpec(arr.shape, lambda g, _nd=nd: (0,) * _nd)

    in_specs = [full_spec(a) for a in inputs]
    out_specs = pl.BlockSpec((B * T, Vp), lambda g: (0, 0))

    # Explicit VMEM budget (inputs + output, with generous headroom).
    vmem_bytes = sum(int(a.size) * a.dtype.itemsize for a in inputs)
    vmem_bytes += B * T * Vp * 4
    vmem_limit = int(min(max(8 * vmem_bytes, 16 << 20), 96 << 20))

    kernel = functools.partial(
        _glat_forward_kernel, batch=B, tq=T, tk=S,
        n_heads=n_heads, head_dim=head_dim, eps=1e-5)

    logits_flat = pl.pallas_call(
        kernel,
        out_shape=jax.ShapeDtypeStruct((B * T, Vp), jnp.float32),
        grid=(1,),
        in_specs=in_specs,
        out_specs=out_specs,
        compiler_params=pltpu.CompilerParams(
            dimension_semantics=("arbitrary",),
            vmem_limit_bytes=vmem_limit),
    )(*inputs)

    return logits_flat[:, :V].reshape(B, T, V)   # == PyTorch logits.transpose(0,1)


def reference_forward(raw, tgt_b, mem_b, n_heads):
    """Pure-JAX mirror using the RAW (unpacked, unscaled) parameters.

    Loops over ALL decoder layers (including the dead ones) exactly like the
    PyTorch module, validating both the packing (fused QKV, folded 1/sqrt(Dh))
    and the dead-layer skip in the kernel.
    """
    D = raw["embedding"].shape[1]
    head_dim = D // n_heads
    scale = 1.0 / math.sqrt(head_dim)

    def layer_norm(x, g, b, eps=1e-5):
        mean = jnp.mean(x, axis=-1, keepdims=True)
        c = x - mean
        var = jnp.mean(c * c, axis=-1, keepdims=True)
        return c * lax.rsqrt(var + eps) * g + b

    def mha(q_in, kv_in, p):
        q = q_in @ p["wq"] + p["bq"]
        k = kv_in @ p["wk"] + p["bk"]
        v = kv_in @ p["wv"] + p["bv"]
        out = p["bo"]
        for h in range(n_heads):
            sl = slice(h * head_dim, (h + 1) * head_dim)
            s = (q[:, sl] * scale) @ k[:, sl].T
            pr = jax.nn.softmax(s, axis=-1)
            out = out + (pr @ v[:, sl]) @ p["wo"][sl, :]
        return out

    def single(tgt, mem):
        x = tgt
        for lp in raw["layers"]:
            xin = tgt
            sa = mha(xin, xin, lp["self_attn"])
            h1 = layer_norm(xin + sa, lp["ln1_g"], lp["ln1_b"])
            ca = mha(h1, mem, lp["cross_attn"])
            h2 = layer_norm(h1 + ca, lp["ln2_g"], lp["ln2_b"])
            ff = jax.nn.relu(h2 @ lp["ff_w1"] + lp["ff_b1"]) @ lp["ff_w2"] + lp["ff_b2"]
            x = layer_norm(h2 + ff, lp["ln3_g"], lp["ln3_b"])
        return x @ raw["out_w"] + raw["out_b"]

    return jax.vmap(single)(tgt_b, mem_b)


# ----------------------------------------------------------------------------
# Parameter init (PyTorch-like raw params) + packing for the fused kernel
# ----------------------------------------------------------------------------
def init_params(key, model_dim, n_heads, ff_dim, n_layers, vocab_size):
    scale = 0.05
    keys = iter(jax.random.split(key, 16 + 24 * n_layers))

    def nrm(shape):
        return scale * jax.random.normal(next(keys), shape, dtype=jnp.float32)

    def attn_params():
        return {
            "wq": nrm((model_dim, model_dim)), "bq": nrm((model_dim,)),
            "wk": nrm((model_dim, model_dim)), "bk": nrm((model_dim,)),
            "wv": nrm((model_dim, model_dim)), "bv": nrm((model_dim,)),
            "wo": nrm((model_dim, model_dim)), "bo": nrm((model_dim,)),
        }

    layers = []
    for _ in range(n_layers):
        layers.append({
            "self_attn": attn_params(),
            "cross_attn": attn_params(),
            "ff_w1": nrm((model_dim, ff_dim)), "ff_b1": nrm((ff_dim,)),
            "ff_w2": nrm((ff_dim, model_dim)), "ff_b2": nrm((model_dim,)),
            "ln1_g": jnp.ones((model_dim,), jnp.float32),
            "ln1_b": jnp.zeros((model_dim,), jnp.float32),
            "ln2_g": jnp.ones((model_dim,), jnp.float32),
            "ln2_b": jnp.zeros((model_dim,), jnp.float32),
            "ln3_g": jnp.ones((model_dim,), jnp.float32),
            "ln3_b": jnp.zeros((model_dim,), jnp.float32),
        })

    return {
        "embedding": nrm((vocab_size, model_dim)),
        "out_w": nrm((model_dim, vocab_size)),
        "out_b": nrm((vocab_size,)),
        "layers": layers,
    }


def pack_params(raw, n_heads):
    """Concatenate QKV, fold the 1/sqrt(Dh) scale into q, stack layers."""
    D = raw["embedding"].shape[1]
    head_dim = D // n_heads
    scale = 1.0 / math.sqrt(head_dim)
    layers = raw["layers"]

    def stack(fn):
        return jnp.stack([fn(lp) for lp in layers], axis=0)

    def row(v):
        return v.reshape(1, -1)

    return {
        "sa_wqkv": stack(lambda lp: jnp.concatenate(
            [lp["self_attn"]["wq"] * scale, lp["self_attn"]["wk"],
             lp["self_attn"]["wv"]], axis=1)),
        "sa_bqkv": stack(lambda lp: row(jnp.concatenate(
            [lp["self_attn"]["bq"] * scale, lp["self_attn"]["bk"],
             lp["self_attn"]["bv"]]))),
        "sa_wo": stack(lambda lp: lp["self_attn"]["wo"]),
        "sa_bo": stack(lambda lp: row(lp["self_attn"]["bo"])),
        "ca_wq": stack(lambda lp: lp["cross_attn"]["wq"] * scale),
        "ca_bq": stack(lambda lp: row(lp["cross_attn"]["bq"] * scale)),
        "ca_wkv": stack(lambda lp: jnp.concatenate(
            [lp["cross_attn"]["wk"], lp["cross_attn"]["wv"]], axis=1)),
        "ca_bkv": stack(lambda lp: row(jnp.concatenate(
            [lp["cross_attn"]["bk"], lp["cross_attn"]["bv"]]))),
        "ca_wo": stack(lambda lp: lp["cross_attn"]["wo"]),
        "ca_bo": stack(lambda lp: row(lp["cross_attn"]["bo"])),
        "ff_w1": stack(lambda lp: lp["ff_w1"]),
        "ff_b1": stack(lambda lp: row(lp["ff_b1"])),
        "ff_w2": stack(lambda lp: lp["ff_w2"]),
        "ff_b2": stack(lambda lp: row(lp["ff_b2"])),
        "ln1_g": stack(lambda lp: row(lp["ln1_g"])),
        "ln1_b": stack(lambda lp: row(lp["ln1_b"])),
        "ln2_g": stack(lambda lp: row(lp["ln2_g"])),
        "ln2_b": stack(lambda lp: row(lp["ln2_b"])),
        "ln3_g": stack(lambda lp: row(lp["ln3_g"])),
        "ln3_b": stack(lambda lp: row(lp["ln3_b"])),
        "embedding": raw["embedding"],
        "out_w": raw["out_w"],
        "out_b": row(raw["out_b"]),
    }


# ----------------------------------------------------------------------------
if __name__ == "__main__":
    # hparams (small, deterministic)
    model_dim = 32
    n_heads = 4
    ff_dim = 64
    n_layers_unit_decoder = 2
    unit_vocab_size = 64

    # B == T so the literal PyTorch glance-mask broadcast is well defined.
    # TODO(synk): the (T,B,D)*(B,T,1) glance broadcast in the source module
    # only works for B == T; reproduced literally here.
    B, T, S = 8, 8, 12

    key = jax.random.PRNGKey(0)
    k_params, k_mem, k_units, k_mask = jax.random.split(key, 4)

    raw_params = init_params(k_params, model_dim, n_heads, ff_dim,
                             n_layers_unit_decoder, unit_vocab_size)
    packed = pack_params(raw_params, n_heads)

    t2u_output = jax.random.normal(k_mem, (S, B, model_dim), dtype=jnp.float32)
    target_units = jax.random.randint(k_units, (B, T), 0, unit_vocab_size,
                                      dtype=jnp.int32)

    logits = glat_unit_decoder_forward(packed, t2u_output, target_units,
                                       k_mask, alpha=0.5, n_heads=n_heads)
    logits = jax.block_until_ready(logits)

    assert logits.shape == (B, T, unit_vocab_size), logits.shape
    assert bool(jnp.all(jnp.isfinite(logits)))

    # Pure-JAX reference: RAW (unpacked) params, ALL layers looped.
    tgt_b, mem_b = _prepare_inputs(packed, t2u_output, target_units,
                                   k_mask, 0.5)
    ref = reference_forward(raw_params, tgt_b, mem_b, n_heads)
    assert bool(jnp.allclose(logits, ref, rtol=5e-2, atol=5e-2))

    print("KERNEL_OK")
</pallas_src>

<mosaic_0001>
module attributes {stable_mosaic.version = 11 : i64} {
  func.func @_glat_forward_kernel(%arg0: i32, %arg1: memref<64x32xf32, #tpu.memory_space<vmem>>, %arg2: memref<96x32xf32, #tpu.memory_space<vmem>>, %arg3: memref<32x96xf32, #tpu.memory_space<vmem>>, %arg4: memref<1x96xf32, #tpu.memory_space<vmem>>, %arg5: memref<32x32xf32, #tpu.memory_space<vmem>>, %arg6: memref<1x32xf32, #tpu.memory_space<vmem>>, %arg7: memref<32x32xf32, #tpu.memory_space<vmem>>, %arg8: memref<1x32xf32, #tpu.memory_space<vmem>>, %arg9: memref<32x64xf32, #tpu.memory_space<vmem>>, %arg10: memref<1x64xf32, #tpu.memory_space<vmem>>, %arg11: memref<32x32xf32, #tpu.memory_space<vmem>>, %arg12: memref<1x32xf32, #tpu.memory_space<vmem>>, %arg13: memref<32x64xf32, #tpu.memory_space<vmem>>, %arg14: memref<1x64xf32, #tpu.memory_space<vmem>>, %arg15: memref<64x32xf32, #tpu.memory_space<vmem>>, %arg16: memref<1x32xf32, #tpu.memory_space<vmem>>, %arg17: memref<1x32xf32, #tpu.memory_space<vmem>>, %arg18: memref<1x32xf32, #tpu.memory_space<vmem>>, %arg19: memref<1x32xf32, #tpu.memory_space<vmem>>, %arg20: memref<1x32xf32, #tpu.memory_space<vmem>>, %arg21: memref<1x32xf32, #tpu.memory_space<vmem>>, %arg22: memref<1x32xf32, #tpu.memory_space<vmem>>, %arg23: memref<32x128xf32, #tpu.memory_space<vmem>>, %arg24: memref<1x128xf32, #tpu.memory_space<vmem>>, %arg25: memref<64x128xf32, #tpu.memory_space<vmem>>) attributes {dimension_semantics = [#tpu.dimension_semantics<arbitrary>], iteration_bounds = array<i64: 1>, scalar_prefetch = 0 : i64, scratch_operands = 0 : i64, tpu.core_type = #tpu.core_type<tc>, window_params = [{pipeline_mode = #tpu.pipeline_mode<synchronous>, transform_indices = @transform_0, window_bounds = array<i64: 64, 32>}, {pipeline_mode = #tpu.pipeline_mode<synchronous>, transform_indices = @transform_1, window_bounds = array<i64: 96, 32>}, {pipeline_mode = #tpu.pipeline_mode<synchronous>, transform_indices = @transform_2, window_bounds = array<i64: 32, 96>}, {pipeline_mode = #tpu.pipeline_mode<synchronous>, transform_indices = @transform_3, window_bounds = array<i64: 1, 96>}, {pipeline_mode = #tpu.pipeline_mode<synchronous>, transform_indices = @transform_4, window_bounds = array<i64: 32, 32>}, {pipeline_mode = #tpu.pipeline_mode<synchronous>, transform_indices = @transform_5, window_bounds = array<i64: 1, 32>}, {pipeline_mode = #tpu.pipeline_mode<synchronous>, transform_indices = @transform_6, window_bounds = array<i64: 32, 32>}, {pipeline_mode = #tpu.pipeline_mode<synchronous>, transform_indices = @transform_7, window_bounds = array<i64: 1, 32>}, {pipeline_mode = #tpu.pipeline_mode<synchronous>, transform_indices = @transform_8, window_bounds = array<i64: 32, 64>}, {pipeline_mode = #tpu.pipeline_mode<synchronous>, transform_indices = @transform_9, window_bounds = array<i64: 1, 64>}, {pipeline_mode = #tpu.pipeline_mode<synchronous>, transform_indices = @transform_10, window_bounds = array<i64: 32, 32>}, {pipeline_mode = #tpu.pipeline_mode<synchronous>, transform_indices = @transform_11, window_bounds = array<i64: 1, 32>}, {pipeline_mode = #tpu.pipeline_mode<synchronous>, transform_indices = @transform_12, window_bounds = array<i64: 32, 64>}, {pipeline_mode = #tpu.pipeline_mode<synchronous>, transform_indices = @transform_13, window_bounds = array<i64: 1, 64>}, {pipeline_mode = #tpu.pipeline_mode<synchronous>, transform_indices = @transform_14, window_bounds = array<i64: 64, 32>}, {pipeline_mode = #tpu.pipeline_mode<synchronous>, transform_indices = @transform_15, window_bounds = array<i64: 1, 32>}, {pipeline_mode = #tpu.pipeline_mode<synchronous>, transform_indices = @transform_16, window_bounds = array<i64: 1, 32>}, {pipeline_mode = #tpu.pipeline_mode<synchronous>, transform_indices = @transform_17, window_bounds = array<i64: 1, 32>}, {pipeline_mode = #tpu.pipeline_mode<synchronous>, transform_indices = @transform_18, window_bounds = array<i64: 1, 32>}, {pipeline_mode = #tpu.pipeline_mode<synchronous>, transform_indices = @transform_19, window_bounds = array<i64: 1, 32>}, {pipeline_mode = #tpu.pipeline_mode<synchronous>, transform_indices = @transform_20, window_bounds = array<i64: 1, 32>}, {pipeline_mode = #tpu.pipeline_mode<synchronous>, transform_indices = @transform_21, window_bounds = array<i64: 1, 32>}, {pipeline_mode = #tpu.pipeline_mode<synchronous>, transform_indices = @transform_22, window_bounds = array<i64: 32, 128>}, {pipeline_mode = #tpu.pipeline_mode<synchronous>, transform_indices = @transform_23, window_bounds = array<i64: 1, 128>}, {pipeline_mode = #tpu.pipeline_mode<synchronous>, transform_indices = @transform_24, window_bounds = array<i64: 64, 128>}]} {
    %c0 = arith.constant 0 : index
    %c0_0 = arith.constant 0 : index
    %0 = vector.load %arg1[%c0, %c0_0] : memref<64x32xf32, #tpu.memory_space<vmem>>, vector<64x32xf32>
    %c0_1 = arith.constant 0 : index
    %c0_2 = arith.constant 0 : index
    %1 = vector.load %arg2[%c0_1, %c0_2] : memref<96x32xf32, #tpu.memory_space<vmem>>, vector<96x32xf32>
    %c0_3 = arith.constant 0 : index
    %c0_4 = arith.constant 0 : index
    %2 = vector.load %arg3[%c0_3, %c0_4] : memref<32x96xf32, #tpu.memory_space<vmem>>, vector<32x96xf32>
    %cst = arith.constant dense<0.000000e+00> : vector<64x96xf32>
    %3 = tpu.matmul %0, %2, %cst {dimension_numbers = #tpu.dot_dimension_numbers<[1], [0], [0], [1], [0, 0, 1, 1], [], []>} : vector<64x32xf32>, vector<32x96xf32>, vector<64x96xf32> -> vector<64x96xf32>
    %c0_5 = arith.constant 0 : index
    %c0_6 = arith.constant 0 : index
    %4 = vector.load %arg4[%c0_5, %c0_6] : memref<1x96xf32, #tpu.memory_space<vmem>>, vector<1x96xf32>
    %5 = vector.broadcast %4 : vector<1x96xf32> to vector<64x96xf32>
    %6 = arith.addf %3, %5 : vector<64x96xf32>
    %7 = vector.extract_strided_slice %6 {offsets = [0, 0], sizes = [64, 32], strides = [1, 1]} : vector<64x96xf32> to vector<64x32xf32>
    %8 = vector.extract_strided_slice %6 {offsets = [0, 32], sizes = [64, 32], strides = [1, 1]} : vector<64x96xf32> to vector<64x32xf32>
    %9 = vector.extract_strided_slice %6 {offsets = [0, 64], sizes = [64, 32], strides = [1, 1]} : vector<64x96xf32> to vector<64x32xf32>
    %10 = vector.extract_strided_slice %7 {offsets = [0, 0], sizes = [8, 32], strides = [1, 1]} : vector<64x32xf32> to vector<8x32xf32>
    %11 = vector.extract_strided_slice %8 {offsets = [0, 0], sizes = [8, 32], strides = [1, 1]} : vector<64x32xf32> to vector<8x32xf32>
    %12 = vector.extract_strided_slice %9 {offsets = [0, 0], sizes = [8, 32], strides = [1, 1]} : vector<64x32xf32> to vector<8x32xf32>
    %13 = vector.extract_strided_slice %10 {offsets = [0, 0], sizes = [8, 8], strides = [1, 1]} : vector<8x32xf32> to vector<8x8xf32>
    %14 = vector.extract_strided_slice %11 {offsets = [0, 0], sizes = [8, 8], strides = [1, 1]} : vector<8x32xf32> to vector<8x8xf32>
    %cst_7 = arith.constant dense<0.000000e+00> : vector<8x8xf32>
    %15 = tpu.matmul %13, %14, %cst_7 {dimension_numbers = #tpu.dot_dimension_numbers<[1], [1], [0], [0], [0, 0, 1, 0], [], []>} : vector<8x8xf32>, vector<8x8xf32>, vector<8x8xf32> -> vector<8x8xf32>
    %cst_8 = arith.constant dense<0xFF800000> : vector<8xf32>
    %16 = vector.multi_reduction <maximumf>, %15, %cst_8 [1] : vector<8x8xf32> to vector<8xf32>
    %17 = vector.shape_cast %16 : vector<8xf32> to vector<8x1xf32>
    %18 = vector.broadcast %17 : vector<8x1xf32> to vector<8x8xf32>
    %19 = arith.subf %15, %18 : vector<8x8xf32>
    %20 = math.exp %19 : vector<8x8xf32>
    %cst_9 = arith.constant dense<0.000000e+00> : vector<8xf32>
    %21 = vector.multi_reduction <add>, %20, %cst_9 [1] : vector<8x8xf32> to vector<8xf32>
    %22 = vector.shape_cast %21 : vector<8xf32> to vector<8x1xf32>
    %23 = tpu.reciprocal %22 {approx = true} : vector<8x1xf32> -> vector<8x1xf32>
    %24 = vector.broadcast %23 : vector<8x1xf32> to vector<8x8xf32>
    %25 = arith.mulf %20, %24 : vector<8x8xf32>
    %26 = vector.extract_strided_slice %12 {offsets = [0, 0], sizes = [8, 8], strides = [1, 1]} : vector<8x32xf32> to vector<8x8xf32>
    %cst_10 = arith.constant dense<0.000000e+00> : vector<8x8xf32>
    %27 = tpu.matmul %25, %26, %cst_10 {dimension_numbers = #tpu.dot_dimension_numbers<[1], [0], [0], [1], [0, 0, 1, 1], [], []>} : vector<8x8xf32>, vector<8x8xf32>, vector<8x8xf32> -> vector<8x8xf32>
    %28 = vector.extract_strided_slice %10 {offsets = [0, 8], sizes = [8, 8], strides = [1, 1]} : vector<8x32xf32> to vector<8x8xf32>
    %29 = vector.extract_strided_slice %11 {offsets = [0, 8], sizes = [8, 8], strides = [1, 1]} : vector<8x32xf32> to vector<8x8xf32>
    %cst_11 = arith.constant dense<0.000000e+00> : vector<8x8xf32>
    %30 = tpu.matmul %28, %29, %cst_11 {dimension_numbers = #tpu.dot_dimension_numbers<[1], [1], [0], [0], [0, 0, 1, 0], [], []>} : vector<8x8xf32>, vector<8x8xf32>, vector<8x8xf32> -> vector<8x8xf32>
    %cst_12 = arith.constant dense<0xFF800000> : vector<8xf32>
    %31 = vector.multi_reduction <maximumf>, %30, %cst_12 [1] : vector<8x8xf32> to vector<8xf32>
    %32 = vector.shape_cast %31 : vector<8xf32> to vector<8x1xf32>
    %33 = vector.broadcast %32 : vector<8x1xf32> to vector<8x8xf32>
    %34 = arith.subf %30, %33 : vector<8x8xf32>
    %35 = math.exp %34 : vector<8x8xf32>
    %cst_13 = arith.constant dense<0.000000e+00> : vector<8xf32>
    %36 = vector.multi_reduction <add>, %35, %cst_13 [1] : vector<8x8xf32> to vector<8xf32>
    %37 = vector.shape_cast %36 : vector<8xf32> to vector<8x1xf32>
    %38 = tpu.reciprocal %37 {approx = true} : vector<8x1xf32> -> vector<8x1xf32>
    %39 = vector.broadcast %38 : vector<8x1xf32> to vector<8x8xf32>
    %40 = arith.mulf %35, %39 : vector<8x8xf32>
    %41 = vector.extract_strided_slice %12 {offsets = [0, 8], sizes = [8, 8], strides = [1, 1]} : vector<8x32xf32> to vector<8x8xf32>
    %cst_14 = arith.constant dense<0.000000e+00> : vector<8x8xf32>
    %42 = tpu.matmul %40, %41, %cst_14 {dimension_numbers = #tpu.dot_dimension_numbers<[1], [0], [0], [1], [0, 0, 1, 1], [], []>} : vector<8x8xf32>, vector<8x8xf32>, vector<8x8xf32> -> vector<8x8xf32>
    %43 = vector.extract_strided_slice %10 {offsets = [0, 16], sizes = [8, 8], strides = [1, 1]} : vector<8x32xf32> to vector<8x8xf32>
    %44 = vector.extract_strided_slice %11 {offsets = [0, 16], sizes = [8, 8], strides = [1, 1]} : vector<8x32xf32> to vector<8x8xf32>
    %cst_15 = arith.constant dense<0.000000e+00> : vector<8x8xf32>
    %45 = tpu.matmul %43, %44, %cst_15 {dimension_numbers = #tpu.dot_dimension_numbers<[1], [1], [0], [0], [0, 0, 1, 0], [], []>} : vector<8x8xf32>, vector<8x8xf32>, vector<8x8xf32> -> vector<8x8xf32>
    %cst_16 = arith.constant dense<0xFF800000> : vector<8xf32>
    %46 = vector.multi_reduction <maximumf>, %45, %cst_16 [1] : vector<8x8xf32> to vector<8xf32>
    %47 = vector.shape_cast %46 : vector<8xf32> to vector<8x1xf32>
    %48 = vector.broadcast %47 : vector<8x1xf32> to vector<8x8xf32>
    %49 = arith.subf %45, %48 : vector<8x8xf32>
    %50 = math.exp %49 : vector<8x8xf32>
    %cst_17 = arith.constant dense<0.000000e+00> : vector<8xf32>
    %51 = vector.multi_reduction <add>, %50, %cst_17 [1] : vector<8x8xf32> to vector<8xf32>
    %52 = vector.shape_cast %51 : vector<8xf32> to vector<8x1xf32>
    %53 = tpu.reciprocal %52 {approx = true} : vector<8x1xf32> -> vector<8x1xf32>
    %54 = vector.broadcast %53 : vector<8x1xf32> to vector<8x8xf32>
    %55 = arith.mulf %50, %54 : vector<8x8xf32>
    %56 = vector.extract_strided_slice %12 {offsets = [0, 16], sizes = [8, 8], strides = [1, 1]} : vector<8x32xf32> to vector<8x8xf32>
    %cst_18 = arith.constant dense<0.000000e+00> : vector<8x8xf32>
    %57 = tpu.matmul %55, %56, %cst_18 {dimension_numbers = #tpu.dot_dimension_numbers<[1], [0], [0], [1], [0, 0, 1, 1], [], []>} : vector<8x8xf32>, vector<8x8xf32>, vector<8x8xf32> -> vector<8x8xf32>
    %58 = vector.extract_strided_slice %10 {offsets = [0, 24], sizes = [8, 8], strides = [1, 1]} : vector<8x32xf32> to vector<8x8xf32>
    %59 = vector.extract_strided_slice %11 {offsets = [0, 24], sizes = [8, 8], strides = [1, 1]} : vector<8x32xf32> to vector<8x8xf32>
    %cst_19 = arith.constant dense<0.000000e+00> : vector<8x8xf32>
    %60 = tpu.matmul %58, %59, %cst_19 {dimension_numbers = #tpu.dot_dimension_numbers<[1], [1], [0], [0], [0, 0, 1, 0], [], []>} : vector<8x8xf32>, vector<8x8xf32>, vector<8x8xf32> -> vector<8x8xf32>
    %cst_20 = arith.constant dense<0xFF800000> : vector<8xf32>
    %61 = vector.multi_reduction <maximumf>, %60, %cst_20 [1] : vector<8x8xf32> to vector<8xf32>
    %62 = vector.shape_cast %61 : vector<8xf32> to vector<8x1xf32>
    %63 = vector.broadcast %62 : vector<8x1xf32> to vector<8x8xf32>
    %64 = arith.subf %60, %63 : vector<8x8xf32>
    %65 = math.exp %64 : vector<8x8xf32>
    %cst_21 = arith.constant dense<0.000000e+00> : vector<8xf32>
    %66 = vector.multi_reduction <add>, %65, %cst_21 [1] : vector<8x8xf32> to vector<8xf32>
    %67 = vector.shape_cast %66 : vector<8xf32> to vector<8x1xf32>
    %68 = tpu.reciprocal %67 {approx = true} : vector<8x1xf32> -> vector<8x1xf32>
    %69 = vector.broadcast %68 : vector<8x1xf32> to vector<8x8xf32>
    %70 = arith.mulf %65, %69 : vector<8x8xf32>
    %71 = vector.extract_strided_slice %12 {offsets = [0, 24], sizes = [8, 8], strides = [1, 1]} : vector<8x32xf32> to vector<8x8xf32>
    %cst_22 = arith.constant dense<0.000000e+00> : vector<8x8xf32>
    %72 = tpu.matmul %70, %71, %cst_22 {dimension_numbers = #tpu.dot_dimension_numbers<[1], [0], [0], [1], [0, 0, 1, 1], [], []>} : vector<8x8xf32>, vector<8x8xf32>, vector<8x8xf32> -> vector<8x8xf32>
    %73 = tpu.concatenate %27, %42, %57, %72 in 1 : vector<8x8xf32>, vector<8x8xf32>, vector<8x8xf32>, vector<8x8xf32> -> vector<8x32xf32>
    %74 = vector.extract_strided_slice %7 {offsets = [8, 0], sizes = [8, 32], strides = [1, 1]} : vector<64x32xf32> to vector<8x32xf32>
    %75 = vector.extract_strided_slice %8 {offsets = [8, 0], sizes = [8, 32], strides = [1, 1]} : vector<64x32xf32> to vector<8x32xf32>
    %76 = vector.extract_strided_slice %9 {offsets = [8, 0], sizes = [8, 32], strides = [1, 1]} : vector<64x32xf32> to vector<8x32xf32>
    %77 = vector.extract_strided_slice %74 {offsets = [0, 0], sizes = [8, 8], strides = [1, 1]} : vector<8x32xf32> to vector<8x8xf32>
    %78 = vector.extract_strided_slice %75 {offsets = [0, 0], sizes = [8, 8], strides = [1, 1]} : vector<8x32xf32> to vector<8x8xf32>
    %cst_23 = arith.constant dense<0.000000e+00> : vector<8x8xf32>
    %79 = tpu.matmul %77, %78, %cst_23 {dimension_numbers = #tpu.dot_dimension_numbers<[1], [1], [0], [0], [0, 0, 1, 0], [], []>} : vector<8x8xf32>, vector<8x8xf32>, vector<8x8xf32> -> vector<8x8xf32>
    %cst_24 = arith.constant dense<0xFF800000> : vector<8xf32>
    %80 = vector.multi_reduction <maximumf>, %79, %cst_24 [1] : vector<8x8xf32> to vector<8xf32>
    %81 = vector.shape_cast %80 : vector<8xf32> to vector<8x1xf32>
    %82 = vector.broadcast %81 : vector<8x1xf32> to vector<8x8xf32>
    %83 = arith.subf %79, %82 : vector<8x8xf32>
    %84 = math.exp %83 : vector<8x8xf32>
    %cst_25 = arith.constant dense<0.000000e+00> : vector<8xf32>
    %85 = vector.multi_reduction <add>, %84, %cst_25 [1] : vector<8x8xf32> to vector<8xf32>
    %86 = vector.shape_cast %85 : vector<8xf32> to vector<8x1xf32>
    %87 = tpu.reciprocal %86 {approx = true} : vector<8x1xf32> -> vector<8x1xf32>
    %88 = vector.broadcast %87 : vector<8x1xf32> to vector<8x8xf32>
    %89 = arith.mulf %84, %88 : vector<8x8xf32>
    %90 = vector.extract_strided_slice %76 {offsets = [0, 0], sizes = [8, 8], strides = [1, 1]} : vector<8x32xf32> to vector<8x8xf32>
    %cst_26 = arith.constant dense<0.000000e+00> : vector<8x8xf32>
    %91 = tpu.matmul %89, %90, %cst_26 {dimension_numbers = #tpu.dot_dimension_numbers<[1], [0], [0], [1], [0, 0, 1, 1], [], []>} : vector<8x8xf32>, vector<8x8xf32>, vector<8x8xf32> -> vector<8x8xf32>
    %92 = vector.extract_strided_slice %74 {offsets = [0, 8], sizes = [8, 8], strides = [1, 1]} : vector<8x32xf32> to vector<8x8xf32>
    %93 = vector.extract_strided_slice %75 {offsets = [0, 8], sizes = [8, 8], strides = [1, 1]} : vector<8x32xf32> to vector<8x8xf32>
    %cst_27 = arith.constant dense<0.000000e+00> : vector<8x8xf32>
    %94 = tpu.matmul %92, %93, %cst_27 {dimension_numbers = #tpu.dot_dimension_numbers<[1], [1], [0], [0], [0, 0, 1, 0], [], []>} : vector<8x8xf32>, vector<8x8xf32>, vector<8x8xf32> -> vector<8x8xf32>
    %cst_28 = arith.constant dense<0xFF800000> : vector<8xf32>
    %95 = vector.multi_reduction <maximumf>, %94, %cst_28 [1] : vector<8x8xf32> to vector<8xf32>
    %96 = vector.shape_cast %95 : vector<8xf32> to vector<8x1xf32>
    %97 = vector.broadcast %96 : vector<8x1xf32> to vector<8x8xf32>
    %98 = arith.subf %94, %97 : vector<8x8xf32>
    %99 = math.exp %98 : vector<8x8xf32>
    %cst_29 = arith.constant dense<0.000000e+00> : vector<8xf32>
    %100 = vector.multi_reduction <add>, %99, %cst_29 [1] : vector<8x8xf32> to vector<8xf32>
    %101 = vector.shape_cast %100 : vector<8xf32> to vector<8x1xf32>
    %102 = tpu.reciprocal %101 {approx = true} : vector<8x1xf32> -> vector<8x1xf32>
    %103 = vector.broadcast %102 : vector<8x1xf32> to vector<8x8xf32>
    %104 = arith.mulf %99, %103 : vector<8x8xf32>
    %105 = vector.extract_strided_slice %76 {offsets = [0, 8], sizes = [8, 8], strides = [1, 1]} : vector<8x32xf32> to vector<8x8xf32>
    %cst_30 = arith.constant dense<0.000000e+00> : vector<8x8xf32>
    %106 = tpu.matmul %104, %105, %cst_30 {dimension_numbers = #tpu.dot_dimension_numbers<[1], [0], [0], [1], [0, 0, 1, 1], [], []>} : vector<8x8xf32>, vector<8x8xf32>, vector<8x8xf32> -> vector<8x8xf32>
    %107 = vector.extract_strided_slice %74 {offsets = [0, 16], sizes = [8, 8], strides = [1, 1]} : vector<8x32xf32> to vector<8x8xf32>
    %108 = vector.extract_strided_slice %75 {offsets = [0, 16], sizes = [8, 8], strides = [1, 1]} : vector<8x32xf32> to vector<8x8xf32>
    %cst_31 = arith.constant dense<0.000000e+00> : vector<8x8xf32>
    %109 = tpu.matmul %107, %108, %cst_31 {dimension_numbers = #tpu.dot_dimension_numbers<[1], [1], [0], [0], [0, 0, 1, 0], [], []>} : vector<8x8xf32>, vector<8x8xf32>, vector<8x8xf32> -> vector<8x8xf32>
    %cst_32 = arith.constant dense<0xFF800000> : vector<8xf32>
    %110 = vector.multi_reduction <maximumf>, %109, %cst_32 [1] : vector<8x8xf32> to vector<8xf32>
    %111 = vector.shape_cast %110 : vector<8xf32> to vector<8x1xf32>
    %112 = vector.broadcast %111 : vector<8x1xf32> to vector<8x8xf32>
    %113 = arith.subf %109, %112 : vector<8x8xf32>
    %114 = math.exp %113 : vector<8x8xf32>
    %cst_33 = arith.constant dense<0.000000e+00> : vector<8xf32>
    %115 = vector.multi_reduction <add>, %114, %cst_33 [1] : vector<8x8xf32> to vector<8xf32>
    %116 = vector.shape_cast %115 : vector<8xf32> to vector<8x1xf32>
    %117 = tpu.reciprocal %116 {approx = true} : vector<8x1xf32> -> vector<8x1xf32>
    %118 = vector.broadcast %117 : vector<8x1xf32> to vector<8x8xf32>
    %119 = arith.mulf %114, %118 : vector<8x8xf32>
    %120 = vector.extract_strided_slice %76 {offsets = [0, 16], sizes = [8, 8], strides = [1, 1]} : vector<8x32xf32> to vector<8x8xf32>
    %cst_34 = arith.constant dense<0.000000e+00> : vector<8x8xf32>
    %121 = tpu.matmul %119, %120, %cst_34 {dimension_numbers = #tpu.dot_dimension_numbers<[1], [0], [0], [1], [0, 0, 1, 1], [], []>} : vector<8x8xf32>, vector<8x8xf32>, vector<8x8xf32> -> vector<8x8xf32>
    %122 = vector.extract_strided_slice %74 {offsets = [0, 24], sizes = [8, 8], strides = [1, 1]} : vector<8x32xf32> to vector<8x8xf32>
    %123 = vector.extract_strided_slice %75 {offsets = [0, 24], sizes = [8, 8], strides = [1, 1]} : vector<8x32xf32> to vector<8x8xf32>
    %cst_35 = arith.constant dense<0.000000e+00> : vector<8x8xf32>
    %124 = tpu.matmul %122, %123, %cst_35 {dimension_numbers = #tpu.dot_dimension_numbers<[1], [1], [0], [0], [0, 0, 1, 0], [], []>} : vector<8x8xf32>, vector<8x8xf32>, vector<8x8xf32> -> vector<8x8xf32>
    %cst_36 = arith.constant dense<0xFF800000> : vector<8xf32>
    %125 = vector.multi_reduction <maximumf>, %124, %cst_36 [1] : vector<8x8xf32> to vector<8xf32>
    %126 = vector.shape_cast %125 : vector<8xf32> to vector<8x1xf32>
    %127 = vector.broadcast %126 : vector<8x1xf32> to vector<8x8xf32>
    %128 = arith.subf %124, %127 : vector<8x8xf32>
    %129 = math.exp %128 : vector<8x8xf32>
    %cst_37 = arith.constant dense<0.000000e+00> : vector<8xf32>
    %130 = vector.multi_reduction <add>, %129, %cst_37 [1] : vector<8x8xf32> to vector<8xf32>
    %131 = vector.shape_cast %130 : vector<8xf32> to vector<8x1xf32>
    %132 = tpu.reciprocal %131 {approx = true} : vector<8x1xf32> -> vector<8x1xf32>
    %133 = vector.broadcast %132 : vector<8x1xf32> to vector<8x8xf32>
    %134 = arith.mulf %129, %133 : vector<8x8xf32>
    %135 = vector.extract_strided_slice %76 {offsets = [0, 24], sizes = [8, 8], strides = [1, 1]} : vector<8x32xf32> to vector<8x8xf32>
    %cst_38 = arith.constant dense<0.000000e+00> : vector<8x8xf32>
    %136 = tpu.matmul %134, %135, %cst_38 {dimension_numbers = #tpu.dot_dimension_numbers<[1], [0], [0], [1], [0, 0, 1, 1], [], []>} : vector<8x8xf32>, vector<8x8xf32>, vector<8x8xf32> -> vector<8x8xf32>
    %137 = tpu.concatenate %91, %106, %121, %136 in 1 : vector<8x8xf32>, vector<8x8xf32>, vector<8x8xf32>, vector<8x8xf32> -> vector<8x32xf32>
    %138 = vector.extract_strided_slice %7 {offsets = [16, 0], sizes = [8, 32], strides = [1, 1]} : vector<64x32xf32> to vector<8x32xf32>
    %139 = vector.extract_strided_slice %8 {offsets = [16, 0], sizes = [8, 32], strides = [1, 1]} : vector<64x32xf32> to vector<8x32xf32>
    %140 = vector.extract_strided_slice %9 {offsets = [16, 0], sizes = [8, 32], strides = [1, 1]} : vector<64x32xf32> to vector<8x32xf32>
    %141 = vector.extract_strided_slice %138 {offsets = [0, 0], sizes = [8, 8], strides = [1, 1]} : vector<8x32xf32> to vector<8x8xf32>
    %142 = vector.extract_strided_slice %139 {offsets = [0, 0], sizes = [8, 8], strides = [1, 1]} : vector<8x32xf32> to vector<8x8xf32>
    %cst_39 = arith.constant dense<0.000000e+00> : vector<8x8xf32>
    %143 = tpu.matmul %141, %142, %cst_39 {dimension_numbers = #tpu.dot_dimension_numbers<[1], [1], [0], [0], [0, 0, 1, 0], [], []>} : vector<8x8xf32>, vector<8x8xf32>, vector<8x8xf32> -> vector<8x8xf32>
    %cst_40 = arith.constant dense<0xFF800000> : vector<8xf32>
    %144 = vector.multi_reduction <maximumf>, %143, %cst_40 [1] : vector<8x8xf32> to vector<8xf32>
    %145 = vector.shape_cast %144 : vector<8xf32> to vector<8x1xf32>
    %146 = vector.broadcast %145 : vector<8x1xf32> to vector<8x8xf32>
    %147 = arith.subf %143, %146 : vector<8x8xf32>
    %148 = math.exp %147 : vector<8x8xf32>
    %cst_41 = arith.constant dense<0.000000e+00> : vector<8xf32>
    %149 = vector.multi_reduction <add>, %148, %cst_41 [1] : vector<8x8xf32> to vector<8xf32>
    %150 = vector.shape_cast %149 : vector<8xf32> to vector<8x1xf32>
    %151 = tpu.reciprocal %150 {approx = true} : vector<8x1xf32> -> vector<8x1xf32>
    %152 = vector.broadcast %151 : vector<8x1xf32> to vector<8x8xf32>
    %153 = arith.mulf %148, %152 : vector<8x8xf32>
    %154 = vector.extract_strided_slice %140 {offsets = [0, 0], sizes = [8, 8], strides = [1, 1]} : vector<8x32xf32> to vector<8x8xf32>
    %cst_42 = arith.constant dense<0.000000e+00> : vector<8x8xf32>
    %155 = tpu.matmul %153, %154, %cst_42 {dimension_numbers = #tpu.dot_dimension_numbers<[1], [0], [0], [1], [0, 0, 1, 1], [], []>} : vector<8x8xf32>, vector<8x8xf32>, vector<8x8xf32> -> vector<8x8xf32>
    %156 = vector.extract_strided_slice %138 {offsets = [0, 8], sizes = [8, 8], strides = [1, 1]} : vector<8x32xf32> to vector<8x8xf32>
    %157 = vector.extract_strided_slice %139 {offsets = [0, 8], sizes = [8, 8], strides = [1, 1]} : vector<8x32xf32> to vector<8x8xf32>
    %cst_43 = arith.constant dense<0.000000e+00> : vector<8x8xf32>
    %158 = tpu.matmul %156, %157, %cst_43 {dimension_numbers = #tpu.dot_dimension_numbers<[1], [1], [0], [0], [0, 0, 1, 0], [], []>} : vector<8x8xf32>, vector<8x8xf32>, vector<8x8xf32> -> vector<8x8xf32>
    %cst_44 = arith.constant dense<0xFF800000> : vector<8xf32>
    %159 = vector.multi_reduction <maximumf>, %158, %cst_44 [1] : vector<8x8xf32> to vector<8xf32>
    %160 = vector.shape_cast %159 : vector<8xf32> to vector<8x1xf32>
    %161 = vector.broadcast %160 : vector<8x1xf32> to vector<8x8xf32>
    %162 = arith.subf %158, %161 : vector<8x8xf32>
    %163 = math.exp %162 : vector<8x8xf32>
    %cst_45 = arith.constant dense<0.000000e+00> : vector<8xf32>
    %164 = vector.multi_reduction <add>, %163, %cst_45 [1] : vector<8x8xf32> to vector<8xf32>
    %165 = vector.shape_cast %164 : vector<8xf32> to vector<8x1xf32>
    %166 = tpu.reciprocal %165 {approx = true} : vector<8x1xf32> -> vector<8x1xf32>
    %167 = vector.broadcast %166 : vector<8x1xf32> to vector<8x8xf32>
    %168 = arith.mulf %163, %167 : vector<8x8xf32>
    %169 = vector.extract_strided_slice %140 {offsets = [0, 8], sizes = [8, 8], strides = [1, 1]} : vector<8x32xf32> to vector<8x8xf32>
    %cst_46 = arith.constant dense<0.000000e+00> : vector<8x8xf32>
    %170 = tpu.matmul %168, %169, %cst_46 {dimension_numbers = #tpu.dot_dimension_numbers<[1], [0], [0], [1], [0, 0, 1, 1], [], []>} : vector<8x8xf32>, vector<8x8xf32>, vector<8x8xf32> -> vector<8x8xf32>
    %171 = vector.extract_strided_slice %138 {offsets = [0, 16], sizes = [8, 8], strides = [1, 1]} : vector<8x32xf32> to vector<8x8xf32>
    %172 = vector.extract_strided_slice %139 {offsets = [0, 16], sizes = [8, 8], strides = [1, 1]} : vector<8x32xf32> to vector<8x8xf32>
    %cst_47 = arith.constant dense<0.000000e+00> : vector<8x8xf32>
    %173 = tpu.matmul %171, %172, %cst_47 {dimension_numbers = #tpu.dot_dimension_numbers<[1], [1], [0], [0], [0, 0, 1, 0], [], []>} : vector<8x8xf32>, vector<8x8xf32>, vector<8x8xf32> -> vector<8x8xf32>
    %cst_48 = arith.constant dense<0xFF800000> : vector<8xf32>
    %174 = vector.multi_reduction <maximumf>, %173, %cst_48 [1] : vector<8x8xf32> to vector<8xf32>
    %175 = vector.shape_cast %174 : vector<8xf32> to vector<8x1xf32>
    %176 = vector.broadcast %175 : vector<8x1xf32> to vector<8x8xf32>
    %177 = arith.subf %173, %176 : vector<8x8xf32>
    %178 = math.exp %177 : vector<8x8xf32>
    %cst_49 = arith.constant dense<0.000000e+00> : vector<8xf32>
    %179 = vector.multi_reduction <add>, %178, %cst_49 [1] : vector<8x8xf32> to vector<8xf32>
    %180 = vector.shape_cast %179 : vector<8xf32> to vector<8x1xf32>
    %181 = tpu.reciprocal %180 {approx = true} : vector<8x1xf32> -> vector<8x1xf32>
    %182 = vector.broadcast %181 : vector<8x1xf32> to vector<8x8xf32>
    %183 = arith.mulf %178, %182 : vector<8x8xf32>
    %184 = vector.extract_strided_slice %140 {offsets = [0, 16], sizes = [8, 8], strides = [1, 1]} : vector<8x32xf32> to vector<8x8xf32>
    %cst_50 = arith.constant dense<0.000000e+00> : vector<8x8xf32>
    %185 = tpu.matmul %183, %184, %cst_50 {dimension_numbers = #tpu.dot_dimension_numbers<[1], [0], [0], [1], [0, 0, 1, 1], [], []>} : vector<8x8xf32>, vector<8x8xf32>, vector<8x8xf32> -> vector<8x8xf32>
    %186 = vector.extract_strided_slice %138 {offsets = [0, 24], sizes = [8, 8], strides = [1, 1]} : vector<8x32xf32> to vector<8x8xf32>
    %187 = vector.extract_strided_slice %139 {offsets = [0, 24], sizes = [8, 8], strides = [1, 1]} : vector<8x32xf32> to vector<8x8xf32>
    %cst_51 = arith.constant dense<0.000000e+00> : vector<8x8xf32>
    %188 = tpu.matmul %186, %187, %cst_51 {dimension_numbers = #tpu.dot_dimension_numbers<[1], [1], [0], [0], [0, 0, 1, 0], [], []>} : vector<8x8xf32>, vector<8x8xf32>, vector<8x8xf32> -> vector<8x8xf32>
    %cst_52 = arith.constant dense<0xFF800000> : vector<8xf32>
    %189 = vector.multi_reduction <maximumf>, %188, %cst_52 [1] : vector<8x8xf32> to vector<8xf32>
    %190 = vector.shape_cast %189 : vector<8xf32> to vector<8x1xf32>
    %191 = vector.broadcast %190 : vector<8x1xf32> to vector<8x8xf32>
    %192 = arith.subf %188, %191 : vector<8x8xf32>
    %193 = math.exp %192 : vector<8x8xf32>
    %cst_53 = arith.constant dense<0.000000e+00> : vector<8xf32>
    %194 = vector.multi_reduction <add>, %193, %cst_53 [1] : vector<8x8xf32> to vector<8xf32>
    %195 = vector.shape_cast %194 : vector<8xf32> to vector<8x1xf32>
    %196 = tpu.reciprocal %195 {approx = true} : vector<8x1xf32> -> vector<8x1xf32>
    %197 = vector.broadcast %196 : vector<8x1xf32> to vector<8x8xf32>
    %198 = arith.mulf %193, %197 : vector<8x8xf32>
    %199 = vector.extract_strided_slice %140 {offsets = [0, 24], sizes = [8, 8], strides = [1, 1]} : vector<8x32xf32> to vector<8x8xf32>
    %cst_54 = arith.constant dense<0.000000e+00> : vector<8x8xf32>
    %200 = tpu.matmul %198, %199, %cst_54 {dimension_numbers = #tpu.dot_dimension_numbers<[1], [0], [0], [1], [0, 0, 1, 1], [], []>} : vector<8x8xf32>, vector<8x8xf32>, vector<8x8xf32> -> vector<8x8xf32>
    %201 = tpu.concatenate %155, %170, %185, %200 in 1 : vector<8x8xf32>, vector<8x8xf32>, vector<8x8xf32>, vector<8x8xf32> -> vector<8x32xf32>
    %202 = vector.extract_strided_slice %7 {offsets = [24, 0], sizes = [8, 32], strides = [1, 1]} : vector<64x32xf32> to vector<8x32xf32>
    %203 = vector.extract_strided_slice %8 {offsets = [24, 0], sizes = [8, 32], strides = [1, 1]} : vector<64x32xf32> to vector<8x32xf32>
    %204 = vector.extract_strided_slice %9 {offsets = [24, 0], sizes = [8, 32], strides = [1, 1]} : vector<64x32xf32> to vector<8x32xf32>
    %205 = vector.extract_strided_slice %202 {offsets = [0, 0], sizes = [8, 8], strides = [1, 1]} : vector<8x32xf32> to vector<8x8xf32>
    %206 = vector.extract_strided_slice %203 {offsets = [0, 0], sizes = [8, 8], strides = [1, 1]} : vector<8x32xf32> to vector<8x8xf32>
    %cst_55 = arith.constant dense<0.000000e+00> : vector<8x8xf32>
    %207 = tpu.matmul %205, %206, %cst_55 {dimension_numbers = #tpu.dot_dimension_numbers<[1], [1], [0], [0], [0, 0, 1, 0], [], []>} : vector<8x8xf32>, vector<8x8xf32>, vector<8x8xf32> -> vector<8x8xf32>
    %cst_56 = arith.constant dense<0xFF800000> : vector<8xf32>
    %208 = vector.multi_reduction <maximumf>, %207, %cst_56 [1] : vector<8x8xf32> to vector<8xf32>
    %209 = vector.shape_cast %208 : vector<8xf32> to vector<8x1xf32>
    %210 = vector.broadcast %209 : vector<8x1xf32> to vector<8x8xf32>
    %211 = arith.subf %207, %210 : vector<8x8xf32>
    %212 = math.exp %211 : vector<8x8xf32>
    %cst_57 = arith.constant dense<0.000000e+00> : vector<8xf32>
    %213 = vector.multi_reduction <add>, %212, %cst_57 [1] : vector<8x8xf32> to vector<8xf32>
    %214 = vector.shape_cast %213 : vector<8xf32> to vector<8x1xf32>
    %215 = tpu.reciprocal %214 {approx = true} : vector<8x1xf32> -> vector<8x1xf32>
    %216 = vector.broadcast %215 : vector<8x1xf32> to vector<8x8xf32>
    %217 = arith.mulf %212, %216 : vector<8x8xf32>
    %218 = vector.extract_strided_slice %204 {offsets = [0, 0], sizes = [8, 8], strides = [1, 1]} : vector<8x32xf32> to vector<8x8xf32>
    %cst_58 = arith.constant dense<0.000000e+00> : vector<8x8xf32>
    %219 = tpu.matmul %217, %218, %cst_58 {dimension_numbers = #tpu.dot_dimension_numbers<[1], [0], [0], [1], [0, 0, 1, 1], [], []>} : vector<8x8xf32>, vector<8x8xf32>, vector<8x8xf32> -> vector<8x8xf32>
    %220 = vector.extract_strided_slice %202 {offsets = [0, 8], sizes = [8, 8], strides = [1, 1]} : vector<8x32xf32> to vector<8x8xf32>
    %221 = vector.extract_strided_slice %203 {offsets = [0, 8], sizes = [8, 8], strides = [1, 1]} : vector<8x32xf32> to vector<8x8xf32>
    %cst_59 = arith.constant dense<0.000000e+00> : vector<8x8xf32>
    %222 = tpu.matmul %220, %221, %cst_59 {dimension_numbers = #tpu.dot_dimension_numbers<[1], [1], [0], [0], [0, 0, 1, 0], [], []>} : vector<8x8xf32>, vector<8x8xf32>, vector<8x8xf32> -> vector<8x8xf32>
    %cst_60 = arith.constant dense<0xFF800000> : vector<8xf32>
    %223 = vector.multi_reduction <maximumf>, %222, %cst_60 [1] : vector<8x8xf32> to vector<8xf32>
    %224 = vector.shape_cast %223 : vector<8xf32> to vector<8x1xf32>
    %225 = vector.broadcast %224 : vector<8x1xf32> to vector<8x8xf32>
    %226 = arith.subf %222, %225 : vector<8x8xf32>
    %227 = math.exp %226 : vector<8x8xf32>
    %cst_61 = arith.constant dense<0.000000e+00> : vector<8xf32>
    %228 = vector.multi_reduction <add>, %227, %cst_61 [1] : vector<8x8xf32> to vector<8xf32>
    %229 = vector.shape_cast %228 : vector<8xf32> to vector<8x1xf32>
    %230 = tpu.reciprocal %229 {approx = true} : vector<8x1xf32> -> vector<8x1xf32>
    %231 = vector.broadcast %230 : vector<8x1xf32> to vector<8x8xf32>
    %232 = arith.mulf %227, %231 : vector<8x8xf32>
    %233 = vector.extract_strided_slice %204 {offsets = [0, 8], sizes = [8, 8], strides = [1, 1]} : vector<8x32xf32> to vector<8x8xf32>
    %cst_62 = arith.constant dense<0.000000e+00> : vector<8x8xf32>
    %234 = tpu.matmul %232, %233, %cst_62 {dimension_numbers = #tpu.dot_dimension_numbers<[1], [0], [0], [1], [0, 0, 1, 1], [], []>} : vector<8x8xf32>, vector<8x8xf32>, vector<8x8xf32> -> vector<8x8xf32>
    %235 = vector.extract_strided_slice %202 {offsets = [0, 16], sizes = [8, 8], strides = [1, 1]} : vector<8x32xf32> to vector<8x8xf32>
    %236 = vector.extract_strided_slice %203 {offsets = [0, 16], sizes = [8, 8], strides = [1, 1]} : vector<8x32xf32> to vector<8x8xf32>
    %cst_63 = arith.constant dense<0.000000e+00> : vector<8x8xf32>
    %237 = tpu.matmul %235, %236, %cst_63 {dimension_numbers = #tpu.dot_dimension_numbers<[1], [1], [0], [0], [0, 0, 1, 0], [], []>} : vector<8x8xf32>, vector<8x8xf32>, vector<8x8xf32> -> vector<8x8xf32>
    %cst_64 = arith.constant dense<0xFF800000> : vector<8xf32>
    %238 = vector.multi_reduction <maximumf>, %237, %cst_64 [1] : vector<8x8xf32> to vector<8xf32>
    %239 = vector.shape_cast %238 : vector<8xf32> to vector<8x1xf32>
    %240 = vector.broadcast %239 : vector<8x1xf32> to vector<8x8xf32>
    %241 = arith.subf %237, %240 : vector<8x8xf32>
    %242 = math.exp %241 : vector<8x8xf32>
    %cst_65 = arith.constant dense<0.000000e+00> : vector<8xf32>
    %243 = vector.multi_reduction <add>, %242, %cst_65 [1] : vector<8x8xf32> to vector<8xf32>
    %244 = vector.shape_cast %243 : vector<8xf32> to vector<8x1xf32>
    %245 = tpu.reciprocal %244 {approx = true} : vector<8x1xf32> -> vector<8x1xf32>
    %246 = vector.broadcast %245 : vector<8x1xf32> to vector<8x8xf32>
    %247 = arith.mulf %242, %246 : vector<8x8xf32>
    %248 = vector.extract_strided_slice %204 {offsets = [0, 16], sizes = [8, 8], strides = [1, 1]} : vector<8x32xf32> to vector<8x8xf32>
    %cst_66 = arith.constant dense<0.000000e+00> : vector<8x8xf32>
    %249 = tpu.matmul %247, %248, %cst_66 {dimension_numbers = #tpu.dot_dimension_numbers<[1], [0], [0], [1], [0, 0, 1, 1], [], []>} : vector<8x8xf32>, vector<8x8xf32>, vector<8x8xf32> -> vector<8x8xf32>
    %250 = vector.extract_strided_slice %202 {offsets = [0, 24], sizes = [8, 8], strides = [1, 1]} : vector<8x32xf32> to vector<8x8xf32>
    %251 = vector.extract_strided_slice %203 {offsets = [0, 24], sizes = [8, 8], strides = [1, 1]} : vector<8x32xf32> to vector<8x8xf32>
    %cst_67 = arith.constant dense<0.000000e+00> : vector<8x8xf32>
    %252 = tpu.matmul %250, %251, %cst_67 {dimension_numbers = #tpu.dot_dimension_numbers<[1], [1], [0], [0], [0, 0, 1, 0], [], []>} : vector<8x8xf32>, vector<8x8xf32>, vector<8x8xf32> -> vector<8x8xf32>
    %cst_68 = arith.constant dense<0xFF800000> : vector<8xf32>
    %253 = vector.multi_reduction <maximumf>, %252, %cst_68 [1] : vector<8x8xf32> to vector<8xf32>
    %254 = vector.shape_cast %253 : vector<8xf32> to vector<8x1xf32>
    %255 = vector.broadcast %254 : vector<8x1xf32> to vector<8x8xf32>
    %256 = arith.subf %252, %255 : vector<8x8xf32>
    %257 = math.exp %256 : vector<8x8xf32>
    %cst_69 = arith.constant dense<0.000000e+00> : vector<8xf32>
    %258 = vector.multi_reduction <add>, %257, %cst_69 [1] : vector<8x8xf32> to vector<8xf32>
    %259 = vector.shape_cast %258 : vector<8xf32> to vector<8x1xf32>
    %260 = tpu.reciprocal %259 {approx = true} : vector<8x1xf32> -> vector<8x1xf32>
    %261 = vector.broadcast %260 : vector<8x1xf32> to vector<8x8xf32>
    %262 = arith.mulf %257, %261 : vector<8x8xf32>
    %263 = vector.extract_strided_slice %204 {offsets = [0, 24], sizes = [8, 8], strides = [1, 1]} : vector<8x32xf32> to vector<8x8xf32>
    %cst_70 = arith.constant dense<0.000000e+00> : vector<8x8xf32>
    %264 = tpu.matmul %262, %263, %cst_70 {dimension_numbers = #tpu.dot_dimension_numbers<[1], [0], [0], [1], [0, 0, 1, 1], [], []>} : vector<8x8xf32>, vector<8x8xf32>, vector<8x8xf32> -> vector<8x8xf32>
    %265 = tpu.concatenate %219, %234, %249, %264 in 1 : vector<8x8xf32>, vector<8x8xf32>, vector<8x8xf32>, vector<8x8xf32> -> vector<8x32xf32>
    %266 = vector.extract_strided_slice %7 {offsets = [32, 0], sizes = [8, 32], strides = [1, 1]} : vector<64x32xf32> to vector<8x32xf32>
    %267 = vector.extract_strided_slice %8 {offsets = [32, 0], sizes = [8, 32], strides = [1, 1]} : vector<64x32xf32> to vector<8x32xf32>
    %268 = vector.extract_strided_slice %9 {offsets = [32, 0], sizes = [8, 32], strides = [1, 1]} : vector<64x32xf32> to vector<8x32xf32>
    %269 = vector.extract_strided_slice %266 {offsets = [0, 0], sizes = [8, 8], strides = [1, 1]} : vector<8x32xf32> to vector<8x8xf32>
    %270 = vector.extract_strided_slice %267 {offsets = [0, 0], sizes = [8, 8], strides = [1, 1]} : vector<8x32xf32> to vector<8x8xf32>
    %cst_71 = arith.constant dense<0.000000e+00> : vector<8x8xf32>
    %271 = tpu.matmul %269, %270, %cst_71 {dimension_numbers = #tpu.dot_dimension_numbers<[1], [1], [0], [0], [0, 0, 1, 0], [], []>} : vector<8x8xf32>, vector<8x8xf32>, vector<8x8xf32> -> vector<8x8xf32>
    %cst_72 = arith.constant dense<0xFF800000> : vector<8xf32>
    %272 = vector.multi_reduction <maximumf>, %271, %cst_72 [1] : vector<8x8xf32> to vector<8xf32>
    %273 = vector.shape_cast %272 : vector<8xf32> to vector<8x1xf32>
    %274 = vector.broadcast %273 : vector<8x1xf32> to vector<8x8xf32>
    %275 = arith.subf %271, %274 : vector<8x8xf32>
    %276 = math.exp %275 : vector<8x8xf32>
    %cst_73 = arith.constant dense<0.000000e+00> : vector<8xf32>
    %277 = vector.multi_reduction <add>, %276, %cst_73 [1] : vector<8x8xf32> to vector<8xf32>
    %278 = vector.shape_cast %277 : vector<8xf32> to vector<8x1xf32>
    %279 = tpu.reciprocal %278 {approx = true} : vector<8x1xf32> -> vector<8x1xf32>
    %280 = vector.broadcast %279 : vector<8x1xf32> to vector<8x8xf32>
    %281 = arith.mulf %276, %280 : vector<8x8xf32>
    %282 = vector.extract_strided_slice %268 {offsets = [0, 0], sizes = [8, 8], strides = [1, 1]} : vector<8x32xf32> to vector<8x8xf32>
    %cst_74 = arith.constant dense<0.000000e+00> : vector<8x8xf32>
    %283 = tpu.matmul %281, %282, %cst_74 {dimension_numbers = #tpu.dot_dimension_numbers<[1], [0], [0], [1], [0, 0, 1, 1], [], []>} : vector<8x8xf32>, vector<8x8xf32>, vector<8x8xf32> -> vector<8x8xf32>
    %284 = vector.extract_strided_slice %266 {offsets = [0, 8], sizes = [8, 8], strides = [1, 1]} : vector<8x32xf32> to vector<8x8xf32>
    %285 = vector.extract_strided_slice %267 {offsets = [0, 8], sizes = [8, 8], strides = [1, 1]} : vector<8x32xf32> to vector<8x8xf32>
    %cst_75 = arith.constant dense<0.000000e+00> : vector<8x8xf32>
    %286 = tpu.matmul %284, %285, %cst_75 {dimension_numbers = #tpu.dot_dimension_numbers<[1], [1], [0], [0], [0, 0, 1, 0], [], []>} : vector<8x8xf32>, vector<8x8xf32>, vector<8x8xf32> -> vector<8x8xf32>
    %cst_76 = arith.constant dense<0xFF800000> : vector<8xf32>
    %287 = vector.multi_reduction <maximumf>, %286, %cst_76 [1] : vector<8x8xf32> to vector<8xf32>
    %288 = vector.shape_cast %287 : vector<8xf32> to vector<8x1xf32>
    %289 = vector.broadcast %288 : vector<8x1xf32> to vector<8x8xf32>
    %290 = arith.subf %286, %289 : vector<8x8xf32>
    %291 = math.exp %290 : vector<8x8xf32>
    %cst_77 = arith.constant dense<0.000000e+00> : vector<8xf32>
    %292 = vector.multi_reduction <add>, %291, %cst_77 [1] : vector<8x8xf32> to vector<8xf32>
    %293 = vector.shape_cast %292 : vector<8xf32> to vector<8x1xf32>
    %294 = tpu.reciprocal %293 {approx = true} : vector<8x1xf32> -> vector<8x1xf32>
    %295 = vector.broadcast %294 : vector<8x1xf32> to vector<8x8xf32>
    %296 = arith.mulf %291, %295 : vector<8x8xf32>
    %297 = vector.extract_strided_slice %268 {offsets = [0, 8], sizes = [8, 8], strides = [1, 1]} : vector<8x32xf32> to vector<8x8xf32>
    %cst_78 = arith.constant dense<0.000000e+00> : vector<8x8xf32>
    %298 = tpu.matmul %296, %297, %cst_78 {dimension_numbers = #tpu.dot_dimension_numbers<[1], [0], [0], [1], [0, 0, 1, 1], [], []>} : vector<8x8xf32>, vector<8x8xf32>, vector<8x8xf32> -> vector<8x8xf32>
    %299 = vector.extract_strided_slice %266 {offsets = [0, 16], sizes = [8, 8], strides = [1, 1]} : vector<8x32xf32> to vector<8x8xf32>
    %300 = vector.extract_strided_slice %267 {offsets = [0, 16], sizes = [8, 8], strides = [1, 1]} : vector<8x32xf32> to vector<8x8xf32>
    %cst_79 = arith.constant dense<0.000000e+00> : vector<8x8xf32>
    %301 = tpu.matmul %299, %300, %cst_79 {dimension_numbers = #tpu.dot_dimension_numbers<[1], [1], [0], [0], [0, 0, 1, 0], [], []>} : vector<8x8xf32>, vector<8x8xf32>, vector<8x8xf32> -> vector<8x8xf32>
    %cst_80 = arith.constant dense<0xFF800000> : vector<8xf32>
    %302 = vector.multi_reduction <maximumf>, %301, %cst_80 [1] : vector<8x8xf32> to vector<8xf32>
    %303 = vector.shape_cast %302 : vector<8xf32> to vector<8x1xf32>
    %304 = vector.broadcast %303 : vector<8x1xf32> to vector<8x8xf32>
    %305 = arith.subf %301, %304 : vector<8x8xf32>
    %306 = math.exp %305 : vector<8x8xf32>
    %cst_81 = arith.constant dense<0.000000e+00> : vector<8xf32>
    %307 = vector.multi_reduction <add>, %306, %cst_81 [1] : vector<8x8xf32> to vector<8xf32>
    %308 = vector.shape_cast %307 : vector<8xf32> to vector<8x1xf32>
    %309 = tpu.reciprocal %308 {approx = true} : vector<8x1xf32> -> vector<8x1xf32>
    %310 = vector.broadcast %309 : vector<8x1xf32> to vector<8x8xf32>
    %311 = arith.mulf %306, %310 : vector<8x8xf32>
    %312 = vector.extract_strided_slice %268 {offsets = [0, 16], sizes = [8, 8], strides = [1, 1]} : vector<8x32xf32> to vector<8x8xf32>
    %cst_82 = arith.constant dense<0.000000e+00> : vector<8x8xf32>
    %313 = tpu.matmul %311, %312, %cst_82 {dimension_numbers = #tpu.dot_dimension_numbers<[1], [0], [0], [1], [0, 0, 1, 1], [], []>} : vector<8x8xf32>, vector<8x8xf32>, vector<8x8xf32> -> vector<8x8xf32>
    %314 = vector.extract_strided_slice %266 {offsets = [0, 24], sizes = [8, 8], strides = [1, 1]} : vector<8x32xf32> to vector<8x8xf32>
    %315 = vector.extract_strided_slice %267 {offsets = [0, 24], sizes = [8, 8], strides = [1, 1]} : vector<8x32xf32> to vector<8x8xf32>
    %cst_83 = arith.constant dense<0.000000e+00> : vector<8x8xf32>
    %316 = tpu.matmul %314, %315, %cst_83 {dimension_numbers = #tpu.dot_dimension_numbers<[1], [1], [0], [0], [0, 0, 1, 0], [], []>} : vector<8x8xf32>, vector<8x8xf32>, vector<8x8xf32> -> vector<8x8xf32>
    %cst_84 = arith.constant dense<0xFF800000> : vector<8xf32>
    %317 = vector.multi_reduction <maximumf>, %316, %cst_84 [1] : vector<8x8xf32> to vector<8xf32>
    %318 = vector.shape_cast %317 : vector<8xf32> to vector<8x1xf32>
    %319 = vector.broadcast %318 : vector<8x1xf32> to vector<8x8xf32>
    %320 = arith.subf %316, %319 : vector<8x8xf32>
    %321 = math.exp %320 : vector<8x8xf32>
    %cst_85 = arith.constant dense<0.000000e+00> : vector<8xf32>
    %322 = vector.multi_reduction <add>, %321, %cst_85 [1] : vector<8x8xf32> to vector<8xf32>
    %323 = vector.shape_cast %322 : vector<8xf32> to vector<8x1xf32>
    %324 = tpu.reciprocal %323 {approx = true} : vector<8x1xf32> -> vector<8x1xf32>
    %325 = vector.broadcast %324 : vector<8x1xf32> to vector<8x8xf32>
    %326 = arith.mulf %321, %325 : vector<8x8xf32>
    %327 = vector.extract_strided_slice %268 {offsets = [0, 24], sizes = [8, 8], strides = [1, 1]} : vector<8x32xf32> to vector<8x8xf32>
    %cst_86 = arith.constant dense<0.000000e+00> : vector<8x8xf32>
    %328 = tpu.matmul %326, %327, %cst_86 {dimension_numbers = #tpu.dot_dimension_numbers<[1], [0], [0], [1], [0, 0, 1, 1], [], []>} : vector<8x8xf32>, vector<8x8xf32>, vector<8x8xf32> -> vector<8x8xf32>
    %329 = tpu.concatenate %283, %298, %313, %328 in 1 : vector<8x8xf32>, vector<8x8xf32>, vector<8x8xf32>, vector<8x8xf32> -> vector<8x32xf32>
    %330 = vector.extract_strided_slice %7 {offsets = [40, 0], sizes = [8, 32], strides = [1, 1]} : vector<64x32xf32> to vector<8x32xf32>
    %331 = vector.extract_strided_slice %8 {offsets = [40, 0], sizes = [8, 32], strides = [1, 1]} : vector<64x32xf32> to vector<8x32xf32>
    %332 = vector.extract_strided_slice %9 {offsets = [40, 0], sizes = [8, 32], strides = [1, 1]} : vector<64x32xf32> to vector<8x32xf32>
    %333 = vector.extract_strided_slice %330 {offsets = [0, 0], sizes = [8, 8], strides = [1, 1]} : vector<8x32xf32> to vector<8x8xf32>
    %334 = vector.extract_strided_slice %331 {offsets = [0, 0], sizes = [8, 8], strides = [1, 1]} : vector<8x32xf32> to vector<8x8xf32>
    %cst_87 = arith.constant dense<0.000000e+00> : vector<8x8xf32>
    %335 = tpu.matmul %333, %334, %cst_87 {dimension_numbers = #tpu.dot_dimension_numbers<[1], [1], [0], [0], [0, 0, 1, 0], [], []>} : vector<8x8xf32>, vector<8x8xf32>, vector<8x8xf32> -> vector<8x8xf32>
    %cst_88 = arith.constant dense<0xFF800000> : vector<8xf32>
    %336 = vector.multi_reduction <maximumf>, %335, %cst_88 [1] : vector<8x8xf32> to vector<8xf32>
    %337 = vector.shape_cast %336 : vector<8xf32> to vector<8x1xf32>
    %338 = vector.broadcast %337 : vector<8x1xf32> to vector<8x8xf32>
    %339 = arith.subf %335, %338 : vector<8x8xf32>
    %340 = math.exp %339 : vector<8x8xf32>
    %cst_89 = arith.constant dense<0.000000e+00> : vector<8xf32>
    %341 = vector.multi_reduction <add>, %340, %cst_89 [1] : vector<8x8xf32> to vector<8xf32>
    %342 = vector.shape_cast %341 : vector<8xf32> to vector<8x1xf32>
    %343 = tpu.reciprocal %342 {approx = true} : vector<8x1xf32> -> vector<8x1xf32>
    %344 = vector.broadcast %343 : vector<8x1xf32> to vector<8x8xf32>
    %345 = arith.mulf %340, %344 : vector<8x8xf32>
    %346 = vector.extract_strided_slice %332 {offsets = [0, 0], sizes = [8, 8], strides = [1, 1]} : vector<8x32xf32> to vector<8x8xf32>
    %cst_90 = arith.constant dense<0.000000e+00> : vector<8x8xf32>
    %347 = tpu.matmul %345, %346, %cst_90 {dimension_numbers = #tpu.dot_dimension_numbers<[1], [0], [0], [1], [0, 0, 1, 1], [], []>} : vector<8x8xf32>, vector<8x8xf32>, vector<8x8xf32> -> vector<8x8xf32>
    %348 = vector.extract_strided_slice %330 {offsets = [0, 8], sizes = [8, 8], strides = [1, 1]} : vector<8x32xf32> to vector<8x8xf32>
    %349 = vector.extract_strided_slice %331 {offsets = [0, 8], sizes = [8, 8], strides = [1, 1]} : vector<8x32xf32> to vector<8x8xf32>
    %cst_91 = arith.constant dense<0.000000e+00> : vector<8x8xf32>
    %350 = tpu.matmul %348, %349, %cst_91 {dimension_numbers = #tpu.dot_dimension_numbers<[1], [1], [0], [0], [0, 0, 1, 0], [], []>} : vector<8x8xf32>, vector<8x8xf32>, vector<8x8xf32> -> vector<8x8xf32>
    %cst_92 = arith.constant dense<0xFF800000> : vector<8xf32>
    %351 = vector.multi_reduction <maximumf>, %350, %cst_92 [1] : vector<8x8xf32> to vector<8xf32>
    %352 = vector.shape_cast %351 : vector<8xf32> to vector<8x1xf32>
    %353 = vector.broadcast %352 : vector<8x1xf32> to vector<8x8xf32>
    %354 = arith.subf %350, %353 : vector<8x8xf32>
    %355 = math.exp %354 : vector<8x8xf32>
    %cst_93 = arith.constant dense<0.000000e+00> : vector<8xf32>
    %356 = vector.multi_reduction <add>, %355, %cst_93 [1] : vector<8x8xf32> to vector<8xf32>
    %357 = vector.shape_cast %356 : vector<8xf32> to vector<8x1xf32>
    %358 = tpu.reciprocal %357 {approx = true} : vector<8x1xf32> -> vector<8x1xf32>
    %359 = vector.broadcast %358 : vector<8x1xf32> to vector<8x8xf32>
    %360 = arith.mulf %355, %359 : vector<8x8xf32>
    %361 = vector.extract_strided_slice %332 {offsets = [0, 8], sizes = [8, 8], strides = [1, 1]} : vector<8x32xf32> to vector<8x8xf32>
    %cst_94 = arith.constant dense<0.000000e+00> : vector<8x8xf32>
    %362 = tpu.matmul %360, %361, %cst_94 {dimension_numbers = #tpu.dot_dimension_numbers<[1], [0], [0], [1], [0, 0, 1, 1], [], []>} : vector<8x8xf32>, vector<8x8xf32>, vector<8x8xf32> -> vector<8x8xf32>
    %363 = vector.extract_strided_slice %330 {offsets = [0, 16], sizes = [8, 8], strides = [1, 1]} : vector<8x32xf32> to vector<8x8xf32>
    %364 = vector.extract_strided_slice %331 {offsets = [0, 16], sizes = [8, 8], strides = [1, 1]} : vector<8x32xf32> to vector<8x8xf32>
    %cst_95 = arith.constant dense<0.000000e+00> : vector<8x8xf32>
    %365 = tpu.matmul %363, %364, %cst_95 {dimension_numbers = #tpu.dot_dimension_numbers<[1], [1], [0], [0], [0, 0, 1, 0], [], []>} : vector<8x8xf32>, vector<8x8xf32>, vector<8x8xf32> -> vector<8x8xf32>
    %cst_96 = arith.constant dense<0xFF800000> : vector<8xf32>
    %366 = vector.multi_reduction <maximumf>, %365, %cst_96 [1] : vector<8x8xf32> to vector<8xf32>
    %367 = vector.shape_cast %366 : vector<8xf32> to vector<8x1xf32>
    %368 = vector.broadcast %367 : vector<8x1xf32> to vector<8x8xf32>
    %369 = arith.subf %365, %368 : vector<8x8xf32>
    %370 = math.exp %369 : vector<8x8xf32>
    %cst_97 = arith.constant dense<0.000000e+00> : vector<8xf32>
    %371 = vector.multi_reduction <add>, %370, %cst_97 [1] : vector<8x8xf32> to vector<8xf32>
    %372 = vector.shape_cast %371 : vector<8xf32> to vector<8x1xf32>
    %373 = tpu.reciprocal %372 {approx = true} : vector<8x1xf32> -> vector<8x1xf32>
    %374 = vector.broadcast %373 : vector<8x1xf32> to vector<8x8xf32>
    %375 = arith.mulf %370, %374 : vector<8x8xf32>
    %376 = vector.extract_strided_slice %332 {offsets = [0, 16], sizes = [8, 8], strides = [1, 1]} : vector<8x32xf32> to vector<8x8xf32>
    %cst_98 = arith.constant dense<0.000000e+00> : vector<8x8xf32>
    %377 = tpu.matmul %375, %376, %cst_98 {dimension_numbers = #tpu.dot_dimension_numbers<[1], [0], [0], [1], [0, 0, 1, 1], [], []>} : vector<8x8xf32>, vector<8x8xf32>, vector<8x8xf32> -> vector<8x8xf32>
    %378 = vector.extract_strided_slice %330 {offsets = [0, 24], sizes = [8, 8], strides = [1, 1]} : vector<8x32xf32> to vector<8x8xf32>
    %379 = vector.extract_strided_slice %331 {offsets = [0, 24], sizes = [8, 8], strides = [1, 1]} : vector<8x32xf32> to vector<8x8xf32>
    %cst_99 = arith.constant dense<0.000000e+00> : vector<8x8xf32>
    %380 = tpu.matmul %378, %379, %cst_99 {dimension_numbers = #tpu.dot_dimension_numbers<[1], [1], [0], [0], [0, 0, 1, 0], [], []>} : vector<8x8xf32>, vector<8x8xf32>, vector<8x8xf32> -> vector<8x8xf32>
    %cst_100 = arith.constant dense<0xFF800000> : vector<8xf32>
    %381 = vector.multi_reduction <maximumf>, %380, %cst_100 [1] : vector<8x8xf32> to vector<8xf32>
    %382 = vector.shape_cast %381 : vector<8xf32> to vector<8x1xf32>
    %383 = vector.broadcast %382 : vector<8x1xf32> to vector<8x8xf32>
    %384 = arith.subf %380, %383 : vector<8x8xf32>
    %385 = math.exp %384 : vector<8x8xf32>
    %cst_101 = arith.constant dense<0.000000e+00> : vector<8xf32>
    %386 = vector.multi_reduction <add>, %385, %cst_101 [1] : vector<8x8xf32> to vector<8xf32>
    %387 = vector.shape_cast %386 : vector<8xf32> to vector<8x1xf32>
    %388 = tpu.reciprocal %387 {approx = true} : vector<8x1xf32> -> vector<8x1xf32>
    %389 = vector.broadcast %388 : vector<8x1xf32> to vector<8x8xf32>
    %390 = arith.mulf %385, %389 : vector<8x8xf32>
    %391 = vector.extract_strided_slice %332 {offsets = [0, 24], sizes = [8, 8], strides = [1, 1]} : vector<8x32xf32> to vector<8x8xf32>
    %cst_102 = arith.constant dense<0.000000e+00> : vector<8x8xf32>
    %392 = tpu.matmul %390, %391, %cst_102 {dimension_numbers = #tpu.dot_dimension_numbers<[1], [0], [0], [1], [0, 0, 1, 1], [], []>} : vector<8x8xf32>, vector<8x8xf32>, vector<8x8xf32> -> vector<8x8xf32>
    %393 = tpu.concatenate %347, %362, %377, %392 in 1 : vector<8x8xf32>, vector<8x8xf32>, vector<8x8xf32>, vector<8x8xf32> -> vector<8x32xf32>
    %394 = vector.extract_strided_slice %7 {offsets = [48, 0], sizes = [8, 32], strides = [1, 1]} : vector<64x32xf32> to vector<8x32xf32>
    %395 = vector.extract_strided_slice %8 {offsets = [48, 0], sizes = [8, 32], strides = [1, 1]} : vector<64x32xf32> to vector<8x32xf32>
    %396 = vector.extract_strided_slice %9 {offsets = [48, 0], sizes = [8, 32], strides = [1, 1]} : vector<64x32xf32> to vector<8x32xf32>
    %397 = vector.extract_strided_slice %394 {offsets = [0, 0], sizes = [8, 8], strides = [1, 1]} : vector<8x32xf32> to vector<8x8xf32>
    %398 = vector.extract_strided_slice %395 {offsets = [0, 0], sizes = [8, 8], strides = [1, 1]} : vector<8x32xf32> to vector<8x8xf32>
    %cst_103 = arith.constant dense<0.000000e+00> : vector<8x8xf32>
    %399 = tpu.matmul %397, %398, %cst_103 {dimension_numbers = #tpu.dot_dimension_numbers<[1], [1], [0], [0], [0, 0, 1, 0], [], []>} : vector<8x8xf32>, vector<8x8xf32>, vector<8x8xf32> -> vector<8x8xf32>
    %cst_104 = arith.constant dense<0xFF800000> : vector<8xf32>
    %400 = vector.multi_reduction <maximumf>, %399, %cst_104 [1] : vector<8x8xf32> to vector<8xf32>
    %401 = vector.shape_cast %400 : vector<8xf32> to vector<8x1xf32>
    %402 = vector.broadcast %401 : vector<8x1xf32> to vector<8x8xf32>
    %403 = arith.subf %399, %402 : vector<8x8xf32>
    %404 = math.exp %403 : vector<8x8xf32>
    %cst_105 = arith.constant dense<0.000000e+00> : vector<8xf32>
    %405 = vector.multi_reduction <add>, %404, %cst_105 [1] : vector<8x8xf32> to vector<8xf32>
    %406 = vector.shape_cast %405 : vector<8xf32> to vector<8x1xf32>
    %407 = tpu.reciprocal %406 {approx = true} : vector<8x1xf32> -> vector<8x1xf32>
    %408 = vector.broadcast %407 : vector<8x1xf32> to vector<8x8xf32>
    %409 = arith.mulf %404, %408 : vector<8x8xf32>
    %410 = vector.extract_strided_slice %396 {offsets = [0, 0], sizes = [8, 8], strides = [1, 1]} : vector<8x32xf32> to vector<8x8xf32>
    %cst_106 = arith.constant dense<0.000000e+00> : vector<8x8xf32>
    %411 = tpu.matmul %409, %410, %cst_106 {dimension_numbers = #tpu.dot_dimension_numbers<[1], [0], [0], [1], [0, 0, 1, 1], [], []>} : vector<8x8xf32>, vector<8x8xf32>, vector<8x8xf32> -> vector<8x8xf32>
    %412 = vector.extract_strided_slice %394 {offsets = [0, 8], sizes = [8, 8], strides = [1, 1]} : vector<8x32xf32> to vector<8x8xf32>
    %413 = vector.extract_strided_slice %395 {offsets = [0, 8], sizes = [8, 8], strides = [1, 1]} : vector<8x32xf32> to vector<8x8xf32>
    %cst_107 = arith.constant dense<0.000000e+00> : vector<8x8xf32>
    %414 = tpu.matmul %412, %413, %cst_107 {dimension_numbers = #tpu.dot_dimension_numbers<[1], [1], [0], [0], [0, 0, 1, 0], [], []>} : vector<8x8xf32>, vector<8x8xf32>, vector<8x8xf32> -> vector<8x8xf32>
    %cst_108 = arith.constant dense<0xFF800000> : vector<8xf32>
    %415 = vector.multi_reduction <maximumf>, %414, %cst_108 [1] : vector<8x8xf32> to vector<8xf32>
    %416 = vector.shape_cast %415 : vector<8xf32> to vector<8x1xf32>
    %417 = vector.broadcast %416 : vector<8x1xf32> to vector<8x8xf32>
    %418 = arith.subf %414, %417 : vector<8x8xf32>
    %419 = math.exp %418 : vector<8x8xf32>
    %cst_109 = arith.constant dense<0.000000e+00> : vector<8xf32>
    %420 = vector.multi_reduction <add>, %419, %cst_109 [1] : vector<8x8xf32> to vector<8xf32>
    %421 = vector.shape_cast %420 : vector<8xf32> to vector<8x1xf32>
    %422 = tpu.reciprocal %421 {approx = true} : vector<8x1xf32> -> vector<8x1xf32>
    %423 = vector.broadcast %422 : vector<8x1xf32> to vector<8x8xf32>
    %424 = arith.mulf %419, %423 : vector<8x8xf32>
    %425 = vector.extract_strided_slice %396 {offsets = [0, 8], sizes = [8, 8], strides = [1, 1]} : vector<8x32xf32> to vector<8x8xf32>
    %cst_110 = arith.constant dense<0.000000e+00> : vector<8x8xf32>
    %426 = tpu.matmul %424, %425, %cst_110 {dimension_numbers = #tpu.dot_dimension_numbers<[1], [0], [0], [1], [0, 0, 1, 1], [], []>} : vector<8x8xf32>, vector<8x8xf32>, vector<8x8xf32> -> vector<8x8xf32>
    %427 = vector.extract_strided_slice %394 {offsets = [0, 16], sizes = [8, 8], strides = [1, 1]} : vector<8x32xf32> to vector<8x8xf32>
    %428 = vector.extract_strided_slice %395 {offsets = [0, 16], sizes = [8, 8], strides = [1, 1]} : vector<8x32xf32> to vector<8x8xf32>
    %cst_111 = arith.constant dense<0.000000e+00> : vector<8x8xf32>
    %429 = tpu.matmul %427, %428, %cst_111 {dimension_numbers = #tpu.dot_dimension_numbers<[1], [1], [0], [0], [0, 0, 1, 0], [], []>} : vector<8x8xf32>, vector<8x8xf32>, vector<8x8xf32> -> vector<8x8xf32>
    %cst_112 = arith.constant dense<0xFF800000> : vector<8xf32>
    %430 = vector.multi_reduction <maximumf>, %429, %cst_112 [1] : vector<8x8xf32> to vector<8xf32>
    %431 = vector.shape_cast %430 : vector<8xf32> to vector<8x1xf32>
    %432 = vector.broadcast %431 : vector<8x1xf32> to vector<8x8xf32>
    %433 = arith.subf %429, %432 : vector<8x8xf32>
    %434 = math.exp %433 : vector<8x8xf32>
    %cst_113 = arith.constant dense<0.000000e+00> : vector<8xf32>
    %435 = vector.multi_reduction <add>, %434, %cst_113 [1] : vector<8x8xf32> to vector<8xf32>
    %436 = vector.shape_cast %435 : vector<8xf32> to vector<8x1xf32>
    %437 = tpu.reciprocal %436 {approx = true} : vector<8x1xf32> -> vector<8x1xf32>
    %438 = vector.broadcast %437 : vector<8x1xf32> to vector<8x8xf32>
    %439 = arith.mulf %434, %438 : vector<8x8xf32>
    %440 = vector.extract_strided_slice %396 {offsets = [0, 16], sizes = [8, 8], strides = [1, 1]} : vector<8x32xf32> to vector<8x8xf32>
    %cst_114 = arith.constant dense<0.000000e+00> : vector<8x8xf32>
    %441 = tpu.matmul %439, %440, %cst_114 {dimension_numbers = #tpu.dot_dimension_numbers<[1], [0], [0], [1], [0, 0, 1, 1], [], []>} : vector<8x8xf32>, vector<8x8xf32>, vector<8x8xf32> -> vector<8x8xf32>
    %442 = vector.extract_strided_slice %394 {offsets = [0, 24], sizes = [8, 8], strides = [1, 1]} : vector<8x32xf32> to vector<8x8xf32>
    %443 = vector.extract_strided_slice %395 {offsets = [0, 24], sizes = [8, 8], strides = [1, 1]} : vector<8x32xf32> to vector<8x8xf32>
    %cst_115 = arith.constant dense<0.000000e+00> : vector<8x8xf32>
    %444 = tpu.matmul %442, %443, %cst_115 {dimension_numbers = #tpu.dot_dimension_numbers<[1], [1], [0], [0], [0, 0, 1, 0], [], []>} : vector<8x8xf32>, vector<8x8xf32>, vector<8x8xf32> -> vector<8x8xf32>
    %cst_116 = arith.constant dense<0xFF800000> : vector<8xf32>
    %445 = vector.multi_reduction <maximumf>, %444, %cst_116 [1] : vector<8x8xf32> to vector<8xf32>
    %446 = vector.shape_cast %445 : vector<8xf32> to vector<8x1xf32>
    %447 = vector.broadcast %446 : vector<8x1xf32> to vector<8x8xf32>
    %448 = arith.subf %444, %447 : vector<8x8xf32>
    %449 = math.exp %448 : vector<8x8xf32>
    %cst_117 = arith.constant dense<0.000000e+00> : vector<8xf32>
    %450 = vector.multi_reduction <add>, %449, %cst_117 [1] : vector<8x8xf32> to vector<8xf32>
    %451 = vector.shape_cast %450 : vector<8xf32> to vector<8x1xf32>
    %452 = tpu.reciprocal %451 {approx = true} : vector<8x1xf32> -> vector<8x1xf32>
    %453 = vector.broadcast %452 : vector<8x1xf32> to vector<8x8xf32>
    %454 = arith.mulf %449, %453 : vector<8x8xf32>
    %455 = vector.extract_strided_slice %396 {offsets = [0, 24], sizes = [8, 8], strides = [1, 1]} : vector<8x32xf32> to vector<8x8xf32>
    %cst_118 = arith.constant dense<0.000000e+00> : vector<8x8xf32>
    %456 = tpu.matmul %454, %455, %cst_118 {dimension_numbers = #tpu.dot_dimension_numbers<[1], [0], [0], [1], [0, 0, 1, 1], [], []>} : vector<8x8xf32>, vector<8x8xf32>, vector<8x8xf32> -> vector<8x8xf32>
    %457 = tpu.concatenate %411, %426, %441, %456 in 1 : vector<8x8xf32>, vector<8x8xf32>, vector<8x8xf32>, vector<8x8xf32> -> vector<8x32xf32>
    %458 = vector.extract_strided_slice %7 {offsets = [56, 0], sizes = [8, 32], strides = [1, 1]} : vector<64x32xf32> to vector<8x32xf32>
    %459 = vector.extract_strided_slice %8 {offsets = [56, 0], sizes = [8, 32], strides = [1, 1]} : vector<64x32xf32> to vector<8x32xf32>
    %460 = vector.extract_strided_slice %9 {offsets = [56, 0], sizes = [8, 32], strides = [1, 1]} : vector<64x32xf32> to vector<8x32xf32>
    %461 = vector.extract_strided_slice %458 {offsets = [0, 0], sizes = [8, 8], strides = [1, 1]} : vector<8x32xf32> to vector<8x8xf32>
    %462 = vector.extract_strided_slice %459 {offsets = [0, 0], sizes = [8, 8], strides = [1, 1]} : vector<8x32xf32> to vector<8x8xf32>
    %cst_119 = arith.constant dense<0.000000e+00> : vector<8x8xf32>
    %463 = tpu.matmul %461, %462, %cst_119 {dimension_numbers = #tpu.dot_dimension_numbers<[1], [1], [0], [0], [0, 0, 1, 0], [], []>} : vector<8x8xf32>, vector<8x8xf32>, vector<8x8xf32> -> vector<8x8xf32>
    %cst_120 = arith.constant dense<0xFF800000> : vector<8xf32>
    %464 = vector.multi_reduction <maximumf>, %463, %cst_120 [1] : vector<8x8xf32> to vector<8xf32>
    %465 = vector.shape_cast %464 : vector<8xf32> to vector<8x1xf32>
    %466 = vector.broadcast %465 : vector<8x1xf32> to vector<8x8xf32>
    %467 = arith.subf %463, %466 : vector<8x8xf32>
    %468 = math.exp %467 : vector<8x8xf32>
    %cst_121 = arith.constant dense<0.000000e+00> : vector<8xf32>
    %469 = vector.multi_reduction <add>, %468, %cst_121 [1] : vector<8x8xf32> to vector<8xf32>
    %470 = vector.shape_cast %469 : vector<8xf32> to vector<8x1xf32>
    %471 = tpu.reciprocal %470 {approx = true} : vector<8x1xf32> -> vector<8x1xf32>
    %472 = vector.broadcast %471 : vector<8x1xf32> to vector<8x8xf32>
    %473 = arith.mulf %468, %472 : vector<8x8xf32>
    %474 = vector.extract_strided_slice %460 {offsets = [0, 0], sizes = [8, 8], strides = [1, 1]} : vector<8x32xf32> to vector<8x8xf32>
    %cst_122 = arith.constant dense<0.000000e+00> : vector<8x8xf32>
    %475 = tpu.matmul %473, %474, %cst_122 {dimension_numbers = #tpu.dot_dimension_numbers<[1], [0], [0], [1], [0, 0, 1, 1], [], []>} : vector<8x8xf32>, vector<8x8xf32>, vector<8x8xf32> -> vector<8x8xf32>
    %476 = vector.extract_strided_slice %458 {offsets = [0, 8], sizes = [8, 8], strides = [1, 1]} : vector<8x32xf32> to vector<8x8xf32>
    %477 = vector.extract_strided_slice %459 {offsets = [0, 8], sizes = [8, 8], strides = [1, 1]} : vector<8x32xf32> to vector<8x8xf32>
    %cst_123 = arith.constant dense<0.000000e+00> : vector<8x8xf32>
    %478 = tpu.matmul %476, %477, %cst_123 {dimension_numbers = #tpu.dot_dimension_numbers<[1], [1], [0], [0], [0, 0, 1, 0], [], []>} : vector<8x8xf32>, vector<8x8xf32>, vector<8x8xf32> -> vector<8x8xf32>
    %cst_124 = arith.constant dense<0xFF800000> : vector<8xf32>
    %479 = vector.multi_reduction <maximumf>, %478, %cst_124 [1] : vector<8x8xf32> to vector<8xf32>
    %480 = vector.shape_cast %479 : vector<8xf32> to vector<8x1xf32>
    %481 = vector.broadcast %480 : vector<8x1xf32> to vector<8x8xf32>
    %482 = arith.subf %478, %481 : vector<8x8xf32>
    %483 = math.exp %482 : vector<8x8xf32>
    %cst_125 = arith.constant dense<0.000000e+00> : vector<8xf32>
    %484 = vector.multi_reduction <add>, %483, %cst_125 [1] : vector<8x8xf32> to vector<8xf32>
    %485 = vector.shape_cast %484 : vector<8xf32> to vector<8x1xf32>
    %486 = tpu.reciprocal %485 {approx = true} : vector<8x1xf32> -> vector<8x1xf32>
    %487 = vector.broadcast %486 : vector<8x1xf32> to vector<8x8xf32>
    %488 = arith.mulf %483, %487 : vector<8x8xf32>
    %489 = vector.extract_strided_slice %460 {offsets = [0, 8], sizes = [8, 8], strides = [1, 1]} : vector<8x32xf32> to vector<8x8xf32>
    %cst_126 = arith.constant dense<0.000000e+00> : vector<8x8xf32>
    %490 = tpu.matmul %488, %489, %cst_126 {dimension_numbers = #tpu.dot_dimension_numbers<[1], [0], [0], [1], [0, 0, 1, 1], [], []>} : vector<8x8xf32>, vector<8x8xf32>, vector<8x8xf32> -> vector<8x8xf32>
    %491 = vector.extract_strided_slice %458 {offsets = [0, 16], sizes = [8, 8], strides = [1, 1]} : vector<8x32xf32> to vector<8x8xf32>
    %492 = vector.extract_strided_slice %459 {offsets = [0, 16], sizes = [8, 8], strides = [1, 1]} : vector<8x32xf32> to vector<8x8xf32>
    %cst_127 = arith.constant dense<0.000000e+00> : vector<8x8xf32>
    %493 = tpu.matmul %491, %492, %cst_127 {dimension_numbers = #tpu.dot_dimension_numbers<[1], [1], [0], [0], [0, 0, 1, 0], [], []>} : vector<8x8xf32>, vector<8x8xf32>, vector<8x8xf32> -> vector<8x8xf32>
    %cst_128 = arith.constant dense<0xFF800000> : vector<8xf32>
    %494 = vector.multi_reduction <maximumf>, %493, %cst_128 [1] : vector<8x8xf32> to vector<8xf32>
    %495 = vector.shape_cast %494 : vector<8xf32> to vector<8x1xf32>
    %496 = vector.broadcast %495 : vector<8x1xf32> to vector<8x8xf32>
    %497 = arith.subf %493, %496 : vector<8x8xf32>
    %498 = math.exp %497 : vector<8x8xf32>
    %cst_129 = arith.constant dense<0.000000e+00> : vector<8xf32>
    %499 = vector.multi_reduction <add>, %498, %cst_129 [1] : vector<8x8xf32> to vector<8xf32>
    %500 = vector.shape_cast %499 : vector<8xf32> to vector<8x1xf32>
    %501 = tpu.reciprocal %500 {approx = true} : vector<8x1xf32> -> vector<8x1xf32>
    %502 = vector.broadcast %501 : vector<8x1xf32> to vector<8x8xf32>
    %503 = arith.mulf %498, %502 : vector<8x8xf32>
    %504 = vector.extract_strided_slice %460 {offsets = [0, 16], sizes = [8, 8], strides = [1, 1]} : vector<8x32xf32> to vector<8x8xf32>
    %cst_130 = arith.constant dense<0.000000e+00> : vector<8x8xf32>
    %505 = tpu.matmul %503, %504, %cst_130 {dimension_numbers = #tpu.dot_dimension_numbers<[1], [0], [0], [1], [0, 0, 1, 1], [], []>} : vector<8x8xf32>, vector<8x8xf32>, vector<8x8xf32> -> vector<8x8xf32>
    %506 = vector.extract_strided_slice %458 {offsets = [0, 24], sizes = [8, 8], strides = [1, 1]} : vector<8x32xf32> to vector<8x8xf32>
    %507 = vector.extract_strided_slice %459 {offsets = [0, 24], sizes = [8, 8], strides = [1, 1]} : vector<8x32xf32> to vector<8x8xf32>
    %cst_131 = arith.constant dense<0.000000e+00> : vector<8x8xf32>
    %508 = tpu.matmul %506, %507, %cst_131 {dimension_numbers = #tpu.dot_dimension_numbers<[1], [1], [0], [0], [0, 0, 1, 0], [], []>} : vector<8x8xf32>, vector<8x8xf32>, vector<8x8xf32> -> vector<8x8xf32>
    %cst_132 = arith.constant dense<0xFF800000> : vector<8xf32>
    %509 = vector.multi_reduction <maximumf>, %508, %cst_132 [1] : vector<8x8xf32> to vector<8xf32>
    %510 = vector.shape_cast %509 : vector<8xf32> to vector<8x1xf32>
    %511 = vector.broadcast %510 : vector<8x1xf32> to vector<8x8xf32>
    %512 = arith.subf %508, %511 : vector<8x8xf32>
    %513 = math.exp %512 : vector<8x8xf32>
    %cst_133 = arith.constant dense<0.000000e+00> : vector<8xf32>
    %514 = vector.multi_reduction <add>, %513, %cst_133 [1] : vector<8x8xf32> to vector<8xf32>
    %515 = vector.shape_cast %514 : vector<8xf32> to vector<8x1xf32>
    %516 = tpu.reciprocal %515 {approx = true} : vector<8x1xf32> -> vector<8x1xf32>
    %517 = vector.broadcast %516 : vector<8x1xf32> to vector<8x8xf32>
    %518 = arith.mulf %513, %517 : vector<8x8xf32>
    %519 = vector.extract_strided_slice %460 {offsets = [0, 24], sizes = [8, 8], strides = [1, 1]} : vector<8x32xf32> to vector<8x8xf32>
    %cst_134 = arith.constant dense<0.000000e+00> : vector<8x8xf32>
    %520 = tpu.matmul %518, %519, %cst_134 {dimension_numbers = #tpu.dot_dimension_numbers<[1], [0], [0], [1], [0, 0, 1, 1], [], []>} : vector<8x8xf32>, vector<8x8xf32>, vector<8x8xf32> -> vector<8x8xf32>
    %521 = tpu.concatenate %475, %490, %505, %520 in 1 : vector<8x8xf32>, vector<8x8xf32>, vector<8x8xf32>, vector<8x8xf32> -> vector<8x32xf32>
    %522 = tpu.concatenate %73, %137, %201, %265, %329, %393, %457, %521 in 0 : vector<8x32xf32>, vector<8x32xf32>, vector<8x32xf32>, vector<8x32xf32>, vector<8x32xf32>, vector<8x32xf32>, vector<8x32xf32>, vector<8x32xf32> -> vector<64x32xf32>
    %c0_135 = arith.constant 0 : index
    %c0_136 = arith.constant 0 : index
    %523 = vector.load %arg5[%c0_135, %c0_136] : memref<32x32xf32, #tpu.memory_space<vmem>>, vector<32x32xf32>
    %cst_137 = arith.constant dense<0.000000e+00> : vector<64x32xf32>
    %524 = tpu.matmul %522, %523, %cst_137 {dimension_numbers = #tpu.dot_dimension_numbers<[1], [0], [0], [1], [0, 0, 1, 1], [], []>} : vector<64x32xf32>, vector<32x32xf32>, vector<64x32xf32> -> vector<64x32xf32>
    %c0_138 = arith.constant 0 : index
    %c0_139 = arith.constant 0 : index
    %525 = vector.load %arg6[%c0_138, %c0_139] : memref<1x32xf32, #tpu.memory_space<vmem>>, vector<1x32xf32>
    %526 = vector.broadcast %525 : vector<1x32xf32> to vector<64x32xf32>
    %527 = arith.addf %524, %526 : vector<64x32xf32>
    %528 = arith.addf %0, %527 : vector<64x32xf32>
    %cst_140 = arith.constant dense<0.000000e+00> : vector<64xf32>
    %529 = vector.multi_reduction <add>, %528, %cst_140 [1] : vector<64x32xf32> to vector<64xf32>
    %530 = vector.shape_cast %529 : vector<64xf32> to vector<64x1xf32>
    %cst_141 = arith.constant 3.200000e+01 : f32
    %531 = vector.broadcast %cst_141 : f32 to vector<64x1xf32>
    %532 = arith.divf %530, %531 : vector<64x1xf32>
    %533 = vector.broadcast %532 : vector<64x1xf32> to vector<64x32xf32>
    %534 = arith.subf %528, %533 : vector<64x32xf32>
    %535 = arith.mulf %534, %534 : vector<64x32xf32>
    %cst_142 = arith.constant dense<0.000000e+00> : vector<64xf32>
    %536 = vector.multi_reduction <add>, %535, %cst_142 [1] : vector<64x32xf32> to vector<64xf32>
    %537 = vector.shape_cast %536 : vector<64xf32> to vector<64x1xf32>
    %cst_143 = arith.constant 3.200000e+01 : f32
    %538 = vector.broadcast %cst_143 : f32 to vector<64x1xf32>
    %539 = arith.divf %537, %538 : vector<64x1xf32>
    %cst_144 = arith.constant 9.99999974E-6 : f32
    %540 = vector.broadcast %cst_144 : f32 to vector<64x1xf32>
    %541 = arith.addf %539, %540 : vector<64x1xf32>
    %542 = math.rsqrt %541 : vector<64x1xf32>
    %543 = vector.broadcast %542 : vector<64x1xf32> to vector<64x32xf32>
    %544 = arith.mulf %534, %543 : vector<64x32xf32>
    %c0_145 = arith.constant 0 : index
    %c0_146 = arith.constant 0 : index
    %545 = vector.load %arg17[%c0_145, %c0_146] : memref<1x32xf32, #tpu.memory_space<vmem>>, vector<1x32xf32>
    %546 = vector.broadcast %545 : vector<1x32xf32> to vector<64x32xf32>
    %547 = arith.mulf %544, %546 : vector<64x32xf32>
    %c0_147 = arith.constant 0 : index
    %c0_148 = arith.constant 0 : index
    %548 = vector.load %arg18[%c0_147, %c0_148] : memref<1x32xf32, #tpu.memory_space<vmem>>, vector<1x32xf32>
    %549 = vector.broadcast %548 : vector<1x32xf32> to vector<64x32xf32>
    %550 = arith.addf %547, %549 : vector<64x32xf32>
    %c0_149 = arith.constant 0 : index
    %c0_150 = arith.constant 0 : index
    %551 = vector.load %arg7[%c0_149, %c0_150] : memref<32x32xf32, #tpu.memory_space<vmem>>, vector<32x32xf32>
    %cst_151 = arith.constant dense<0.000000e+00> : vector<64x32xf32>
    %552 = tpu.matmul %550, %551, %cst_151 {dimension_numbers = #tpu.dot_dimension_numbers<[1], [0], [0], [1], [0, 0, 1, 1], [], []>} : vector<64x32xf32>, vector<32x32xf32>, vector<64x32xf32> -> vector<64x32xf32>
    %c0_152 = arith.constant 0 : index
    %c0_153 = arith.constant 0 : index
    %553 = vector.load %arg8[%c0_152, %c0_153] : memref<1x32xf32, #tpu.memory_space<vmem>>, vector<1x32xf32>
    %554 = vector.broadcast %553 : vector<1x32xf32> to vector<64x32xf32>
    %555 = arith.addf %552, %554 : vector<64x32xf32>
    %c0_154 = arith.constant 0 : index
    %c0_155 = arith.constant 0 : index
    %556 = vector.load %arg9[%c0_154, %c0_155] : memref<32x64xf32, #tpu.memory_space<vmem>>, vector<32x64xf32>
    %cst_156 = arith.constant dense<0.000000e+00> : vector<96x64xf32>
    %557 = tpu.matmul %1, %556, %cst_156 {dimension_numbers = #tpu.dot_dimension_numbers<[1], [0], [0], [1], [0, 0, 1, 1], [], []>} : vector<96x32xf32>, vector<32x64xf32>, vector<96x64xf32> -> vector<96x64xf32>
    %c0_157 = arith.constant 0 : index
    %c0_158 = arith.constant 0 : index
    %558 = vector.load %arg10[%c0_157, %c0_158] : memref<1x64xf32, #tpu.memory_space<vmem>>, vector<1x64xf32>
    %559 = vector.broadcast %558 : vector<1x64xf32> to vector<96x64xf32>
    %560 = arith.addf %557, %559 : vector<96x64xf32>
    %561 = vector.extract_strided_slice %560 {offsets = [0, 0], sizes = [96, 32], strides = [1, 1]} : vector<96x64xf32> to vector<96x32xf32>
    %562 = vector.extract_strided_slice %560 {offsets = [0, 32], sizes = [96, 32], strides = [1, 1]} : vector<96x64xf32> to vector<96x32xf32>
    %563 = vector.extract_strided_slice %555 {offsets = [0, 0], sizes = [8, 32], strides = [1, 1]} : vector<64x32xf32> to vector<8x32xf32>
    %564 = vector.extract_strided_slice %561 {offsets = [0, 0], sizes = [12, 32], strides = [1, 1]} : vector<96x32xf32> to vector<12x32xf32>
    %565 = vector.extract_strided_slice %562 {offsets = [0, 0], sizes = [12, 32], strides = [1, 1]} : vector<96x32xf32> to vector<12x32xf32>
    %566 = vector.extract_strided_slice %563 {offsets = [0, 0], sizes = [8, 8], strides = [1, 1]} : vector<8x32xf32> to vector<8x8xf32>
    %567 = vector.extract_strided_slice %564 {offsets = [0, 0], sizes = [12, 8], strides = [1, 1]} : vector<12x32xf32> to vector<12x8xf32>
    %cst_159 = arith.constant dense<0.000000e+00> : vector<8x12xf32>
    %568 = tpu.matmul %566, %567, %cst_159 {dimension_numbers = #tpu.dot_dimension_numbers<[1], [1], [0], [0], [0, 0, 1, 0], [], []>} : vector<8x8xf32>, vector<12x8xf32>, vector<8x12xf32> -> vector<8x12xf32>
    %cst_160 = arith.constant dense<0xFF800000> : vector<8xf32>
    %569 = vector.multi_reduction <maximumf>, %568, %cst_160 [1] : vector<8x12xf32> to vector<8xf32>
    %570 = vector.shape_cast %569 : vector<8xf32> to vector<8x1xf32>
    %571 = vector.broadcast %570 : vector<8x1xf32> to vector<8x12xf32>
    %572 = arith.subf %568, %571 : vector<8x12xf32>
    %573 = math.exp %572 : vector<8x12xf32>
    %cst_161 = arith.constant dense<0.000000e+00> : vector<8xf32>
    %574 = vector.multi_reduction <add>, %573, %cst_161 [1] : vector<8x12xf32> to vector<8xf32>
    %575 = vector.shape_cast %574 : vector<8xf32> to vector<8x1xf32>
    %576 = tpu.reciprocal %575 {approx = true} : vector<8x1xf32> -> vector<8x1xf32>
    %577 = vector.broadcast %576 : vector<8x1xf32> to vector<8x12xf32>
    %578 = arith.mulf %573, %577 : vector<8x12xf32>
    %579 = vector.extract_strided_slice %565 {offsets = [0, 0], sizes = [12, 8], strides = [1, 1]} : vector<12x32xf32> to vector<12x8xf32>
    %cst_162 = arith.constant dense<0.000000e+00> : vector<8x8xf32>
    %580 = tpu.matmul %578, %579, %cst_162 {dimension_numbers = #tpu.dot_dimension_numbers<[1], [0], [0], [1], [0, 0, 1, 1], [], []>} : vector<8x12xf32>, vector<12x8xf32>, vector<8x8xf32> -> vector<8x8xf32>
    %581 = vector.extract_strided_slice %563 {offsets = [0, 8], sizes = [8, 8], strides = [1, 1]} : vector<8x32xf32> to vector<8x8xf32>
    %582 = vector.extract_strided_slice %564 {offsets = [0, 8], sizes = [12, 8], strides = [1, 1]} : vector<12x32xf32> to vector<12x8xf32>
    %cst_163 = arith.constant dense<0.000000e+00> : vector<8x12xf32>
    %583 = tpu.matmul %581, %582, %cst_163 {dimension_numbers = #tpu.dot_dimension_numbers<[1], [1], [0], [0], [0, 0, 1, 0], [], []>} : vector<8x8xf32>, vector<12x8xf32>, vector<8x12xf32> -> vector<8x12xf32>
    %cst_164 = arith.constant dense<0xFF800000> : vector<8xf32>
    %584 = vector.multi_reduction <maximumf>, %583, %cst_164 [1] : vector<8x12xf32> to vector<8xf32>
    %585 = vector.shape_cast %584 : vector<8xf32> to vector<8x1xf32>
    %586 = vector.broadcast %585 : vector<8x1xf32> to vector<8x12xf32>
    %587 = arith.subf %583, %586 : vector<8x12xf32>
    %588 = math.exp %587 : vector<8x12xf32>
    %cst_165 = arith.constant dense<0.000000e+00> : vector<8xf32>
    %589 = vector.multi_reduction <add>, %588, %cst_165 [1] : vector<8x12xf32> to vector<8xf32>
    %590 = vector.shape_cast %589 : vector<8xf32> to vector<8x1xf32>
    %591 = tpu.reciprocal %590 {approx = true} : vector<8x1xf32> -> vector<8x1xf32>
    %592 = vector.broadcast %591 : vector<8x1xf32> to vector<8x12xf32>
    %593 = arith.mulf %588, %592 : vector<8x12xf32>
    %594 = vector.extract_strided_slice %565 {offsets = [0, 8], sizes = [12, 8], strides = [1, 1]} : vector<12x32xf32> to vector<12x8xf32>
    %cst_166 = arith.constant dense<0.000000e+00> : vector<8x8xf32>
    %595 = tpu.matmul %593, %594, %cst_166 {dimension_numbers = #tpu.dot_dimension_numbers<[1], [0], [0], [1], [0, 0, 1, 1], [], []>} : vector<8x12xf32>, vector<12x8xf32>, vector<8x8xf32> -> vector<8x8xf32>
    %596 = vector.extract_strided_slice %563 {offsets = [0, 16], sizes = [8, 8], strides = [1, 1]} : vector<8x32xf32> to vector<8x8xf32>
    %597 = vector.extract_strided_slice %564 {offsets = [0, 16], sizes = [12, 8], strides = [1, 1]} : vector<12x32xf32> to vector<12x8xf32>
    %cst_167 = arith.constant dense<0.000000e+00> : vector<8x12xf32>
    %598 = tpu.matmul %596, %597, %cst_167 {dimension_numbers = #tpu.dot_dimension_numbers<[1], [1], [0], [0], [0, 0, 1, 0], [], []>} : vector<8x8xf32>, vector<12x8xf32>, vector<8x12xf32> -> vector<8x12xf32>
    %cst_168 = arith.constant dense<0xFF800000> : vector<8xf32>
    %599 = vector.multi_reduction <maximumf>, %598, %cst_168 [1] : vector<8x12xf32> to vector<8xf32>
    %600 = vector.shape_cast %599 : vector<8xf32> to vector<8x1xf32>
    %601 = vector.broadcast %600 : vector<8x1xf32> to vector<8x12xf32>
    %602 = arith.subf %598, %601 : vector<8x12xf32>
    %603 = math.exp %602 : vector<8x12xf32>
    %cst_169 = arith.constant dense<0.000000e+00> : vector<8xf32>
    %604 = vector.multi_reduction <add>, %603, %cst_169 [1] : vector<8x12xf32> to vector<8xf32>
    %605 = vector.shape_cast %604 : vector<8xf32> to vector<8x1xf32>
    %606 = tpu.reciprocal %605 {approx = true} : vector<8x1xf32> -> vector<8x1xf32>
    %607 = vector.broadcast %606 : vector<8x1xf32> to vector<8x12xf32>
    %608 = arith.mulf %603, %607 : vector<8x12xf32>
    %609 = vector.extract_strided_slice %565 {offsets = [0, 16], sizes = [12, 8], strides = [1, 1]} : vector<12x32xf32> to vector<12x8xf32>
    %cst_170 = arith.constant dense<0.000000e+00> : vector<8x8xf32>
    %610 = tpu.matmul %608, %609, %cst_170 {dimension_numbers = #tpu.dot_dimension_numbers<[1], [0], [0], [1], [0, 0, 1, 1], [], []>} : vector<8x12xf32>, vector<12x8xf32>, vector<8x8xf32> -> vector<8x8xf32>
    %611 = vector.extract_strided_slice %563 {offsets = [0, 24], sizes = [8, 8], strides = [1, 1]} : vector<8x32xf32> to vector<8x8xf32>
    %612 = vector.extract_strided_slice %564 {offsets = [0, 24], sizes = [12, 8], strides = [1, 1]} : vector<12x32xf32> to vector<12x8xf32>
    %cst_171 = arith.constant dense<0.000000e+00> : vector<8x12xf32>
    %613 = tpu.matmul %611, %612, %cst_171 {dimension_numbers = #tpu.dot_dimension_numbers<[1], [1], [0], [0], [0, 0, 1, 0], [], []>} : vector<8x8xf32>, vector<12x8xf32>, vector<8x12xf32> -> vector<8x12xf32>
    %cst_172 = arith.constant dense<0xFF800000> : vector<8xf32>
    %614 = vector.multi_reduction <maximumf>, %613, %cst_172 [1] : vector<8x12xf32> to vector<8xf32>
    %615 = vector.shape_cast %614 : vector<8xf32> to vector<8x1xf32>
    %616 = vector.broadcast %615 : vector<8x1xf32> to vector<8x12xf32>
    %617 = arith.subf %613, %616 : vector<8x12xf32>
    %618 = math.exp %617 : vector<8x12xf32>
    %cst_173 = arith.constant dense<0.000000e+00> : vector<8xf32>
    %619 = vector.multi_reduction <add>, %618, %cst_173 [1] : vector<8x12xf32> to vector<8xf32>
    %620 = vector.shape_cast %619 : vector<8xf32> to vector<8x1xf32>
    %621 = tpu.reciprocal %620 {approx = true} : vector<8x1xf32> -> vector<8x1xf32>
    %622 = vector.broadcast %621 : vector<8x1xf32> to vector<8x12xf32>
    %623 = arith.mulf %618, %622 : vector<8x12xf32>
    %624 = vector.extract_strided_slice %565 {offsets = [0, 24], sizes = [12, 8], strides = [1, 1]} : vector<12x32xf32> to vector<12x8xf32>
    %cst_174 = arith.constant dense<0.000000e+00> : vector<8x8xf32>
    %625 = tpu.matmul %623, %624, %cst_174 {dimension_numbers = #tpu.dot_dimension_numbers<[1], [0], [0], [1], [0, 0, 1, 1], [], []>} : vector<8x12xf32>, vector<12x8xf32>, vector<8x8xf32> -> vector<8x8xf32>
    %626 = tpu.concatenate %580, %595, %610, %625 in 1 : vector<8x8xf32>, vector<8x8xf32>, vector<8x8xf32>, vector<8x8xf32> -> vector<8x32xf32>
    %627 = vector.extract_strided_slice %555 {offsets = [8, 0], sizes = [8, 32], strides = [1, 1]} : vector<64x32xf32> to vector<8x32xf32>
    %628 = vector.extract_strided_slice %561 {offsets = [12, 0], sizes = [12, 32], strides = [1, 1]} : vector<96x32xf32> to vector<12x32xf32>
    %629 = vector.extract_strided_slice %562 {offsets = [12, 0], sizes = [12, 32], strides = [1, 1]} : vector<96x32xf32> to vector<12x32xf32>
    %630 = vector.extract_strided_slice %627 {offsets = [0, 0], sizes = [8, 8], strides = [1, 1]} : vector<8x32xf32> to vector<8x8xf32>
    %631 = vector.extract_strided_slice %628 {offsets = [0, 0], sizes = [12, 8], strides = [1, 1]} : vector<12x32xf32> to vector<12x8xf32>
    %cst_175 = arith.constant dense<0.000000e+00> : vector<8x12xf32>
    %632 = tpu.matmul %630, %631, %cst_175 {dimension_numbers = #tpu.dot_dimension_numbers<[1], [1], [0], [0], [0, 0, 1, 0], [], []>} : vector<8x8xf32>, vector<12x8xf32>, vector<8x12xf32> -> vector<8x12xf32>
    %cst_176 = arith.constant dense<0xFF800000> : vector<8xf32>
    %633 = vector.multi_reduction <maximumf>, %632, %cst_176 [1] : vector<8x12xf32> to vector<8xf32>
    %634 = vector.shape_cast %633 : vector<8xf32> to vector<8x1xf32>
    %635 = vector.broadcast %634 : vector<8x1xf32> to vector<8x12xf32>
    %636 = arith.subf %632, %635 : vector<8x12xf32>
    %637 = math.exp %636 : vector<8x12xf32>
    %cst_177 = arith.constant dense<0.000000e+00> : vector<8xf32>
    %638 = vector.multi_reduction <add>, %637, %cst_177 [1] : vector<8x12xf32> to vector<8xf32>
    %639 = vector.shape_cast %638 : vector<8xf32> to vector<8x1xf32>
    %640 = tpu.reciprocal %639 {approx = true} : vector<8x1xf32> -> vector<8x1xf32>
    %641 = vector.broadcast %640 : vector<8x1xf32> to vector<8x12xf32>
    %642 = arith.mulf %637, %641 : vector<8x12xf32>
    %643 = vector.extract_strided_slice %629 {offsets = [0, 0], sizes = [12, 8], strides = [1, 1]} : vector<12x32xf32> to vector<12x8xf32>
    %cst_178 = arith.constant dense<0.000000e+00> : vector<8x8xf32>
    %644 = tpu.matmul %642, %643, %cst_178 {dimension_numbers = #tpu.dot_dimension_numbers<[1], [0], [0], [1], [0, 0, 1, 1], [], []>} : vector<8x12xf32>, vector<12x8xf32>, vector<8x8xf32> -> vector<8x8xf32>
    %645 = vector.extract_strided_slice %627 {offsets = [0, 8], sizes = [8, 8], strides = [1, 1]} : vector<8x32xf32> to vector<8x8xf32>
    %646 = vector.extract_strided_slice %628 {offsets = [0, 8], sizes = [12, 8], strides = [1, 1]} : vector<12x32xf32> to vector<12x8xf32>
    %cst_179 = arith.constant dense<0.000000e+00> : vector<8x12xf32>
    %647 = tpu.matmul %645, %646, %cst_179 {dimension_numbers = #tpu.dot_dimension_numbers<[1], [1], [0], [0], [0, 0, 1, 0], [], []>} : vector<8x8xf32>, vector<12x8xf32>, vector<8x12xf32> -> vector<8x12xf32>
    %cst_180 = arith.constant dense<0xFF800000> : vector<8xf32>
    %648 = vector.multi_reduction <maximumf>, %647, %cst_180 [1] : vector<8x12xf32> to vector<8xf32>
    %649 = vector.shape_cast %648 : vector<8xf32> to vector<8x1xf32>
    %650 = vector.broadcast %649 : vector<8x1xf32> to vector<8x12xf32>
    %651 = arith.subf %647, %650 : vector<8x12xf32>
    %652 = math.exp %651 : vector<8x12xf32>
    %cst_181 = arith.constant dense<0.000000e+00> : vector<8xf32>
    %653 = vector.multi_reduction <add>, %652, %cst_181 [1] : vector<8x12xf32> to vector<8xf32>
    %654 = vector.shape_cast %653 : vector<8xf32> to vector<8x1xf32>
    %655 = tpu.reciprocal %654 {approx = true} : vector<8x1xf32> -> vector<8x1xf32>
    %656 = vector.broadcast %655 : vector<8x1xf32> to vector<8x12xf32>
    %657 = arith.mulf %652, %656 : vector<8x12xf32>
    %658 = vector.extract_strided_slice %629 {offsets = [0, 8], sizes = [12, 8], strides = [1, 1]} : vector<12x32xf32> to vector<12x8xf32>
    %cst_182 = arith.constant dense<0.000000e+00> : vector<8x8xf32>
    %659 = tpu.matmul %657, %658, %cst_182 {dimension_numbers = #tpu.dot_dimension_numbers<[1], [0], [0], [1], [0, 0, 1, 1], [], []>} : vector<8x12xf32>, vector<12x8xf32>, vector<8x8xf32> -> vector<8x8xf32>
    %660 = vector.extract_strided_slice %627 {offsets = [0, 16], sizes = [8, 8], strides = [1, 1]} : vector<8x32xf32> to vector<8x8xf32>
    %661 = vector.extract_strided_slice %628 {offsets = [0, 16], sizes = [12, 8], strides = [1, 1]} : vector<12x32xf32> to vector<12x8xf32>
    %cst_183 = arith.constant dense<0.000000e+00> : vector<8x12xf32>
    %662 = tpu.matmul %660, %661, %cst_183 {dimension_numbers = #tpu.dot_dimension_numbers<[1], [1], [0], [0], [0, 0, 1, 0], [], []>} : vector<8x8xf32>, vector<12x8xf32>, vector<8x12xf32> -> vector<8x12xf32>
    %cst_184 = arith.constant dense<0xFF800000> : vector<8xf32>
    %663 = vector.multi_reduction <maximumf>, %662, %cst_184 [1] : vector<8x12xf32> to vector<8xf32>
    %664 = vector.shape_cast %663 : vector<8xf32> to vector<8x1xf32>
    %665 = vector.broadcast %664 : vector<8x1xf32> to vector<8x12xf32>
    %666 = arith.subf %662, %665 : vector<8x12xf32>
    %667 = math.exp %666 : vector<8x12xf32>
    %cst_185 = arith.constant dense<0.000000e+00> : vector<8xf32>
    %668 = vector.multi_reduction <add>, %667, %cst_185 [1] : vector<8x12xf32> to vector<8xf32>
    %669 = vector.shape_cast %668 : vector<8xf32> to vector<8x1xf32>
    %670 = tpu.reciprocal %669 {approx = true} : vector<8x1xf32> -> vector<8x1xf32>
    %671 = vector.broadcast %670 : vector<8x1xf32> to vector<8x12xf32>
    %672 = arith.mulf %667, %671 : vector<8x12xf32>
    %673 = vector.extract_strided_slice %629 {offsets = [0, 16], sizes = [12, 8], strides = [1, 1]} : vector<12x32xf32> to vector<12x8xf32>
    %cst_186 = arith.constant dense<0.000000e+00> : vector<8x8xf32>
    %674 = tpu.matmul %672, %673, %cst_186 {dimension_numbers = #tpu.dot_dimension_numbers<[1], [0], [0], [1], [0, 0, 1, 1], [], []>} : vector<8x12xf32>, vector<12x8xf32>, vector<8x8xf32> -> vector<8x8xf32>
    %675 = vector.extract_strided_slice %627 {offsets = [0, 24], sizes = [8, 8], strides = [1, 1]} : vector<8x32xf32> to vector<8x8xf32>
    %676 = vector.extract_strided_slice %628 {offsets = [0, 24], sizes = [12, 8], strides = [1, 1]} : vector<12x32xf32> to vector<12x8xf32>
    %cst_187 = arith.constant dense<0.000000e+00> : vector<8x12xf32>
    %677 = tpu.matmul %675, %676, %cst_187 {dimension_numbers = #tpu.dot_dimension_numbers<[1], [1], [0], [0], [0, 0, 1, 0], [], []>} : vector<8x8xf32>, vector<12x8xf32>, vector<8x12xf32> -> vector<8x12xf32>
    %cst_188 = arith.constant dense<0xFF800000> : vector<8xf32>
    %678 = vector.multi_reduction <maximumf>, %677, %cst_188 [1] : vector<8x12xf32> to vector<8xf32>
    %679 = vector.shape_cast %678 : vector<8xf32> to vector<8x1xf32>
    %680 = vector.broadcast %679 : vector<8x1xf32> to vector<8x12xf32>
    %681 = arith.subf %677, %680 : vector<8x12xf32>
    %682 = math.exp %681 : vector<8x12xf32>
    %cst_189 = arith.constant dense<0.000000e+00> : vector<8xf32>
    %683 = vector.multi_reduction <add>, %682, %cst_189 [1] : vector<8x12xf32> to vector<8xf32>
    %684 = vector.shape_cast %683 : vector<8xf32> to vector<8x1xf32>
    %685 = tpu.reciprocal %684 {approx = true} : vector<8x1xf32> -> vector<8x1xf32>
    %686 = vector.broadcast %685 : vector<8x1xf32> to vector<8x12xf32>
    %687 = arith.mulf %682, %686 : vector<8x12xf32>
    %688 = vector.extract_strided_slice %629 {offsets = [0, 24], sizes = [12, 8], strides = [1, 1]} : vector<12x32xf32> to vector<12x8xf32>
    %cst_190 = arith.constant dense<0.000000e+00> : vector<8x8xf32>
    %689 = tpu.matmul %687, %688, %cst_190 {dimension_numbers = #tpu.dot_dimension_numbers<[1], [0], [0], [1], [0, 0, 1, 1], [], []>} : vector<8x12xf32>, vector<12x8xf32>, vector<8x8xf32> -> vector<8x8xf32>
    %690 = tpu.concatenate %644, %659, %674, %689 in 1 : vector<8x8xf32>, vector<8x8xf32>, vector<8x8xf32>, vector<8x8xf32> -> vector<8x32xf32>
    %691 = vector.extract_strided_slice %555 {offsets = [16, 0], sizes = [8, 32], strides = [1, 1]} : vector<64x32xf32> to vector<8x32xf32>
    %692 = vector.extract_strided_slice %561 {offsets = [24, 0], sizes = [12, 32], strides = [1, 1]} : vector<96x32xf32> to vector<12x32xf32>
    %693 = vector.extract_strided_slice %562 {offsets = [24, 0], sizes = [12, 32], strides = [1, 1]} : vector<96x32xf32> to vector<12x32xf32>
    %694 = vector.extract_strided_slice %691 {offsets = [0, 0], sizes = [8, 8], strides = [1, 1]} : vector<8x32xf32> to vector<8x8xf32>
    %695 = vector.extract_strided_slice %692 {offsets = [0, 0], sizes = [12, 8], strides = [1, 1]} : vector<12x32xf32> to vector<12x8xf32>
    %cst_191 = arith.constant dense<0.000000e+00> : vector<8x12xf32>
    %696 = tpu.matmul %694, %695, %cst_191 {dimension_numbers = #tpu.dot_dimension_numbers<[1], [1], [0], [0], [0, 0, 1, 0], [], []>} : vector<8x8xf32>, vector<12x8xf32>, vector<8x12xf32> -> vector<8x12xf32>
    %cst_192 = arith.constant dense<0xFF800000> : vector<8xf32>
    %697 = vector.multi_reduction <maximumf>, %696, %cst_192 [1] : vector<8x12xf32> to vector<8xf32>
    %698 = vector.shape_cast %697 : vector<8xf32> to vector<8x1xf32>
    %699 = vector.broadcast %698 : vector<8x1xf32> to vector<8x12xf32>
    %700 = arith.subf %696, %699 : vector<8x12xf32>
    %701 = math.exp %700 : vector<8x12xf32>
    %cst_193 = arith.constant dense<0.000000e+00> : vector<8xf32>
    %702 = vector.multi_reduction <add>, %701, %cst_193 [1] : vector<8x12xf32> to vector<8xf32>
    %703 = vector.shape_cast %702 : vector<8xf32> to vector<8x1xf32>
    %704 = tpu.reciprocal %703 {approx = true} : vector<8x1xf32> -> vector<8x1xf32>
    %705 = vector.broadcast %704 : vector<8x1xf32> to vector<8x12xf32>
    %706 = arith.mulf %701, %705 : vector<8x12xf32>
    %707 = vector.extract_strided_slice %693 {offsets = [0, 0], sizes = [12, 8], strides = [1, 1]} : vector<12x32xf32> to vector<12x8xf32>
    %cst_194 = arith.constant dense<0.000000e+00> : vector<8x8xf32>
    %708 = tpu.matmul %706, %707, %cst_194 {dimension_numbers = #tpu.dot_dimension_numbers<[1], [0], [0], [1], [0, 0, 1, 1], [], []>} : vector<8x12xf32>, vector<12x8xf32>, vector<8x8xf32> -> vector<8x8xf32>
    %709 = vector.extract_strided_slice %691 {offsets = [0, 8], sizes = [8, 8], strides = [1, 1]} : vector<8x32xf32> to vector<8x8xf32>
    %710 = vector.extract_strided_slice %692 {offsets = [0, 8], sizes = [12, 8], strides = [1, 1]} : vector<12x32xf32> to vector<12x8xf32>
    %cst_195 = arith.constant dense<0.000000e+00> : vector<8x12xf32>
    %711 = tpu.matmul %709, %710, %cst_195 {dimension_numbers = #tpu.dot_dimension_numbers<[1], [1], [0], [0], [0, 0, 1, 0], [], []>} : vector<8x8xf32>, vector<12x8xf32>, vector<8x12xf32> -> vector<8x12xf32>
    %cst_196 = arith.constant dense<0xFF800000> : vector<8xf32>
    %712 = vector.multi_reduction <maximumf>, %711, %cst_196 [1] : vector<8x12xf32> to vector<8xf32>
    %713 = vector.shape_cast %712 : vector<8xf32> to vector<8x1xf32>
    %714 = vector.broadcast %713 : vector<8x1xf32> to vector<8x12xf32>
    %715 = arith.subf %711, %714 : vector<8x12xf32>
    %716 = math.exp %715 : vector<8x12xf32>
    %cst_197 = arith.constant dense<0.000000e+00> : vector<8xf32>
    %717 = vector.multi_reduction <add>, %716, %cst_197 [1] : vector<8x12xf32> to vector<8xf32>
    %718 = vector.shape_cast %717 : vector<8xf32> to vector<8x1xf32>
    %719 = tpu.reciprocal %718 {approx = true} : vector<8x1xf32> -> vector<8x1xf32>
    %720 = vector.broadcast %719 : vector<8x1xf32> to vector<8x12xf32>
    %721 = arith.mulf %716, %720 : vector<8x12xf32>
    %722 = vector.extract_strided_slice %693 {offsets = [0, 8], sizes = [12, 8], strides = [1, 1]} : vector<12x32xf32> to vector<12x8xf32>
    %cst_198 = arith.constant dense<0.000000e+00> : vector<8x8xf32>
    %723 = tpu.matmul %721, %722, %cst_198 {dimension_numbers = #tpu.dot_dimension_numbers<[1], [0], [0], [1], [0, 0, 1, 1], [], []>} : vector<8x12xf32>, vector<12x8xf32>, vector<8x8xf32> -> vector<8x8xf32>
    %724 = vector.extract_strided_slice %691 {offsets = [0, 16], sizes = [8, 8], strides = [1, 1]} : vector<8x32xf32> to vector<8x8xf32>
    %725 = vector.extract_strided_slice %692 {offsets = [0, 16], sizes = [12, 8], strides = [1, 1]} : vector<12x32xf32> to vector<12x8xf32>
    %cst_199 = arith.constant dense<0.000000e+00> : vector<8x12xf32>
    %726 = tpu.matmul %724, %725, %cst_199 {dimension_numbers = #tpu.dot_dimension_numbers<[1], [1], [0], [0], [0, 0, 1, 0], [], []>} : vector<8x8xf32>, vector<12x8xf32>, vector<8x12xf32> -> vector<8x12xf32>
    %cst_200 = arith.constant dense<0xFF800000> : vector<8xf32>
    %727 = vector.multi_reduction <maximumf>, %726, %cst_200 [1] : vector<8x12xf32> to vector<8xf32>
    %728 = vector.shape_cast %727 : vector<8xf32> to vector<8x1xf32>
    %729 = vector.broadcast %728 : vector<8x1xf32> to vector<8x12xf32>
    %730 = arith.subf %726, %729 : vector<8x12xf32>
    %731 = math.exp %730 : vector<8x12xf32>
    %cst_201 = arith.constant dense<0.000000e+00> : vector<8xf32>
    %732 = vector.multi_reduction <add>, %731, %cst_201 [1] : vector<8x12xf32> to vector<8xf32>
    %733 = vector.shape_cast %732 : vector<8xf32> to vector<8x1xf32>
    %734 = tpu.reciprocal %733 {approx = true} : vector<8x1xf32> -> vector<8x1xf32>
    %735 = vector.broadcast %734 : vector<8x1xf32> to vector<8x12xf32>
    %736 = arith.mulf %731, %735 : vector<8x12xf32>
    %737 = vector.extract_strided_slice %693 {offsets = [0, 16], sizes = [12, 8], strides = [1, 1]} : vector<12x32xf32> to vector<12x8xf32>
    %cst_202 = arith.constant dense<0.000000e+00> : vector<8x8xf32>
    %738 = tpu.matmul %736, %737, %cst_202 {dimension_numbers = #tpu.dot_dimension_numbers<[1], [0], [0], [1], [0, 0, 1, 1], [], []>} : vector<8x12xf32>, vector<12x8xf32>, vector<8x8xf32> -> vector<8x8xf32>
    %739 = vector.extract_strided_slice %691 {offsets = [0, 24], sizes = [8, 8], strides = [1, 1]} : vector<8x32xf32> to vector<8x8xf32>
    %740 = vector.extract_strided_slice %692 {offsets = [0, 24], sizes = [12, 8], strides = [1, 1]} : vector<12x32xf32> to vector<12x8xf32>
    %cst_203 = arith.constant dense<0.000000e+00> : vector<8x12xf32>
    %741 = tpu.matmul %739, %740, %cst_203 {dimension_numbers = #tpu.dot_dimension_numbers<[1], [1], [0], [0], [0, 0, 1, 0], [], []>} : vector<8x8xf32>, vector<12x8xf32>, vector<8x12xf32> -> vector<8x12xf32>
    %cst_204 = arith.constant dense<0xFF800000> : vector<8xf32>
    %742 = vector.multi_reduction <maximumf>, %741, %cst_204 [1] : vector<8x12xf32> to vector<8xf32>
    %743 = vector.shape_cast %742 : vector<8xf32> to vector<8x1xf32>
    %744 = vector.broadcast %743 : vector<8x1xf32> to vector<8x12xf32>
    %745 = arith.subf %741, %744 : vector<8x12xf32>
    %746 = math.exp %745 : vector<8x12xf32>
    %cst_205 = arith.constant dense<0.000000e+00> : vector<8xf32>
    %747 = vector.multi_reduction <add>, %746, %cst_205 [1] : vector<8x12xf32> to vector<8xf32>
    %748 = vector.shape_cast %747 : vector<8xf32> to vector<8x1xf32>
    %749 = tpu.reciprocal %748 {approx = true} : vector<8x1xf32> -> vector<8x1xf32>
    %750 = vector.broadcast %749 : vector<8x1xf32> to vector<8x12xf32>
    %751 = arith.mulf %746, %750 : vector<8x12xf32>
    %752 = vector.extract_strided_slice %693 {offsets = [0, 24], sizes = [12, 8], strides = [1, 1]} : vector<12x32xf32> to vector<12x8xf32>
    %cst_206 = arith.constant dense<0.000000e+00> : vector<8x8xf32>
    %753 = tpu.matmul %751, %752, %cst_206 {dimension_numbers = #tpu.dot_dimension_numbers<[1], [0], [0], [1], [0, 0, 1, 1], [], []>} : vector<8x12xf32>, vector<12x8xf32>, vector<8x8xf32> -> vector<8x8xf32>
    %754 = tpu.concatenate %708, %723, %738, %753 in 1 : vector<8x8xf32>, vector<8x8xf32>, vector<8x8xf32>, vector<8x8xf32> -> vector<8x32xf32>
    %755 = vector.extract_strided_slice %555 {offsets = [24, 0], sizes = [8, 32], strides = [1, 1]} : vector<64x32xf32> to vector<8x32xf32>
    %756 = vector.extract_strided_slice %561 {offsets = [36, 0], sizes = [12, 32], strides = [1, 1]} : vector<96x32xf32> to vector<12x32xf32>
    %757 = vector.extract_strided_slice %562 {offsets = [36, 0], sizes = [12, 32], strides = [1, 1]} : vector<96x32xf32> to vector<12x32xf32>
    %758 = vector.extract_strided_slice %755 {offsets = [0, 0], sizes = [8, 8], strides = [1, 1]} : vector<8x32xf32> to vector<8x8xf32>
    %759 = vector.extract_strided_slice %756 {offsets = [0, 0], sizes = [12, 8], strides = [1, 1]} : vector<12x32xf32> to vector<12x8xf32>
    %cst_207 = arith.constant dense<0.000000e+00> : vector<8x12xf32>
    %760 = tpu.matmul %758, %759, %cst_207 {dimension_numbers = #tpu.dot_dimension_numbers<[1], [1], [0], [0], [0, 0, 1, 0], [], []>} : vector<8x8xf32>, vector<12x8xf32>, vector<8x12xf32> -> vector<8x12xf32>
    %cst_208 = arith.constant dense<0xFF800000> : vector<8xf32>
    %761 = vector.multi_reduction <maximumf>, %760, %cst_208 [1] : vector<8x12xf32> to vector<8xf32>
    %762 = vector.shape_cast %761 : vector<8xf32> to vector<8x1xf32>
    %763 = vector.broadcast %762 : vector<8x1xf32> to vector<8x12xf32>
    %764 = arith.subf %760, %763 : vector<8x12xf32>
    %765 = math.exp %764 : vector<8x12xf32>
    %cst_209 = arith.constant dense<0.000000e+00> : vector<8xf32>
    %766 = vector.multi_reduction <add>, %765, %cst_209 [1] : vector<8x12xf32> to vector<8xf32>
    %767 = vector.shape_cast %766 : vector<8xf32> to vector<8x1xf32>
    %768 = tpu.reciprocal %767 {approx = true} : vector<8x1xf32> -> vector<8x1xf32>
    %769 = vector.broadcast %768 : vector<8x1xf32> to vector<8x12xf32>
    %770 = arith.mulf %765, %769 : vector<8x12xf32>
    %771 = vector.extract_strided_slice %757 {offsets = [0, 0], sizes = [12, 8], strides = [1, 1]} : vector<12x32xf32> to vector<12x8xf32>
    %cst_210 = arith.constant dense<0.000000e+00> : vector<8x8xf32>
    %772 = tpu.matmul %770, %771, %cst_210 {dimension_numbers = #tpu.dot_dimension_numbers<[1], [0], [0], [1], [0, 0, 1, 1], [], []>} : vector<8x12xf32>, vector<12x8xf32>, vector<8x8xf32> -> vector<8x8xf32>
    %773 = vector.extract_strided_slice %755 {offsets = [0, 8], sizes = [8, 8], strides = [1, 1]} : vector<8x32xf32> to vector<8x8xf32>
    %774 = vector.extract_strided_slice %756 {offsets = [0, 8], sizes = [12, 8], strides = [1, 1]} : vector<12x32xf32> to vector<12x8xf32>
    %cst_211 = arith.constant dense<0.000000e+00> : vector<8x12xf32>
    %775 = tpu.matmul %773, %774, %cst_211 {dimension_numbers = #tpu.dot_dimension_numbers<[1], [1], [0], [0], [0, 0, 1, 0], [], []>} : vector<8x8xf32>, vector<12x8xf32>, vector<8x12xf32> -> vector<8x12xf32>
    %cst_212 = arith.constant dense<0xFF800000> : vector<8xf32>
    %776 = vector.multi_reduction <maximumf>, %775, %cst_212 [1] : vector<8x12xf32> to vector<8xf32>
    %777 = vector.shape_cast %776 : vector<8xf32> to vector<8x1xf32>
    %778 = vector.broadcast %777 : vector<8x1xf32> to vector<8x12xf32>
    %779 = arith.subf %775, %778 : vector<8x12xf32>
    %780 = math.exp %779 : vector<8x12xf32>
    %cst_213 = arith.constant dense<0.000000e+00> : vector<8xf32>
    %781 = vector.multi_reduction <add>, %780, %cst_213 [1] : vector<8x12xf32> to vector<8xf32>
    %782 = vector.shape_cast %781 : vector<8xf32> to vector<8x1xf32>
    %783 = tpu.reciprocal %782 {approx = true} : vector<8x1xf32> -> vector<8x1xf32>
    %784 = vector.broadcast %783 : vector<8x1xf32> to vector<8x12xf32>
    %785 = arith.mulf %780, %784 : vector<8x12xf32>
    %786 = vector.extract_strided_slice %757 {offsets = [0, 8], sizes = [12, 8], strides = [1, 1]} : vector<12x32xf32> to vector<12x8xf32>
    %cst_214 = arith.constant dense<0.000000e+00> : vector<8x8xf32>
    %787 = tpu.matmul %785, %786, %cst_214 {dimension_numbers = #tpu.dot_dimension_numbers<[1], [0], [0], [1], [0, 0, 1, 1], [], []>} : vector<8x12xf32>, vector<12x8xf32>, vector<8x8xf32> -> vector<8x8xf32>
    %788 = vector.extract_strided_slice %755 {offsets = [0, 16], sizes = [8, 8], strides = [1, 1]} : vector<8x32xf32> to vector<8x8xf32>
    %789 = vector.extract_strided_slice %756 {offsets = [0, 16], sizes = [12, 8], strides = [1, 1]} : vector<12x32xf32> to vector<12x8xf32>
    %cst_215 = arith.constant dense<0.000000e+00> : vector<8x12xf32>
    %790 = tpu.matmul %788, %789, %cst_215 {dimension_numbers = #tpu.dot_dimension_numbers<[1], [1], [0], [0], [0, 0, 1, 0], [], []>} : vector<8x8xf32>, vector<12x8xf32>, vector<8x12xf32> -> vector<8x12xf32>
    %cst_216 = arith.constant dense<0xFF800000> : vector<8xf32>
    %791 = vector.multi_reduction <maximumf>, %790, %cst_216 [1] : vector<8x12xf32> to vector<8xf32>
    %792 = vector.shape_cast %791 : vector<8xf32> to vector<8x1xf32>
    %793 = vector.broadcast %792 : vector<8x1xf32> to vector<8x12xf32>
    %794 = arith.subf %790, %793 : vector<8x12xf32>
    %795 = math.exp %794 : vector<8x12xf32>
    %cst_217 = arith.constant dense<0.000000e+00> : vector<8xf32>
    %796 = vector.multi_reduction <add>, %795, %cst_217 [1] : vector<8x12xf32> to vector<8xf32>
    %797 = vector.shape_cast %796 : vector<8xf32> to vector<8x1xf32>
    %798 = tpu.reciprocal %797 {approx = true} : vector<8x1xf32> -> vector<8x1xf32>
    %799 = vector.broadcast %798 : vector<8x1xf32> to vector<8x12xf32>
    %800 = arith.mulf %795, %799 : vector<8x12xf32>
    %801 = vector.extract_strided_slice %757 {offsets = [0, 16], sizes = [12, 8], strides = [1, 1]} : vector<12x32xf32> to vector<12x8xf32>
    %cst_218 = arith.constant dense<0.000000e+00> : vector<8x8xf32>
    %802 = tpu.matmul %800, %801, %cst_218 {dimension_numbers = #tpu.dot_dimension_numbers<[1], [0], [0], [1], [0, 0, 1, 1], [], []>} : vector<8x12xf32>, vector<12x8xf32>, vector<8x8xf32> -> vector<8x8xf32>
    %803 = vector.extract_strided_slice %755 {offsets = [0, 24], sizes = [8, 8], strides = [1, 1]} : vector<8x32xf32> to vector<8x8xf32>
    %804 = vector.extract_strided_slice %756 {offsets = [0, 24], sizes = [12, 8], strides = [1, 1]} : vector<12x32xf32> to vector<12x8xf32>
    %cst_219 = arith.constant dense<0.000000e+00> : vector<8x12xf32>
    %805 = tpu.matmul %803, %804, %cst_219 {dimension_numbers = #tpu.dot_dimension_numbers<[1], [1], [0], [0], [0, 0, 1, 0], [], []>} : vector<8x8xf32>, vector<12x8xf32>, vector<8x12xf32> -> vector<8x12xf32>
    %cst_220 = arith.constant dense<0xFF800000> : vector<8xf32>
    %806 = vector.multi_reduction <maximumf>, %805, %cst_220 [1] : vector<8x12xf32> to vector<8xf32>
    %807 = vector.shape_cast %806 : vector<8xf32> to vector<8x1xf32>
    %808 = vector.broadcast %807 : vector<8x1xf32> to vector<8x12xf32>
    %809 = arith.subf %805, %808 : vector<8x12xf32>
    %810 = math.exp %809 : vector<8x12xf32>
    %cst_221 = arith.constant dense<0.000000e+00> : vector<8xf32>
    %811 = vector.multi_reduction <add>, %810, %cst_221 [1] : vector<8x12xf32> to vector<8xf32>
    %812 = vector.shape_cast %811 : vector<8xf32> to vector<8x1xf32>
    %813 = tpu.reciprocal %812 {approx = true} : vector<8x1xf32> -> vector<8x1xf32>
    %814 = vector.broadcast %813 : vector<8x1xf32> to vector<8x12xf32>
    %815 = arith.mulf %810, %814 : vector<8x12xf32>
    %816 = vector.extract_strided_slice %757 {offsets = [0, 24], sizes = [12, 8], strides = [1, 1]} : vector<12x32xf32> to vector<12x8xf32>
    %cst_222 = arith.constant dense<0.000000e+00> : vector<8x8xf32>
    %817 = tpu.matmul %815, %816, %cst_222 {dimension_numbers = #tpu.dot_dimension_numbers<[1], [0], [0], [1], [0, 0, 1, 1], [], []>} : vector<8x12xf32>, vector<12x8xf32>, vector<8x8xf32> -> vector<8x8xf32>
    %818 = tpu.concatenate %772, %787, %802, %817 in 1 : vector<8x8xf32>, vector<8x8xf32>, vector<8x8xf32>, vector<8x8xf32> -> vector<8x32xf32>
    %819 = vector.extract_strided_slice %555 {offsets = [32, 0], sizes = [8, 32], strides = [1, 1]} : vector<64x32xf32> to vector<8x32xf32>
    %820 = vector.extract_strided_slice %561 {offsets = [48, 0], sizes = [12, 32], strides = [1, 1]} : vector<96x32xf32> to vector<12x32xf32>
    %821 = vector.extract_strided_slice %562 {offsets = [48, 0], sizes = [12, 32], strides = [1, 1]} : vector<96x32xf32> to vector<12x32xf32>
    %822 = vector.extract_strided_slice %819 {offsets = [0, 0], sizes = [8, 8], strides = [1, 1]} : vector<8x32xf32> to vector<8x8xf32>
    %823 = vector.extract_strided_slice %820 {offsets = [0, 0], sizes = [12, 8], strides = [1, 1]} : vector<12x32xf32> to vector<12x8xf32>
    %cst_223 = arith.constant dense<0.000000e+00> : vector<8x12xf32>
    %824 = tpu.matmul %822, %823, %cst_223 {dimension_numbers = #tpu.dot_dimension_numbers<[1], [1], [0], [0], [0, 0, 1, 0], [], []>} : vector<8x8xf32>, vector<12x8xf32>, vector<8x12xf32> -> vector<8x12xf32>
    %cst_224 = arith.constant dense<0xFF800000> : vector<8xf32>
    %825 = vector.multi_reduction <maximumf>, %824, %cst_224 [1] : vector<8x12xf32> to vector<8xf32>
    %826 = vector.shape_cast %825 : vector<8xf32> to vector<8x1xf32>
    %827 = vector.broadcast %826 : vector<8x1xf32> to vector<8x12xf32>
    %828 = arith.subf %824, %827 : vector<8x12xf32>
    %829 = math.exp %828 : vector<8x12xf32>
    %cst_225 = arith.constant dense<0.000000e+00> : vector<8xf32>
    %830 = vector.multi_reduction <add>, %829, %cst_225 [1] : vector<8x12xf32> to vector<8xf32>
    %831 = vector.shape_cast %830 : vector<8xf32> to vector<8x1xf32>
    %832 = tpu.reciprocal %831 {approx = true} : vector<8x1xf32> -> vector<8x1xf32>
    %833 = vector.broadcast %832 : vector<8x1xf32> to vector<8x12xf32>
    %834 = arith.mulf %829, %833 : vector<8x12xf32>
    %835 = vector.extract_strided_slice %821 {offsets = [0, 0], sizes = [12, 8], strides = [1, 1]} : vector<12x32xf32> to vector<12x8xf32>
    %cst_226 = arith.constant dense<0.000000e+00> : vector<8x8xf32>
    %836 = tpu.matmul %834, %835, %cst_226 {dimension_numbers = #tpu.dot_dimension_numbers<[1], [0], [0], [1], [0, 0, 1, 1], [], []>} : vector<8x12xf32>, vector<12x8xf32>, vector<8x8xf32> -> vector<8x8xf32>
    %837 = vector.extract_strided_slice %819 {offsets = [0, 8], sizes = [8, 8], strides = [1, 1]} : vector<8x32xf32> to vector<8x8xf32>
    %838 = vector.extract_strided_slice %820 {offsets = [0, 8], sizes = [12, 8], strides = [1, 1]} : vector<12x32xf32> to vector<12x8xf32>
    %cst_227 = arith.constant dense<0.000000e+00> : vector<8x12xf32>
    %839 = tpu.matmul %837, %838, %cst_227 {dimension_numbers = #tpu.dot_dimension_numbers<[1], [1], [0], [0], [0, 0, 1, 0], [], []>} : vector<8x8xf32>, vector<12x8xf32>, vector<8x12xf32> -> vector<8x12xf32>
    %cst_228 = arith.constant dense<0xFF800000> : vector<8xf32>
    %840 = vector.multi_reduction <maximumf>, %839, %cst_228 [1] : vector<8x12xf32> to vector<8xf32>
    %841 = vector.shape_cast %840 : vector<8xf32> to vector<8x1xf32>
    %842 = vector.broadcast %841 : vector<8x1xf32> to vector<8x12xf32>
    %843 = arith.subf %839, %842 : vector<8x12xf32>
    %844 = math.exp %843 : vector<8x12xf32>
    %cst_229 = arith.constant dense<0.000000e+00> : vector<8xf32>
    %845 = vector.multi_reduction <add>, %844, %cst_229 [1] : vector<8x12xf32> to vector<8xf32>
    %846 = vector.shape_cast %845 : vector<8xf32> to vector<8x1xf32>
    %847 = tpu.reciprocal %846 {approx = true} : vector<8x1xf32> -> vector<8x1xf32>
    %848 = vector.broadcast %847 : vector<8x1xf32> to vector<8x12xf32>
    %849 = arith.mulf %844, %848 : vector<8x12xf32>
    %850 = vector.extract_strided_slice %821 {offsets = [0, 8], sizes = [12, 8], strides = [1, 1]} : vector<12x32xf32> to vector<12x8xf32>
    %cst_230 = arith.constant dense<0.000000e+00> : vector<8x8xf32>
    %851 = tpu.matmul %849, %850, %cst_230 {dimension_numbers = #tpu.dot_dimension_numbers<[1], [0], [0], [1], [0, 0, 1, 1], [], []>} : vector<8x12xf32>, vector<12x8xf32>, vector<8x8xf32> -> vector<8x8xf32>
    %852 = vector.extract_strided_slice %819 {offsets = [0, 16], sizes = [8, 8], strides = [1, 1]} : vector<8x32xf32> to vector<8x8xf32>
    %853 = vector.extract_strided_slice %820 {offsets = [0, 16], sizes = [12, 8], strides = [1, 1]} : vector<12x32xf32> to vector<12x8xf32>
    %cst_231 = arith.constant dense<0.000000e+00> : vector<8x12xf32>
    %854 = tpu.matmul %852, %853, %cst_231 {dimension_numbers = #tpu.dot_dimension_numbers<[1], [1], [0], [0], [0, 0, 1, 0], [], []>} : vector<8x8xf32>, vector<12x8xf32>, vector<8x12xf32> -> vector<8x12xf32>
    %cst_232 = arith.constant dense<0xFF800000> : vector<8xf32>
    %855 = vector.multi_reduction <maximumf>, %854, %cst_232 [1] : vector<8x12xf32> to vector<8xf32>
    %856 = vector.shape_cast %855 : vector<8xf32> to vector<8x1xf32>
    %857 = vector.broadcast %856 : vector<8x1xf32> to vector<8x12xf32>
    %858 = arith.subf %854, %857 : vector<8x12xf32>
    %859 = math.exp %858 : vector<8x12xf32>
    %cst_233 = arith.constant dense<0.000000e+00> : vector<8xf32>
    %860 = vector.multi_reduction <add>, %859, %cst_233 [1] : vector<8x12xf32> to vector<8xf32>
    %861 = vector.shape_cast %860 : vector<8xf32> to vector<8x1xf32>
    %862 = tpu.reciprocal %861 {approx = true} : vector<8x1xf32> -> vector<8x1xf32>
    %863 = vector.broadcast %862 : vector<8x1xf32> to vector<8x12xf32>
    %864 = arith.mulf %859, %863 : vector<8x12xf32>
    %865 = vector.extract_strided_slice %821 {offsets = [0, 16], sizes = [12, 8], strides = [1, 1]} : vector<12x32xf32> to vector<12x8xf32>
    %cst_234 = arith.constant dense<0.000000e+00> : vector<8x8xf32>
    %866 = tpu.matmul %864, %865, %cst_234 {dimension_numbers = #tpu.dot_dimension_numbers<[1], [0], [0], [1], [0, 0, 1, 1], [], []>} : vector<8x12xf32>, vector<12x8xf32>, vector<8x8xf32> -> vector<8x8xf32>
    %867 = vector.extract_strided_slice %819 {offsets = [0, 24], sizes = [8, 8], strides = [1, 1]} : vector<8x32xf32> to vector<8x8xf32>
    %868 = vector.extract_strided_slice %820 {offsets = [0, 24], sizes = [12, 8], strides = [1, 1]} : vector<12x32xf32> to vector<12x8xf32>
    %cst_235 = arith.constant dense<0.000000e+00> : vector<8x12xf32>
    %869 = tpu.matmul %867, %868, %cst_235 {dimension_numbers = #tpu.dot_dimension_numbers<[1], [1], [0], [0], [0, 0, 1, 0], [], []>} : vector<8x8xf32>, vector<12x8xf32>, vector<8x12xf32> -> vector<8x12xf32>
    %cst_236 = arith.constant dense<0xFF800000> : vector<8xf32>
    %870 = vector.multi_reduction <maximumf>, %869, %cst_236 [1] : vector<8x12xf32> to vector<8xf32>
    %871 = vector.shape_cast %870 : vector<8xf32> to vector<8x1xf32>
    %872 = vector.broadcast %871 : vector<8x1xf32> to vector<8x12xf32>
    %873 = arith.subf %869, %872 : vector<8x12xf32>
    %874 = math.exp %873 : vector<8x12xf32>
    %cst_237 = arith.constant dense<0.000000e+00> : vector<8xf32>
    %875 = vector.multi_reduction <add>, %874, %cst_237 [1] : vector<8x12xf32> to vector<8xf32>
    %876 = vector.shape_cast %875 : vector<8xf32> to vector<8x1xf32>
    %877 = tpu.reciprocal %876 {approx = true} : vector<8x1xf32> -> vector<8x1xf32>
    %878 = vector.broadcast %877 : vector<8x1xf32> to vector<8x12xf32>
    %879 = arith.mulf %874, %878 : vector<8x12xf32>
    %880 = vector.extract_strided_slice %821 {offsets = [0, 24], sizes = [12, 8], strides = [1, 1]} : vector<12x32xf32> to vector<12x8xf32>
    %cst_238 = arith.constant dense<0.000000e+00> : vector<8x8xf32>
    %881 = tpu.matmul %879, %880, %cst_238 {dimension_numbers = #tpu.dot_dimension_numbers<[1], [0], [0], [1], [0, 0, 1, 1], [], []>} : vector<8x12xf32>, vector<12x8xf32>, vector<8x8xf32> -> vector<8x8xf32>
    %882 = tpu.concatenate %836, %851, %866, %881 in 1 : vector<8x8xf32>, vector<8x8xf32>, vector<8x8xf32>, vector<8x8xf32> -> vector<8x32xf32>
    %883 = vector.extract_strided_slice %555 {offsets = [40, 0], sizes = [8, 32], strides = [1, 1]} : vector<64x32xf32> to vector<8x32xf32>
    %884 = vector.extract_strided_slice %561 {offsets = [60, 0], sizes = [12, 32], strides = [1, 1]} : vector<96x32xf32> to vector<12x32xf32>
    %885 = vector.extract_strided_slice %562 {offsets = [60, 0], sizes = [12, 32], strides = [1, 1]} : vector<96x32xf32> to vector<12x32xf32>
    %886 = vector.extract_strided_slice %883 {offsets = [0, 0], sizes = [8, 8], strides = [1, 1]} : vector<8x32xf32> to vector<8x8xf32>
    %887 = vector.extract_strided_slice %884 {offsets = [0, 0], sizes = [12, 8], strides = [1, 1]} : vector<12x32xf32> to vector<12x8xf32>
    %cst_239 = arith.constant dense<0.000000e+00> : vector<8x12xf32>
    %888 = tpu.matmul %886, %887, %cst_239 {dimension_numbers = #tpu.dot_dimension_numbers<[1], [1], [0], [0], [0, 0, 1, 0], [], []>} : vector<8x8xf32>, vector<12x8xf32>, vector<8x12xf32> -> vector<8x12xf32>
    %cst_240 = arith.constant dense<0xFF800000> : vector<8xf32>
    %889 = vector.multi_reduction <maximumf>, %888, %cst_240 [1] : vector<8x12xf32> to vector<8xf32>
    %890 = vector.shape_cast %889 : vector<8xf32> to vector<8x1xf32>
    %891 = vector.broadcast %890 : vector<8x1xf32> to vector<8x12xf32>
    %892 = arith.subf %888, %891 : vector<8x12xf32>
    %893 = math.exp %892 : vector<8x12xf32>
    %cst_241 = arith.constant dense<0.000000e+00> : vector<8xf32>
    %894 = vector.multi_reduction <add>, %893, %cst_241 [1] : vector<8x12xf32> to vector<8xf32>
    %895 = vector.shape_cast %894 : vector<8xf32> to vector<8x1xf32>
    %896 = tpu.reciprocal %895 {approx = true} : vector<8x1xf32> -> vector<8x1xf32>
    %897 = vector.broadcast %896 : vector<8x1xf32> to vector<8x12xf32>
    %898 = arith.mulf %893, %897 : vector<8x12xf32>
    %899 = vector.extract_strided_slice %885 {offsets = [0, 0], sizes = [12, 8], strides = [1, 1]} : vector<12x32xf32> to vector<12x8xf32>
    %cst_242 = arith.constant dense<0.000000e+00> : vector<8x8xf32>
    %900 = tpu.matmul %898, %899, %cst_242 {dimension_numbers = #tpu.dot_dimension_numbers<[1], [0], [0], [1], [0, 0, 1, 1], [], []>} : vector<8x12xf32>, vector<12x8xf32>, vector<8x8xf32> -> vector<8x8xf32>
    %901 = vector.extract_strided_slice %883 {offsets = [0, 8], sizes = [8, 8], strides = [1, 1]} : vector<8x32xf32> to vector<8x8xf32>
    %902 = vector.extract_strided_slice %884 {offsets = [0, 8], sizes = [12, 8], strides = [1, 1]} : vector<12x32xf32> to vector<12x8xf32>
    %cst_243 = arith.constant dense<0.000000e+00> : vector<8x12xf32>
    %903 = tpu.matmul %901, %902, %cst_243 {dimension_numbers = #tpu.dot_dimension_numbers<[1], [1], [0], [0], [0, 0, 1, 0], [], []>} : vector<8x8xf32>, vector<12x8xf32>, vector<8x12xf32> -> vector<8x12xf32>
    %cst_244 = arith.constant dense<0xFF800000> : vector<8xf32>
    %904 = vector.multi_reduction <maximumf>, %903, %cst_244 [1] : vector<8x12xf32> to vector<8xf32>
    %905 = vector.shape_cast %904 : vector<8xf32> to vector<8x1xf32>
    %906 = vector.broadcast %905 : vector<8x1xf32> to vector<8x12xf32>
    %907 = arith.subf %903, %906 : vector<8x12xf32>
    %908 = math.exp %907 : vector<8x12xf32>
    %cst_245 = arith.constant dense<0.000000e+00> : vector<8xf32>
    %909 = vector.multi_reduction <add>, %908, %cst_245 [1] : vector<8x12xf32> to vector<8xf32>
    %910 = vector.shape_cast %909 : vector<8xf32> to vector<8x1xf32>
    %911 = tpu.reciprocal %910 {approx = true} : vector<8x1xf32> -> vector<8x1xf32>
    %912 = vector.broadcast %911 : vector<8x1xf32> to vector<8x12xf32>
    %913 = arith.mulf %908, %912 : vector<8x12xf32>
    %914 = vector.extract_strided_slice %885 {offsets = [0, 8], sizes = [12, 8], strides = [1, 1]} : vector<12x32xf32> to vector<12x8xf32>
    %cst_246 = arith.constant dense<0.000000e+00> : vector<8x8xf32>
    %915 = tpu.matmul %913, %914, %cst_246 {dimension_numbers = #tpu.dot_dimension_numbers<[1], [0], [0], [1], [0, 0, 1, 1], [], []>} : vector<8x12xf32>, vector<12x8xf32>, vector<8x8xf32> -> vector<8x8xf32>
    %916 = vector.extract_strided_slice %883 {offsets = [0, 16], sizes = [8, 8], strides = [1, 1]} : vector<8x32xf32> to vector<8x8xf32>
    %917 = vector.extract_strided_slice %884 {offsets = [0, 16], sizes = [12, 8], strides = [1, 1]} : vector<12x32xf32> to vector<12x8xf32>
    %cst_247 = arith.constant dense<0.000000e+00> : vector<8x12xf32>
    %918 = tpu.matmul %916, %917, %cst_247 {dimension_numbers = #tpu.dot_dimension_numbers<[1], [1], [0], [0], [0, 0, 1, 0], [], []>} : vector<8x8xf32>, vector<12x8xf32>, vector<8x12xf32> -> vector<8x12xf32>
    %cst_248 = arith.constant dense<0xFF800000> : vector<8xf32>
    %919 = vector.multi_reduction <maximumf>, %918, %cst_248 [1] : vector<8x12xf32> to vector<8xf32>
    %920 = vector.shape_cast %919 : vector<8xf32> to vector<8x1xf32>
    %921 = vector.broadcast %920 : vector<8x1xf32> to vector<8x12xf32>
    %922 = arith.subf %918, %921 : vector<8x12xf32>
    %923 = math.exp %922 : vector<8x12xf32>
    %cst_249 = arith.constant dense<0.000000e+00> : vector<8xf32>
    %924 = vector.multi_reduction <add>, %923, %cst_249 [1] : vector<8x12xf32> to vector<8xf32>
    %925 = vector.shape_cast %924 : vector<8xf32> to vector<8x1xf32>
    %926 = tpu.reciprocal %925 {approx = true} : vector<8x1xf32> -> vector<8x1xf32>
    %927 = vector.broadcast %926 : vector<8x1xf32> to vector<8x12xf32>
    %928 = arith.mulf %923, %927 : vector<8x12xf32>
    %929 = vector.extract_strided_slice %885 {offsets = [0, 16], sizes = [12, 8], strides = [1, 1]} : vector<12x32xf32> to vector<12x8xf32>
    %cst_250 = arith.constant dense<0.000000e+00> : vector<8x8xf32>
    %930 = tpu.matmul %928, %929, %cst_250 {dimension_numbers = #tpu.dot_dimension_numbers<[1], [0], [0], [1], [0, 0, 1, 1], [], []>} : vector<8x12xf32>, vector<12x8xf32>, vector<8x8xf32> -> vector<8x8xf32>
    %931 = vector.extract_strided_slice %883 {offsets = [0, 24], sizes = [8, 8], strides = [1, 1]} : vector<8x32xf32> to vector<8x8xf32>
    %932 = vector.extract_strided_slice %884 {offsets = [0, 24], sizes = [12, 8], strides = [1, 1]} : vector<12x32xf32> to vector<12x8xf32>
    %cst_251 = arith.constant dense<0.000000e+00> : vector<8x12xf32>
    %933 = tpu.matmul %931, %932, %cst_251 {dimension_numbers = #tpu.dot_dimension_numbers<[1], [1], [0], [0], [0, 0, 1, 0], [], []>} : vector<8x8xf32>, vector<12x8xf32>, vector<8x12xf32> -> vector<8x12xf32>
    %cst_252 = arith.constant dense<0xFF800000> : vector<8xf32>
    %934 = vector.multi_reduction <maximumf>, %933, %cst_252 [1] : vector<8x12xf32> to vector<8xf32>
    %935 = vector.shape_cast %934 : vector<8xf32> to vector<8x1xf32>
    %936 = vector.broadcast %935 : vector<8x1xf32> to vector<8x12xf32>
    %937 = arith.subf %933, %936 : vector<8x12xf32>
    %938 = math.exp %937 : vector<8x12xf32>
    %cst_253 = arith.constant dense<0.000000e+00> : vector<8xf32>
    %939 = vector.multi_reduction <add>, %938, %cst_253 [1] : vector<8x12xf32> to vector<8xf32>
    %940 = vector.shape_cast %939 : vector<8xf32> to vector<8x1xf32>
    %941 = tpu.reciprocal %940 {approx = true} : vector<8x1xf32> -> vector<8x1xf32>
    %942 = vector.broadcast %941 : vector<8x1xf32> to vector<8x12xf32>
    %943 = arith.mulf %938, %942 : vector<8x12xf32>
    %944 = vector.extract_strided_slice %885 {offsets = [0, 24], sizes = [12, 8], strides = [1, 1]} : vector<12x32xf32> to vector<12x8xf32>
    %cst_254 = arith.constant dense<0.000000e+00> : vector<8x8xf32>
    %945 = tpu.matmul %943, %944, %cst_254 {dimension_numbers = #tpu.dot_dimension_numbers<[1], [0], [0], [1], [0, 0, 1, 1], [], []>} : vector<8x12xf32>, vector<12x8xf32>, vector<8x8xf32> -> vector<8x8xf32>
    %946 = tpu.concatenate %900, %915, %930, %945 in 1 : vector<8x8xf32>, vector<8x8xf32>, vector<8x8xf32>, vector<8x8xf32> -> vector<8x32xf32>
    %947 = vector.extract_strided_slice %555 {offsets = [48, 0], sizes = [8, 32], strides = [1, 1]} : vector<64x32xf32> to vector<8x32xf32>
    %948 = vector.extract_strided_slice %561 {offsets = [72, 0], sizes = [12, 32], strides = [1, 1]} : vector<96x32xf32> to vector<12x32xf32>
    %949 = vector.extract_strided_slice %562 {offsets = [72, 0], sizes = [12, 32], strides = [1, 1]} : vector<96x32xf32> to vector<12x32xf32>
    %950 = vector.extract_strided_slice %947 {offsets = [0, 0], sizes = [8, 8], strides = [1, 1]} : vector<8x32xf32> to vector<8x8xf32>
    %951 = vector.extract_strided_slice %948 {offsets = [0, 0], sizes = [12, 8], strides = [1, 1]} : vector<12x32xf32> to vector<12x8xf32>
    %cst_255 = arith.constant dense<0.000000e+00> : vector<8x12xf32>
    %952 = tpu.matmul %950, %951, %cst_255 {dimension_numbers = #tpu.dot_dimension_numbers<[1], [1], [0], [0], [0, 0, 1, 0], [], []>} : vector<8x8xf32>, vector<12x8xf32>, vector<8x12xf32> -> vector<8x12xf32>
    %cst_256 = arith.constant dense<0xFF800000> : vector<8xf32>
    %953 = vector.multi_reduction <maximumf>, %952, %cst_256 [1] : vector<8x12xf32> to vector<8xf32>
    %954 = vector.shape_cast %953 : vector<8xf32> to vector<8x1xf32>
    %955 = vector.broadcast %954 : vector<8x1xf32> to vector<8x12xf32>
    %956 = arith.subf %952, %955 : vector<8x12xf32>
    %957 = math.exp %956 : vector<8x12xf32>
    %cst_257 = arith.constant dense<0.000000e+00> : vector<8xf32>
    %958 = vector.multi_reduction <add>, %957, %cst_257 [1] : vector<8x12xf32> to vector<8xf32>
    %959 = vector.shape_cast %958 : vector<8xf32> to vector<8x1xf32>
    %960 = tpu.reciprocal %959 {approx = true} : vector<8x1xf32> -> vector<8x1xf32>
    %961 = vector.broadcast %960 : vector<8x1xf32> to vector<8x12xf32>
    %962 = arith.mulf %957, %961 : vector<8x12xf32>
    %963 = vector.extract_strided_slice %949 {offsets = [0, 0], sizes = [12, 8], strides = [1, 1]} : vector<12x32xf32> to vector<12x8xf32>
    %cst_258 = arith.constant dense<0.000000e+00> : vector<8x8xf32>
    %964 = tpu.matmul %962, %963, %cst_258 {dimension_numbers = #tpu.dot_dimension_numbers<[1], [0], [0], [1], [0, 0, 1, 1], [], []>} : vector<8x12xf32>, vector<12x8xf32>, vector<8x8xf32> -> vector<8x8xf32>
    %965 = vector.extract_strided_slice %947 {offsets = [0, 8], sizes = [8, 8], strides = [1, 1]} : vector<8x32xf32> to vector<8x8xf32>
    %966 = vector.extract_strided_slice %948 {offsets = [0, 8], sizes = [12, 8], strides = [1, 1]} : vector<12x32xf32> to vector<12x8xf32>
    %cst_259 = arith.constant dense<0.000000e+00> : vector<8x12xf32>
    %967 = tpu.matmul %965, %966, %cst_259 {dimension_numbers = #tpu.dot_dimension_numbers<[1], [1], [0], [0], [0, 0, 1, 0], [], []>} : vector<8x8xf32>, vector<12x8xf32>, vector<8x12xf32> -> vector<8x12xf32>
    %cst_260 = arith.constant dense<0xFF800000> : vector<8xf32>
    %968 = vector.multi_reduction <maximumf>, %967, %cst_260 [1] : vector<8x12xf32> to vector<8xf32>
    %969 = vector.shape_cast %968 : vector<8xf32> to vector<8x1xf32>
    %970 = vector.broadcast %969 : vector<8x1xf32> to vector<8x12xf32>
    %971 = arith.subf %967, %970 : vector<8x12xf32>
    %972 = math.exp %971 : vector<8x12xf32>
    %cst_261 = arith.constant dense<0.000000e+00> : vector<8xf32>
    %973 = vector.multi_reduction <add>, %972, %cst_261 [1] : vector<8x12xf32> to vector<8xf32>
    %974 = vector.shape_cast %973 : vector<8xf32> to vector<8x1xf32>
    %975 = tpu.reciprocal %974 {approx = true} : vector<8x1xf32> -> vector<8x1xf32>
    %976 = vector.broadcast %975 : vector<8x1xf32> to vector<8x12xf32>
    %977 = arith.mulf %972, %976 : vector<8x12xf32>
    %978 = vector.extract_strided_slice %949 {offsets = [0, 8], sizes = [12, 8], strides = [1, 1]} : vector<12x32xf32> to vector<12x8xf32>
    %cst_262 = arith.constant dense<0.000000e+00> : vector<8x8xf32>
    %979 = tpu.matmul %977, %978, %cst_262 {dimension_numbers = #tpu.dot_dimension_numbers<[1], [0], [0], [1], [0, 0, 1, 1], [], []>} : vector<8x12xf32>, vector<12x8xf32>, vector<8x8xf32> -> vector<8x8xf32>
    %980 = vector.extract_strided_slice %947 {offsets = [0, 16], sizes = [8, 8], strides = [1, 1]} : vector<8x32xf32> to vector<8x8xf32>
    %981 = vector.extract_strided_slice %948 {offsets = [0, 16], sizes = [12, 8], strides = [1, 1]} : vector<12x32xf32> to vector<12x8xf32>
    %cst_263 = arith.constant dense<0.000000e+00> : vector<8x12xf32>
    %982 = tpu.matmul %980, %981, %cst_263 {dimension_numbers = #tpu.dot_dimension_numbers<[1], [1], [0], [0], [0, 0, 1, 0], [], []>} : vector<8x8xf32>, vector<12x8xf32>, vector<8x12xf32> -> vector<8x12xf32>
    %cst_264 = arith.constant dense<0xFF800000> : vector<8xf32>
    %983 = vector.multi_reduction <maximumf>, %982, %cst_264 [1] : vector<8x12xf32> to vector<8xf32>
    %984 = vector.shape_cast %983 : vector<8xf32> to vector<8x1xf32>
    %985 = vector.broadcast %984 : vector<8x1xf32> to vector<8x12xf32>
    %986 = arith.subf %982, %985 : vector<8x12xf32>
    %987 = math.exp %986 : vector<8x12xf32>
    %cst_265 = arith.constant dense<0.000000e+00> : vector<8xf32>
    %988 = vector.multi_reduction <add>, %987, %cst_265 [1] : vector<8x12xf32> to vector<8xf32>
    %989 = vector.shape_cast %988 : vector<8xf32> to vector<8x1xf32>
    %990 = tpu.reciprocal %989 {approx = true} : vector<8x1xf32> -> vector<8x1xf32>
    %991 = vector.broadcast %990 : vector<8x1xf32> to vector<8x12xf32>
    %992 = arith.mulf %987, %991 : vector<8x12xf32>
    %993 = vector.extract_strided_slice %949 {offsets = [0, 16], sizes = [12, 8], strides = [1, 1]} : vector<12x32xf32> to vector<12x8xf32>
    %cst_266 = arith.constant dense<0.000000e+00> : vector<8x8xf32>
    %994 = tpu.matmul %992, %993, %cst_266 {dimension_numbers = #tpu.dot_dimension_numbers<[1], [0], [0], [1], [0, 0, 1, 1], [], []>} : vector<8x12xf32>, vector<12x8xf32>, vector<8x8xf32> -> vector<8x8xf32>
    %995 = vector.extract_strided_slice %947 {offsets = [0, 24], sizes = [8, 8], strides = [1, 1]} : vector<8x32xf32> to vector<8x8xf32>
    %996 = vector.extract_strided_slice %948 {offsets = [0, 24], sizes = [12, 8], strides = [1, 1]} : vector<12x32xf32> to vector<12x8xf32>
    %cst_267 = arith.constant dense<0.000000e+00> : vector<8x12xf32>
    %997 = tpu.matmul %995, %996, %cst_267 {dimension_numbers = #tpu.dot_dimension_numbers<[1], [1], [0], [0], [0, 0, 1, 0], [], []>} : vector<8x8xf32>, vector<12x8xf32>, vector<8x12xf32> -> vector<8x12xf32>
    %cst_268 = arith.constant dense<0xFF800000> : vector<8xf32>
    %998 = vector.multi_reduction <maximumf>, %997, %cst_268 [1] : vector<8x12xf32> to vector<8xf32>
    %999 = vector.shape_cast %998 : vector<8xf32> to vector<8x1xf32>
    %1000 = vector.broadcast %999 : vector<8x1xf32> to vector<8x12xf32>
    %1001 = arith.subf %997, %1000 : vector<8x12xf32>
    %1002 = math.exp %1001 : vector<8x12xf32>
    %cst_269 = arith.constant dense<0.000000e+00> : vector<8xf32>
    %1003 = vector.multi_reduction <add>, %1002, %cst_269 [1] : vector<8x12xf32> to vector<8xf32>
    %1004 = vector.shape_cast %1003 : vector<8xf32> to vector<8x1xf32>
    %1005 = tpu.reciprocal %1004 {approx = true} : vector<8x1xf32> -> vector<8x1xf32>
    %1006 = vector.broadcast %1005 : vector<8x1xf32> to vector<8x12xf32>
    %1007 = arith.mulf %1002, %1006 : vector<8x12xf32>
    %1008 = vector.extract_strided_slice %949 {offsets = [0, 24], sizes = [12, 8], strides = [1, 1]} : vector<12x32xf32> to vector<12x8xf32>
    %cst_270 = arith.constant dense<0.000000e+00> : vector<8x8xf32>
    %1009 = tpu.matmul %1007, %1008, %cst_270 {dimension_numbers = #tpu.dot_dimension_numbers<[1], [0], [0], [1], [0, 0, 1, 1], [], []>} : vector<8x12xf32>, vector<12x8xf32>, vector<8x8xf32> -> vector<8x8xf32>
    %1010 = tpu.concatenate %964, %979, %994, %1009 in 1 : vector<8x8xf32>, vector<8x8xf32>, vector<8x8xf32>, vector<8x8xf32> -> vector<8x32xf32>
    %1011 = vector.extract_strided_slice %555 {offsets = [56, 0], sizes = [8, 32], strides = [1, 1]} : vector<64x32xf32> to vector<8x32xf32>
    %1012 = vector.extract_strided_slice %561 {offsets = [84, 0], sizes = [12, 32], strides = [1, 1]} : vector<96x32xf32> to vector<12x32xf32>
    %1013 = vector.extract_strided_slice %562 {offsets = [84, 0], sizes = [12, 32], strides = [1, 1]} : vector<96x32xf32> to vector<12x32xf32>
    %1014 = vector.extract_strided_slice %1011 {offsets = [0, 0], sizes = [8, 8], strides = [1, 1]} : vector<8x32xf32> to vector<8x8xf32>
    %1015 = vector.extract_strided_slice %1012 {offsets = [0, 0], sizes = [12, 8], strides = [1, 1]} : vector<12x32xf32> to vector<12x8xf32>
    %cst_271 = arith.constant dense<0.000000e+00> : vector<8x12xf32>
    %1016 = tpu.matmul %1014, %1015, %cst_271 {dimension_numbers = #tpu.dot_dimension_numbers<[1], [1], [0], [0], [0, 0, 1, 0], [], []>} : vector<8x8xf32>, vector<12x8xf32>, vector<8x12xf32> -> vector<8x12xf32>
    %cst_272 = arith.constant dense<0xFF800000> : vector<8xf32>
    %1017 = vector.multi_reduction <maximumf>, %1016, %cst_272 [1] : vector<8x12xf32> to vector<8xf32>
    %1018 = vector.shape_cast %1017 : vector<8xf32> to vector<8x1xf32>
    %1019 = vector.broadcast %1018 : vector<8x1xf32> to vector<8x12xf32>
    %1020 = arith.subf %1016, %1019 : vector<8x12xf32>
    %1021 = math.exp %1020 : vector<8x12xf32>
    %cst_273 = arith.constant dense<0.000000e+00> : vector<8xf32>
    %1022 = vector.multi_reduction <add>, %1021, %cst_273 [1] : vector<8x12xf32> to vector<8xf32>
    %1023 = vector.shape_cast %1022 : vector<8xf32> to vector<8x1xf32>
    %1024 = tpu.reciprocal %1023 {approx = true} : vector<8x1xf32> -> vector<8x1xf32>
    %1025 = vector.broadcast %1024 : vector<8x1xf32> to vector<8x12xf32>
    %1026 = arith.mulf %1021, %1025 : vector<8x12xf32>
    %1027 = vector.extract_strided_slice %1013 {offsets = [0, 0], sizes = [12, 8], strides = [1, 1]} : vector<12x32xf32> to vector<12x8xf32>
    %cst_274 = arith.constant dense<0.000000e+00> : vector<8x8xf32>
    %1028 = tpu.matmul %1026, %1027, %cst_274 {dimension_numbers = #tpu.dot_dimension_numbers<[1], [0], [0], [1], [0, 0, 1, 1], [], []>} : vector<8x12xf32>, vector<12x8xf32>, vector<8x8xf32> -> vector<8x8xf32>
    %1029 = vector.extract_strided_slice %1011 {offsets = [0, 8], sizes = [8, 8], strides = [1, 1]} : vector<8x32xf32> to vector<8x8xf32>
    %1030 = vector.extract_strided_slice %1012 {offsets = [0, 8], sizes = [12, 8], strides = [1, 1]} : vector<12x32xf32> to vector<12x8xf32>
    %cst_275 = arith.constant dense<0.000000e+00> : vector<8x12xf32>
    %1031 = tpu.matmul %1029, %1030, %cst_275 {dimension_numbers = #tpu.dot_dimension_numbers<[1], [1], [0], [0], [0, 0, 1, 0], [], []>} : vector<8x8xf32>, vector<12x8xf32>, vector<8x12xf32> -> vector<8x12xf32>
    %cst_276 = arith.constant dense<0xFF800000> : vector<8xf32>
    %1032 = vector.multi_reduction <maximumf>, %1031, %cst_276 [1] : vector<8x12xf32> to vector<8xf32>
    %1033 = vector.shape_cast %1032 : vector<8xf32> to vector<8x1xf32>
    %1034 = vector.broadcast %1033 : vector<8x1xf32> to vector<8x12xf32>
    %1035 = arith.subf %1031, %1034 : vector<8x12xf32>
    %1036 = math.exp %1035 : vector<8x12xf32>
    %cst_277 = arith.constant dense<0.000000e+00> : vector<8xf32>
    %1037 = vector.multi_reduction <add>, %1036, %cst_277 [1] : vector<8x12xf32> to vector<8xf32>
    %1038 = vector.shape_cast %1037 : vector<8xf32> to vector<8x1xf32>
    %1039 = tpu.reciprocal %1038 {approx = true} : vector<8x1xf32> -> vector<8x1xf32>
    %1040 = vector.broadcast %1039 : vector<8x1xf32> to vector<8x12xf32>
    %1041 = arith.mulf %1036, %1040 : vector<8x12xf32>
    %1042 = vector.extract_strided_slice %1013 {offsets = [0, 8], sizes = [12, 8], strides = [1, 1]} : vector<12x32xf32> to vector<12x8xf32>
    %cst_278 = arith.constant dense<0.000000e+00> : vector<8x8xf32>
    %1043 = tpu.matmul %1041, %1042, %cst_278 {dimension_numbers = #tpu.dot_dimension_numbers<[1], [0], [0], [1], [0, 0, 1, 1], [], []>} : vector<8x12xf32>, vector<12x8xf32>, vector<8x8xf32> -> vector<8x8xf32>
    %1044 = vector.extract_strided_slice %1011 {offsets = [0, 16], sizes = [8, 8], strides = [1, 1]} : vector<8x32xf32> to vector<8x8xf32>
    %1045 = vector.extract_strided_slice %1012 {offsets = [0, 16], sizes = [12, 8], strides = [1, 1]} : vector<12x32xf32> to vector<12x8xf32>
    %cst_279 = arith.constant dense<0.000000e+00> : vector<8x12xf32>
    %1046 = tpu.matmul %1044, %1045, %cst_279 {dimension_numbers = #tpu.dot_dimension_numbers<[1], [1], [0], [0], [0, 0, 1, 0], [], []>} : vector<8x8xf32>, vector<12x8xf32>, vector<8x12xf32> -> vector<8x12xf32>
    %cst_280 = arith.constant dense<0xFF800000> : vector<8xf32>
    %1047 = vector.multi_reduction <maximumf>, %1046, %cst_280 [1] : vector<8x12xf32> to vector<8xf32>
    %1048 = vector.shape_cast %1047 : vector<8xf32> to vector<8x1xf32>
    %1049 = vector.broadcast %1048 : vector<8x1xf32> to vector<8x12xf32>
    %1050 = arith.subf %1046, %1049 : vector<8x12xf32>
    %1051 = math.exp %1050 : vector<8x12xf32>
    %cst_281 = arith.constant dense<0.000000e+00> : vector<8xf32>
    %1052 = vector.multi_reduction <add>, %1051, %cst_281 [1] : vector<8x12xf32> to vector<8xf32>
    %1053 = vector.shape_cast %1052 : vector<8xf32> to vector<8x1xf32>
    %1054 = tpu.reciprocal %1053 {approx = true} : vector<8x1xf32> -> vector<8x1xf32>
    %1055 = vector.broadcast %1054 : vector<8x1xf32> to vector<8x12xf32>
    %1056 = arith.mulf %1051, %1055 : vector<8x12xf32>
    %1057 = vector.extract_strided_slice %1013 {offsets = [0, 16], sizes = [12, 8], strides = [1, 1]} : vector<12x32xf32> to vector<12x8xf32>
    %cst_282 = arith.constant dense<0.000000e+00> : vector<8x8xf32>
    %1058 = tpu.matmul %1056, %1057, %cst_282 {dimension_numbers = #tpu.dot_dimension_numbers<[1], [0], [0], [1], [0, 0, 1, 1], [], []>} : vector<8x12xf32>, vector<12x8xf32>, vector<8x8xf32> -> vector<8x8xf32>
    %1059 = vector.extract_strided_slice %1011 {offsets = [0, 24], sizes = [8, 8], strides = [1, 1]} : vector<8x32xf32> to vector<8x8xf32>
    %1060 = vector.extract_strided_slice %1012 {offsets = [0, 24], sizes = [12, 8], strides = [1, 1]} : vector<12x32xf32> to vector<12x8xf32>
    %cst_283 = arith.constant dense<0.000000e+00> : vector<8x12xf32>
    %1061 = tpu.matmul %1059, %1060, %cst_283 {dimension_numbers = #tpu.dot_dimension_numbers<[1], [1], [0], [0], [0, 0, 1, 0], [], []>} : vector<8x8xf32>, vector<12x8xf32>, vector<8x12xf32> -> vector<8x12xf32>
    %cst_284 = arith.constant dense<0xFF800000> : vector<8xf32>
    %1062 = vector.multi_reduction <maximumf>, %1061, %cst_284 [1] : vector<8x12xf32> to vector<8xf32>
    %1063 = vector.shape_cast %1062 : vector<8xf32> to vector<8x1xf32>
    %1064 = vector.broadcast %1063 : vector<8x1xf32> to vector<8x12xf32>
    %1065 = arith.subf %1061, %1064 : vector<8x12xf32>
    %1066 = math.exp %1065 : vector<8x12xf32>
    %cst_285 = arith.constant dense<0.000000e+00> : vector<8xf32>
    %1067 = vector.multi_reduction <add>, %1066, %cst_285 [1] : vector<8x12xf32> to vector<8xf32>
    %1068 = vector.shape_cast %1067 : vector<8xf32> to vector<8x1xf32>
    %1069 = tpu.reciprocal %1068 {approx = true} : vector<8x1xf32> -> vector<8x1xf32>
    %1070 = vector.broadcast %1069 : vector<8x1xf32> to vector<8x12xf32>
    %1071 = arith.mulf %1066, %1070 : vector<8x12xf32>
    %1072 = vector.extract_strided_slice %1013 {offsets = [0, 24], sizes = [12, 8], strides = [1, 1]} : vector<12x32xf32> to vector<12x8xf32>
    %cst_286 = arith.constant dense<0.000000e+00> : vector<8x8xf32>
    %1073 = tpu.matmul %1071, %1072, %cst_286 {dimension_numbers = #tpu.dot_dimension_numbers<[1], [0], [0], [1], [0, 0, 1, 1], [], []>} : vector<8x12xf32>, vector<12x8xf32>, vector<8x8xf32> -> vector<8x8xf32>
    %1074 = tpu.concatenate %1028, %1043, %1058, %1073 in 1 : vector<8x8xf32>, vector<8x8xf32>, vector<8x8xf32>, vector<8x8xf32> -> vector<8x32xf32>
    %1075 = tpu.concatenate %626, %690, %754, %818, %882, %946, %1010, %1074 in 0 : vector<8x32xf32>, vector<8x32xf32>, vector<8x32xf32>, vector<8x32xf32>, vector<8x32xf32>, vector<8x32xf32>, vector<8x32xf32>, vector<8x32xf32> -> vector<64x32xf32>
    %c0_287 = arith.constant 0 : index
    %c0_288 = arith.constant 0 : index
    %1076 = vector.load %arg11[%c0_287, %c0_288] : memref<32x32xf32, #tpu.memory_space<vmem>>, vector<32x32xf32>
    %cst_289 = arith.constant dense<0.000000e+00> : vector<64x32xf32>
    %1077 = tpu.matmul %1075, %1076, %cst_289 {dimension_numbers = #tpu.dot_dimension_numbers<[1], [0], [0], [1], [0, 0, 1, 1], [], []>} : vector<64x32xf32>, vector<32x32xf32>, vector<64x32xf32> -> vector<64x32xf32>
    %c0_290 = arith.constant 0 : index
    %c0_291 = arith.constant 0 : index
    %1078 = vector.load %arg12[%c0_290, %c0_291] : memref<1x32xf32, #tpu.memory_space<vmem>>, vector<1x32xf32>
    %1079 = vector.broadcast %1078 : vector<1x32xf32> to vector<64x32xf32>
    %1080 = arith.addf %1077, %1079 : vector<64x32xf32>
    %1081 = arith.addf %550, %1080 : vector<64x32xf32>
    %cst_292 = arith.constant dense<0.000000e+00> : vector<64xf32>
    %1082 = vector.multi_reduction <add>, %1081, %cst_292 [1] : vector<64x32xf32> to vector<64xf32>
    %1083 = vector.shape_cast %1082 : vector<64xf32> to vector<64x1xf32>
    %cst_293 = arith.constant 3.200000e+01 : f32
    %1084 = vector.broadcast %cst_293 : f32 to vector<64x1xf32>
    %1085 = arith.divf %1083, %1084 : vector<64x1xf32>
    %1086 = vector.broadcast %1085 : vector<64x1xf32> to vector<64x32xf32>
    %1087 = arith.subf %1081, %1086 : vector<64x32xf32>
    %1088 = arith.mulf %1087, %1087 : vector<64x32xf32>
    %cst_294 = arith.constant dense<0.000000e+00> : vector<64xf32>
    %1089 = vector.multi_reduction <add>, %1088, %cst_294 [1] : vector<64x32xf32> to vector<64xf32>
    %1090 = vector.shape_cast %1089 : vector<64xf32> to vector<64x1xf32>
    %cst_295 = arith.constant 3.200000e+01 : f32
    %1091 = vector.broadcast %cst_295 : f32 to vector<64x1xf32>
    %1092 = arith.divf %1090, %1091 : vector<64x1xf32>
    %cst_296 = arith.constant 9.99999974E-6 : f32
    %1093 = vector.broadcast %cst_296 : f32 to vector<64x1xf32>
    %1094 = arith.addf %1092, %1093 : vector<64x1xf32>
    %1095 = math.rsqrt %1094 : vector<64x1xf32>
    %1096 = vector.broadcast %1095 : vector<64x1xf32> to vector<64x32xf32>
    %1097 = arith.mulf %1087, %1096 : vector<64x32xf32>
    %c0_297 = arith.constant 0 : index
    %c0_298 = arith.constant 0 : index
    %1098 = vector.load %arg19[%c0_297, %c0_298] : memref<1x32xf32, #tpu.memory_space<vmem>>, vector<1x32xf32>
    %1099 = vector.broadcast %1098 : vector<1x32xf32> to vector<64x32xf32>
    %1100 = arith.mulf %1097, %1099 : vector<64x32xf32>
    %c0_299 = arith.constant 0 : index
    %c0_300 = arith.constant 0 : index
    %1101 = vector.load %arg20[%c0_299, %c0_300] : memref<1x32xf32, #tpu.memory_space<vmem>>, vector<1x32xf32>
    %1102 = vector.broadcast %1101 : vector<1x32xf32> to vector<64x32xf32>
    %1103 = arith.addf %1100, %1102 : vector<64x32xf32>
    %c0_301 = arith.constant 0 : index
    %c0_302 = arith.constant 0 : index
    %1104 = vector.load %arg13[%c0_301, %c0_302] : memref<32x64xf32, #tpu.memory_space<vmem>>, vector<32x64xf32>
    %cst_303 = arith.constant dense<0.000000e+00> : vector<64x64xf32>
    %1105 = tpu.matmul %1103, %1104, %cst_303 {dimension_numbers = #tpu.dot_dimension_numbers<[1], [0], [0], [1], [0, 0, 1, 1], [], []>} : vector<64x32xf32>, vector<32x64xf32>, vector<64x64xf32> -> vector<64x64xf32>
    %c0_304 = arith.constant 0 : index
    %c0_305 = arith.constant 0 : index
    %1106 = vector.load %arg14[%c0_304, %c0_305] : memref<1x64xf32, #tpu.memory_space<vmem>>, vector<1x64xf32>
    %1107 = vector.broadcast %1106 : vector<1x64xf32> to vector<64x64xf32>
    %1108 = arith.addf %1105, %1107 : vector<64x64xf32>
    %cst_306 = arith.constant 0.000000e+00 : f32
    %1109 = vector.broadcast %cst_306 : f32 to vector<64x64xf32>
    %1110 = arith.maximumf %1108, %1109 : vector<64x64xf32>
    %c0_307 = arith.constant 0 : index
    %c0_308 = arith.constant 0 : index
    %1111 = vector.load %arg15[%c0_307, %c0_308] : memref<64x32xf32, #tpu.memory_space<vmem>>, vector<64x32xf32>
    %cst_309 = arith.constant dense<0.000000e+00> : vector<64x32xf32>
    %1112 = tpu.matmul %1110, %1111, %cst_309 {dimension_numbers = #tpu.dot_dimension_numbers<[1], [0], [0], [1], [0, 0, 1, 1], [], []>} : vector<64x64xf32>, vector<64x32xf32>, vector<64x32xf32> -> vector<64x32xf32>
    %c0_310 = arith.constant 0 : index
    %c0_311 = arith.constant 0 : index
    %1113 = vector.load %arg16[%c0_310, %c0_311] : memref<1x32xf32, #tpu.memory_space<vmem>>, vector<1x32xf32>
    %1114 = vector.broadcast %1113 : vector<1x32xf32> to vector<64x32xf32>
    %1115 = arith.addf %1112, %1114 : vector<64x32xf32>
    %1116 = arith.addf %1103, %1115 : vector<64x32xf32>
    %cst_312 = arith.constant dense<0.000000e+00> : vector<64xf32>
    %1117 = vector.multi_reduction <add>, %1116, %cst_312 [1] : vector<64x32xf32> to vector<64xf32>
    %1118 = vector.shape_cast %1117 : vector<64xf32> to vector<64x1xf32>
    %cst_313 = arith.constant 3.200000e+01 : f32
    %1119 = vector.broadcast %cst_313 : f32 to vector<64x1xf32>
    %1120 = arith.divf %1118, %1119 : vector<64x1xf32>
    %1121 = vector.broadcast %1120 : vector<64x1xf32> to vector<64x32xf32>
    %1122 = arith.subf %1116, %1121 : vector<64x32xf32>
    %1123 = arith.mulf %1122, %1122 : vector<64x32xf32>
    %cst_314 = arith.constant dense<0.000000e+00> : vector<64xf32>
    %1124 = vector.multi_reduction <add>, %1123, %cst_314 [1] : vector<64x32xf32> to vector<64xf32>
    %1125 = vector.shape_cast %1124 : vector<64xf32> to vector<64x1xf32>
    %cst_315 = arith.constant 3.200000e+01 : f32
    %1126 = vector.broadcast %cst_315 : f32 to vector<64x1xf32>
    %1127 = arith.divf %1125, %1126 : vector<64x1xf32>
    %cst_316 = arith.constant 9.99999974E-6 : f32
    %1128 = vector.broadcast %cst_316 : f32 to vector<64x1xf32>
    %1129 = arith.addf %1127, %1128 : vector<64x1xf32>
    %1130 = math.rsqrt %1129 : vector<64x1xf32>
    %1131 = vector.broadcast %1130 : vector<64x1xf32> to vector<64x32xf32>
    %1132 = arith.mulf %1122, %1131 : vector<64x32xf32>
    %c0_317 = arith.constant 0 : index
    %c0_318 = arith.constant 0 : index
    %1133 = vector.load %arg21[%c0_317, %c0_318] : memref<1x32xf32, #tpu.memory_space<vmem>>, vector<1x32xf32>
    %1134 = vector.broadcast %1133 : vector<1x32xf32> to vector<64x32xf32>
    %1135 = arith.mulf %1132, %1134 : vector<64x32xf32>
    %c0_319 = arith.constant 0 : index
    %c0_320 = arith.constant 0 : index
    %1136 = vector.load %arg22[%c0_319, %c0_320] : memref<1x32xf32, #tpu.memory_space<vmem>>, vector<1x32xf32>
    %1137 = vector.broadcast %1136 : vector<1x32xf32> to vector<64x32xf32>
    %1138 = arith.addf %1135, %1137 : vector<64x32xf32>
    %c0_321 = arith.constant 0 : index
    %c0_322 = arith.constant 0 : index
    %1139 = vector.load %arg23[%c0_321, %c0_322] : memref<32x128xf32, #tpu.memory_space<vmem>>, vector<32x128xf32>
    %cst_323 = arith.constant dense<0.000000e+00> : vector<64x128xf32>
    %1140 = tpu.matmul %1138, %1139, %cst_323 {dimension_numbers = #tpu.dot_dimension_numbers<[1], [0], [0], [1], [0, 0, 1, 1], [], []>} : vector<64x32xf32>, vector<32x128xf32>, vector<64x128xf32> -> vector<64x128xf32>
    %c0_324 = arith.constant 0 : index
    %c0_325 = arith.constant 0 : index
    %1141 = vector.load %arg24[%c0_324, %c0_325] : memref<1x128xf32, #tpu.memory_space<vmem>>, vector<1x128xf32>
    %1142 = vector.broadcast %1141 : vector<1x128xf32> to vector<64x128xf32>
    %1143 = arith.addf %1140, %1142 : vector<64x128xf32>
    %c0_326 = arith.constant 0 : index
    %c0_327 = arith.constant 0 : index
    %1144 = vector.load %arg25[%c0_326, %c0_327] : memref<64x128xf32, #tpu.memory_space<vmem>>, vector<64x128xf32>
    tpu.vector_store %arg25[%c0_326, %c0_327], %1143 {strides = array<i32>} : memref<64x128xf32, #tpu.memory_space<vmem>>, vector<64x128xf32>,
    return
  }
  func.func @transform_0(%arg0: i32) -> (i32, i32) {
    %c0_i32 = arith.constant 0 : i32
    %c0_i32_0 = arith.constant 0 : i32
    %c0_i32_1 = arith.constant 0 : i32
    return %c0_i32, %c0_i32_0 : i32, i32
  }
  func.func @transform_1(%arg0: i32) -> (i32, i32) {
    %c0_i32 = arith.constant 0 : i32
    %c0_i32_0 = arith.constant 0 : i32
    %c0_i32_1 = arith.constant 0 : i32
    return %c0_i32, %c0_i32_0 : i32, i32
  }
  func.func @transform_2(%arg0: i32) -> (i32, i32) {
    %c0_i32 = arith.constant 0 : i32
    %c0_i32_0 = arith.constant 0 : i32
    %c0_i32_1 = arith.constant 0 : i32
    return %c0_i32, %c0_i32_0 : i32, i32
  }
  func.func @transform_3(%arg0: i32) -> (i32, i32) {
    %c0_i32 = arith.constant 0 : i32
    %c0_i32_0 = arith.constant 0 : i32
    %c0_i32_1 = arith.constant 0 : i32
    return %c0_i32, %c0_i32_0 : i32, i32
  }
  func.func @transform_4(%arg0: i32) -> (i32, i32) {
    %c0_i32 = arith.constant 0 : i32
    %c0_i32_0 = arith.constant 0 : i32
    %c0_i32_1 = arith.constant 0 : i32
    return %c0_i32, %c0_i32_0 : i32, i32
  }
  func.func @transform_5(%arg0: i32) -> (i32, i32) {
    %c0_i32 = arith.constant 0 : i32
    %c0_i32_0 = arith.constant 0 : i32
    %c0_i32_1 = arith.constant 0 : i32
    return %c0_i32, %c0_i32_0 : i32, i32
  }
  func.func @transform_6(%arg0: i32) -> (i32, i32) {
    %c0_i32 = arith.constant 0 : i32
    %c0_i32_0 = arith.constant 0 : i32
    %c0_i32_1 = arith.constant 0 : i32
    return %c0_i32, %c0_i32_0 : i32, i32
  }
  func.func @transform_7(%arg0: i32) -> (i32, i32) {
    %c0_i32 = arith.constant 0 : i32
    %c0_i32_0 = arith.constant 0 : i32
    %c0_i32_1 = arith.constant 0 : i32
    return %c0_i32, %c0_i32_0 : i32, i32
  }
  func.func @transform_8(%arg0: i32) -> (i32, i32) {
    %c0_i32 = arith.constant 0 : i32
    %c0_i32_0 = arith.constant 0 : i32
    %c0_i32_1 = arith.constant 0 : i32
    return %c0_i32, %c0_i32_0 : i32, i32
  }
  func.func @transform_9(%arg0: i32) -> (i32, i32) {
    %c0_i32 = arith.constant 0 : i32
    %c0_i32_0 = arith.constant 0 : i32
    %c0_i32_1 = arith.constant 0 : i32
    return %c0_i32, %c0_i32_0 : i32, i32
  }
  func.func @transform_10(%arg0: i32) -> (i32, i32) {
    %c0_i32 = arith.constant 0 : i32
    %c0_i32_0 = arith.constant 0 : i32
    %c0_i32_1 = arith.constant 0 : i32
    return %c0_i32, %c0_i32_0 : i32, i32
  }
  func.func @transform_11(%arg0: i32) -> (i32, i32) {
    %c0_i32 = arith.constant 0 : i32
    %c0_i32_0 = arith.constant 0 : i32
    %c0_i32_1 = arith.constant 0 : i32
    return %c0_i32, %c0_i32_0 : i32, i32
  }
  func.func @transform_12(%arg0: i32) -> (i32, i32) {
    %c0_i32 = arith.constant 0 : i32
    %c0_i32_0 = arith.constant 0 : i32
    %c0_i32_1 = arith.constant 0 : i32
    return %c0_i32, %c0_i32_0 : i32, i32
  }
  func.func @transform_13(%arg0: i32) -> (i32, i32) {
    %c0_i32 = arith.constant 0 : i32
    %c0_i32_0 = arith.constant 0 : i32
    %c0_i32_1 = arith.constant 0 : i32
    return %c0_i32, %c0_i32_0 : i32, i32
  }
  func.func @transform_14(%arg0: i32) -> (i32, i32) {
    %c0_i32 = arith.constant 0 : i32
    %c0_i32_0 = arith.constant 0 : i32
    %c0_i32_1 = arith.constant 0 : i32
    return %c0_i32, %c0_i32_0 : i32, i32
  }
  func.func @transform_15(%arg0: i32) -> (i32, i32) {
    %c0_i32 = arith.constant 0 : i32
    %c0_i32_0 = arith.constant 0 : i32
    %c0_i32_1 = arith.constant 0 : i32
    return %c0_i32, %c0_i32_0 : i32, i32
  }
  func.func @transform_16(%arg0: i32) -> (i32, i32) {
    %c0_i32 = arith.constant 0 : i32
    %c0_i32_0 = arith.constant 0 : i32
    %c0_i32_1 = arith.constant 0 : i32
    return %c0_i32, %c0_i32_0 : i32, i32
  }
  func.func @transform_17(%arg0: i32) -> (i32, i32) {
    %c0_i32 = arith.constant 0 : i32
    %c0_i32_0 = arith.constant 0 : i32
    %c0_i32_1 = arith.constant 0 : i32
    return %c0_i32, %c0_i32_0 : i32, i32
  }
  func.func @transform_18(%arg0: i32) -> (i32, i32) {
    %c0_i32 = arith.constant 0 : i32
    %c0_i32_0 = arith.constant 0 : i32
    %c0_i32_1 = arith.constant 0 : i32
    return %c0_i32, %c0_i32_0 : i32, i32
  }
  func.func @transform_19(%arg0: i32) -> (i32, i32) {
    %c0_i32 = arith.constant 0 : i32
    %c0_i32_0 = arith.constant 0 : i32
    %c0_i32_1 = arith.constant 0 : i32
    return %c0_i32, %c0_i32_0 : i32, i32
  }
  func.func @transform_20(%arg0: i32) -> (i32, i32) {
    %c0_i32 = arith.constant 0 : i32
    %c0_i32_0 = arith.constant 0 : i32
    %c0_i32_1 = arith.constant 0 : i32
    return %c0_i32, %c0_i32_0 : i32, i32
  }
  func.func @transform_21(%arg0: i32) -> (i32, i32) {
    %c0_i32 = arith.constant 0 : i32
    %c0_i32_0 = arith.constant 0 : i32
    %c0_i32_1 = arith.constant 0 : i32
    return %c0_i32, %c0_i32_0 : i32, i32
  }
  func.func @transform_22(%arg0: i32) -> (i32, i32) {
    %c0_i32 = arith.constant 0 : i32
    %c0_i32_0 = arith.constant 0 : i32
    %c0_i32_1 = arith.constant 0 : i32
    return %c0_i32, %c0_i32_0 : i32, i32
  }
  func.func @transform_23(%arg0: i32) -> (i32, i32) {
    %c0_i32 = arith.constant 0 : i32
    %c0_i32_0 = arith.constant 0 : i32
    %c0_i32_1 = arith.constant 0 : i32
    return %c0_i32, %c0_i32_0 : i32, i32
  }
  func.func @transform_24(%arg0: i32) -> (i32, i32) {
    %c0_i32 = arith.constant 0 : i32
    %c0_i32_0 = arith.constant 0 : i32
    %c0_i32_1 = arith.constant 0 : i32
    return %c0_i32, %c0_i32_0 : i32, i32
  }
}

</mosaic_0001>

<bundles_post_ra>
// kernel: tpu_custom_call.1
= control target key start
LH: loop header
LB: loop body
LE: loop exit
PB: predicated region body
PF: predicated region fallthrough
CT: control target
= control target key end

     0   :  { %s18026_s0 = inlined_call_operand.vmem [shape: f32[64,32], index: 0, kind: input, shape index: {}]   ;;  %s18027_s1 = inlined_call_operand.vmem [shape: f32[96,32], index: 1, kind: input, shape index: {}]   ;;  %s18028_s2 = inlined_call_operand.vmem [shape: f32[32,96], index: 2, kind: input, shape index: {}]   ;;  %s18029_s3 = inlined_call_operand.vmem [shape: f32[1,96], index: 3, kind: input, shape index: {}]   ;;  %s18030_s4 = inlined_call_operand.vmem [shape: f32[32,32], index: 4, kind: input, shape index: {}]   ;;  %s18031_s5 = inlined_call_operand.vmem [shape: f32[1,32], index: 5, kind: input, shape index: {}]   ;;  %s18032_s6 = inlined_call_operand.vmem [shape: f32[32,32], index: 6, kind: input, shape index: {}]   ;;  %s18033_s7 = inlined_call_operand.vmem [shape: f32[1,32], index: 7, kind: input, shape index: {}]   ;;  %s18034_s8 = inlined_call_operand.vmem [shape: f32[32,64], index: 8, kind: input, shape index: {}]   ;;  %s18035_s9 = inlined_call_operand.vmem [shape: f32[1,64], index: 9, kind: input, shape index: {}]   ;;  %s18036_s10 = inlined_call_operand.vmem [shape: f32[32,32], index: 10, kind: input, shape index: {}]   ;;  %s18037_s11 = inlined_call_operand.vmem [shape: f32[1,32], index: 11, kind: input, shape index: {}]   ;;  %s18038_s12 = inlined_call_operand.vmem [shape: f32[32,64], index: 12, kind: input, shape index: {}]   ;;  %s18039_s13 = inlined_call_operand.vmem [shape: f32[1,64], index: 13, kind: input, shape index: {}]   ;;  %s18040_s14 = inlined_call_operand.vmem [shape: f32[64,32], index: 14, kind: input, shape index: {}]   ;;  %s18041_s15 = inlined_call_operand.vmem [shape: f32[1,32], index: 15, kind: input, shape index: {}]   ;;  %s18042_s16 = inlined_call_operand.vmem [shape: f32[1,32], index: 16, kind: input, shape index: {}]   ;;  %s18043_s17 = inlined_call_operand.vmem [shape: f32[1,32], index: 17, kind: input, shape index: {}]   ;;  %s18044_s18 = inlined_call_operand.vmem [shape: f32[1,32], index: 18, kind: input, shape index: {}]   ;;  %s18045_s19 = inlined_call_operand.vmem [shape: f32[1,32], index: 19, kind: input, shape index: {}]   ;;  %s18046_s20 = inlined_call_operand.vmem [shape: f32[1,32], index: 20, kind: input, shape index: {}]   ;;  %s18047_s21 = inlined_call_operand.vmem [shape: f32[1,32], index: 21, kind: input, shape index: {}]   ;;  %s18048_s22 = inlined_call_operand.vmem [shape: f32[32,128], index: 22, kind: input, shape index: {}]   ;;  %s18049_s23 = inlined_call_operand.vmem [shape: f32[1,128], index: 23, kind: input, shape index: {}]   ;;  %s18050_s24 = inlined_call_operand.hbm [shape: f32[64,128], index: 24, kind: output, shape index: {}]  }
   0x1   :  { %18080 = sst [smem:[#allocation5_spill]] %s18026_s0 }
   0x2   :  { %18081 = sst [smem:[#allocation6_spill]] %s18027_s1 }
   0x3   :  { %18082 = sst [smem:[#allocation7_spill]] %s18028_s2 }
   0x4   :  { %18083 = sst [smem:[#allocation8_spill]] %s18029_s3 }
   0x5   :  { %18084 = sst [smem:[#allocation9_spill]] %s18030_s4 }
   0x6   :  { %18085 = sst [smem:[#allocation10_spill]] %s18031_s5 }
   0x7   :  { %18086 = sst [smem:[#allocation11_spill]] %s18032_s6 }
   0x8   :  { %18087 = sst [smem:[#allocation12_spill]] %s18033_s7 }
   0x9   :  { %18088 = sst [smem:[#allocation13_spill]] %s18034_s8 }
   0xa   :  { %s18089_s27 = sld [smem:[#allocation7_spill]]  ;;  %vm109_vm0 = vcmask 261120   ;;  %s18090_s25 = sld [smem:[#allocation5_spill]] }
  0x10   :  { %v98_v0 = vld [vmem:[%s18089_s27] sm:$0xff]  ;;  %v99_v1 = vld [vmem:[%s18089_s27 + $0x8] sm:$0xff]  ;;  %v100_v2 = vld [vmem:[%s18089_s27 + $0x10] sm:$0xff] }
  0x11   :  { %v14456_v3 = vpack.c.bf16 %v99_v1, %v98_v0  ;;  %v101_v4 = vld [vmem:[%s18089_s27 + $0x18] sm:$0xff]  ;;  %v78_v5 = vld [vmem:[%s18090_s25] sm:$0xff] }
  0x12   :  { %v14460_v6 = vpack.c.bf16 %v101_v4, %v100_v2  ;;  %13522 = vmatprep.mubr.msk.f32.mxu0 %vm109_vm0, %v78_v5 }
  0x13   :  { %29 = vsyncpa [#allocation3], 0  ;;  %14457 = vmatprep.subr.bf16.mxu0 %v14456_v3  ;;  %v79_v7 = vld [vmem:[%s18090_s25 + $0x8] sm:$0xff]  ;;  %v15422_v8 = vmov 0.0   ;;  %vm15423_vm1 = vmmov 0   ;;  %s18091_s26 = sld [smem:[#allocation8_spill]] }
  0x14   :  { %14459 = vmatpush3.bf16.msra.mxu0 %v14456_v3  ;;  %13534 = vmatprep.subr.mxu1 %v15422_v8  ;;  %s18060_s27 = smov 64   ;;  %s15425_s28 = smov 96   ;;  %vm242_vm2 = vcmask 64512   ;;  %v80_v29 = vld [vmem:[%s18090_s25 + $0x10] sm:$0xff]  ;;  %v81_v30 = vld [vmem:[%s18090_s25 + $0x18] sm:$0xff]  ;;  %v82_v31 = vld [vmem:[%s18090_s25 + $0x20] sm:$0xff] }
  0x15   :  { %14461 = vmatprep.subr.bf16.mxu0 %v14460_v6  ;;  %13536 = vmatprep.mubr.msk.f32.mxu1 %vm15423_vm1, %v15422_v8  ;;  %s18062_s6 = smov 88   ;;  %s18058_s2 = smov 56   ;;  %v83_v32 = vld [vmem:[%s18090_s25 + $0x28] sm:$0xff]  ;;  %v84_v33 = vld [vmem:[%s18090_s25 + $0x30] sm:$0xff]  ;;  %v85_v34 = vld [vmem:[%s18090_s25 + $0x38] sm:$0xff]  ;;  %vm912_vm3 = vcmask 130048  }
  0x16   :  { %s18068_s29 = smov 80   ;;  %s18070_s0 = smov 112   ;;  %vm914_vm4 = vcmask 195584   ;;  %vm16742_vm5 = vmpackc.low %vm242_vm2, %vm242_vm2  ;;  %vm6328_vm6 = vcmask 1043456   ;;  %vm6308_vm7 = vcmask 97280   ;;  %vm15439_vm8 = vmmov 1  }
  0x17   :  { %s18072_s7 = smov 120   ;;  %s15433_s8 = smov 40   ;;  %vm16848_vm9 = vmpackc.low %vm6328_vm6, %vm15439_vm8  ;;  %vm12316_vm10 = vcmask 523264  }
  0x18   :  { %14463 = vmatpush3.bf16.msra.mxu0 %v14460_v6  ;;  %s15434_s4 = smov 48   ;;  %s18093_s1 = smov 64  }
  0x19   :  { %13559 = vmatprep.subr.mxu0 %v15422_v8  ;;  %v15594_v9 = vld [vmem:[%s18091_s26] ss:$0 sm:$0xff]  ;;  %s18094_s5 = smov 56   ;;  %s18078_s26 = smov 8  }
  0x1a   :  { %s18076_s30 = smov 16   ;;  %s18097_s3 = sld [smem:[#allocation11_spill]] }
  0x1b   :  { %13523 = vmatmul.mubr.msk.f32.vlgmr.msra.gmra.mrb[0].mxu0 %vm109_vm0, %v79_v7 }
  0x1c   :  { %13525 = vmatprep.mubr.msk.f32.mxu0 %vm109_vm0, %v80_v29 }
  0x1f   :  { %13526 = vmatmul.mubr.msk.f32.gmra.mrb[2].mxu0 %vm109_vm0, %v81_v30 }
  0x20   :  { %13528 = vmatprep.mubr.msk.f32.mxu0 %vm109_vm0, %v82_v31 }
  0x23   :  { %13529 = vmatmul.mubr.msk.f32.gmra.mrb[4].mxu0 %vm109_vm0, %v83_v32 }
  0x24   :  { %13531 = vmatprep.mubr.msk.f32.mxu0 %vm109_vm0, %v84_v33 }
  0x27   :  { %13532 = vmatmul.mubr.msk.f32.gmra.mrb[6].mxu0 %vm109_vm0, %v85_v34 }
  0x28   :  { %13561 = vmatprep.mubr.msk.f32.mxu0 %vm15423_vm1, %v15422_v8 }
  0xee   :  { %v15596_v10 = vpop.f32.mrb[0].mxu0 }
  0xef   :  { %v200_v11 = vpop.f32.mrb[1].mxu0  ;;  %v15666_v40 = vadd.f32 %v15596_v10, %v15594_v9 }
  0xf0   :  { %v15599_v12 = vadd.f32 %v15594_v9, %v200_v11 }
  0xf2   :  { %328 = vrot.lane.b32.xlu1 %v15599_v12, %s18060_s27  ;;  %240 = vrot.lane.b32.xlu0 %v15599_v12, %s15425_s28  ;;  %s18064_s27 = smov 72   ;;  %v13527_v41 = vpop.f32.mrb[2].mxu0 }
  0xf3   :  { %v210_v42 = vpop.f32.mrb[3].mxu0  ;;  %v15684_v44 = vadd.f32 %v13527_v41, %v15594_v9 }
  0xf4   :  { %v15673_v43 = vadd.f32 %v15594_v9, %v210_v42 }
  0xf6   :  { %406 = vrot.lane.b32.xlu1 %v15599_v12, %s18062_s6  ;;  %s18066_s6 = smov 104   ;;  %v13530_v45 = vpop.f32.mrb[4].mxu0 }
  0xf7   :  { %v220_v46 = vpop.f32.mrb[5].mxu0  ;;  %v15704_v50 = vadd.f32 %v13530_v45, %v15594_v9 }
  0xf8   :  { %v15693_v47 = vadd.f32 %v15594_v9, %v220_v46 }
  0xfa   :  { %v13533_v48 = vpop.f32.mrb[6].mxu0 }
  0xfb   :  { %v230_v49 = vpop.f32.mrb[7].mxu0  ;;  %v15725_v57 = vadd.f32 %v13533_v48, %v15594_v9 }
  0xfc   :  { %v15713_v52 = vadd.f32 %v15594_v9, %v230_v49 }
 0x164   :  { %v241_v13 = vpop.permute.xlu0 %240  ;;  %v329_v14 = vpop.permute.xlu1 %328 }
 0x165   :  { %13535 = vmatpush3.xpose.msk.msra.mxu1 %vm242_vm2, %v241_v13 }
 0x166   :  { %13539 = vmatprep.subr.mxu1 %v15422_v8 }
 0x168   :  { %13537 = vmatmul.mubr.msk.f32.vlgmr.msra.gmra.mrb[0].mxu1 %vm242_vm2, %v15599_v12  ;;  %v407_v23 = vpop.permute.xlu1 %406 }
 0x169   :  { %13540 = vmatpush3.msra.mxu1 %v329_v14  ;;  %13541 = vmatprep.mubr.msk.f32.mxu1 %vm15423_vm1, %v15422_v8 }
 0x16a   :  { %13544 = vmatprep.subr.mxu1 %v15422_v8 }
 0x23b   :  { %v313_v15 = vpop.f32.mrb[0].mxu1 }
 0x23c   :  { %v13538_v16 = vpop.f32.mrb[1].mxu1  ;;  %v317_v17 = vsel %vm242_vm2, %v313_v15, -inf }
 0x23d   :  { %318 = vmax.xlane.f32.xlu0 %v317_v17 }
 0x253   :  { %493 = vrot.lane.b32.xlu0 %v15599_v12, %s18058_s2  ;;  %s18092_s2 = smov 88  }
 0x257   :  { %571 = vrot.lane.b32.xlu0 %v15599_v12, %s18068_s29 }
 0x25b   :  { %569 = vrot.lane.b32.xlu0 %v15599_v12, %s18070_s0 }
 0x2ca   :  { %v319_v18 = vpop.xlane.xlu0 %318 }
 0x2cb   :  { %v320_v19 = vsub.f32 %v313_v15, %v319_v18 }
 0x2cd   :  { %v321_v20 = vmul.f32 1.442695, %v320_v19 }
 0x2ce   :  { %v494_v28 = vpop.permute.xlu0 %493 }
 0x2cf   :  { %15084 = vpow2.f32 %v321_v20 }
 0x2d2   :  { %v572_v58 = vpop.permute.xlu0 %571 }
 0x2d6   :  { %v570_v59 = vpop.permute.xlu0 %569 }
 0x2d9   :  { %v15085_v21 = vpop.eup %15084 }
 0x2da   :  { %v323_v22 = vsel %vm242_vm2, %v15085_v21, 0.0 }
 0x2db   :  { %324 = vadd.xlane.f32.xlu1 %v323_v22 }
 0x2ec   :  { %404 = vrot.lane.b32.xlu1 %v15599_v12, %s18072_s7 }
 0x368   :  { %v325_v24 = vpop.xlane.xlu1 %324 }
 0x369   :  { %15086 = vrcp.f32 %v325_v24 }
 0x36c   :  { %v405_v27 = vpop.permute.xlu1 %404 }
 0x373   :  { %v15087_v25 = vpop.eup %15086 }
 0x374   :  { %v327_v26 = vmul.f32 %v15087_v25, %v15085_v21 }
 0x376   :  { %13542 = vmatmul.mubr.msk.f32.vlgmr.msra.gmra.mrb[2].mxu1 %vm242_vm2, %v327_v26 }
 0x377   :  { %13545 = vmatpush3.xpose.msk.msra.mxu1 %vm242_vm2, %v407_v23  ;;  %13546 = vmatprep.mubr.msk.f32.mxu1 %vm15423_vm1, %v15422_v8 }
 0x378   :  { %13549 = vmatprep.subr.mxu1 %v15422_v8 }
 0x37a   :  { %13547 = vmatmul.mubr.msk.f32.vlgmr.msra.gmra.mrb[4].mxu1 %vm242_vm2, %v405_v27 }
 0x37b   :  { %13550 = vmatpush3.msra.mxu1 %v494_v28  ;;  %13551 = vmatprep.mubr.msk.f32.mxu1 %vm15423_vm1, %v15422_v8 }
 0x37c   :  { %13554 = vmatprep.subr.mxu1 %v15422_v8 }
 0x449   :  { %v15659_v35 = vpop.f32.mrb[2].mxu1 }
 0x44a   :  { %v13543_v36 = vpop.f32.mrb[3].mxu1 }
 0x44d   :  { %v478_v37 = vpop.f32.mrb[4].mxu1 }
 0x44e   :  { %v13548_v38 = vpop.f32.mrb[5].mxu1  ;;  %v482_v39 = vsel %vm242_vm2, %v478_v37, -inf }
 0x44f   :  { %483 = vmax.xlane.f32.xlu1 %v482_v39 }
 0x460   :  { %736 = vrot.lane.b32.xlu1 %v15599_v12, %s18064_s27 }
 0x464   :  { %1247 = vrot.lane.b32.xlu1 %v15666_v40, %s18068_s29 }
 0x468   :  { %1412 = vrot.lane.b32.xlu1 %v15666_v40, %s18064_s27 }
 0x46c   :  { %1591 = vrot.lane.b32.xlu1 %v15673_v43, %s15425_s28 }
 0x470   :  { %1754 = vrot.lane.b32.xlu1 %v15673_v43, %s18072_s7 }
 0x474   :  { %1919 = vrot.lane.b32.xlu1 %v15673_v43, %s18070_s0 }
 0x478   :  { %2084 = vrot.lane.b32.xlu1 %v15673_v43, %s18066_s6 }
 0x47c   :  { %2430 = vrot.lane.b32.xlu1 %v15684_v44, %s18092_s2 }
 0x480   :  { %2595 = vrot.lane.b32.xlu1 %v15684_v44, %s18068_s29 }
 0x484   :  { %2760 = vrot.lane.b32.xlu1 %v15684_v44, %s18064_s27 }
 0x488   :  { %2939 = vrot.lane.b32.xlu1 %v15693_v47, %s15425_s28 }
 0x48c   :  { %3102 = vrot.lane.b32.xlu1 %v15693_v47, %s18072_s7 }
 0x490   :  { %3267 = vrot.lane.b32.xlu1 %v15693_v47, %s18070_s0 }
 0x494   :  { %3432 = vrot.lane.b32.xlu1 %v15693_v47, %s18066_s6 }
 0x498   :  { %3778 = vrot.lane.b32.xlu1 %v15704_v50, %s18092_s2 }
 0x49c   :  { %3943 = vrot.lane.b32.xlu1 %v15704_v50, %s18068_s29 }
 0x4a0   :  { %4108 = vrot.lane.b32.xlu1 %v15704_v50, %s18064_s27 }
 0x4a4   :  { %4287 = vrot.lane.b32.xlu1 %v15713_v52, %s15425_s28 }
 0x4a8   :  { %4450 = vrot.lane.b32.xlu1 %v15713_v52, %s18072_s7 }
 0x4ac   :  { %4615 = vrot.lane.b32.xlu1 %v15713_v52, %s18070_s0 }
 0x4b0   :  { %4780 = vrot.lane.b32.xlu1 %v15713_v52, %s18066_s6 }
 0x4b4   :  { %5126 = vrot.lane.b32.xlu1 %v15725_v57, %s18092_s2 }
 0x4b8   :  { %5291 = vrot.lane.b32.xlu1 %v15725_v57, %s18068_s29 }
 0x4bc   :  { %5456 = vrot.lane.b32.xlu1 %v15725_v57, %s18064_s27 }
 0x4dc   :  { %v484_v51 = vpop.xlane.xlu1 %483 }
 0x4dd   :  { %v485_v53 = vsub.f32 %v478_v37, %v484_v51 }
 0x4df   :  { %v486_v54 = vmul.f32 1.442695, %v485_v53 }
 0x4e0   :  { %v737_v60 = vpop.permute.xlu1 %736 }
 0x4e1   :  { %15088 = vpow2.f32 %v486_v54 }
 0x4e4   :  { %v1248_v63 = vpop.permute.xlu1 %1247 }
 0x4e8   :  { %v1413_v2 = vpop.permute.xlu1 %1412 }
 0x4eb   :  { %v15089_v55 = vpop.eup %15088 }
 0x4ec   :  { %v488_v56 = vsel %vm242_vm2, %v15089_v55, 0.0  ;;  %v1592_v6 = vpop.permute.xlu1 %1591 }
 0x4ed   :  { %489 = vadd.xlane.f32.xlu0 %v488_v56 }
 0x4f0   :  { %v1755_v9 = vpop.permute.xlu1 %1754 }
 0x4f4   :  { %v1920_v11 = vpop.permute.xlu1 %1919 }
 0x4f8   :  { %v2085_v15 = vpop.permute.xlu1 %2084 }
 0x4fc   :  { %v2431_v17 = vpop.permute.xlu1 %2430 }
 0x500   :  { %v2596_v20 = vpop.permute.xlu1 %2595 }
 0x503   :  { %734 = vrot.lane.b32.xlu0 %v15599_v12, %s18066_s6 }
 0x504   :  { %v2761_v22 = vpop.permute.xlu1 %2760 }
 0x507   :  { %917 = vrot.lane.b32.xlu0 %v15666_v40, %s15425_s28 }
 0x508   :  { %v2940_v24 = vpop.permute.xlu1 %2939 }
 0x50b   :  { %1082 = vrot.lane.b32.xlu0 %v15666_v40, %s18092_s2 }
 0x50c   :  { %v3103_v26 = vpop.permute.xlu1 %3102 }
 0x50f   :  { %1080 = vrot.lane.b32.xlu0 %v15666_v40, %s18072_s7 }
 0x510   :  { %v3268_v28 = vpop.permute.xlu1 %3267 }
 0x513   :  { %1245 = vrot.lane.b32.xlu0 %v15666_v40, %s18070_s0 }
 0x514   :  { %v3433_v30 = vpop.permute.xlu1 %3432 }
 0x517   :  { %1410 = vrot.lane.b32.xlu0 %v15666_v40, %s18066_s6 }
 0x518   :  { %v3779_v32 = vpop.permute.xlu1 %3778 }
 0x51b   :  { %1756 = vrot.lane.b32.xlu0 %v15673_v43, %s18092_s2 }
 0x51c   :  { %v3944_v34 = vpop.permute.xlu1 %3943 }
 0x51f   :  { %1921 = vrot.lane.b32.xlu0 %v15673_v43, %s18068_s29 }
 0x520   :  { %v4109_v37 = vpop.permute.xlu1 %4108 }
 0x523   :  { %2086 = vrot.lane.b32.xlu0 %v15673_v43, %s18064_s27 }
 0x524   :  { %v4288_v39 = vpop.permute.xlu1 %4287 }
 0x527   :  { %2265 = vrot.lane.b32.xlu0 %v15684_v44, %s15425_s28 }
 0x528   :  { %v4451_v42 = vpop.permute.xlu1 %4450 }
 0x52b   :  { %2428 = vrot.lane.b32.xlu0 %v15684_v44, %s18072_s7 }
 0x52c   :  { %v4616_v46 = vpop.permute.xlu1 %4615 }
 0x52f   :  { %2593 = vrot.lane.b32.xlu0 %v15684_v44, %s18070_s0 }
 0x530   :  { %v4781_v49 = vpop.permute.xlu1 %4780 }
 0x533   :  { %2758 = vrot.lane.b32.xlu0 %v15684_v44, %s18066_s6 }
 0x534   :  { %v5127_v53 = vpop.permute.xlu1 %5126 }
 0x537   :  { %3104 = vrot.lane.b32.xlu0 %v15693_v47, %s18092_s2 }
 0x53b   :  { %3269 = vrot.lane.b32.xlu0 %v15693_v47, %s18068_s29 }
 0x53f   :  { %3434 = vrot.lane.b32.xlu0 %v15693_v47, %s18064_s27 }
 0x543   :  { %3613 = vrot.lane.b32.xlu0 %v15704_v50, %s15425_s28 }
 0x547   :  { %3776 = vrot.lane.b32.xlu0 %v15704_v50, %s18072_s7 }
 0x54b   :  { %3941 = vrot.lane.b32.xlu0 %v15704_v50, %s18070_s0 }
 0x54f   :  { %4106 = vrot.lane.b32.xlu0 %v15704_v50, %s18066_s6 }
 0x553   :  { %4452 = vrot.lane.b32.xlu0 %v15713_v52, %s18092_s2 }
 0x557   :  { %4617 = vrot.lane.b32.xlu0 %v15713_v52, %s18068_s29  ;;  %s18098_s29 = sld [smem:[#allocation13_spill]] }
 0x55b   :  { %4782 = vrot.lane.b32.xlu0 %v15713_v52, %s18064_s27  ;;  %s18074_s27 = smov 24  }
 0x55f   :  { %4961 = vrot.lane.b32.xlu0 %v15725_v57, %s15425_s28 }
 0x563   :  { %5124 = vrot.lane.b32.xlu0 %v15725_v57, %s18072_s7  ;;  %s18096_s7 = sld [smem:[#allocation10_spill]] }
 0x567   :  { %5289 = vrot.lane.b32.xlu0 %v15725_v57, %s18070_s0 }
 0x56b   :  { %5454 = vrot.lane.b32.xlu0 %v15725_v57, %s18066_s6  ;;  %s15440_s6 = smov [#allocation2]  }
 0x57a   :  { %v490_v61 = vpop.xlane.xlu0 %489 }
 0x57b   :  { %15090 = vrcp.f32 %v490_v61 }
 0x57e   :  { %v735_v62 = vpop.permute.xlu0 %734 }
 0x582   :  { %v918_v0 = vpop.permute.xlu0 %917 }
 0x585   :  { %v15091_v1 = vpop.eup %15090 }
 0x586   :  { %v1083_v3 = vpop.permute.xlu0 %1082  ;;  %v492_v4 = vmul.f32 %v15091_v1, %v15089_v55  ;;  %v5292_v55 = vpop.permute.xlu1 %5291 }
 0x588   :  { %13552 = vmatmul.mubr.msk.f32.vlgmr.msra.gmra.mrb[6].mxu1 %vm242_vm2, %v492_v4 }
 0x589   :  { %13555 = vmatpush3.xpose.msk.msra.mxu1 %vm242_vm2, %v572_v58  ;;  %13556 = vmatprep.mubr.msk.f32.mxu1 %vm15423_vm1, %v15422_v8 }
 0x58a   :  { %v1081_v5 = vpop.permute.xlu0 %1080  ;;  %13564 = vmatprep.subr.mxu1 %v15422_v8  ;;  %v5457_v58 = vpop.permute.xlu1 %5456 }
 0x58c   :  { %13557 = vmatmul.mubr.msk.f32.vlgmr.msra.gmra.mrb[8].mxu1 %vm242_vm2, %v570_v59 }
 0x58d   :  { %13565 = vmatpush3.xpose.msk.msra.mxu1 %vm242_vm2, %v737_v60  ;;  %13566 = vmatprep.mubr.msk.f32.mxu1 %vm15423_vm1, %v15422_v8 }
 0x58e   :  { %v1246_v7 = vpop.permute.xlu0 %1245  ;;  %13574 = vmatprep.subr.mxu1 %v15422_v8 }
 0x590   :  { %13567 = vmatmul.mubr.msk.f32.vlgmr.msra.gmra.mrb[10].mxu1 %vm242_vm2, %v735_v62 }
 0x591   :  { %13575 = vmatpush3.xpose.msk.msra.mxu1 %vm242_vm2, %v918_v0  ;;  %13576 = vmatprep.mubr.msk.f32.mxu1 %vm15423_vm1, %v15422_v8 }
 0x592   :  { %v1411_v10 = vpop.permute.xlu0 %1410  ;;  %13584 = vmatprep.subr.mxu1 %v15422_v8 }
 0x594   :  { %13577 = vmatmul.mubr.msk.f32.vlgmr.msra.gmra.mrb[12].mxu1 %vm242_vm2, %v15666_v40 }
 0x595   :  { %13585 = vmatpush3.xpose.msk.msra.mxu1 %vm242_vm2, %v1083_v3  ;;  %13586 = vmatprep.mubr.msk.f32.mxu1 %vm15423_vm1, %v15422_v8 }
 0x596   :  { %13594 = vmatprep.subr.mxu1 %v15422_v8  ;;  %v1757_v13 = vpop.permute.xlu0 %1756 }
 0x598   :  { %13587 = vmatmul.mubr.msk.f32.vlgmr.msra.gmra.mrb[14].mxu1 %vm242_vm2, %v1081_v5 }
 0x599   :  { %13595 = vmatpush3.xpose.msk.msra.mxu1 %vm242_vm2, %v1248_v63  ;;  %13596 = vmatprep.mubr.msk.f32.mxu1 %vm15423_vm1, %v15422_v8 }
 0x59a   :  { %13604 = vmatprep.subr.mxu1 %v15422_v8  ;;  %v1922_v14 = vpop.permute.xlu0 %1921 }
 0x59c   :  { %13597 = vmatmul.mubr.msk.f32.vlgmr.msra.gmra.mrb[16].mxu1 %vm242_vm2, %v1246_v7 }
 0x59d   :  { %13605 = vmatpush3.xpose.msk.msra.mxu1 %vm242_vm2, %v1413_v2  ;;  %13606 = vmatprep.mubr.msk.f32.mxu1 %vm15423_vm1, %v15422_v8 }
 0x59e   :  { %13614 = vmatprep.subr.mxu1 %v15422_v8  ;;  %v2087_v16 = vpop.permute.xlu0 %2086 }
 0x5a0   :  { %13607 = vmatmul.mubr.msk.f32.vlgmr.msra.gmra.mrb[18].mxu1 %vm242_vm2, %v1411_v10 }
 0x5a1   :  { %13615 = vmatpush3.xpose.msk.msra.mxu1 %vm242_vm2, %v1592_v6  ;;  %13616 = vmatprep.mubr.msk.f32.mxu1 %vm15423_vm1, %v15422_v8 }
 0x5a2   :  { %13624 = vmatprep.subr.mxu1 %v15422_v8  ;;  %v2266_v18 = vpop.permute.xlu0 %2265 }
 0x5a4   :  { %13617 = vmatmul.mubr.msk.f32.vlgmr.msra.gmra.mrb[20].mxu1 %vm242_vm2, %v15673_v43 }
 0x5a5   :  { %13625 = vmatpush3.xpose.msk.msra.mxu1 %vm242_vm2, %v1757_v13  ;;  %13626 = vmatprep.mubr.msk.f32.mxu1 %vm15423_vm1, %v15422_v8 }
 0x5a6   :  { %13634 = vmatprep.subr.mxu1 %v15422_v8  ;;  %v2429_v19 = vpop.permute.xlu0 %2428 }
 0x5a8   :  { %13627 = vmatmul.mubr.msk.f32.vlgmr.msra.gmra.mrb[22].mxu1 %vm242_vm2, %v1755_v9 }
 0x5a9   :  { %13635 = vmatpush3.xpose.msk.msra.mxu1 %vm242_vm2, %v1922_v14  ;;  %13636 = vmatprep.mubr.msk.f32.mxu1 %vm15423_vm1, %v15422_v8 }
 0x5aa   :  { %13644 = vmatprep.subr.mxu1 %v15422_v8  ;;  %v2594_v21 = vpop.permute.xlu0 %2593 }
 0x5ac   :  { %13637 = vmatmul.mubr.msk.f32.vlgmr.msra.gmra.mrb[24].mxu1 %vm242_vm2, %v1920_v11 }
 0x5ad   :  { %13645 = vmatpush3.xpose.msk.msra.mxu1 %vm242_vm2, %v2087_v16  ;;  %13646 = vmatprep.mubr.msk.f32.mxu1 %vm15423_vm1, %v15422_v8 }
 0x5ae   :  { %13654 = vmatprep.subr.mxu1 %v15422_v8  ;;  %v2759_v23 = vpop.permute.xlu0 %2758 }
 0x5b0   :  { %13647 = vmatmul.mubr.msk.f32.vlgmr.msra.gmra.mrb[26].mxu1 %vm242_vm2, %v2085_v15 }
 0x5b1   :  { %13655 = vmatpush3.xpose.msk.msra.mxu1 %vm242_vm2, %v2266_v18  ;;  %13656 = vmatprep.mubr.msk.f32.mxu1 %vm15423_vm1, %v15422_v8 }
 0x5b2   :  { %13664 = vmatprep.subr.mxu1 %v15422_v8  ;;  %v3105_v25 = vpop.permute.xlu0 %3104 }
 0x5b4   :  { %13657 = vmatmul.mubr.msk.f32.vlgmr.msra.gmra.mrb[28].mxu1 %vm242_vm2, %v15684_v44 }
 0x5b5   :  { %13665 = vmatpush3.xpose.msk.msra.mxu1 %vm242_vm2, %v2431_v17  ;;  %13666 = vmatprep.mubr.msk.f32.mxu1 %vm15423_vm1, %v15422_v8 }
 0x5b6   :  { %13674 = vmatprep.subr.mxu1 %v15422_v8  ;;  %v3270_v27 = vpop.permute.xlu0 %3269 }
 0x5b8   :  { %13667 = vmatmul.mubr.msk.f32.vlgmr.msra.gmra.mrb[30].mxu1 %vm242_vm2, %v2429_v19 }
 0x5b9   :  { %13675 = vmatpush3.xpose.msk.msra.mxu1 %vm242_vm2, %v2596_v20  ;;  %13676 = vmatprep.mubr.msk.f32.mxu1 %vm15423_vm1, %v15422_v8 }
 0x5ba   :  { %13684 = vmatprep.subr.mxu1 %v15422_v8  ;;  %v3435_v29 = vpop.permute.xlu0 %3434 }
 0x5bc   :  { %13677 = vmatmul.mubr.msk.f32.vlgmr.msra.gmra.mrb[32].mxu1 %vm242_vm2, %v2594_v21 }
 0x5bd   :  { %13685 = vmatpush3.xpose.msk.msra.mxu1 %vm242_vm2, %v2761_v22  ;;  %13686 = vmatprep.mubr.msk.f32.mxu1 %vm15423_vm1, %v15422_v8 }
 0x5be   :  { %13694 = vmatprep.subr.mxu1 %v15422_v8  ;;  %v3614_v31 = vpop.permute.xlu0 %3613 }
 0x5c0   :  { %13687 = vmatmul.mubr.msk.f32.vlgmr.msra.gmra.mrb[34].mxu1 %vm242_vm2, %v2759_v23 }
 0x5c1   :  { %13695 = vmatpush3.xpose.msk.msra.mxu1 %vm242_vm2, %v2940_v24  ;;  %13696 = vmatprep.mubr.msk.f32.mxu1 %vm15423_vm1, %v15422_v8 }
 0x5c2   :  { %13704 = vmatprep.subr.mxu1 %v15422_v8  ;;  %v3777_v33 = vpop.permute.xlu0 %3776 }
 0x5c4   :  { %13697 = vmatmul.mubr.msk.f32.vlgmr.msra.gmra.mrb[36].mxu1 %vm242_vm2, %v15693_v47 }
 0x5c5   :  { %13705 = vmatpush3.xpose.msk.msra.mxu1 %vm242_vm2, %v3105_v25  ;;  %13706 = vmatprep.mubr.msk.f32.mxu1 %vm15423_vm1, %v15422_v8 }
 0x5c6   :  { %13714 = vmatprep.subr.mxu1 %v15422_v8  ;;  %v3942_v36 = vpop.permute.xlu0 %3941 }
 0x5c8   :  { %13707 = vmatmul.mubr.msk.f32.vlgmr.msra.gmra.mrb[38].mxu1 %vm242_vm2, %v3103_v26 }
 0x5c9   :  { %13715 = vmatpush3.xpose.msk.msra.mxu1 %vm242_vm2, %v3270_v27  ;;  %13716 = vmatprep.mubr.msk.f32.mxu1 %vm15423_vm1, %v15422_v8 }
 0x5ca   :  { %13724 = vmatprep.subr.mxu1 %v15422_v8  ;;  %v4107_v38 = vpop.permute.xlu0 %4106 }
 0x5cc   :  { %13717 = vmatmul.mubr.msk.f32.vlgmr.msra.gmra.mrb[40].mxu1 %vm242_vm2, %v3268_v28 }
 0x5cd   :  { %13725 = vmatpush3.xpose.msk.msra.mxu1 %vm242_vm2, %v3435_v29  ;;  %13726 = vmatprep.mubr.msk.f32.mxu1 %vm15423_vm1, %v15422_v8 }
 0x5ce   :  { %13734 = vmatprep.subr.mxu1 %v15422_v8  ;;  %v4453_v41 = vpop.permute.xlu0 %4452 }
 0x5d0   :  { %13727 = vmatmul.mubr.msk.f32.vlgmr.msra.gmra.mrb[42].mxu1 %vm242_vm2, %v3433_v30 }
 0x5d1   :  { %13735 = vmatpush3.xpose.msk.msra.mxu1 %vm242_vm2, %v3614_v31  ;;  %13736 = vmatprep.mubr.msk.f32.mxu1 %vm15423_vm1, %v15422_v8 }
 0x5d2   :  { %13744 = vmatprep.subr.mxu1 %v15422_v8  ;;  %v4618_v45 = vpop.permute.xlu0 %4617 }
 0x5d4   :  { %13737 = vmatmul.mubr.msk.f32.vlgmr.msra.gmra.mrb[44].mxu1 %vm242_vm2, %v15704_v50 }
 0x5d5   :  { %13745 = vmatpush3.xpose.msk.msra.mxu1 %vm242_vm2, %v3779_v32  ;;  %13746 = vmatprep.mubr.msk.f32.mxu1 %vm15423_vm1, %v15422_v8 }
 0x5d6   :  { %13754 = vmatprep.subr.mxu1 %v15422_v8  ;;  %v4783_v48 = vpop.permute.xlu0 %4782 }
 0x5d8   :  { %13747 = vmatmul.mubr.msk.f32.vlgmr.msra.gmra.mrb[46].mxu1 %vm242_vm2, %v3777_v33 }
 0x5d9   :  { %13755 = vmatpush3.xpose.msk.msra.mxu1 %vm242_vm2, %v3944_v34  ;;  %13756 = vmatprep.mubr.msk.f32.mxu1 %vm15423_vm1, %v15422_v8 }
 0x5da   :  { %13764 = vmatprep.subr.mxu1 %v15422_v8  ;;  %v4962_v51 = vpop.permute.xlu0 %4961 }
 0x5dc   :  { %13757 = vmatmul.mubr.msk.f32.vlgmr.msra.gmra.mrb[48].mxu1 %vm242_vm2, %v3942_v36 }
 0x5dd   :  { %13765 = vmatpush3.xpose.msk.msra.mxu1 %vm242_vm2, %v4109_v37  ;;  %13766 = vmatprep.mubr.msk.f32.mxu1 %vm15423_vm1, %v15422_v8 }
 0x5de   :  { %13774 = vmatprep.subr.mxu1 %v15422_v8  ;;  %v5125_v54 = vpop.permute.xlu0 %5124 }
 0x5e0   :  { %13767 = vmatmul.mubr.msk.f32.vlgmr.msra.gmra.mrb[50].mxu1 %vm242_vm2, %v4107_v38 }
 0x5e1   :  { %13775 = vmatpush3.xpose.msk.msra.mxu1 %vm242_vm2, %v4288_v39  ;;  %13776 = vmatprep.mubr.msk.f32.mxu1 %vm15423_vm1, %v15422_v8 }
 0x5e2   :  { %13784 = vmatprep.subr.mxu1 %v15422_v8  ;;  %v5290_v56 = vpop.permute.xlu0 %5289 }
 0x5e4   :  { %13777 = vmatmul.mubr.msk.f32.vlgmr.msra.gmra.mrb[52].mxu1 %vm242_vm2, %v15713_v52 }
 0x5e5   :  { %13785 = vmatpush3.xpose.msk.msra.mxu1 %vm242_vm2, %v4453_v41  ;;  %13786 = vmatprep.mubr.msk.f32.mxu1 %vm15423_vm1, %v15422_v8 }
 0x5e6   :  { %13794 = vmatprep.subr.mxu1 %v15422_v8  ;;  %v5455_v59 = vpop.permute.xlu0 %5454 }
 0x5e8   :  { %13787 = vmatmul.mubr.msk.f32.vlgmr.msra.gmra.mrb[54].mxu1 %vm242_vm2, %v4451_v42 }
 0x5e9   :  { %13795 = vmatpush3.xpose.msk.msra.mxu1 %vm242_vm2, %v4618_v45  ;;  %13796 = vmatprep.mubr.msk.f32.mxu1 %vm15423_vm1, %v15422_v8 }
 0x5ea   :  { %13804 = vmatprep.subr.mxu1 %v15422_v8 }
 0x5ec   :  { %13797 = vmatmul.mubr.msk.f32.vlgmr.msra.gmra.mrb[56].mxu1 %vm242_vm2, %v4616_v46 }
 0x5ed   :  { %13805 = vmatpush3.xpose.msk.msra.mxu1 %vm242_vm2, %v4783_v48  ;;  %13806 = vmatprep.mubr.msk.f32.mxu1 %vm15423_vm1, %v15422_v8 }
 0x5ee   :  { %13814 = vmatprep.subr.mxu1 %v15422_v8 }
 0x5f0   :  { %13807 = vmatmul.mubr.msk.f32.vlgmr.msra.gmra.mrb[58].mxu1 %vm242_vm2, %v4781_v49 }
 0x5f1   :  { %13815 = vmatpush3.xpose.msk.msra.mxu1 %vm242_vm2, %v4962_v51  ;;  %13816 = vmatprep.mubr.msk.f32.mxu1 %vm15423_vm1, %v15422_v8 }
 0x5f2   :  { %13824 = vmatprep.subr.mxu1 %v15422_v8 }
 0x5f4   :  { %13817 = vmatmul.mubr.msk.f32.vlgmr.msra.gmra.mrb[60].mxu1 %vm242_vm2, %v15725_v57 }
 0x5f5   :  { %13825 = vmatpush3.xpose.msk.msra.mxu1 %vm242_vm2, %v5127_v53  ;;  %13826 = vmatprep.mubr.msk.f32.mxu1 %vm15423_vm1, %v15422_v8 }
 0x5f6   :  { %13834 = vmatprep.subr.mxu1 %v15422_v8 }
 0x5f8   :  { %13827 = vmatmul.mubr.msk.f32.vlgmr.msra.gmra.mrb[62].mxu1 %vm242_vm2, %v5125_v54 }
 0x5f9   :  { %13835 = vmatpush3.xpose.msk.msra.mxu1 %vm242_vm2, %v5292_v55  ;;  %13836 = vmatprep.mubr.msk.f32.mxu1 %vm15423_vm1, %v15422_v8 }
 0x5fa   :  { %13844 = vmatprep.subr.mxu1 %v15422_v8 }
 0x5fc   :  { %13837 = vmatmul.mubr.msk.f32.vlgmr.msra.gmra.mrb[64].mxu1 %vm242_vm2, %v5290_v56 }
 0x5fd   :  { %13845 = vmatpush3.xpose.msk.msra.mxu1 %vm242_vm2, %v5457_v58  ;;  %13846 = vmatprep.mubr.msk.f32.mxu1 %vm15423_vm1, %v15422_v8 }
 0x600   :  { %13847 = vmatmul.mubr.msk.f32.vlgmr.msra.gmra.mrb[66].mxu1 %vm242_vm2, %v5455_v59 }
 0x65b   :  { %v15944_v60 = vpop.f32.mrb[6].mxu1 }
 0x65c   :  { %v13553_v61 = vpop.f32.mrb[7].mxu1 }
 0x65f   :  { %v15946_v62 = vpop.f32.mrb[8].mxu1 }
 0x660   :  { %v13558_v63 = vpop.f32.mrb[9].mxu1  ;;  %v647_v0 = vsel %vm242_vm2, %v15946_v62, -inf }
 0x661   :  { %648 = vmax.xlane.f32.xlu1 %v647_v0 }
 0x663   :  { %v15950_v1 = vpop.f32.mrb[10].mxu1 }
 0x664   :  { %v13568_v2 = vpop.f32.mrb[11].mxu1  ;;  %v812_v3 = vsel %vm242_vm2, %v15950_v1, -inf }
 0x665   :  { %813 = vmax.xlane.f32.xlu0 %v812_v3 }
 0x667   :  { %v15954_v4 = vpop.f32.mrb[12].mxu1 }
 0x668   :  { %v13578_v5 = vpop.f32.mrb[13].mxu1  ;;  %v993_v6 = vsel %vm242_vm2, %v15954_v4, -inf }
 0x669   :  { %994 = vmax.xlane.f32.xlu0 %v993_v6 }
 0x66b   :  { %v15958_v7 = vpop.f32.mrb[14].mxu1 }
 0x66c   :  { %v13588_v9 = vpop.f32.mrb[15].mxu1  ;;  %v1158_v10 = vsel %vm242_vm2, %v15958_v7, -inf }
 0x66d   :  { %1159 = vmax.xlane.f32.xlu1 %v1158_v10 }
 0x66f   :  { %v15962_v11 = vpop.f32.mrb[16].mxu1 }
 0x670   :  { %v13598_v13 = vpop.f32.mrb[17].mxu1  ;;  %v1323_v14 = vsel %vm242_vm2, %v15962_v11, -inf }
 0x671   :  { %1324 = vmax.xlane.f32.xlu0 %v1323_v14 }
 0x673   :  { %v15966_v15 = vpop.f32.mrb[18].mxu1 }
 0x674   :  { %v13608_v16 = vpop.f32.mrb[19].mxu1  ;;  %v1488_v17 = vsel %vm242_vm2, %v15966_v15, -inf }
 0x675   :  { %1489 = vmax.xlane.f32.xlu1 %v1488_v17 }
 0x677   :  { %v15970_v18 = vpop.f32.mrb[20].mxu1 }
 0x678   :  { %v13618_v19 = vpop.f32.mrb[21].mxu1  ;;  %v1667_v55 = vsel %vm242_vm2, %v15970_v18, -inf }
 0x67b   :  { %v15972_v20 = vpop.f32.mrb[22].mxu1 }
 0x67c   :  { %v13628_v21 = vpop.f32.mrb[23].mxu1  ;;  %v1832_v46 = vsel %vm242_vm2, %v15972_v20, -inf }
 0x67f   :  { %v15974_v22 = vpop.f32.mrb[24].mxu1 }
 0x680   :  { %v13638_v23 = vpop.f32.mrb[25].mxu1  ;;  %v1997_v51 = vsel %vm242_vm2, %v15974_v22, -inf }
 0x683   :  { %v15976_v24 = vpop.f32.mrb[26].mxu1 }
 0x684   :  { %v13648_v25 = vpop.f32.mrb[27].mxu1  ;;  %v2162_v56 = vsel %vm242_vm2, %v15976_v24, -inf }
 0x686   :  { %823 = vrot.lane.b32.xlu1 %v15599_v12, %s15433_s8 }
 0x687   :  { %658 = vrot.lane.b32.xlu0 %v15599_v12, %s15434_s4  ;;  %v15982_v26 = vpop.f32.mrb[28].mxu1 }
 0x688   :  { %v13658_v27 = vpop.f32.mrb[29].mxu1  ;;  %v2341_v61 = vsel %vm242_vm2, %v15982_v26, -inf }
 0x68a   :  { %1004 = vrot.lane.b32.xlu1 %v15666_v40, %s18093_s1 }
 0x68b   :  { %1169 = vrot.lane.b32.xlu0 %v15666_v40, %s18094_s5  ;;  %v15988_v28 = vpop.f32.mrb[30].mxu1 }
 0x68c   :  { %v13668_v29 = vpop.f32.mrb[31].mxu1 }
 0x68e   :  { %1334 = vrot.lane.b32.xlu1 %v15666_v40, %s15434_s4 }
 0x68f   :  { %1499 = vrot.lane.b32.xlu0 %v15666_v40, %s15433_s8  ;;  %v15994_v30 = vpop.f32.mrb[32].mxu1 }
 0x690   :  { %v13678_v12 = vpop.f32.mrb[33].mxu1 }
 0x693   :  { %v15996_v31 = vpop.f32.mrb[34].mxu1 }
 0x694   :  { %v13688_v32 = vpop.f32.mrb[35].mxu1 }
 0x697   :  { %v15998_v33 = vpop.f32.mrb[36].mxu1 }
 0x698   :  { %v13698_v34 = vpop.f32.mrb[37].mxu1 }
 0x69b   :  { %v16000_v36 = vpop.f32.mrb[38].mxu1 }
 0x69c   :  { %v13708_v37 = vpop.f32.mrb[39].mxu1 }
 0x69f   :  { %v16002_v38 = vpop.f32.mrb[40].mxu1 }
 0x6a0   :  { %v13718_v39 = vpop.f32.mrb[41].mxu1 }
 0x6a3   :  { %v16004_v41 = vpop.f32.mrb[42].mxu1 }
 0x6a4   :  { %v13728_v42 = vpop.f32.mrb[43].mxu1 }
 0x6a7   :  { %v16006_v45 = vpop.f32.mrb[44].mxu1 }
 0x6a8   :  { %v13738_v40 = vpop.f32.mrb[45].mxu1 }
 0x6ab   :  { %v16010_v48 = vpop.f32.mrb[46].mxu1 }
 0x6ac   :  { %v13748_v49 = vpop.f32.mrb[47].mxu1 }
 0x6ae   :  { %1833 = vmax.xlane.f32.xlu0 %v1832_v46 }
 0x6af   :  { %v16014_v53 = vpop.f32.mrb[48].mxu1 }
 0x6b0   :  { %v13758_v54 = vpop.f32.mrb[49].mxu1 }
 0x6b2   :  { %1668 = vmax.xlane.f32.xlu1 %v1667_v55  ;;  %1998 = vmax.xlane.f32.xlu0 %v1997_v51 }
 0x6b3   :  { %v16020_v58 = vpop.f32.mrb[50].mxu1 }
 0x6b4   :  { %v13768_v59 = vpop.f32.mrb[51].mxu1 }
 0x6b6   :  { %2163 = vmax.xlane.f32.xlu1 %v2162_v56  ;;  %2342 = vmax.xlane.f32.xlu0 %v2341_v61 }
 0x6b7   :  { %v16024_v63 = vpop.f32.mrb[52].mxu1 }
 0x6b8   :  { %v13778_v0 = vpop.f32.mrb[53].mxu1 }
 0x6bb   :  { %v16026_v2 = vpop.f32.mrb[54].mxu1 }
 0x6bc   :  { %v13788_v3 = vpop.f32.mrb[55].mxu1 }
 0x6bd   :  { %v2671_v3 = vsel %vm242_vm2, %v15994_v30, -inf }
 0x6bf   :  { %v16028_v5 = vpop.f32.mrb[56].mxu1 }
 0x6c0   :  { %v13798_v6 = vpop.f32.mrb[57].mxu1 }
 0x6c3   :  { %v16030_v9 = vpop.f32.mrb[58].mxu1 }
 0x6c4   :  { %v13808_v10 = vpop.f32.mrb[59].mxu1 }
 0x6c5   :  { %v2506_v10 = vsel %vm242_vm2, %v15988_v28, -inf }
 0x6c7   :  { %v16032_v13 = vpop.f32.mrb[60].mxu1 }
 0x6c8   :  { %v13818_v14 = vpop.f32.mrb[61].mxu1 }
 0x6cb   :  { %v16034_v16 = vpop.f32.mrb[62].mxu1 }
 0x6cc   :  { %v13828_v17 = vpop.f32.mrb[63].mxu1 }
 0x6cf   :  { %v16036_v19 = vpop.f32.mrb[64].mxu1 }
 0x6d0   :  { %v13838_v21 = vpop.f32.mrb[65].mxu1 }
 0x6d1   :  { %v3015_v21 = vsel %vm242_vm2, %v15998_v33, -inf }
 0x6d3   :  { %v16038_v23 = vpop.f32.mrb[66].mxu1 }
 0x6d4   :  { %v13848_v25 = vpop.f32.mrb[67].mxu1 }
 0x6ee   :  { %v649_v27 = vpop.xlane.xlu1 %648 }
 0x6ef   :  { %v650_v29 = vsub.f32 %v15946_v62, %v649_v27  ;;  %v2836_v27 = vsel %vm242_vm2, %v15996_v31, -inf }
 0x6f1   :  { %v651_v12 = vmul.f32 1.442695, %v650_v29 }
 0x6f2   :  { %v814_v32 = vpop.xlane.xlu0 %813 }
 0x6f3   :  { %15092 = vpow2.f32 %v651_v12  ;;  %v815_v34 = vsub.f32 %v15950_v1, %v814_v32 }
 0x6f5   :  { %v816_v37 = vmul.f32 1.442695, %v815_v34  ;;  %v3345_v34 = vsel %vm242_vm2, %v16002_v38, -inf }
 0x6f6   :  { %v995_v39 = vpop.xlane.xlu0 %994 }
 0x6f7   :  { %15094 = vpow2.f32 %v816_v37  ;;  %v996_v42 = vsub.f32 %v15954_v4, %v995_v39  ;;  %v3180_v37 = vsel %vm242_vm2, %v16000_v36, -inf  ;;  %v3689_v39 = vsel %vm242_vm2, %v16006_v45, -inf }
 0x6f9   :  { %v997_v40 = vmul.f32 1.442695, %v996_v42  ;;  %v3510_v42 = vsel %vm242_vm2, %v16004_v41, -inf }
 0x6fa   :  { %v1160_v46 = vpop.xlane.xlu1 %1159 }
 0x6fb   :  { %15096 = vpow2.f32 %v997_v40  ;;  %v1161_v49 = vsub.f32 %v15958_v7, %v1160_v46  ;;  %v4019_v40 = vsel %vm242_vm2, %v16014_v53, -inf  ;;  %v3854_v46 = vsel %vm242_vm2, %v16010_v48, -inf }
 0x6fd   :  { %v16044_v51 = vpop.eup %15092  ;;  %v1162_v54 = vmul.f32 1.442695, %v1161_v49  ;;  %v4363_v49 = vsel %vm242_vm2, %v16024_v63, -inf }
 0x6fe   :  { %v1325_v55 = vpop.xlane.xlu0 %1324  ;;  %v653_v62 = vsel %vm242_vm2, %v16044_v51, 0.0 }
 0x6ff   :  { %15098 = vpow2.f32 %v1162_v54  ;;  %v1326_v1 = vsub.f32 %v15962_v11, %v1325_v55  ;;  %654 = vadd.xlane.f32.xlu0 %v653_v62  ;;  %v4693_v54 = vsel %vm242_vm2, %v16028_v5, -inf  ;;  %v4184_v55 = vsel %vm242_vm2, %v16020_v58, -inf }
 0x700   :  { %v4528_v62 = vsel %vm242_vm2, %v16026_v2, -inf }
 0x701   :  { %v16049_v56 = vpop.eup %15094  ;;  %v1327_v59 = vmul.f32 1.442695, %v1326_v1  ;;  %v5037_v1 = vsel %vm242_vm2, %v16032_v13, -inf }
 0x702   :  { %v659_v4 = vpop.permute.xlu0 %658  ;;  %v1490_v61 = vpop.xlane.xlu1 %1489  ;;  %v818_v0 = vsel %vm242_vm2, %v16049_v56, 0.0 }
 0x703   :  { %15100 = vpow2.f32 %v1327_v59  ;;  %v1491_v7 = vsub.f32 %v15966_v15, %v1490_v61  ;;  %13560 = vmatpush3.msra.mxu0 %v659_v4  ;;  %819 = vadd.xlane.f32.xlu1 %v818_v0  ;;  %v4858_v59 = vsel %vm242_vm2, %v16030_v9, -inf  ;;  %v5202_v4 = vsel %vm242_vm2, %v16034_v16, -inf }
 0x704   :  { %2672 = vmax.xlane.f32.xlu0 %v2671_v3  ;;  %13569 = vmatprep.subr.mxu0 %v15422_v8  ;;  %v5367_v61 = vsel %vm242_vm2, %v16036_v19, -inf  ;;  %v5532_v0 = vsel %vm242_vm2, %v16038_v23, -inf }
 0x705   :  { %v16057_v11 = vpop.eup %15096  ;;  %v1492_v6 = vmul.f32 1.442695, %v1491_v7 }
 0x706   :  { %v999_v14 = vsel %vm242_vm2, %v16057_v11, 0.0  ;;  %v16127_v7 = vpop.permute.xlu1 %823 }
 0x707   :  { %15102 = vpow2.f32 %v1492_v6  ;;  %2507 = vmax.xlane.f32.xlu1 %v2506_v10 }
 0x708   :  { %1000 = vadd.xlane.f32.xlu0 %v999_v14 }
 0x709   :  { %v16063_v15 = vpop.eup %15098 }
 0x70a   :  { %v1164_v17 = vsel %vm242_vm2, %v16063_v15, 0.0  ;;  %v16137_v3 = vpop.permute.xlu1 %1004 }
 0x70b   :  { %1165 = vadd.xlane.f32.xlu1 %v1164_v17 }
 0x70c   :  { %3016 = vmax.xlane.f32.xlu0 %v3015_v21 }
 0x70d   :  { %v16069_v25 = vpop.eup %15100 }
 0x70e   :  { %v1329_v29 = vsel %vm242_vm2, %v16069_v25, 0.0  ;;  %v16147_v6 = vpop.permute.xlu1 %1334 }
 0x70f   :  { %2837 = vmax.xlane.f32.xlu1 %v2836_v27 }
 0x710   :  { %1330 = vadd.xlane.f32.xlu0 %v1329_v29 }
 0x711   :  { %v16075_v12 = vpop.eup %15102 }
 0x712   :  { %v1494_v32 = vsel %vm242_vm2, %v16075_v12, 0.0 }
 0x713   :  { %1495 = vadd.xlane.f32.xlu1 %v1494_v32 }
 0x714   :  { %3346 = vmax.xlane.f32.xlu0 %v3345_v34 }
 0x717   :  { %3181 = vmax.xlane.f32.xlu1 %v3180_v37 }
 0x718   :  { %3690 = vmax.xlane.f32.xlu0 %v3689_v39 }
 0x71b   :  { %3511 = vmax.xlane.f32.xlu1 %v3510_v42 }
 0x71c   :  { %4020 = vmax.xlane.f32.xlu0 %v4019_v40 }
 0x71f   :  { %3855 = vmax.xlane.f32.xlu1 %v3854_v46 }
 0x720   :  { %4364 = vmax.xlane.f32.xlu0 %v4363_v49 }
 0x723   :  { %4185 = vmax.xlane.f32.xlu1 %v4184_v55 }
 0x724   :  { %4694 = vmax.xlane.f32.xlu0 %v4693_v54 }
 0x727   :  { %4529 = vmax.xlane.f32.xlu1 %v4528_v62 }
 0x728   :  { %5038 = vmax.xlane.f32.xlu0 %v5037_v1 }
 0x72b   :  { %4859 = vmax.xlane.f32.xlu1 %v4858_v59 }
 0x72f   :  { %5203 = vmax.xlane.f32.xlu1 %v5202_v4 }
 0x733   :  { %5368 = vmax.xlane.f32.xlu1 %v5367_v61 }
 0x737   :  { %5533 = vmax.xlane.f32.xlu1 %v5532_v0 }
 0x73e   :  { %1843 = vrot.lane.b32.xlu0 %v15673_v43, %s18094_s5 }
 0x73f   :  { %v1669_v10 = vpop.xlane.xlu1 %1668 }
 0x740   :  { %v1670_v14 = vsub.f32 %v15970_v18, %v1669_v10 }
 0x742   :  { %2008 = vrot.lane.b32.xlu0 %v15673_v43, %s15434_s4  ;;  %v1671_v27 = vmul.f32 1.442695, %v1670_v14 }
 0x743   :  { %v2164_v29 = vpop.xlane.xlu1 %2163 }
 0x744   :  { %v2165_v32 = vsub.f32 %v15976_v24, %v2164_v29  ;;  %15104 = vpow2.f32 %v1671_v27 }
 0x746   :  { %2352 = vrot.lane.b32.xlu0 %v15684_v44, %s18093_s1  ;;  %v2166_v42 = vmul.f32 1.442695, %v2165_v32 }
 0x748   :  { %1678 = vrot.lane.b32.xlu1 %v15673_v43, %s18093_s1 }
 0x74a   :  { %2517 = vrot.lane.b32.xlu0 %v15684_v44, %s18094_s5 }
 0x74c   :  { %2173 = vrot.lane.b32.xlu1 %v15673_v43, %s15433_s8  ;;  %v16135_v43 = vpop.permute.xlu0 %1169 }
 0x74e   :  { %2847 = vrot.lane.b32.xlu0 %v15684_v44, %s15433_s8  ;;  %v16156_v46 = vpop.eup %15104 }
 0x750   :  { %2682 = vrot.lane.b32.xlu1 %v15684_v44, %s15434_s4  ;;  %v16145_v44 = vpop.permute.xlu0 %1499 }
 0x752   :  { %3191 = vrot.lane.b32.xlu0 %v15693_v47, %s18094_s5 }
 0x754   :  { %3026 = vrot.lane.b32.xlu1 %v15693_v47, %s18093_s1 }
 0x756   :  { %3521 = vrot.lane.b32.xlu0 %v15693_v47, %s15433_s8 }
 0x758   :  { %3356 = vrot.lane.b32.xlu1 %v15693_v47, %s15434_s4  ;;  %v1834_v47 = vpop.xlane.xlu0 %1833 }
 0x759   :  { %v1835_v21 = vsub.f32 %v15972_v20, %v1834_v47  ;;  %v1673_v20 = vsel %vm242_vm2, %v16156_v46, 0.0 }
 0x75a   :  { %3865 = vrot.lane.b32.xlu0 %v15704_v50, %s18094_s5 }
 0x75b   :  { %v1836_v34 = vmul.f32 1.442695, %v1835_v21 }
 0x75c   :  { %3700 = vrot.lane.b32.xlu1 %v15704_v50, %s18093_s1  ;;  %v1999_v17 = vpop.xlane.xlu0 %1998 }
 0x75d   :  { %v2000_v37 = vsub.f32 %v15974_v22, %v1999_v17  ;;  %15106 = vpow2.f32 %v1836_v34 }
 0x75e   :  { %4195 = vrot.lane.b32.xlu0 %v15704_v50, %s15433_s8  ;;  %15108 = vpow2.f32 %v2166_v42 }
 0x75f   :  { %v2001_v40 = vmul.f32 1.442695, %v2000_v37 }
 0x760   :  { %4030 = vrot.lane.b32.xlu1 %v15704_v50, %s15434_s4  ;;  %v2343_v39 = vpop.xlane.xlu0 %2342 }
 0x761   :  { %v2344_v50 = vsub.f32 %v15982_v26, %v2343_v39  ;;  %15110 = vpow2.f32 %v2001_v40 }
 0x763   :  { %v2345_v18 = vmul.f32 1.442695, %v2344_v50 }
 0x765   :  { %15112 = vpow2.f32 %v2345_v18 }
 0x767   :  { %v16160_v24 = vpop.eup %15106 }
 0x768   :  { %v16162_v49 = vpop.eup %15108  ;;  %v1838_v22 = vsel %vm242_vm2, %v16160_v24, 0.0 }
 0x769   :  { %v2168_v26 = vsel %vm242_vm2, %v16162_v49, 0.0 }
 0x76b   :  { %v16166_v54 = vpop.eup %15110 }
 0x76c   :  { %v2003_v55 = vsel %vm242_vm2, %v16166_v54, 0.0 }
 0x76f   :  { %v16172_v62 = vpop.eup %15112 }
 0x770   :  { %v2347_v1 = vsel %vm242_vm2, %v16172_v62, 0.0 }
 0x77d   :  { %1674 = vadd.xlane.f32.xlu0 %v1673_v20 }
 0x781   :  { %1839 = vadd.xlane.f32.xlu0 %v1838_v22 }
 0x784   :  { %2169 = vadd.xlane.f32.xlu1 %v2168_v26 }
 0x785   :  { %2004 = vadd.xlane.f32.xlu0 %v2003_v55 }
 0x789   :  { %2348 = vadd.xlane.f32.xlu0 %v2347_v1 }
 0x78c   :  { %v655_v59 = vpop.xlane.xlu0 %654 }
 0x78d   :  { %15114 = vrcp.f32 %v655_v59 }
 0x790   :  { %v820_v4 = vpop.xlane.xlu1 %819 }
 0x791   :  { %15116 = vrcp.f32 %v820_v4  ;;  %v2673_v61 = vpop.xlane.xlu0 %2672 }
 0x792   :  { %v2674_v0 = vsub.f32 %v15994_v30, %v2673_v61 }
 0x794   :  { %v2675_v47 = vmul.f32 1.442695, %v2674_v0  ;;  %v2508_v10 = vpop.xlane.xlu1 %2507 }
 0x795   :  { %v2509_v14 = vsub.f32 %v15988_v28, %v2508_v10  ;;  %v1001_v17 = vpop.xlane.xlu0 %1000 }
 0x796   :  { %15118 = vpow2.f32 %v2675_v47 }
 0x797   :  { %v15115_v21 = vpop.eup %15114  ;;  %v2510_v27 = vmul.f32 1.442695, %v2509_v14  ;;  %15120 = vrcp.f32 %v1001_v17 }
 0x798   :  { %v657_v29 = vmul.f32 %v15115_v21, %v16044_v51  ;;  %v1166_v32 = vpop.xlane.xlu1 %1165 }
 0x799   :  { %15122 = vpow2.f32 %v2510_v27  ;;  %v3017_v34 = vpop.xlane.xlu0 %3016 }
 0x79a   :  { %15124 = vrcp.f32 %v1166_v32  ;;  %v3018_v37 = vsub.f32 %v15998_v33, %v3017_v34  ;;  %13562 = vmatmul.mubr.msk.f32.vlgmr.msra.gmra.mrb[8].mxu0 %vm242_vm2, %v657_v29 }
 0x79b   :  { %v15117_v30 = vpop.eup %15116  ;;  %13570 = vmatpush3.msra.mxu0 %v16127_v7  ;;  %13571 = vmatprep.mubr.msk.f32.mxu0 %vm15423_vm1, %v15422_v8 }
 0x79c   :  { %v3019_v28 = vmul.f32 1.442695, %v3018_v37  ;;  %v2838_v39 = vpop.xlane.xlu1 %2837  ;;  %13579 = vmatprep.subr.mxu0 %v15422_v8  ;;  %v822_v51 = vmul.f32 %v15117_v30, %v16049_v56 }
 0x79d   :  { %v2839_v42 = vsub.f32 %v15996_v31, %v2838_v39  ;;  %v1331_v40 = vpop.xlane.xlu0 %1330 }
 0x79e   :  { %15126 = vpow2.f32 %v3019_v28  ;;  %13572 = vmatmul.mubr.msk.f32.vlgmr.msra.gmra.mrb[10].mxu0 %vm242_vm2, %v822_v51 }
 0x79f   :  { %v2840_v33 = vmul.f32 1.442695, %v2839_v42  ;;  %15128 = vrcp.f32 %v1331_v40  ;;  %13580 = vmatpush3.msra.mxu0 %v16137_v3  ;;  %13581 = vmatprep.mubr.msk.f32.mxu0 %vm15423_vm1, %v15422_v8 }
 0x7a0   :  { %v16191_v7 = vpop.eup %15118  ;;  %v1496_v50 = vpop.xlane.xlu1 %1495  ;;  %13589 = vmatprep.subr.mxu0 %v15422_v8 }
 0x7a1   :  { %v15121_v18 = vpop.eup %15120  ;;  %15130 = vpow2.f32 %v2840_v33  ;;  %v3347_v56 = vpop.xlane.xlu0 %3346  ;;  %v2677_v31 = vsel %vm242_vm2, %v16191_v7, 0.0 }
 0x7a2   :  { %15132 = vrcp.f32 %v1496_v50  ;;  %2678 = vadd.xlane.f32.xlu0 %v2677_v31  ;;  %v1003_v20 = vmul.f32 %v15121_v18, %v16057_v11  ;;  %v3348_v3 = vsub.f32 %v16002_v38, %v3347_v56 }
 0x7a3   :  { %v16197_v22 = vpop.eup %15122 }
 0x7a4   :  { %v15125_v26 = vpop.eup %15124  ;;  %13582 = vmatmul.mubr.msk.f32.vlgmr.msra.gmra.mrb[12].mxu0 %vm242_vm2, %v1003_v20  ;;  %v3182_v55 = vpop.xlane.xlu1 %3181  ;;  %v2512_v1 = vsel %vm242_vm2, %v16197_v22, 0.0  ;;  %v3349_v38 = vmul.f32 1.442695, %v3348_v3 }
 0x7a5   :  { %13590 = vmatpush3.msra.mxu0 %v16135_v43  ;;  %v3183_v59 = vsub.f32 %v16000_v36, %v3182_v55  ;;  %v3691_v4 = vpop.xlane.xlu0 %3690  ;;  %13591 = vmatprep.mubr.msk.f32.mxu0 %vm15423_vm1, %v15422_v8  ;;  %v1168_v11 = vmul.f32 %v15125_v26, %v16063_v15 }
 0x7a6   :  { %13599 = vmatprep.subr.mxu0 %v15422_v8  ;;  %2513 = vadd.xlane.f32.xlu1 %v2512_v1  ;;  %v3692_v0 = vsub.f32 %v16006_v45, %v3691_v4 }
 0x7a7   :  { %v3184_v61 = vmul.f32 1.442695, %v3183_v59 }
 0x7a8   :  { %v16210_v47 = vpop.eup %15126  ;;  %13592 = vmatmul.mubr.msk.f32.vlgmr.msra.gmra.mrb[14].mxu0 %vm242_vm2, %v1168_v11  ;;  %v3512_v43 = vpop.xlane.xlu1 %3511  ;;  %v3693_v21 = vmul.f32 1.442695, %v3692_v0 }
 0x7a9   :  { %v15129_v10 = vpop.eup %15128  ;;  %15134 = vpow2.f32 %v3184_v61  ;;  %13600 = vmatpush3.msra.mxu0 %v16147_v6  ;;  %v3513_v36 = vsub.f32 %v16004_v41, %v3512_v43  ;;  %v4021_v14 = vpop.xlane.xlu0 %4020  ;;  %13601 = vmatprep.mubr.msk.f32.mxu0 %vm15423_vm1, %v15422_v8  ;;  %v3021_v15 = vsel %vm242_vm2, %v16210_v47, 0.0 }
 0x7aa   :  { %13609 = vmatprep.subr.mxu0 %v15422_v8  ;;  %3022 = vadd.xlane.f32.xlu1 %v3021_v15  ;;  %v1333_v45 = vmul.f32 %v15129_v10, %v16069_v25  ;;  %15136 = vpow2.f32 %v3349_v38  ;;  %v4022_v6 = vsub.f32 %v16014_v53, %v4021_v14 }
 0x7ab   :  { %v16221_v17 = vpop.eup %15130  ;;  %v3514_v27 = vmul.f32 1.442695, %v3513_v36 }
 0x7ac   :  { %v15133_v41 = vpop.eup %15132  ;;  %13602 = vmatmul.mubr.msk.f32.vlgmr.msra.gmra.mrb[16].mxu0 %vm242_vm2, %v1333_v45  ;;  %v3856_v29 = vpop.xlane.xlu1 %3855  ;;  %v2842_v32 = vsel %vm242_vm2, %v16221_v17, 0.0  ;;  %v4023_v53 = vmul.f32 1.442695, %v4022_v6 }
 0x7ad   :  { %15138 = vpow2.f32 %v3514_v27  ;;  %13610 = vmatpush3.msra.mxu0 %v16145_v44  ;;  %v3857_v34 = vsub.f32 %v16010_v48, %v3856_v29  ;;  %13611 = vmatprep.mubr.msk.f32.mxu0 %vm15423_vm1, %v15422_v8  ;;  %v1498_v25 = vmul.f32 %v15133_v41, %v16075_v12  ;;  %v4365_v4 = vpop.xlane.xlu0 %4364 }
 0x7ae   :  { %2843 = vadd.xlane.f32.xlu0 %v2842_v32  ;;  %13619 = vmatprep.subr.mxu0 %v15422_v8  ;;  %15140 = vpow2.f32 %v3693_v21  ;;  %v4366_v41 = vsub.f32 %v16024_v63, %v4365_v4 }
 0x7af   :  { %v3858_v37 = vmul.f32 1.442695, %v3857_v34 }
 0x7b0   :  { %13612 = vmatmul.mubr.msk.f32.vlgmr.msra.gmra.mrb[18].mxu0 %vm242_vm2, %v1498_v25  ;;  %v4186_v30 = vpop.xlane.xlu1 %4185  ;;  %v4367_v32 = vmul.f32 1.442695, %v4366_v41 }
 0x7b1   :  { %15142 = vpow2.f32 %v3858_v37  ;;  %v4187_v28 = vsub.f32 %v16020_v58, %v4186_v30  ;;  %13621 = vmatprep.mubr.msk.f32.mxu0 %vm15423_vm1, %v15422_v8  ;;  %v4695_v61 = vpop.xlane.xlu0 %4694 }
 0x7b2   :  { %15144 = vpow2.f32 %v4023_v53  ;;  %v4696_v34 = vsub.f32 %v16028_v5, %v4695_v61 }
 0x7b3   :  { %v16237_v48 = vpop.eup %15134  ;;  %v4188_v44 = vmul.f32 1.442695, %v4187_v28 }
 0x7b4   :  { %v4530_v12 = vpop.xlane.xlu1 %4529  ;;  %v3186_v39 = vsel %vm242_vm2, %v16237_v48, 0.0  ;;  %v16241_v51 = vpop.eup %15136 }
 0x7b5   :  { %15146 = vpow2.f32 %v4188_v44  ;;  %3187 = vadd.xlane.f32.xlu0 %v3186_v39  ;;  %v3351_v58 = vsel %vm242_vm2, %v16241_v51, 0.0  ;;  %v5039_v0 = vpop.xlane.xlu0 %5038  ;;  %v4531_v36 = vsub.f32 %v16026_v2, %v4530_v12 }
 0x7b6   :  { %v5040_v37 = vsub.f32 %v16032_v13, %v5039_v0 }
 0x7b7   :  { %v16243_v42 = vpop.eup %15138  ;;  %v4532_v15 = vmul.f32 1.442695, %v4531_v36 }
 0x7b8   :  { %v4860_v40 = vpop.xlane.xlu1 %4859  ;;  %v3516_v33 = vsel %vm242_vm2, %v16243_v42, 0.0  ;;  %v16249_v50 = vpop.eup %15140  ;;  %v5041_v5 = vmul.f32 1.442695, %v5040_v37 }
 0x7b9   :  { %3352 = vadd.xlane.f32.xlu0 %v3351_v58  ;;  %3517 = vadd.xlane.f32.xlu1 %v3516_v33  ;;  %v3695_v31 = vsel %vm242_vm2, %v16249_v50, 0.0  ;;  %v16270_v43 = vpop.permute.xlu0 %1843  ;;  %v4861_v45 = vsub.f32 %v16030_v9, %v4860_v40  ;;  %15148 = vpow2.f32 %v4532_v15 }
 0x7bb   :  { %v16251_v18 = vpop.eup %15142  ;;  %v4862_v21 = vmul.f32 1.442695, %v4861_v45 }
 0x7bc   :  { %v5204_v56 = vpop.xlane.xlu1 %5203  ;;  %v3860_v20 = vsel %vm242_vm2, %v16251_v18, 0.0  ;;  %v16257_v3 = vpop.eup %15144 }
 0x7bd   :  { %3696 = vadd.xlane.f32.xlu0 %v3695_v31  ;;  %3861 = vadd.xlane.f32.xlu1 %v3860_v20  ;;  %v4025_v1 = vsel %vm242_vm2, %v16257_v3, 0.0  ;;  %v16276_v10 = vpop.permute.xlu0 %2008  ;;  %v5205_v27 = vsub.f32 %v16034_v16, %v5204_v56  ;;  %15150 = vpow2.f32 %v4862_v21  ;;  %v4697_v16 = vmul.f32 1.442695, %v4696_v34 }
 0x7bf   :  { %v16259_v26 = vpop.eup %15146 }
 0x7c0   :  { %v16261_v55 = vpop.xlane.xlu1 %5368  ;;  %v4190_v59 = vsel %vm242_vm2, %v16259_v26, 0.0 }
 0x7c1   :  { %4026 = vadd.xlane.f32.xlu0 %v4025_v1  ;;  %4191 = vadd.xlane.f32.xlu1 %v4190_v59  ;;  %v16281_v14 = vpop.permute.xlu0 %2352 }
 0x7c3   :  { %v16296_v53 = vpop.eup %15148 }
 0x7c4   :  { %v5534_v11 = vpop.xlane.xlu1 %5533 }
 0x7c5   :  { %v16287_v6 = vpop.permute.xlu0 %2517  ;;  %v5535_v2 = vsub.f32 %v16038_v23, %v5534_v11  ;;  %v4534_v23 = vsel %vm242_vm2, %v16296_v53, 0.0 }
 0x7c7   :  { %v5536_v25 = vmul.f32 1.442695, %v5535_v2  ;;  %v16303_v30 = vpop.eup %15150 }
 0x7c8   :  { %v1679_v38 = vpop.permute.xlu1 %1678  ;;  %v4864_v44 = vsel %vm242_vm2, %v16303_v30, 0.0 }
 0x7c9   :  { %13620 = vmatpush3.msra.mxu0 %v1679_v38  ;;  %v16291_v29 = vpop.permute.xlu0 %2847 }
 0x7ca   :  { %13629 = vmatprep.subr.mxu0 %v15422_v8 }
 0x7cc   :  { %v16294_v9 = vpop.permute.xlu1 %2173 }
 0x7cd   :  { %v16299_v63 = vpop.permute.xlu0 %3191 }
 0x7d0   :  { %v16305_v28 = vpop.permute.xlu1 %2682 }
 0x7d1   :  { %v16311_v39 = vpop.permute.xlu0 %3521 }
 0x7d2   :  { %4374 = vrot.lane.b32.xlu1 %v15713_v52, %s18093_s1 }
 0x7d4   :  { %v16313_v13 = vpop.permute.xlu1 %3026 }
 0x7d5   :  { %v16321_v56 = vpop.permute.xlu0 %3865 }
 0x7d7   :  { %4539 = vrot.lane.b32.xlu0 %v15713_v52, %s18094_s5 }
 0x7d8   :  { %v16329_v59 = vpop.permute.xlu1 %3356 }
 0x7d9   :  { %v16335_v38 = vpop.permute.xlu0 %4195 }
 0x7db   :  { %4704 = vrot.lane.b32.xlu0 %v15713_v52, %s15434_s4 }
 0x7dc   :  { %v16337_v61 = vpop.permute.xlu1 %3700 }
 0x7df   :  { %4869 = vrot.lane.b32.xlu0 %v15713_v52, %s15433_s8  ;;  %v5206_v52 = vmul.f32 1.442695, %v5205_v27 }
 0x7e0   :  { %v16341_v15 = vpop.permute.xlu1 %4030 }
 0x7e1   :  { %15152 = vpow2.f32 %v5206_v52 }
 0x7e2   :  { %15154 = vpow2.f32 %v4367_v32 }
 0x7e3   :  { %5048 = vrot.lane.b32.xlu0 %v15725_v57, %s18093_s1  ;;  %15156 = vpow2.f32 %v5536_v25 }
 0x7e4   :  { %15158 = vpow2.f32 %v4697_v16 }
 0x7e5   :  { %15160 = vpow2.f32 %v5041_v5 }
 0x7eb   :  { %v16309_v12 = vpop.eup %15152 }
 0x7ec   :  { %v16315_v40 = vpop.eup %15154  ;;  %v5208_v58 = vsel %vm242_vm2, %v16309_v12, 0.0 }
 0x7ed   :  { %v16319_v33 = vpop.eup %15156  ;;  %v4369_v31 = vsel %vm242_vm2, %v16315_v40, 0.0 }
 0x7ee   :  { %v5538_v20 = vsel %vm242_vm2, %v16319_v33, 0.0  ;;  %v16327_v1 = vpop.eup %15158 }
 0x7ef   :  { %v4699_v4 = vsel %vm242_vm2, %v16327_v1, 0.0  ;;  %v16333_v11 = vpop.eup %15160 }
 0x7f0   :  { %v5043_v0 = vsel %vm242_vm2, %v16333_v11, 0.0 }
 0x7f6   :  { %4535 = vadd.xlane.f32.xlu1 %v4534_v23 }
 0x7fa   :  { %4865 = vadd.xlane.f32.xlu1 %v4864_v44 }
 0x7fe   :  { %5209 = vadd.xlane.f32.xlu1 %v5208_v58 }
 0x802   :  { %4370 = vadd.xlane.f32.xlu0 %v4369_v31  ;;  %5539 = vadd.xlane.f32.xlu1 %v5538_v20 }
 0x806   :  { %4700 = vadd.xlane.f32.xlu0 %v4699_v4 }
 0x80a   :  { %v1675_v36 = vpop.xlane.xlu0 %1674  ;;  %5044 = vadd.xlane.f32.xlu0 %v5043_v0 }
 0x80b   :  { %15162 = vrcp.f32 %v1675_v36 }
 0x80e   :  { %v1840_v45 = vpop.xlane.xlu0 %1839 }
 0x80f   :  { %15164 = vrcp.f32 %v1840_v45 }
 0x811   :  { %v2170_v27 = vpop.xlane.xlu1 %2169 }
 0x812   :  { %v2005_v21 = vpop.xlane.xlu0 %2004 }
 0x813   :  { %15166 = vrcp.f32 %v2005_v21  ;;  %5378 = vrot.lane.b32.xlu1 %v15725_v57, %s15434_s4  ;;  %s18095_s4 = sld [smem:[#allocation9_spill]] }
 0x814   :  { %15168 = vrcp.f32 %v2170_v27 }
 0x815   :  { %v15163_v41 = vpop.eup %15162 }
 0x816   :  { %v2349_v52 = vpop.xlane.xlu0 %2348  ;;  %v1677_v2 = vmul.f32 %v15163_v41, %v16156_v46 }
 0x817   :  { %15170 = vrcp.f32 %v2349_v52 }
 0x818   :  { %13622 = vmatmul.mubr.msk.f32.vlgmr.msra.gmra.mrb[20].mxu0 %vm242_vm2, %v1677_v2 }
 0x819   :  { %v15165_v32 = vpop.eup %15164  ;;  %13630 = vmatpush3.msra.mxu0 %v16270_v43  ;;  %13631 = vmatprep.mubr.msk.f32.mxu0 %vm15423_vm1, %v15422_v8  ;;  %v5636_v52 = vld [vmem:[%s18095_s4 + $0x10] sm:$0xff]  ;;  %v5637_v2 = vld [vmem:[%s18095_s4 + $0x18] sm:$0xff] }
 0x81a   :  { %13639 = vmatprep.subr.mxu0 %v15422_v8  ;;  %v1842_v34 = vmul.f32 %v15165_v32, %v16160_v24  ;;  %v14468_v32 = vpack.c.bf16 %v5637_v2, %v5636_v52 }
 0x81c   :  { %13632 = vmatmul.mubr.msk.f32.vlgmr.msra.gmra.mrb[22].mxu0 %vm242_vm2, %v1842_v34 }
 0x81d   :  { %v15167_v25 = vpop.eup %15166  ;;  %13640 = vmatpush3.msra.mxu0 %v16276_v10  ;;  %13641 = vmatprep.mubr.msk.f32.mxu0 %vm15423_vm1, %v15422_v8 }
 0x81e   :  { %13649 = vmatprep.subr.mxu0 %v15422_v8  ;;  %v2007_v46 = vmul.f32 %v15167_v25, %v16166_v54  ;;  %v15169_v43 = vpop.eup %15168 }
 0x81f   :  { %v2172_v24 = vmul.f32 %v15169_v43, %v16162_v49 }
 0x820   :  { %13642 = vmatmul.mubr.msk.f32.vlgmr.msra.gmra.mrb[24].mxu0 %vm242_vm2, %v2007_v46  ;;  %5213 = vrot.lane.b32.xlu0 %v15725_v57, %s18094_s5  ;;  %s18103_s5 = smov 120  }
 0x821   :  { %13650 = vmatpush3.msra.mxu0 %v16294_v9  ;;  %13651 = vmatprep.mubr.msk.f32.mxu0 %vm15423_vm1, %v15422_v8  ;;  %v15171_v10 = vpop.eup %15170  ;;  %v5370_v9 = vsub.f32 %v16036_v19, %v16261_v55 }
 0x822   :  { %13659 = vmatprep.subr.mxu0 %v15422_v8  ;;  %v2351_v54 = vmul.f32 %v15171_v10, %v16172_v62 }
 0x823   :  { %v5371_v49 = vmul.f32 1.442695, %v5370_v9 }
 0x824   :  { %13652 = vmatmul.mubr.msk.f32.vlgmr.msra.gmra.mrb[26].mxu0 %vm242_vm2, %v2172_v24 }
 0x825   :  { %13660 = vmatpush3.msra.mxu0 %v16281_v14  ;;  %13661 = vmatprep.mubr.msk.f32.mxu0 %vm15423_vm1, %v15422_v8  ;;  %15172 = vpow2.f32 %v5371_v49 }
 0x826   :  { %13669 = vmatprep.subr.mxu0 %v15422_v8 }
 0x828   :  { %13662 = vmatmul.mubr.msk.f32.vlgmr.msra.gmra.mrb[28].mxu0 %vm242_vm2, %v2351_v54 }
 0x829   :  { %13670 = vmatpush3.msra.mxu0 %v16287_v6  ;;  %13671 = vmatprep.mubr.msk.f32.mxu0 %vm15423_vm1, %v15422_v8 }
 0x82a   :  { %13679 = vmatprep.subr.mxu0 %v15422_v8 }
 0x82f   :  { %v2679_v14 = vpop.xlane.xlu0 %2678  ;;  %v16379_v37 = vpop.eup %15172 }
 0x830   :  { %v5373_v19 = vsel %vm242_vm2, %v16379_v37, 0.0 }
 0x833   :  { %v2514_v16 = vpop.xlane.xlu1 %2513 }
 0x834   :  { %15174 = vrcp.f32 %v2514_v16 }
 0x835   :  { %15176 = vrcp.f32 %v2679_v14 }
 0x837   :  { %v3023_v62 = vpop.xlane.xlu1 %3022 }
 0x83b   :  { %v2844_v23 = vpop.xlane.xlu0 %2843 }
 0x83c   :  { %15178 = vrcp.f32 %v2844_v23 }
 0x83d   :  { %15180 = vrcp.f32 %v3023_v62 }
 0x83e   :  { %v15175_v5 = vpop.eup %15174 }
 0x83f   :  { %5374 = vadd.xlane.f32.xlu0 %v5373_v19  ;;  %v2516_v55 = vmul.f32 %v15175_v5, %v16197_v22  ;;  %v15177_v6 = vpop.eup %15176 }
 0x840   :  { %v2681_v58 = vmul.f32 %v15177_v6, %v16191_v7 }
 0x841   :  { %13672 = vmatmul.mubr.msk.f32.vlgmr.msra.gmra.mrb[30].mxu0 %vm242_vm2, %v2516_v55 }
 0x842   :  { %13680 = vmatpush3.msra.mxu0 %v16305_v28  ;;  %v3188_v44 = vpop.xlane.xlu0 %3187  ;;  %13681 = vmatprep.mubr.msk.f32.mxu0 %vm15423_vm1, %v15422_v8 }
 0x843   :  { %15182 = vrcp.f32 %v3188_v44  ;;  %13689 = vmatprep.subr.mxu0 %v15422_v8 }
 0x845   :  { %13682 = vmatmul.mubr.msk.f32.vlgmr.msra.gmra.mrb[32].mxu0 %vm242_vm2, %v2681_v58 }
 0x846   :  { %v15179_v31 = vpop.eup %15178  ;;  %13690 = vmatpush3.msra.mxu0 %v16291_v29  ;;  %v3353_v22 = vpop.xlane.xlu0 %3352  ;;  %13691 = vmatprep.mubr.msk.f32.mxu0 %vm15423_vm1, %v15422_v8 }
 0x847   :  { %15184 = vrcp.f32 %v3353_v22  ;;  %v3518_v28 = vpop.xlane.xlu1 %3517  ;;  %13699 = vmatprep.subr.mxu0 %v15422_v8  ;;  %v2846_v20 = vmul.f32 %v15179_v31, %v16221_v17  ;;  %v15181_v4 = vpop.eup %15180 }
 0x848   :  { %15186 = vrcp.f32 %v3518_v28  ;;  %v3025_v29 = vmul.f32 %v15181_v4, %v16210_v47 }
 0x849   :  { %13692 = vmatmul.mubr.msk.f32.vlgmr.msra.gmra.mrb[34].mxu0 %vm242_vm2, %v2846_v20 }
 0x84a   :  { %13700 = vmatpush3.msra.mxu0 %v16313_v13  ;;  %13701 = vmatprep.mubr.msk.f32.mxu0 %vm15423_vm1, %v15422_v8  ;;  %v3697_v7 = vpop.xlane.xlu0 %3696 }
 0x84b   :  { %13709 = vmatprep.subr.mxu0 %v15422_v8  ;;  %15188 = vrcp.f32 %v3697_v7  ;;  %v3862_v13 = vpop.xlane.xlu1 %3861 }
 0x84c   :  { %15190 = vrcp.f32 %v3862_v13 }
 0x84d   :  { %v15183_v0 = vpop.eup %15182  ;;  %13702 = vmatmul.mubr.msk.f32.vlgmr.msra.gmra.mrb[36].mxu0 %vm242_vm2, %v3025_v29 }
 0x84e   :  { %13710 = vmatpush3.msra.mxu0 %v16299_v63  ;;  %13711 = vmatprep.mubr.msk.f32.mxu0 %vm15423_vm1, %v15422_v8  ;;  %v3190_v17 = vmul.f32 %v15183_v0, %v16237_v48  ;;  %v4027_v63 = vpop.xlane.xlu0 %4026 }
 0x84f   :  { %13719 = vmatprep.subr.mxu0 %v15422_v8  ;;  %15192 = vrcp.f32 %v4027_v63  ;;  %v4192_v48 = vpop.xlane.xlu1 %4191 }
 0x850   :  { %15194 = vrcp.f32 %v4192_v48 }
 0x851   :  { %v15185_v36 = vpop.eup %15184  ;;  %13712 = vmatmul.mubr.msk.f32.vlgmr.msra.gmra.mrb[38].mxu0 %vm242_vm2, %v3190_v17 }
 0x852   :  { %13720 = vmatpush3.msra.mxu0 %v16329_v59  ;;  %13721 = vmatprep.mubr.msk.f32.mxu0 %vm15423_vm1, %v15422_v8  ;;  %v3355_v47 = vmul.f32 %v15185_v36, %v16241_v51  ;;  %v15187_v45 = vpop.eup %15186  ;;  %v4540_v46 = vpop.permute.xlu0 %4539 }
 0x853   :  { %13729 = vmatprep.subr.mxu0 %v15422_v8  ;;  %v3520_v51 = vmul.f32 %v15187_v45, %v16243_v42 }
 0x855   :  { %13722 = vmatmul.mubr.msk.f32.vlgmr.msra.gmra.mrb[40].mxu0 %vm242_vm2, %v3355_v47  ;;  %5543 = vrot.lane.b32.xlu0 %v15725_v57, %s15433_s8  ;;  %v15189_v59 = vpop.eup %15188  ;;  %s18109_s8 = smov 72  }
 0x856   :  { %13730 = vmatpush3.msra.mxu0 %v16311_v39  ;;  %13731 = vmatprep.mubr.msk.f32.mxu0 %vm15423_vm1, %v15422_v8  ;;  %v3699_v57 = vmul.f32 %v15189_v59, %v16249_v50  ;;  %v15191_v39 = vpop.eup %15190  ;;  %v4705_v10 = vpop.permute.xlu0 %4704 }
 0x857   :  { %13739 = vmatprep.subr.mxu0 %v15422_v8 }
 0x859   :  { %13732 = vmatmul.mubr.msk.f32.vlgmr.msra.gmra.mrb[42].mxu0 %vm242_vm2, %v3520_v51  ;;  %900 = vrot.lane.b32.xlu0 %v15944_v60, %s18078_s26  ;;  %v3864_v60 = vmul.f32 %v15191_v39, %v16251_v18  ;;  %v15193_v42 = vpop.eup %15192 }
 0x85a   :  { %13740 = vmatpush3.msra.mxu0 %v16337_v61  ;;  %13741 = vmatprep.mubr.msk.f32.mxu0 %vm15423_vm1, %v15422_v8  ;;  %v4029_v50 = vmul.f32 %v15193_v42, %v16257_v3  ;;  %v4375_v61 = vpop.permute.xlu1 %4374  ;;  %v4870_v16 = vpop.permute.xlu0 %4869 }
 0x85b   :  { %13749 = vmatprep.subr.mxu0 %v15422_v8 }
 0x85d   :  { %13742 = vmatmul.mubr.msk.f32.vlgmr.msra.gmra.mrb[44].mxu0 %vm242_vm2, %v3699_v57 }
 0x85e   :  { %13750 = vmatpush3.msra.mxu0 %v16321_v56  ;;  %13751 = vmatprep.mubr.msk.f32.mxu0 %vm15423_vm1, %v15422_v8  ;;  %v15195_v56 = vpop.eup %15194  ;;  %v5049_v62 = vpop.permute.xlu0 %5048 }
 0x85f   :  { %13759 = vmatprep.subr.mxu0 %v15422_v8  ;;  %v4194_v18 = vmul.f32 %v15195_v56, %v16259_v26  ;;  %v5635_v26 = vld [vmem:[%s18095_s4 + $0x8] sm:$0xff] }
 0x861   :  { %13752 = vmatmul.mubr.msk.f32.vlgmr.msra.gmra.mrb[46].mxu0 %vm242_vm2, %v3864_v60 }
 0x862   :  { %13760 = vmatpush3.msra.mxu0 %v16341_v15  ;;  %13761 = vmatprep.mubr.msk.f32.mxu0 %vm15423_vm1, %v15422_v8 }
 0x863   :  { %13769 = vmatprep.subr.mxu0 %v15422_v8 }
 0x865   :  { %13762 = vmatmul.mubr.msk.f32.vlgmr.msra.gmra.mrb[48].mxu0 %vm242_vm2, %v4029_v50 }
 0x866   :  { %13770 = vmatpush3.msra.mxu0 %v16335_v38  ;;  %13771 = vmatprep.mubr.msk.f32.mxu0 %vm15423_vm1, %v15422_v8  ;;  %v5634_v38 = vld [vmem:[%s18095_s4] sm:$0xff]  ;;  %s18099_s4 = sld [smem:[#allocation6_spill]] }
 0x867   :  { %13779 = vmatprep.subr.mxu0 %v15422_v8  ;;  %v14464_v21 = vpack.c.bf16 %v5635_v26, %v5634_v38 }
 0x869   :  { %13772 = vmatmul.mubr.msk.f32.vlgmr.msra.gmra.mrb[50].mxu0 %vm242_vm2, %v4194_v18  ;;  %14465 = vmatprep.subr.bf16.mxu1 %v14464_v21 }
 0x86a   :  { %13780 = vmatpush3.msra.mxu0 %v4375_v61  ;;  %13781 = vmatprep.mubr.msk.f32.mxu0 %vm15423_vm1, %v15422_v8 }
 0x86b   :  { %13789 = vmatprep.subr.mxu0 %v15422_v8  ;;  %14467 = vmatpush3.bf16.msra.mxu1 %v14464_v21 }
 0x86c   :  { %14469 = vmatprep.subr.bf16.mxu1 %v14468_v32 }
 0x86d   :  { %v730_v3 = vpop.f32.mrb[8].mxu0 }
 0x86e   :  { %v13563_v15 = vpop.f32.mrb[9].mxu0  ;;  %904 = vrot.lane.b32.xlu0 %v730_v3, %s18076_s30 }
 0x86f   :  { %14471 = vmatpush3.bf16.msra.mxu1 %v14468_v32 }
 0x871   :  { %v895_v27 = vpop.f32.mrb[10].mxu0 }
 0x872   :  { %v13573_v41 = vpop.f32.mrb[11].mxu0  ;;  %908 = vrot.lane.b32.xlu1 %v895_v27, %s18074_s27 }
 0x877   :  { %v16466_v34 = vpop.f32.mrb[12].mxu0 }
 0x878   :  { %v13583_v25 = vpop.f32.mrb[13].mxu0 }
 0x87b   :  { %v1241_v43 = vpop.f32.mrb[14].mxu0 }
 0x87c   :  { %v13593_v24 = vpop.f32.mrb[15].mxu0  ;;  %1576 = vrot.lane.b32.xlu0 %v1241_v43, %s18078_s26 }
 0x87f   :  { %v1406_v54 = vpop.f32.mrb[16].mxu0 }
 0x880   :  { %v13603_v9 = vpop.f32.mrb[17].mxu0  ;;  %1580 = vrot.lane.b32.xlu0 %v1406_v54, %s18076_s30 }
 0x883   :  { %v1571_v49 = vpop.f32.mrb[18].mxu0  ;;  %v4536_v23 = vpop.xlane.xlu1 %4535 }
 0x884   :  { %v13613_v14 = vpop.f32.mrb[19].mxu0  ;;  %1584 = vrot.lane.b32.xlu1 %v1571_v49, %s18074_s27 }
 0x887   :  { %v4866_v55 = vpop.xlane.xlu1 %4865 }
 0x88b   :  { %v5210_v22 = vpop.xlane.xlu1 %5209 }
 0x88f   :  { %v4371_v5 = vpop.xlane.xlu0 %4370  ;;  %v5540_v29 = vpop.xlane.xlu1 %5539 }
 0x890   :  { %15196 = vrcp.f32 %v4371_v5 }
 0x891   :  { %15198 = vrcp.f32 %v4536_v23 }
 0x893   :  { %v4701_v19 = vpop.xlane.xlu0 %4700  ;;  %v5379_v13 = vpop.permute.xlu1 %5378 }
 0x894   :  { %15200 = vrcp.f32 %v4701_v19 }
 0x895   :  { %15202 = vrcp.f32 %v4866_v55 }
 0x897   :  { %v5045_v44 = vpop.xlane.xlu0 %5044 }
 0x898   :  { %15204 = vrcp.f32 %v5045_v44 }
 0x899   :  { %15206 = vrcp.f32 %v5210_v22 }
 0x89a   :  { %v15197_v6 = vpop.eup %15196 }
 0x89b   :  { %v4373_v58 = vmul.f32 %v15197_v6, %v16315_v40  ;;  %v15199_v31 = vpop.eup %15198  ;;  %v5214_v17 = vpop.permute.xlu0 %5213 }
 0x89c   :  { %v4538_v28 = vmul.f32 %v15199_v31, %v16296_v53 }
 0x89d   :  { %13782 = vmatmul.mubr.msk.f32.vlgmr.msra.gmra.mrb[52].mxu0 %vm242_vm2, %v4373_v58 }
 0x89e   :  { %13790 = vmatpush3.msra.mxu0 %v4540_v46  ;;  %13791 = vmatprep.mubr.msk.f32.mxu0 %vm15423_vm1, %v15422_v8  ;;  %v15201_v20 = vpop.eup %15200 }
 0x89f   :  { %13799 = vmatprep.subr.mxu0 %v15422_v8  ;;  %v4703_v40 = vmul.f32 %v15201_v20, %v16327_v1  ;;  %v15203_v4 = vpop.eup %15202 }
 0x8a0   :  { %v4868_v53 = vmul.f32 %v15203_v4, %v16303_v30 }
 0x8a1   :  { %13792 = vmatmul.mubr.msk.f32.vlgmr.msra.gmra.mrb[54].mxu0 %vm242_vm2, %v4538_v28 }
 0x8a2   :  { %13800 = vmatpush3.msra.mxu0 %v4705_v10  ;;  %13801 = vmatprep.mubr.msk.f32.mxu0 %vm15423_vm1, %v15422_v8  ;;  %v15205_v7 = vpop.eup %15204 }
 0x8a3   :  { %13809 = vmatprep.subr.mxu0 %v15422_v8  ;;  %v5047_v1 = vmul.f32 %v15205_v7, %v16333_v11  ;;  %v15207_v0 = vpop.eup %15206 }
 0x8a4   :  { %v5212_v30 = vmul.f32 %v15207_v0, %v16309_v12 }
 0x8a5   :  { %13802 = vmatmul.mubr.msk.f32.vlgmr.msra.gmra.mrb[56].mxu0 %vm242_vm2, %v4703_v40 }
 0x8a6   :  { %13810 = vmatpush3.msra.mxu0 %v4870_v16  ;;  %13811 = vmatprep.mubr.msk.f32.mxu0 %vm15423_vm1, %v15422_v8 }
 0x8a7   :  { %13819 = vmatprep.subr.mxu0 %v15422_v8 }
 0x8a9   :  { %13812 = vmatmul.mubr.msk.f32.vlgmr.msra.gmra.mrb[58].mxu0 %vm242_vm2, %v4868_v53 }
 0x8aa   :  { %13820 = vmatpush3.msra.mxu0 %v5049_v62  ;;  %13821 = vmatprep.mubr.msk.f32.mxu0 %vm15423_vm1, %v15422_v8 }
 0x8ab   :  { %13829 = vmatprep.subr.mxu0 %v15422_v8 }
 0x8ad   :  { %13822 = vmatmul.mubr.msk.f32.vlgmr.msra.gmra.mrb[60].mxu0 %vm242_vm2, %v5047_v1 }
 0x8ae   :  { %13830 = vmatpush3.msra.mxu0 %v5214_v17  ;;  %13831 = vmatprep.mubr.msk.f32.mxu0 %vm15423_vm1, %v15422_v8 }
 0x8af   :  { %13839 = vmatprep.subr.mxu0 %v15422_v8 }
 0x8b1   :  { %13832 = vmatmul.mubr.msk.f32.vlgmr.msra.gmra.mrb[62].mxu0 %vm242_vm2, %v5212_v30 }
 0x8b2   :  { %13840 = vmatpush3.msra.mxu0 %v5379_v13  ;;  %13841 = vmatprep.mubr.msk.f32.mxu0 %vm15423_vm1, %v15422_v8 }
 0x8b3   :  { %13849 = vmatprep.subr.mxu0 %v15422_v8 }
 0x8cc   :  { %v5375_v11 = vpop.xlane.xlu0 %5374 }
 0x8cd   :  { %15208 = vrcp.f32 %v5375_v11 }
 0x8ce   :  { %15210 = vrcp.f32 %v5540_v29 }
 0x8d0   :  { %v5544_v47 = vpop.permute.xlu0 %5543 }
 0x8d4   :  { %v901_v48 = vpop.permute.xlu0 %900 }
 0x8d5   :  { %v911_v59 = vsel %vm242_vm2, %v15659_v35, %v901_v48 }
 0x8d7   :  { %v15209_v36 = vpop.eup %15208 }
 0x8d8   :  { %v5377_v63 = vmul.f32 %v15209_v36, %v16379_v37  ;;  %v15211_v45 = vpop.eup %15210 }
 0x8d9   :  { %v5542_v12 = vmul.f32 %v15211_v45, %v16319_v33 }
 0x8da   :  { %13842 = vmatmul.mubr.msk.f32.vlgmr.msra.gmra.mrb[64].mxu0 %vm242_vm2, %v5377_v63 }
 0x8db   :  { %13850 = vmatpush3.msra.mxu0 %v5544_v47  ;;  %13851 = vmatprep.mubr.msk.f32.mxu0 %vm15423_vm1, %v15422_v8 }
 0x8de   :  { %13852 = vmatmul.mubr.msk.f32.vlgmr.msra.gmra.mrb[66].mxu0 %vm242_vm2, %v5542_v12 }
 0x8e0   :  { %v905_v51 = vpop.permute.xlu0 %904 }
 0x8e1   :  { %v913_v37 = vsel %vm912_vm3, %v911_v59, %v905_v51 }
 0x8e4   :  { %v909_v57 = vpop.permute.xlu1 %908 }
 0x8e5   :  { %v915_v39 = vsel %vm914_vm4, %v913_v37, %v909_v57 }
 0x8e6   :  { %13862 = vmatprep.mubr.msk.f32.mxu1 %vm109_vm0, %v915_v39 }
 0x8eb   :  { %v1750_v60 = vpop.f32.mrb[20].mxu0 }
 0x8ec   :  { %v13623_v42 = vpop.f32.mrb[21].mxu0 }
 0x8ee   :  { %v1577_v50 = vpop.permute.xlu0 %1576 }
 0x8ef   :  { %v1915_v33 = vpop.f32.mrb[22].mxu0  ;;  %v1587_v35 = vsel %vm242_vm2, %v16466_v34, %v1577_v50 }
 0x8f0   :  { %2250 = vrot.lane.b32.xlu0 %v1915_v33, %s18078_s26  ;;  %v13633_v56 = vpop.f32.mrb[23].mxu0 }
 0x8f2   :  { %v1581_v18 = vpop.permute.xlu0 %1580 }
 0x8f3   :  { %v2080_v61 = vpop.f32.mrb[24].mxu0  ;;  %v1588_v15 = vsel %vm912_vm3, %v1587_v35, %v1581_v18 }
 0x8f4   :  { %2254 = vrot.lane.b32.xlu1 %v2080_v61, %s18076_s30  ;;  %v13643_v3 = vpop.f32.mrb[25].mxu0 }
 0x8f6   :  { %v1585_v38 = vpop.permute.xlu1 %1584 }
 0x8f7   :  { %v1589_v26 = vsel %vm914_vm4, %v1588_v15, %v1585_v38  ;;  %v2245_v21 = vpop.f32.mrb[26].mxu0 }
 0x8f8   :  { %13863 = vmatmul.mubr.msk.f32.vlgmr.msra.gmra.mrb[68].mxu1 %vm109_vm0, %v1589_v26  ;;  %2258 = vrot.lane.b32.xlu1 %v2245_v21, %s18074_s27  ;;  %v13653_v27 = vpop.f32.mrb[27].mxu0 }
 0x8fb   :  { %v2424_v41 = vpop.f32.mrb[28].mxu0 }
 0x8fc   :  { %v13663_v52 = vpop.f32.mrb[29].mxu0 }
 0x8fd   :  { %v16554_v52 = vld [vmem:[%s18096_s7] ss:$0 sm:$0xff] }
 0x914   :  { %v2589_v2 = vpop.f32.mrb[30].mxu0 }
 0x915   :  { %2924 = vrot.lane.b32.xlu0 %v2589_v2, %s18078_s26  ;;  %v13673_v32 = vpop.f32.mrb[31].mxu0 }
 0x918   :  { %v2754_v25 = vpop.f32.mrb[32].mxu0 }
 0x919   :  { %2928 = vrot.lane.b32.xlu0 %v2754_v25, %s18076_s30  ;;  %v13683_v34 = vpop.f32.mrb[33].mxu0 }
 0x91c   :  { %v2919_v46 = vpop.f32.mrb[34].mxu0 }
 0x91d   :  { %2932 = vrot.lane.b32.xlu1 %v2919_v46, %s18074_s27  ;;  %v13693_v43 = vpop.f32.mrb[35].mxu0  ;;  %v15388_v46 = vld [vmem:[%s18090_s25] sm:$0xff] }
 0x920   :  { %v3098_v24 = vpop.f32.mrb[36].mxu0 }
 0x921   :  { %v13703_v10 = vpop.f32.mrb[37].mxu0 }
 0x924   :  { %v3263_v54 = vpop.f32.mrb[38].mxu0 }
 0x925   :  { %3598 = vrot.lane.b32.xlu0 %v3263_v54, %s18078_s26  ;;  %v13713_v9 = vpop.f32.mrb[39].mxu0 }
 0x928   :  { %v3428_v49 = vpop.f32.mrb[40].mxu0 }
 0x929   :  { %3602 = vrot.lane.b32.xlu1 %v3428_v49, %s18076_s30  ;;  %v13723_v14 = vpop.f32.mrb[41].mxu0 }
 0x92c   :  { %v3593_v16 = vpop.f32.mrb[42].mxu0 }
 0x92d   :  { %3606 = vrot.lane.b32.xlu1 %v3593_v16, %s18074_s27  ;;  %v13733_v62 = vpop.f32.mrb[43].mxu0 }
 0x930   :  { %v3772_v23 = vpop.f32.mrb[44].mxu0 }
 0x931   :  { %v13743_v5 = vpop.f32.mrb[45].mxu0 }
 0x934   :  { %v3937_v19 = vpop.f32.mrb[46].mxu0 }
 0x935   :  { %4272 = vrot.lane.b32.xlu0 %v3937_v19, %s18078_s26  ;;  %v13753_v55 = vpop.f32.mrb[47].mxu0 }
 0x938   :  { %v4102_v6 = vpop.f32.mrb[48].mxu0 }
 0x939   :  { %4276 = vrot.lane.b32.xlu0 %v4102_v6, %s18076_s30  ;;  %v13763_v44 = vpop.f32.mrb[49].mxu0 }
 0x93c   :  { %v4267_v58 = vpop.f32.mrb[50].mxu0 }
 0x93d   :  { %4280 = vrot.lane.b32.xlu1 %v4267_v58, %s18074_s27  ;;  %v13773_v31 = vpop.f32.mrb[51].mxu0 }
 0x962   :  { %v2251_v22 = vpop.permute.xlu0 %2250 }
 0x963   :  { %v2261_v20 = vsel %vm242_vm2, %v1750_v60, %v2251_v22 }
 0x966   :  { %v2255_v28 = vpop.permute.xlu1 %2254 }
 0x967   :  { %v2262_v40 = vsel %vm912_vm3, %v2261_v20, %v2255_v28 }
 0x96a   :  { %v2259_v4 = vpop.permute.xlu1 %2258 }
 0x96b   :  { %v2263_v53 = vsel %vm914_vm4, %v2262_v40, %v2259_v4 }
 0x96c   :  { %13865 = vmatprep.mubr.msk.f32.mxu1 %vm109_vm0, %v2263_v53 }
 0x970   :  { %v4446_v7 = vpop.f32.mrb[52].mxu0 }
 0x971   :  { %v13783_v29 = vpop.f32.mrb[53].mxu0 }
 0x974   :  { %v4611_v1 = vpop.f32.mrb[54].mxu0 }
 0x975   :  { %4946 = vrot.lane.b32.xlu0 %v4611_v1, %s18078_s26  ;;  %v13793_v0 = vpop.f32.mrb[55].mxu0 }
 0x978   :  { %v4776_v17 = vpop.f32.mrb[56].mxu0 }
 0x979   :  { %4950 = vrot.lane.b32.xlu1 %v4776_v17, %s18076_s30  ;;  %v13803_v30 = vpop.f32.mrb[57].mxu0 }
 0x97c   :  { %v4941_v13 = vpop.f32.mrb[58].mxu0 }
 0x97d   :  { %4954 = vrot.lane.b32.xlu1 %v4941_v13, %s18074_s27  ;;  %v13813_v11 = vpop.f32.mrb[59].mxu0  ;;  %v15390_v13 = vld [vmem:[%s18090_s25 + $0x10] sm:$0xff] }
 0x980   :  { %v5120_v36 = vpop.f32.mrb[60].mxu0 }
 0x981   :  { %v13823_v47 = vpop.f32.mrb[61].mxu0 }
 0x982   :  { %v15391_v47 = vld [vmem:[%s18090_s25 + $0x18] sm:$0xff] }
 0x984   :  { %v5285_v63 = vpop.f32.mrb[62].mxu0 }
 0x985   :  { %5620 = vrot.lane.b32.xlu0 %v5285_v63, %s18078_s26  ;;  %v13833_v45 = vpop.f32.mrb[63].mxu0 }
 0x987   :  { %v2925_v12 = vpop.permute.xlu0 %2924 }
 0x988   :  { %v2935_v51 = vsel %vm242_vm2, %v2424_v41, %v2925_v12 }
 0x98b   :  { %v2929_v48 = vpop.permute.xlu0 %2928 }
 0x98c   :  { %v2936_v59 = vsel %vm912_vm3, %v2935_v51, %v2929_v48 }
 0x98f   :  { %v2933_v37 = vpop.permute.xlu1 %2932 }
 0x990   :  { %v2937_v57 = vsel %vm914_vm4, %v2936_v59, %v2933_v37 }
 0x991   :  { %13866 = vmatmul.mubr.msk.f32.gmra.mrb[70].mxu1 %vm109_vm0, %v2937_v57 }
 0x997   :  { %v3599_v39 = vpop.permute.xlu0 %3598 }
 0x998   :  { %v3609_v42 = vsel %vm242_vm2, %v3098_v24, %v3599_v39  ;;  %v15389_v24 = vld [vmem:[%s18090_s25 + $0x8] sm:$0xff]  ;;  %v5917_v39 = vld [vmem:[%s18097_s3] sm:$0xff] }
 0x99b   :  { %v3603_v60 = vpop.permute.xlu1 %3602 }
 0x99c   :  { %v3610_v50 = vsel %vm912_vm3, %v3609_v42, %v3603_v60  ;;  %v5918_v60 = vld [vmem:[%s18097_s3 + $0x8] sm:$0xff] }
 0x99d   :  { %v15392_v42 = vld [vmem:[%s18090_s25 + $0x28] sm:$0xff] }
 0x99f   :  { %v3607_v33 = vpop.permute.xlu1 %3606 }
 0x9a0   :  { %v3611_v56 = vsel %vm914_vm4, %v3610_v50, %v3607_v33  ;;  %v14472_v33 = vpack.c.bf16 %v5918_v60, %v5917_v39 }
 0x9a1   :  { %13868 = vmatprep.mubr.msk.f32.mxu1 %vm109_vm0, %v3611_v56  ;;  %v15393_v56 = vld [vmem:[%s18090_s25 + $0x20] sm:$0xff] }
 0x9a2   :  { %14473 = vmatprep.subr.bf16.mxu0 %v14472_v33 }
 0x9a3   :  { %14475 = vmatpush3.bf16.msra.mxu0 %v14472_v33 }
 0x9a7   :  { %v4273_v18 = vpop.permute.xlu0 %4272 }
 0x9a8   :  { %v4283_v35 = vsel %vm242_vm2, %v3772_v23, %v4273_v18 }
 0x9ab   :  { %v4277_v61 = vpop.permute.xlu0 %4276 }
 0x9ac   :  { %v4284_v38 = vsel %vm912_vm3, %v4283_v35, %v4277_v61  ;;  %v5919_v35 = vld [vmem:[%s18097_s3 + $0x10] sm:$0xff] }
 0x9ad   :  { %v5450_v3 = vpop.f32.mrb[64].mxu0 }
 0x9ae   :  { %5624 = vrot.lane.b32.xlu0 %v5450_v3, %s18076_s30  ;;  %v13843_v15 = vpop.f32.mrb[65].mxu0  ;;  %s18102_s30 = sld [smem:[#allocation12_spill]] }
 0x9af   :  { %v4281_v26 = vpop.permute.xlu1 %4280  ;;  %v5920_v15 = vld [vmem:[%s18097_s3 + $0x18] sm:$0xff] }
 0x9b0   :  { %v4285_v21 = vsel %vm914_vm4, %v4284_v38, %v4281_v26  ;;  %v14476_v38 = vpack.c.bf16 %v5920_v15, %v5919_v35  ;;  %v6057_v26 = vld [vmem:[%s18098_s29] sm:$0xff] }
 0x9b1   :  { %13869 = vmatmul.mubr.msk.f32.gmra.mrb[72].mxu1 %vm109_vm0, %v4285_v21  ;;  %v5615_v27 = vpop.f32.mrb[66].mxu0  ;;  %v6058_v21 = vld [vmem:[%s18098_s29 + $0x8] sm:$0xff] }
 0x9b2   :  { %5628 = vrot.lane.b32.xlu1 %v5615_v27, %s18074_s27  ;;  %v13853_v41 = vpop.f32.mrb[67].mxu0  ;;  %14477 = vmatprep.subr.bf16.mxu0 %v14476_v38  ;;  %v6059_v27 = vld [vmem:[%s18098_s29 + $0x10] sm:$0xff] }
 0x9b3   :  { %14479 = vmatpush3.bf16.msra.mxu0 %v14476_v38  ;;  %v14480_v41 = vpack.c.bf16 %v6058_v21, %v6057_v26 }
 0x9b5   :  { %14481 = vmatprep.subr.bf16.mxu1 %v14480_v41 }
 0x9b6   :  { %14483 = vmatpush3.bf16.msra.mxu1 %v14480_v41 }
 0x9cb   :  { %v13864_v2 = vpop.f32.mrb[68].mxu1 }
 0x9cc   :  { %v5735_v32 = vpop.f32.mrb[69].mxu1  ;;  %v5741_v25 = vadd.f32 %v13864_v2, %v16554_v52  ;;  %v6060_v2 = vld [vmem:[%s18098_s29 + $0x18] sm:$0xff]  ;;  %s18104_s29 = smov 112  }
 0x9cd   :  { %v5736_v34 = vadd.f32 %v16554_v52, %v5735_v32  ;;  %v86_v32 = vld [vmem:[%s18099_s4] sm:$0xff] }
 0x9ce   :  { %v5775_v10 = vadd.f32 %v15389_v24, %v5741_v25  ;;  %v14484_v25 = vpack.c.bf16 %v6060_v2, %v6059_v27 }
 0x9cf   :  { %v5774_v43 = vadd.f32 %v15388_v46, %v5736_v34  ;;  %v87_v34 = vld [vmem:[%s18099_s4 + $0x8] sm:$0xff]  ;;  %v88_v46 = vld [vmem:[%s18099_s4 + $0x10] sm:$0xff] }
 0x9d0   :  { %v5785_v9 = vsel %vm109_vm0, %v5775_v10, 0.0  ;;  %14485 = vmatprep.subr.bf16.mxu1 %v14484_v25 }
 0x9d1   :  { %v5782_v54 = vsel %vm109_vm0, %v5774_v43, 0.0  ;;  %14487 = vmatpush3.bf16.msra.mxu1 %v14484_v25 }
 0x9d2   :  { %5783 = vadd.xlane.f32.xlu0 %v5782_v54 }
 0x9d6   :  { %5786 = vadd.xlane.f32.xlu1 %v5785_v9 }
 0x9e7   :  { %v4947_v49 = vpop.permute.xlu0 %4946 }
 0x9e8   :  { %v4957_v16 = vsel %vm242_vm2, %v4446_v7, %v4947_v49 }
 0x9eb   :  { %v4951_v14 = vpop.permute.xlu1 %4950 }
 0x9ec   :  { %v4958_v62 = vsel %vm912_vm3, %v4957_v16, %v4951_v14 }
 0x9ef   :  { %v4955_v23 = vpop.permute.xlu1 %4954 }
 0x9f0   :  { %v4959_v5 = vsel %vm914_vm4, %v4958_v62, %v4955_v23 }
 0x9f1   :  { %13871 = vmatprep.mubr.msk.f32.mxu1 %vm109_vm0, %v4959_v5 }
 0x9f7   :  { %v5621_v19 = vpop.permute.xlu0 %5620 }
 0x9f8   :  { %v5631_v6 = vsel %vm242_vm2, %v5120_v36, %v5621_v19 }
 0xa20   :  { %v5625_v55 = vpop.permute.xlu0 %5624 }
 0xa21   :  { %v5632_v44 = vsel %vm912_vm3, %v5631_v6, %v5625_v55 }
 0xa24   :  { %v5629_v58 = vpop.permute.xlu1 %5628 }
 0xa25   :  { %v5633_v31 = vsel %vm914_vm4, %v5632_v44, %v5629_v58  ;;  %v15394_v44 = vld [vmem:[%s18090_s25 + $0x38] sm:$0xff] }
 0xa26   :  { %13872 = vmatmul.mubr.msk.f32.gmra.mrb[74].mxu1 %vm109_vm0, %v5633_v31 }
 0xa27   :  { %13902 = vmatprep.mubr.msk.f32.mxu1 %vm109_vm0, %v86_v32 }
 0xa2a   :  { %13903 = vmatmul.mubr.msk.f32.vlgmr.msra.gmra.mrb[76].mxu1 %vm109_vm0, %v87_v34 }
 0xa2b   :  { %13905 = vmatprep.mubr.msk.f32.mxu1 %vm109_vm0, %v88_v46 }
 0xa5f   :  { %v5784_v22 = vpop.xlane.xlu0 %5783 }
 0xa60   :  { %v5807_v28 = vmul.f32 0.03125, %v5784_v22  ;;  %v15395_v22 = vld [vmem:[%s18090_s25 + $0x30] sm:$0xff]  ;;  %s18108_s25 = smov 104  }
 0xa62   :  { %v16574_v20 = vsub.f32 %v5774_v43, %v5807_v28  ;;  %v89_v43 = vld [vmem:[%s18099_s4 + $0x18] sm:$0xff] }
 0xa63   :  { %v5787_v40 = vpop.xlane.xlu1 %5786  ;;  %13906 = vmatmul.mubr.msk.f32.gmra.mrb[78].mxu1 %vm109_vm0, %v89_v43 }
 0xa64   :  { %v5808_v4 = vmul.f32 0.03125, %v5787_v40  ;;  %v13867_v53 = vpop.f32.mrb[70].mxu1  ;;  %v5823_v7 = vmul.f32 %v16574_v20, %v16574_v20 }
 0xa65   :  { %v5745_v29 = vpop.f32.mrb[71].mxu1  ;;  %v5751_v0 = vadd.f32 %v13867_v53, %v16554_v52 }
 0xa66   :  { %v16578_v1 = vsub.f32 %v5775_v10, %v5808_v4  ;;  %v5746_v17 = vadd.f32 %v16554_v52, %v5745_v29  ;;  %v5831_v30 = vsel %vm109_vm0, %v5823_v7, 0.0 }
 0xa67   :  { %5832 = vadd.xlane.f32.xlu0 %v5831_v30  ;;  %v16591_v63 = vadd.f32 %v15391_v47, %v5751_v0 }
 0xa68   :  { %v5776_v11 = vadd.f32 %v15390_v13, %v5746_v17  ;;  %v5824_v36 = vmul.f32 %v16578_v1, %v16578_v1  ;;  %v16673_v13 = vld [vmem:[%s18042_s16] ss:$0 sm:$0xff] }
 0xa69   :  { %v5791_v48 = vsel %vm109_vm0, %v16591_v63, 0.0 }
 0xa6a   :  { %v5788_v45 = vsel %vm109_vm0, %v5776_v11, 0.0  ;;  %v5834_v12 = vsel %vm109_vm0, %v5824_v36, 0.0  ;;  %v16679_v36 = vld [vmem:[%s18043_s17] ss:$0 sm:$0xff] }
 0xa6b   :  { %5789 = vadd.xlane.f32.xlu1 %v5788_v45  ;;  %5835 = vadd.xlane.f32.xlu0 %v5834_v12 }
 0xa6f   :  { %5792 = vadd.xlane.f32.xlu0 %v5791_v48 }
 0xa84   :  { %v13870_v51 = vpop.f32.mrb[72].mxu1 }
 0xa85   :  { %v5761_v59 = vadd.f32 %v13870_v51, %v16554_v52  ;;  %v5755_v37 = vpop.f32.mrb[73].mxu1 }
 0xa86   :  { %v5756_v57 = vadd.f32 %v16554_v52, %v5755_v37 }
 0xa87   :  { %v16608_v50 = vadd.f32 %v15392_v42, %v5761_v59 }
 0xa88   :  { %v16613_v18 = vadd.f32 %v15393_v56, %v5756_v57 }
 0xa89   :  { %v5797_v61 = vsel %vm109_vm0, %v16608_v50, 0.0 }
 0xa8a   :  { %5798 = vadd.xlane.f32.xlu0 %v5797_v61  ;;  %v5794_v3 = vsel %vm109_vm0, %v16613_v18, 0.0 }
 0xa8b   :  { %5795 = vadd.xlane.f32.xlu1 %v5794_v3 }
 0xaf4   :  { %v5833_v24 = vpop.xlane.xlu0 %5832 }
 0xaf5   :  { %v5855_v10 = vmul.f32 0.03125, %v5833_v24 }
 0xaf7   :  { %v5863_v54 = vadd.f32 1e-05, %v5855_v10 }
 0xaf8   :  { %v5790_v9 = vpop.xlane.xlu1 %5789  ;;  %v5836_v49 = vpop.xlane.xlu0 %5835 }
 0xaf9   :  { %15212 = vrsqrt.f32 %v5863_v54  ;;  %v5809_v14 = vmul.f32 0.03125, %v5790_v9  ;;  %v5856_v16 = vmul.f32 0.03125, %v5836_v49  ;;  %v13873_v62 = vpop.f32.mrb[74].mxu1 }
 0xafa   :  { %v5771_v23 = vadd.f32 %v13873_v62, %v16554_v52  ;;  %v5765_v5 = vpop.f32.mrb[75].mxu1 }
 0xafb   :  { %v16654_v19 = vsub.f32 %v5776_v11, %v5809_v14  ;;  %v5864_v55 = vadd.f32 1e-05, %v5856_v16  ;;  %v5766_v6 = vadd.f32 %v16554_v52, %v5765_v5 }
 0xafc   :  { %v5781_v58 = vadd.f32 %v15394_v44, %v5771_v23  ;;  %v5793_v31 = vpop.xlane.xlu0 %5792  ;;  %v16730_v23 = vld [vmem:[%s18035_s9] ss:$0 sm:$0xff] }
 0xafd   :  { %15214 = vrsqrt.f32 %v5864_v55  ;;  %v5780_v28 = vadd.f32 %v15395_v22, %v5766_v6  ;;  %v5810_v40 = vmul.f32 0.03125, %v5793_v31  ;;  %v5825_v7 = vmul.f32 %v16654_v19, %v16654_v19  ;;  %v13904_v62 = vpop.f32.mrb[76].mxu1 }
 0xafe   :  { %v5803_v4 = vsel %vm109_vm0, %v5781_v58, 0.0  ;;  %v6176_v5 = vadd.f32 %v13904_v62, %v16730_v23  ;;  %v15438_v55 = vmov 0.0|0.0   ;;  %v91_v62 = vld [vmem:[%s18099_s4 + $0x28] sm:$0xff] }
 0xaff   :  { %v5818_v53 = vsub.f32 %v16591_v63, %v5810_v40  ;;  %5804 = vadd.xlane.f32.xlu0 %v5803_v4  ;;  %v5800_v52 = vsel %vm109_vm0, %v5780_v28, 0.0  ;;  %v5837_v17 = vsel %vm109_vm0, %v5825_v7, 0.0  ;;  %14488 = vmatprep.subr.bf16.mxu0 %v15438_v55 }
 0xb00   :  { %5801 = vadd.xlane.f32.xlu1 %v5800_v52  ;;  %14504 = vmatprep.subr.bf16.mxu1 %v15438_v55 }
 0xb01   :  { %v5826_v29 = vmul.f32 %v5818_v53, %v5818_v53 }
 0xb03   :  { %v15213_v0 = vpop.eup %15212  ;;  %v5840_v30 = vsel %vm109_vm0, %v5826_v29, 0.0 }
 0xb04   :  { %5838 = vadd.xlane.f32.xlu1 %v5837_v17  ;;  %5841 = vadd.xlane.f32.xlu0 %v5840_v30  ;;  %v5879_v11 = vmul.f32 %v15213_v0, %v16574_v20  ;;  %v6936_v30 = vrot.slane %v6176_v5, 4 }
 0xb06   :  { %v5894_v47 = vmul.f32 %v16673_v13, %v5879_v11 }
 0xb07   :  { %v15215_v63 = vpop.eup %15214 }
 0xb08   :  { %v5880_v45 = vmul.f32 %v15215_v63, %v16578_v1  ;;  %v16684_v12 = vadd.f32 %v16679_v36, %v5894_v47 }
 0xb0a   :  { %13882 = vmatprep.mubr.msk.f32.mxu0 %vm109_vm0, %v16684_v12  ;;  %v5895_v48 = vmul.f32 %v16673_v13, %v5880_v45 }
 0xb0c   :  { %v16690_v20 = vadd.f32 %v16679_v36, %v5895_v48 }
 0xb0e   :  { %13883 = vmatmul.mubr.msk.f32.vlgmr.msra.gmra.mrb[68].mxu0 %vm109_vm0, %v16690_v20 }
 0xb17   :  { %v5799_v51 = vpop.xlane.xlu0 %5798 }
 0xb18   :  { %v5812_v59 = vmul.f32 0.03125, %v5799_v51  ;;  %v5796_v37 = vpop.xlane.xlu1 %5795 }
 0xb19   :  { %v5811_v57 = vmul.f32 0.03125, %v5796_v37 }
 0xb1a   :  { %v16695_v1 = vsub.f32 %v16608_v50, %v5812_v59 }
 0xb1b   :  { %v16698_v39 = vsub.f32 %v16613_v18, %v5811_v57 }
 0xb1c   :  { %v5828_v60 = vmul.f32 %v16695_v1, %v16695_v1 }
 0xb1d   :  { %v5827_v42 = vmul.f32 %v16698_v39, %v16698_v39 }
 0xb1e   :  { %v5846_v33 = vsel %vm109_vm0, %v5828_v60, 0.0 }
 0xb1f   :  { %5847 = vadd.xlane.f32.xlu0 %v5846_v33  ;;  %v5843_v56 = vsel %vm109_vm0, %v5827_v42, 0.0 }
 0xb20   :  { %5844 = vadd.xlane.f32.xlu1 %v5843_v56 }
 0xb8c   :  { %v5805_v61 = vpop.xlane.xlu0 %5804 }
 0xb8d   :  { %v5814_v3 = vmul.f32 0.03125, %v5805_v61  ;;  %v5802_v35 = vpop.xlane.xlu1 %5801 }
 0xb8e   :  { %v5813_v50 = vmul.f32 0.03125, %v5802_v35 }
 0xb8f   :  { %v16706_v15 = vsub.f32 %v5781_v58, %v5814_v3 }
 0xb90   :  { %v16708_v18 = vsub.f32 %v5780_v28, %v5813_v50 }
 0xb91   :  { %v5839_v38 = vpop.xlane.xlu1 %5838  ;;  %v5842_v26 = vpop.xlane.xlu0 %5841  ;;  %v5830_v21 = vmul.f32 %v16706_v15, %v16706_v15 }
 0xb92   :  { %v5857_v27 = vmul.f32 0.03125, %v5839_v38  ;;  %v5858_v41 = vmul.f32 0.03125, %v5842_v26  ;;  %v5829_v2 = vmul.f32 %v16708_v18, %v16708_v18 }
 0xb93   :  { %v5852_v32 = vsel %vm109_vm0, %v5830_v21, 0.0 }
 0xb94   :  { %v5865_v25 = vadd.f32 1e-05, %v5857_v27  ;;  %v5866_v34 = vadd.f32 1e-05, %v5858_v41  ;;  %5853 = vadd.xlane.f32.xlu0 %v5852_v32  ;;  %v5849_v46 = vsel %vm109_vm0, %v5829_v2, 0.0 }
 0xb95   :  { %5850 = vadd.xlane.f32.xlu1 %v5849_v46 }
 0xb96   :  { %15216 = vrsqrt.f32 %v5865_v25 }
 0xb97   :  { %15218 = vrsqrt.f32 %v5866_v34  ;;  %v16793_v34 = vld [vmem:[%s18102_s30] ss:$0 sm:$0xff] }
 0xba0   :  { %v15217_v43 = vpop.eup %15216 }
 0xba1   :  { %v15219_v24 = vpop.eup %15218  ;;  %v5881_v10 = vmul.f32 %v15217_v43, %v16654_v19  ;;  %v6170_v19 = vpop.f32.mrb[77].mxu1 }
 0xba2   :  { %v5882_v54 = vmul.f32 %v15219_v24, %v5818_v53  ;;  %v6171_v6 = vadd.f32 %v16730_v23, %v6170_v19  ;;  %v16737_v44 = vpop.f32.mrb[78].mxu1  ;;  %v93_v19 = vld [vmem:[%s18099_s4 + $0x38] sm:$0xff] }
 0xba3   :  { %v5896_v9 = vmul.f32 %v16673_v13, %v5881_v10  ;;  %v6180_v58 = vpop.f32.mrb[79].mxu1 }
 0xba4   :  { %v5897_v49 = vmul.f32 %v16673_v13, %v5882_v54  ;;  %v14489_v22 = vpack.c.bf16 %v6176_v5, %v6171_v6  ;;  %v6181_v29 = vadd.f32 %v16730_v23, %v6180_v58  ;;  %v16752_v17 = vpack.i.bf16 %v6176_v5, %v6171_v6  ;;  %v92_v5 = vld [vmem:[%s18099_s4 + $0x30] sm:$0xff]  ;;  %v94_v6 = vld [vmem:[%s18099_s4 + $0x40] sm:$0xff] }
 0xba5   :  { %v16720_v14 = vadd.f32 %v16679_v36, %v5896_v9 }
 0xba6   :  { %v16723_v16 = vadd.f32 %v16679_v36, %v5897_v49  ;;  %14491 = vmatpush3.bf16.xpose.msk.msra.mxu0 %vm16742_vm5, %v14489_v22  ;;  %v16750_v0 = vrot.slane %v6181_v29, 4  ;;  %v90_v49 = vld [vmem:[%s18099_s4 + $0x20] sm:$0xff] }
 0xba7   :  { %13885 = vmatprep.mubr.msk.f32.mxu0 %vm109_vm0, %v16720_v14  ;;  %14492 = vmatprep.subr.bf16.mxu0 %v15438_v55 }
 0xba8   :  { %13886 = vmatmul.mubr.msk.f32.gmra.mrb[70].mxu0 %vm109_vm0, %v16723_v16  ;;  %v16756_v11 = vsel %vm6328_vm6, %v6936_v30, %v16750_v0  ;;  %13908 = vmatprep.mubr.msk.f32.mxu1 %vm109_vm0, %v90_v49  ;;  %v16891_v49 = vadd.f32 %v16737_v44, %v16730_v23 }
 0xba9   :  { %v16760_v63 = vpack.i.bf16 %v16750_v0, %v16756_v11  ;;  %v14521_v45 = vpack.c.bf16 %v16750_v0, %v16756_v11  ;;  %13909 = vmatmul.mubr.msk.f32.gmra.mrb[80].mxu1 %vm109_vm0, %v91_v62 }
 0xbaa   :  { %13911 = vmatprep.mubr.msk.f32.mxu1 %vm109_vm0, %v92_v5 }
 0xbac   :  { %v5848_v28 = vpop.xlane.xlu0 %5847 }
 0xbad   :  { %v5860_v40 = vmul.f32 0.03125, %v5848_v28  ;;  %v5845_v4 = vpop.xlane.xlu1 %5844  ;;  %13912 = vmatmul.mubr.msk.f32.gmra.mrb[82].mxu1 %vm109_vm0, %v93_v19 }
 0xbae   :  { %v5859_v53 = vmul.f32 0.03125, %v5845_v4  ;;  %13914 = vmatprep.mubr.msk.f32.mxu1 %vm109_vm0, %v94_v6 }
 0xbaf   :  { %v5868_v52 = vadd.f32 1e-05, %v5860_v40 }
 0xbb0   :  { %v5867_v7 = vadd.f32 1e-05, %v5859_v53 }
 0xbb1   :  { %15220 = vrsqrt.f32 %v5868_v52 }
 0xbb2   :  { %15222 = vrsqrt.f32 %v5867_v7 }
 0xbbb   :  { %v15221_v47 = vpop.eup %15220 }
 0xbbc   :  { %v15223_v48 = vpop.eup %15222  ;;  %v5884_v51 = vmul.f32 %v15221_v47, %v16695_v1 }
 0xbbd   :  { %v5883_v59 = vmul.f32 %v15223_v48, %v16698_v39 }
 0xbbe   :  { %v5899_v37 = vmul.f32 %v16673_v13, %v5884_v51 }
 0xbbf   :  { %v5898_v57 = vmul.f32 %v16673_v13, %v5883_v59 }
 0xbc0   :  { %v16772_v42 = vadd.f32 %v16679_v36, %v5899_v37 }
 0xbc1   :  { %v16769_v60 = vadd.f32 %v16679_v36, %v5898_v57  ;;  %v95_v57 = vld [vmem:[%s18099_s4 + $0x48] sm:$0xff] }
 0xbc2   :  { %13915 = vmatmul.mubr.msk.f32.gmra.mrb[84].mxu1 %vm109_vm0, %v95_v57 }
 0xbc3   :  { %13888 = vmatprep.mubr.msk.f32.mxu0 %vm109_vm0, %v16769_v60 }
 0xbc4   :  { %13889 = vmatmul.mubr.msk.f32.gmra.mrb[72].mxu0 %vm109_vm0, %v16772_v42 }
 0xbe1   :  { %v16778_v33 = vpop.f32.mrb[68].mxu0 }
 0xbe2   :  { %v6018_v1 = vpop.f32.mrb[69].mxu0 }
 0xc21   :  { %v5854_v39 = vpop.xlane.xlu0 %5853 }
 0xc22   :  { %v5862_v56 = vmul.f32 0.03125, %v5854_v39  ;;  %v5851_v61 = vpop.xlane.xlu1 %5850  ;;  %v97_v39 = vld [vmem:[%s18099_s4 + $0x58] sm:$0xff] }
 0xc23   :  { %v5861_v3 = vmul.f32 0.03125, %v5851_v61 }
 0xc24   :  { %v5870_v35 = vadd.f32 1e-05, %v5862_v56 }
 0xc25   :  { %v5869_v50 = vadd.f32 1e-05, %v5861_v3 }
 0xc26   :  { %15224 = vrsqrt.f32 %v5870_v35 }
 0xc27   :  { %15226 = vrsqrt.f32 %v5869_v50 }
 0xc30   :  { %v15225_v38 = vpop.eup %15224 }
 0xc31   :  { %v15227_v26 = vpop.eup %15226  ;;  %v5886_v21 = vmul.f32 %v15225_v38, %v16706_v15 }
 0xc32   :  { %v5885_v27 = vmul.f32 %v15227_v26, %v16708_v18 }
 0xc33   :  { %v5901_v41 = vmul.f32 %v16673_v13, %v5886_v21 }
 0xc34   :  { %v5900_v2 = vmul.f32 %v16673_v13, %v5885_v27  ;;  %v16802_v13 = vadd.f32 %v16793_v34, %v6018_v1  ;;  %v96_v1 = vld [vmem:[%s18099_s4 + $0x50] sm:$0xff]  ;;  %s18107_s4 = smov 80  }
 0xc35   :  { %v16788_v25 = vadd.f32 %v16679_v36, %v5901_v41  ;;  %13917 = vmatprep.mubr.msk.f32.mxu1 %vm109_vm0, %v96_v1 }
 0xc36   :  { %v16785_v32 = vadd.f32 %v16679_v36, %v5900_v2  ;;  %13918 = vmatmul.mubr.msk.f32.gmra.mrb[86].mxu1 %vm109_vm0, %v97_v39 }
 0xc37   :  { %13952 = vmatprep.mubr.msk.f32.mxu1 %vm15423_vm1, %v15422_v8 }
 0xc38   :  { %13891 = vmatprep.mubr.msk.f32.mxu0 %vm109_vm0, %v16785_v32 }
 0xc39   :  { %13892 = vmatmul.mubr.msk.f32.gmra.mrb[74].mxu0 %vm109_vm0, %v16788_v25 }
 0xc3a   :  { %13924 = vmatprep.mubr.msk.f32.mxu0 %vm15423_vm1, %v15422_v8 }
 0xc3d   :  { %13925 = vmatmul.mubr.msk.f32.vlgmr.msra.gmra.mrb[76].mxu0 %vm242_vm2, %v16802_v13 }
 0xc3e   :  { %13931 = vmatprep.mubr.msk.f32.mxu0 %vm15423_vm1, %v15422_v8 }
 0xc7b   :  { %v16808_v36 = vpop.f32.mrb[70].mxu0 }
 0xc7c   :  { %v16810_v15 = vpop.f32.mrb[71].mxu0  ;;  %v13910_v56 = vpop.f32.mrb[80].mxu1 }
 0xc7d   :  { %v6190_v61 = vpop.f32.mrb[81].mxu1  ;;  %v6196_v6 = vadd.f32 %v13910_v56, %v16730_v23 }
 0xc7e   :  { %v16894_v62 = vadd.f32 %v16730_v23, %v6190_v61 }
 0xc80   :  { %v13913_v3 = vpop.f32.mrb[82].mxu1 }
 0xc81   :  { %v6200_v35 = vpop.f32.mrb[83].mxu1 }
 0xc97   :  { %v16812_v18 = vpop.f32.mrb[72].mxu0 }
 0xc98   :  { %v16814_v46 = vpop.f32.mrb[73].mxu0 }
 0xd0c   :  { %v16816_v43 = vpop.f32.mrb[74].mxu0 }
 0xd0d   :  { %v16818_v24 = vpop.f32.mrb[75].mxu0 }
 0xd10   :  { %v6304_v10 = vpop.f32.mrb[76].mxu0 }
 0xd11   :  { %v13926_v54 = vpop.f32.mrb[77].mxu0  ;;  %v6309_v9 = vsel %vm6308_vm7, %v6304_v10, -inf }
 0xd12   :  { %6310 = vmax.xlane.f32.xlu1 %v6309_v9  ;;  %v13916_v54 = vpop.f32.mrb[84].mxu1 }
 0xd13   :  { %v6210_v9 = vpop.f32.mrb[85].mxu1  ;;  %v16934_v57 = vadd.f32 %v13916_v54, %v16730_v23 }
 0xd14   :  { %v13919_v5 = vpop.f32.mrb[86].mxu1  ;;  %v6211_v44 = vadd.f32 %v16730_v23, %v6210_v9 }
 0xd15   :  { %v6220_v19 = vpop.f32.mrb[87].mxu1 }
 0xd16   :  { %v16937_v1 = vadd.f32 %v16730_v23, %v6220_v19 }
 0xd23   :  { %14805 = vrot.lane.b32.xlu1 %v16752_v17, %s15425_s28 }
 0xd27   :  { %6401 = vrot.lane.b32.xlu1 %v16802_v13, %s18103_s5 }
 0xd2b   :  { %14815 = vrot.lane.b32.xlu1 %v16752_v17, %s18104_s29 }
 0xd9f   :  { %v6311_v58 = vpop.xlane.xlu1 %6310 }
 0xda0   :  { %v6312_v22 = vsub.f32 %v6304_v10, %v6311_v58  ;;  %v16899_v58 = vpack.i.bf16 %v16894_v62, %v16891_v49 }
 0xda2   :  { %v6313_v28 = vmul.f32 1.442695, %v6312_v22  ;;  %v14553_v22 = vpack.c.bf16 %v16894_v62, %v16891_v49 }
 0xda3   :  { %v14806_v40 = vpop.permute.xlu1 %14805 }
 0xda4   :  { %15228 = vpow2.f32 %v6313_v28  ;;  %v14808_v4 = vunpack.i.h.bf16 %v14806_v40  ;;  %v14807_v53 = vunpack.i.l.bf16 %v14806_v40  ;;  %v16903_v28 = vrot.slane %v6196_v6, 4 }
 0xda5   :  { %v8346_v40 = vrot.slane %v16894_v62, 4 }
 0xda6   :  { %v14493_v7 = vpack.c.bf16 %v14808_v4, %v14807_v53  ;;  %v16908_v4 = vadd.f32 %v13913_v3, %v16730_v23  ;;  %v16911_v53 = vadd.f32 %v16730_v23, %v6200_v35  ;;  %v16953_v35 = vpack.i.bf16 %v16937_v1, %v16934_v57 }
 0xda7   :  { %v6402_v29 = vpop.permute.xlu1 %6401 }
 0xda8   :  { %14495 = vmatpush3.bf16.msk.msra.mxu0 %vm16848_vm9, %v14493_v7  ;;  %v16915_v7 = vsel %vm6328_vm6, %v8346_v40, %v16903_v28 }
 0xda9   :  { %14496 = vmatprep.subr.bf16.mxu0 %v15438_v55 }
 0xdab   :  { %v14816_v30 = vpop.permute.xlu1 %14815 }
 0xdac   :  { %v14818_v47 = vunpack.i.h.bf16 %v14816_v30  ;;  %v14817_v48 = vunpack.i.l.bf16 %v14816_v30  ;;  %v14585_v30 = vpack.c.bf16 %v16903_v28, %v16915_v7 }
 0xdae   :  { %v15229_v51 = vpop.eup %15228  ;;  %v14505_v59 = vpack.c.bf16 %v14818_v47, %v14817_v48  ;;  %v16923_v47 = vrot.slane %v6211_v44, 4  ;;  %v6226_v48 = vadd.f32 %v13919_v5, %v16730_v23  ;;  %v14681_v23 = vpack.c.bf16 %v16937_v1, %v16934_v57 }
 0xdaf   :  { %v6315_v37 = vsel %vm6308_vm7, %v15229_v51, 0.0 }
 0xdb0   :  { %6316 = vadd.xlane.f32.xlu0 %v6315_v37  ;;  %14507 = vmatpush3.bf16.xpose.msk.msra.mxu1 %vm16742_vm5, %v14505_v59  ;;  %v14617_v59 = vpack.c.bf16 %v16908_v4, %v16911_v53  ;;  %v9756_v37 = vrot.slane %v16908_v4, 4  ;;  %v16939_v39 = vrot.slane %v6226_v48, 4 }
 0xdb1   :  { %14516 = vmatprep.subr.bf16.mxu1 %v15438_v55 }
 0xdb2   :  { %v16943_v56 = vsel %vm6328_vm6, %v9756_v37, %v16923_v47 }
 0xdb3   :  { %v16947_v61 = vpack.i.bf16 %v16923_v47, %v16943_v56  ;;  %v14649_v3 = vpack.c.bf16 %v16923_v47, %v16943_v56 }
 0xdc6   :  { %14810 = vrot.lane.b32.xlu0 %v16752_v17, %s18103_s5 }
 0xdca   :  { %6574 = vrot.lane.b32.xlu0 %v16802_v13, %s18104_s29 }
 0xe3d   :  { %v6317_v50 = vpop.xlane.xlu0 %6316 }
 0xe3e   :  { %15230 = vrcp.f32 %v6317_v50  ;;  %v11166_v50 = vrot.slane %v16937_v1, 4 }
 0xe41   :  { %v14811_v38 = vpop.permute.xlu0 %14810 }
 0xe42   :  { %v14813_v21 = vunpack.i.h.bf16 %v14811_v38  ;;  %v14812_v27 = vunpack.i.l.bf16 %v14811_v38  ;;  %v16960_v38 = vsel %vm6328_vm6, %v11166_v50, %v16939_v39 }
 0xe44   :  { %v14497_v10 = vpack.c.bf16 %v14813_v21, %v14812_v27 }
 0xe45   :  { %v6575_v26 = vpop.permute.xlu0 %6574 }
 0xe46   :  { %13953 = vmatmul.mubr.msk.f32.vlgmr.msra.gmra.mrb[88].mxu1 %vm242_vm2, %v6575_v26  ;;  %v16964_v26 = vpack.i.bf16 %v16939_v39, %v16960_v38 }
 0xe47   :  { %13973 = vmatprep.mubr.msk.f32.mxu1 %vm15423_vm1, %v15422_v8 }
 0xe48   :  { %v15231_v41 = vpop.eup %15230 }
 0xe49   :  { %v6319_v2 = vmul.f32 %v15231_v41, %v15229_v51  ;;  %v16928_v51 = vpack.i.bf16 %v16908_v4, %v16911_v53 }
 0xe4b   :  { %13932 = vmatmul.mubr.msk.f32.vlgmr.msra.gmra.mrb[78].mxu0 %vm6308_vm7, %v6319_v2 }
 0xe4c   :  { %14499 = vmatpush3.bf16.xpose.msk.msra.mxu0 %vm16742_vm5, %v14497_v10  ;;  %13938 = vmatprep.mubr.msk.f32.mxu0 %vm15423_vm1, %v15422_v8 }
 0xe4d   :  { %14500 = vmatprep.subr.bf16.mxu0 %v15438_v55 }
 0xe53   :  { %13939 = vmatmul.mubr.msk.f32.vlgmr.msra.gmra.mrb[80].mxu0 %vm242_vm2, %v6402_v29  ;;  %v16919_v29 = vpack.i.bf16 %v16903_v28, %v16915_v7 }
 0xe54   :  { %13945 = vmatprep.mubr.msk.f32.mxu0 %vm15423_vm1, %v15422_v8 }
 0xf19   :  { %v6652_v27 = vpop.f32.mrb[88].mxu1 }
 0xf1a   :  { %v13954_v41 = vpop.f32.mrb[89].mxu1  ;;  %v6656_v2 = vsel %vm6308_vm7, %v6652_v27, -inf }
 0xf1b   :  { %6657 = vmax.xlane.f32.xlu0 %v6656_v2 }
 0xf1e   :  { %v16969_v10 = vpop.f32.mrb[78].mxu0 }
 0xf1f   :  { %v13933_v54 = vpop.f32.mrb[79].mxu0 }
 0xf26   :  { %v6479_v9 = vpop.f32.mrb[80].mxu0 }
 0xf27   :  { %v13940_v5 = vpop.f32.mrb[81].mxu0  ;;  %v6483_v19 = vsel %vm6308_vm7, %v6479_v9, -inf }
 0xf28   :  { %6484 = vmax.xlane.f32.xlu1 %v6483_v19 }
 0xfa8   :  { %v6658_v6 = vpop.xlane.xlu0 %6657 }
 0xfa9   :  { %v6659_v40 = vsub.f32 %v6652_v27, %v6658_v6 }
 0xfab   :  { %v6660_v44 = vmul.f32 1.442695, %v6659_v40 }
 0xfad   :  { %15232 = vpow2.f32 %v6660_v44 }
 0xfb5   :  { %v6485_v48 = vpop.xlane.xlu1 %6484 }
 0xfb6   :  { %v6486_v37 = vsub.f32 %v6479_v9, %v6485_v48 }
 0xfb7   :  { %v15233_v50 = vpop.eup %15232 }
 0xfb8   :  { %v6487_v21 = vmul.f32 1.442695, %v6486_v37  ;;  %v6662_v41 = vsel %vm6308_vm7, %v15233_v50, 0.0 }
 0xfb9   :  { %6663 = vadd.xlane.f32.xlu1 %v6662_v41 }
 0xfba   :  { %15234 = vpow2.f32 %v6487_v21 }
 0xfc4   :  { %v15235_v2 = vpop.eup %15234 }
 0xfc5   :  { %v6489_v54 = vsel %vm6308_vm7, %v15235_v2, 0.0 }
 0xfc6   :  { %6490 = vadd.xlane.f32.xlu0 %v6489_v54 }
 0xfca   :  { %14825 = vrot.lane.b32.xlu1 %v16752_v17, %s18107_s4 }
 0xfce   :  { %14830 = vrot.lane.b32.xlu1 %v16752_v17, %s18108_s25 }
 0xfdc   :  { %14820 = vrot.lane.b32.xlu0 %v16752_v17, %s18092_s2 }
 0xfe0   :  { %6747 = vrot.lane.b32.xlu0 %v16802_v13, %s18108_s25 }
0x1046   :  { %v6664_v27 = vpop.xlane.xlu1 %6663 }
0x104a   :  { %v14826_v6 = vpop.permute.xlu1 %14825 }
0x104b   :  { %v14828_v44 = vunpack.i.h.bf16 %v14826_v6  ;;  %v14827_v48 = vunpack.i.l.bf16 %v14826_v6 }
0x104d   :  { %v14509_v13 = vpack.c.bf16 %v14828_v44, %v14827_v48 }
0x1053   :  { %v6491_v9 = vpop.xlane.xlu0 %6490 }
0x1054   :  { %15236 = vrcp.f32 %v6491_v9  ;;  %v14831_v9 = vpop.permute.xlu1 %14830 }
0x1055   :  { %15238 = vrcp.f32 %v6664_v27 }
0x1057   :  { %v14821_v21 = vpop.permute.xlu0 %14820 }
0x1058   :  { %v14823_v5 = vunpack.i.h.bf16 %v14821_v21  ;;  %v14822_v19 = vunpack.i.l.bf16 %v14821_v21  ;;  %v14833_v21 = vunpack.i.h.bf16 %v14831_v9 }
0x105a   :  { %v14501_v40 = vpack.c.bf16 %v14823_v5, %v14822_v19  ;;  %v14832_v5 = vunpack.i.l.bf16 %v14831_v9 }
0x105b   :  { %v6748_v19 = vpop.permute.xlu0 %6747 }
0x105c   :  { %14503 = vmatpush3.bf16.msk.msra.mxu0 %vm16848_vm9, %v14501_v40 }
0x105d   :  { %14508 = vmatprep.subr.bf16.mxu0 %v15438_v55 }
0x105e   :  { %v15237_v37 = vpop.eup %15236 }
0x105f   :  { %v6493_v41 = vmul.f32 %v15237_v37, %v15235_v2  ;;  %v15239_v54 = vpop.eup %15238  ;;  %v14513_v2 = vpack.c.bf16 %v14833_v21, %v14832_v5  ;;  %v17012_v5 = vadd.f32 %v16778_v33, %v16793_v34 }
0x1060   :  { %v6666_v27 = vmul.f32 %v15239_v54, %v15233_v50 }
0x1061   :  { %13946 = vmatmul.mubr.msk.f32.vlgmr.msra.gmra.mrb[82].mxu0 %vm6308_vm7, %v6493_v41 }
0x1062   :  { %14511 = vmatpush3.bf16.msk.msra.mxu0 %vm16848_vm9, %v14509_v13  ;;  %13959 = vmatprep.mubr.msk.f32.mxu0 %vm15423_vm1, %v15422_v8 }
0x1063   :  { %14512 = vmatprep.subr.bf16.mxu0 %v15438_v55 }
0x1065   :  { %13960 = vmatmul.mubr.msk.f32.vlgmr.msra.gmra.mrb[84].mxu0 %vm6308_vm7, %v6666_v27 }
0x1066   :  { %13966 = vmatprep.mubr.msk.f32.mxu0 %vm15423_vm1, %v15422_v8 }
0x106b   :  { %14515 = vmatpush3.bf16.xpose.msk.msra.mxu0 %vm16742_vm5, %v14513_v2 }
0x106c   :  { %14524 = vmatprep.subr.bf16.mxu0 %v15438_v55 }
0x1072   :  { %13967 = vmatmul.mubr.msk.f32.vlgmr.msra.gmra.mrb[86].mxu0 %vm242_vm2, %v6748_v19 }
0x1073   :  { %13987 = vmatprep.mubr.msk.f32.mxu0 %vm15423_vm1, %v15422_v8 }
0x1134   :  { %v17000_v50 = vpop.f32.mrb[82].mxu0 }
0x1135   :  { %v13947_v6 = vpop.f32.mrb[83].mxu0 }
0x1138   :  { %v17002_v40 = vpop.f32.mrb[84].mxu0 }
0x1139   :  { %v13961_v44 = vpop.f32.mrb[85].mxu0 }
0x1145   :  { %v6825_v48 = vpop.f32.mrb[86].mxu0 }
0x1146   :  { %v13968_v37 = vpop.f32.mrb[87].mxu0  ;;  %v6829_v41 = vsel %vm6308_vm7, %v6825_v48, -inf }
0x1147   :  { %6830 = vmax.xlane.f32.xlu1 %v6829_v41 }
0x11d4   :  { %v6831_v54 = vpop.xlane.xlu1 %6830 }
0x11d5   :  { %v6832_v13 = vsub.f32 %v6825_v48, %v6831_v54 }
0x11d7   :  { %v6833_v9 = vmul.f32 1.442695, %v6832_v13 }
0x11d9   :  { %15240 = vpow2.f32 %v6833_v9 }
0x11e3   :  { %v15241_v27 = vpop.eup %15240 }
0x11e4   :  { %v6835_v21 = vsel %vm6308_vm7, %v15241_v27, 0.0 }
0x11e5   :  { %6836 = vadd.xlane.f32.xlu0 %v6835_v21 }
0x11fb   :  { %14835 = vrot.lane.b32.xlu0 %v16752_v17, %s18109_s8 }
0x11ff   :  { %14845 = vrot.lane.b32.xlu0 %v16760_v63, %s18103_s5 }
0x1203   :  { %7107 = vrot.lane.b32.xlu0 %v17012_v5, %s18103_s5 }
0x1272   :  { %v6837_v2 = vpop.xlane.xlu0 %6836 }
0x1273   :  { %15242 = vrcp.f32 %v6837_v2 }
0x1276   :  { %v14836_v19 = vpop.permute.xlu0 %14835 }
0x1277   :  { %v14838_v6 = vunpack.i.h.bf16 %v14836_v19  ;;  %v14837_v44 = vunpack.i.l.bf16 %v14836_v19 }
0x1279   :  { %v14517_v48 = vpack.c.bf16 %v14838_v6, %v14837_v44 }
0x127b   :  { %14519 = vmatpush3.bf16.msk.msra.mxu1 %vm16848_vm9, %v14517_v48 }
0x127c   :  { %14520 = vmatprep.subr.bf16.mxu1 %v15438_v55 }
0x127d   :  { %v15243_v17 = vpop.eup %15242 }
0x127e   :  { %v6839_v37 = vmul.f32 %v15243_v17, %v15241_v27  ;;  %v14846_v17 = vpop.permute.xlu0 %14845 }
0x1280   :  { %13974 = vmatmul.mubr.msk.f32.vlgmr.msra.gmra.mrb[90].mxu1 %vm6308_vm7, %v6839_v37 }
0x1281   :  { %13980 = vmatprep.mubr.msk.f32.mxu1 %vm15423_vm1, %v15422_v8 }
0x1284   :  { %14523 = vmatpush3.bf16.xpose.msk.msra.mxu1 %vm16742_vm5, %v14521_v45 }
0x1285   :  { %14532 = vmatprep.subr.bf16.mxu1 %v15438_v55 }
0x128b   :  { %13981 = vmatmul.mubr.msk.f32.vlgmr.msra.gmra.mrb[92].mxu1 %vm242_vm2, %v17012_v5 }
0x128c   :  { %14001 = vmatprep.mubr.msk.f32.mxu1 %vm15423_vm1, %v15422_v8 }
0x1353   :  { %v17032_v33 = vpop.f32.mrb[90].mxu1 }
0x1354   :  { %v13975_v41 = vpop.f32.mrb[91].mxu1 }
0x1355   :  { %v14848_v41 = vunpack.i.h.bf16 %v14846_v17 }
0x135e   :  { %v7012_v54 = vpop.f32.mrb[92].mxu1 }
0x135f   :  { %v13982_v13 = vpop.f32.mrb[93].mxu1  ;;  %v7016_v9 = vsel %vm6308_vm7, %v7012_v54, -inf }
0x1360   :  { %7017 = vmax.xlane.f32.xlu1 %v7016_v9 }
0x13ed   :  { %v7018_v0 = vpop.xlane.xlu1 %7017 }
0x13ee   :  { %v7019_v11 = vsub.f32 %v7012_v54, %v7018_v0  ;;  %v14847_v54 = vunpack.i.l.bf16 %v14846_v17  ;;  %v7108_v0 = vpop.permute.xlu0 %7107 }
0x13f0   :  { %v7020_v27 = vmul.f32 1.442695, %v7019_v11  ;;  %v14529_v9 = vpack.c.bf16 %v14848_v41, %v14847_v54 }
0x13f2   :  { %15244 = vpow2.f32 %v7020_v27 }
0x13fc   :  { %v15245_v45 = vpop.eup %15244 }
0x13fd   :  { %v7022_v21 = vsel %vm6308_vm7, %v15245_v45, 0.0 }
0x13fe   :  { %7023 = vadd.xlane.f32.xlu1 %v7022_v21 }
0x140f   :  { %14840 = vrot.lane.b32.xlu1 %v16760_v63, %s15425_s28 }
0x148b   :  { %v7024_v2 = vpop.xlane.xlu1 %7023 }
0x148c   :  { %15246 = vrcp.f32 %v7024_v2 }
0x148f   :  { %v14841_v19 = vpop.permute.xlu1 %14840 }
0x1490   :  { %v14843_v6 = vunpack.i.h.bf16 %v14841_v19  ;;  %v14842_v44 = vunpack.i.l.bf16 %v14841_v19 }
0x1492   :  { %v14525_v48 = vpack.c.bf16 %v14843_v6, %v14842_v44 }
0x1494   :  { %14527 = vmatpush3.bf16.msk.msra.mxu0 %vm16848_vm9, %v14525_v48 }
0x1495   :  { %14528 = vmatprep.subr.bf16.mxu0 %v15438_v55 }
0x1496   :  { %v15247_v37 = vpop.eup %15246 }
0x1497   :  { %v7026_v13 = vmul.f32 %v15247_v37, %v15245_v45 }
0x1499   :  { %13988 = vmatmul.mubr.msk.f32.vlgmr.msra.gmra.mrb[88].mxu0 %vm6308_vm7, %v7026_v13 }
0x149a   :  { %13994 = vmatprep.mubr.msk.f32.mxu0 %vm15423_vm1, %v15422_v8 }
0x149d   :  { %14531 = vmatpush3.bf16.xpose.msk.msra.mxu0 %vm16742_vm5, %v14529_v9 }
0x149e   :  { %14540 = vmatprep.subr.bf16.mxu0 %v15438_v55 }
0x14a4   :  { %13995 = vmatmul.mubr.msk.f32.vlgmr.msra.gmra.mrb[90].mxu0 %vm242_vm2, %v7108_v0 }
0x14a5   :  { %14015 = vmatprep.mubr.msk.f32.mxu0 %vm15423_vm1, %v15422_v8 }
0x156c   :  { %v17050_v11 = vpop.f32.mrb[88].mxu0 }
0x156d   :  { %v13989_v27 = vpop.f32.mrb[89].mxu0 }
0x1577   :  { %v7185_v45 = vpop.f32.mrb[90].mxu0 }
0x1578   :  { %v13996_v21 = vpop.f32.mrb[91].mxu0  ;;  %v7189_v2 = vsel %vm6308_vm7, %v7185_v45, -inf }
0x1579   :  { %7190 = vmax.xlane.f32.xlu1 %v7189_v2 }
0x158a   :  { %14855 = vrot.lane.b32.xlu1 %v16760_v63, %s18104_s29 }
0x158e   :  { %7280 = vrot.lane.b32.xlu1 %v17012_v5, %s18104_s29 }
0x1606   :  { %v7191_v19 = vpop.xlane.xlu1 %7190 }
0x1607   :  { %v7192_v6 = vsub.f32 %v7185_v45, %v7191_v19 }
0x1609   :  { %v7193_v44 = vmul.f32 1.442695, %v7192_v6 }
0x160a   :  { %v14856_v0 = vpop.permute.xlu1 %14855 }
0x160b   :  { %15248 = vpow2.f32 %v7193_v44  ;;  %v14858_v45 = vunpack.i.h.bf16 %v14856_v0  ;;  %v14857_v21 = vunpack.i.l.bf16 %v14856_v0 }
0x160d   :  { %v14537_v19 = vpack.c.bf16 %v14858_v45, %v14857_v21 }
0x160e   :  { %v7281_v6 = vpop.permute.xlu1 %7280 }
0x1615   :  { %v15249_v48 = vpop.eup %15248 }
0x1616   :  { %v7195_v17 = vsel %vm6308_vm7, %v15249_v48, 0.0 }
0x1617   :  { %7196 = vadd.xlane.f32.xlu0 %v7195_v17 }
0x162d   :  { %14850 = vrot.lane.b32.xlu0 %v16760_v63, %s18092_s2 }
0x16a4   :  { %v7197_v37 = vpop.xlane.xlu0 %7196 }
0x16a5   :  { %15250 = vrcp.f32 %v7197_v37 }
0x16a8   :  { %v14851_v41 = vpop.permute.xlu0 %14850 }
0x16a9   :  { %v14853_v54 = vunpack.i.h.bf16 %v14851_v41  ;;  %v14852_v13 = vunpack.i.l.bf16 %v14851_v41 }
0x16ab   :  { %v14533_v9 = vpack.c.bf16 %v14853_v54, %v14852_v13 }
0x16ad   :  { %14535 = vmatpush3.bf16.msk.msra.mxu1 %vm16848_vm9, %v14533_v9 }
0x16ae   :  { %14536 = vmatprep.subr.bf16.mxu1 %v15438_v55 }
0x16af   :  { %v15251_v27 = vpop.eup %15250 }
0x16b0   :  { %v7199_v2 = vmul.f32 %v15251_v27, %v15249_v48 }
0x16b2   :  { %14002 = vmatmul.mubr.msk.f32.vlgmr.msra.gmra.mrb[94].mxu1 %vm6308_vm7, %v7199_v2 }
0x16b3   :  { %14008 = vmatprep.mubr.msk.f32.mxu1 %vm15423_vm1, %v15422_v8 }
0x16b6   :  { %14539 = vmatpush3.bf16.xpose.msk.msra.mxu1 %vm16742_vm5, %v14537_v19 }
0x16b7   :  { %14548 = vmatprep.subr.bf16.mxu1 %v15438_v55 }
0x16bd   :  { %14009 = vmatmul.mubr.msk.f32.vlgmr.msra.gmra.mrb[96].mxu1 %vm242_vm2, %v7281_v6 }
0x16be   :  { %14029 = vmatprep.mubr.msk.f32.mxu1 %vm15423_vm1, %v15422_v8 }
0x1785   :  { %v17072_v44 = vpop.f32.mrb[94].mxu1 }
0x1786   :  { %v14003_v48 = vpop.f32.mrb[95].mxu1 }
0x1790   :  { %v7358_v17 = vpop.f32.mrb[96].mxu1 }
0x1791   :  { %v14010_v37 = vpop.f32.mrb[97].mxu1  ;;  %v7362_v41 = vsel %vm6308_vm7, %v7358_v17, -inf }
0x1792   :  { %7363 = vmax.xlane.f32.xlu0 %v7362_v41 }
0x17a8   :  { %14860 = vrot.lane.b32.xlu0 %v16760_v63, %s18107_s4 }
0x17ac   :  { %7453 = vrot.lane.b32.xlu0 %v17012_v5, %s18108_s25 }
0x181f   :  { %v7364_v54 = vpop.xlane.xlu0 %7363 }
0x1820   :  { %v7365_v13 = vsub.f32 %v7358_v17, %v7364_v54 }
0x1822   :  { %v7366_v9 = vmul.f32 1.442695, %v7365_v13 }
0x1823   :  { %v14861_v0 = vpop.permute.xlu0 %14860 }
0x1824   :  { %15252 = vpow2.f32 %v7366_v9  ;;  %v14863_v27 = vunpack.i.h.bf16 %v14861_v0  ;;  %v14862_v45 = vunpack.i.l.bf16 %v14861_v0 }
0x1826   :  { %v14541_v21 = vpack.c.bf16 %v14863_v27, %v14862_v45 }
0x1827   :  { %v7454_v13 = vpop.permute.xlu0 %7453 }
0x1828   :  { %14543 = vmatpush3.bf16.msk.msra.mxu0 %vm16848_vm9, %v14541_v21 }
0x1829   :  { %14544 = vmatprep.subr.bf16.mxu0 %v15438_v55 }
0x182e   :  { %v15253_v2 = vpop.eup %15252 }
0x182f   :  { %v7368_v19 = vsel %vm6308_vm7, %v15253_v2, 0.0 }
0x1830   :  { %7369 = vadd.xlane.f32.xlu1 %v7368_v19 }
0x1841   :  { %14865 = vrot.lane.b32.xlu1 %v16760_v63, %s18108_s25 }
0x18bd   :  { %v7370_v5 = vpop.xlane.xlu1 %7369 }
0x18be   :  { %15254 = vrcp.f32 %v7370_v5 }
0x18c1   :  { %v14866_v6 = vpop.permute.xlu1 %14865 }
0x18c2   :  { %v14868_v48 = vunpack.i.h.bf16 %v14866_v6  ;;  %v14867_v17 = vunpack.i.l.bf16 %v14866_v6 }
0x18c4   :  { %v14545_v54 = vpack.c.bf16 %v14868_v48, %v14867_v17  ;;  %v17104_v17 = vadd.f32 %v16793_v34, %v16810_v15 }
0x18c8   :  { %v15255_v37 = vpop.eup %15254 }
0x18c9   :  { %v7372_v41 = vmul.f32 %v15255_v37, %v15253_v2 }
0x18cb   :  { %14016 = vmatmul.mubr.msk.f32.vlgmr.msra.gmra.mrb[92].mxu0 %vm6308_vm7, %v7372_v41 }
0x18cc   :  { %14547 = vmatpush3.bf16.xpose.msk.msra.mxu0 %vm16742_vm5, %v14545_v54  ;;  %14022 = vmatprep.mubr.msk.f32.mxu0 %vm15423_vm1, %v15422_v8 }
0x18cd   :  { %14556 = vmatprep.subr.bf16.mxu0 %v15438_v55 }
0x18d3   :  { %14023 = vmatmul.mubr.msk.f32.vlgmr.msra.gmra.mrb[94].mxu0 %vm242_vm2, %v7454_v13 }
0x18d4   :  { %14043 = vmatprep.mubr.msk.f32.mxu0 %vm15423_vm1, %v15422_v8 }
0x199e   :  { %v17094_v9 = vpop.f32.mrb[92].mxu0 }
0x199f   :  { %v14017_v0 = vpop.f32.mrb[93].mxu0 }
0x19a6   :  { %v7531_v27 = vpop.f32.mrb[94].mxu0 }
0x19a7   :  { %v14024_v45 = vpop.f32.mrb[95].mxu0  ;;  %v7535_v21 = vsel %vm6308_vm7, %v7531_v27, -inf }
0x19a8   :  { %7536 = vmax.xlane.f32.xlu1 %v7535_v21 }
0x1a35   :  { %v7537_v2 = vpop.xlane.xlu1 %7536 }
0x1a36   :  { %v7538_v19 = vsub.f32 %v7531_v27, %v7537_v2 }
0x1a38   :  { %v7539_v5 = vmul.f32 1.442695, %v7538_v19 }
0x1a3a   :  { %15256 = vpow2.f32 %v7539_v5 }
0x1a44   :  { %v15257_v6 = vpop.eup %15256 }
0x1a45   :  { %v7541_v48 = vsel %vm6308_vm7, %v15257_v6, 0.0 }
0x1a46   :  { %7542 = vadd.xlane.f32.xlu0 %v7541_v48 }
0x1a5c   :  { %14870 = vrot.lane.b32.xlu0 %v16760_v63, %s18109_s8 }
0x1a60   :  { %14880 = vrot.lane.b32.xlu0 %v16899_v58, %s18103_s5 }
0x1a64   :  { %7811 = vrot.lane.b32.xlu0 %v17104_v17, %s18103_s5 }
0x1ad3   :  { %v7543_v37 = vpop.xlane.xlu0 %7542 }
0x1ad4   :  { %15258 = vrcp.f32 %v7543_v37 }
0x1ad7   :  { %v14871_v41 = vpop.permute.xlu0 %14870 }
0x1ad8   :  { %v14873_v54 = vunpack.i.h.bf16 %v14871_v41  ;;  %v14872_v13 = vunpack.i.l.bf16 %v14871_v41 }
0x1ada   :  { %v14549_v0 = vpack.c.bf16 %v14873_v54, %v14872_v13 }
0x1adb   :  { %v14881_v13 = vpop.permute.xlu0 %14880 }
0x1adc   :  { %14551 = vmatpush3.bf16.msk.msra.mxu1 %vm16848_vm9, %v14549_v0 }
0x1add   :  { %14552 = vmatprep.subr.bf16.mxu1 %v15438_v55 }
0x1ade   :  { %v15259_v63 = vpop.eup %15258 }
0x1adf   :  { %v7545_v27 = vmul.f32 %v15259_v63, %v15257_v6  ;;  %v14883_v63 = vunpack.i.h.bf16 %v14881_v13 }
0x1ae1   :  { %14030 = vmatmul.mubr.msk.f32.vlgmr.msra.gmra.mrb[98].mxu1 %vm6308_vm7, %v7545_v27  ;;  %v14882_v27 = vunpack.i.l.bf16 %v14881_v13 }
0x1ae2   :  { %14036 = vmatprep.mubr.msk.f32.mxu1 %vm15423_vm1, %v15422_v8 }
0x1ae5   :  { %14555 = vmatpush3.bf16.xpose.msk.msra.mxu1 %vm16742_vm5, %v14553_v22 }
0x1ae6   :  { %14564 = vmatprep.subr.bf16.mxu1 %v15438_v55 }
0x1aec   :  { %14037 = vmatmul.mubr.msk.f32.vlgmr.msra.gmra.mrb[100].mxu1 %vm242_vm2, %v17104_v17 }
0x1aed   :  { %14057 = vmatprep.mubr.msk.f32.mxu1 %vm15423_vm1, %v15422_v8 }
0x1bb4   :  { %v17124_v34 = vpop.f32.mrb[98].mxu1 }
0x1bb5   :  { %v14031_v15 = vpop.f32.mrb[99].mxu1 }
0x1bbf   :  { %v7716_v45 = vpop.f32.mrb[100].mxu1 }
0x1bc0   :  { %v14038_v21 = vpop.f32.mrb[101].mxu1  ;;  %v7720_v2 = vsel %vm6308_vm7, %v7716_v45, -inf }
0x1bc1   :  { %7721 = vmax.xlane.f32.xlu1 %v7720_v2  ;;  %v7812_v21 = vpop.permute.xlu0 %7811 }
0x1c4e   :  { %v7722_v49 = vpop.xlane.xlu1 %7721 }
0x1c4f   :  { %v7723_v62 = vsub.f32 %v7716_v45, %v7722_v49  ;;  %v14561_v45 = vpack.c.bf16 %v14883_v63, %v14882_v27 }
0x1c51   :  { %v7724_v19 = vmul.f32 1.442695, %v7723_v62 }
0x1c53   :  { %15260 = vpow2.f32 %v7724_v19 }
0x1c5d   :  { %v15261_v22 = vpop.eup %15260 }
0x1c5e   :  { %v7726_v5 = vsel %vm6308_vm7, %v15261_v22, 0.0 }
0x1c5f   :  { %7727 = vadd.xlane.f32.xlu1 %v7726_v5 }
0x1c70   :  { %14875 = vrot.lane.b32.xlu1 %v16899_v58, %s15425_s28 }
0x1cec   :  { %v7728_v6 = vpop.xlane.xlu1 %7727 }
0x1ced   :  { %15262 = vrcp.f32 %v7728_v6 }
0x1cf0   :  { %v14876_v48 = vpop.permute.xlu1 %14875 }
0x1cf1   :  { %v14878_v37 = vunpack.i.h.bf16 %v14876_v48  ;;  %v14877_v41 = vunpack.i.l.bf16 %v14876_v48 }
0x1cf3   :  { %v14557_v54 = vpack.c.bf16 %v14878_v37, %v14877_v41 }
0x1cf5   :  { %14559 = vmatpush3.bf16.msk.msra.mxu0 %vm16848_vm9, %v14557_v54 }
0x1cf6   :  { %14560 = vmatprep.subr.bf16.mxu0 %v15438_v55 }
0x1cf7   :  { %v15263_v0 = vpop.eup %15262 }
0x1cf8   :  { %v7730_v15 = vmul.f32 %v15263_v0, %v15261_v22 }
0x1cfa   :  { %14044 = vmatmul.mubr.msk.f32.vlgmr.msra.gmra.mrb[96].mxu0 %vm6308_vm7, %v7730_v15 }
0x1cfb   :  { %14050 = vmatprep.mubr.msk.f32.mxu0 %vm15423_vm1, %v15422_v8 }
0x1cfe   :  { %14563 = vmatpush3.bf16.xpose.msk.msra.mxu0 %vm16742_vm5, %v14561_v45 }
0x1cff   :  { %14572 = vmatprep.subr.bf16.mxu0 %v15438_v55 }
0x1d05   :  { %14051 = vmatmul.mubr.msk.f32.vlgmr.msra.gmra.mrb[98].mxu0 %vm242_vm2, %v7812_v21 }
0x1d06   :  { %14071 = vmatprep.mubr.msk.f32.mxu0 %vm15423_vm1, %v15422_v8 }
0x1dcd   :  { %v17142_v2 = vpop.f32.mrb[96].mxu0 }
0x1dce   :  { %v14045_v49 = vpop.f32.mrb[97].mxu0 }
0x1dd8   :  { %v7889_v62 = vpop.f32.mrb[98].mxu0 }
0x1dd9   :  { %v14052_v19 = vpop.f32.mrb[99].mxu0  ;;  %v7893_v22 = vsel %vm6308_vm7, %v7889_v62, -inf }
0x1dda   :  { %7894 = vmax.xlane.f32.xlu1 %v7893_v22 }
0x1deb   :  { %14890 = vrot.lane.b32.xlu1 %v16899_v58, %s18104_s29 }
0x1def   :  { %7984 = vrot.lane.b32.xlu1 %v17104_v17, %s18104_s29 }
0x1e67   :  { %v7895_v5 = vpop.xlane.xlu1 %7894 }
0x1e68   :  { %v7896_v6 = vsub.f32 %v7889_v62, %v7895_v5 }
0x1e6a   :  { %v7897_v48 = vmul.f32 1.442695, %v7896_v6 }
0x1e6b   :  { %v14891_v15 = vpop.permute.xlu1 %14890 }
0x1e6c   :  { %15264 = vpow2.f32 %v7897_v48  ;;  %v14893_v21 = vunpack.i.h.bf16 %v14891_v15  ;;  %v14892_v49 = vunpack.i.l.bf16 %v14891_v15 }
0x1e6e   :  { %v14569_v19 = vpack.c.bf16 %v14893_v21, %v14892_v49 }
0x1e6f   :  { %v7985_v22 = vpop.permute.xlu1 %7984 }
0x1e76   :  { %v15265_v37 = vpop.eup %15264 }
0x1e77   :  { %v7899_v41 = vsel %vm6308_vm7, %v15265_v37, 0.0 }
0x1e78   :  { %7900 = vadd.xlane.f32.xlu0 %v7899_v41 }
0x1e8e   :  { %14885 = vrot.lane.b32.xlu0 %v16899_v58, %s18092_s2 }
0x1f05   :  { %v7901_v54 = vpop.xlane.xlu0 %7900 }
0x1f06   :  { %15266 = vrcp.f32 %v7901_v54 }
0x1f09   :  { %v14886_v13 = vpop.permute.xlu0 %14885 }
0x1f0a   :  { %v14888_v0 = vunpack.i.h.bf16 %v14886_v13  ;;  %v14887_v63 = vunpack.i.l.bf16 %v14886_v13 }
0x1f0c   :  { %v14565_v27 = vpack.c.bf16 %v14888_v0, %v14887_v63 }
0x1f0e   :  { %14567 = vmatpush3.bf16.msk.msra.mxu1 %vm16848_vm9, %v14565_v27 }
0x1f0f   :  { %14568 = vmatprep.subr.bf16.mxu1 %v15438_v55 }
0x1f10   :  { %v15267_v45 = vpop.eup %15266 }
0x1f11   :  { %v7903_v62 = vmul.f32 %v15267_v45, %v15265_v37 }
0x1f13   :  { %14058 = vmatmul.mubr.msk.f32.vlgmr.msra.gmra.mrb[102].mxu1 %vm6308_vm7, %v7903_v62 }
0x1f14   :  { %14064 = vmatprep.mubr.msk.f32.mxu1 %vm15423_vm1, %v15422_v8 }
0x1f17   :  { %14571 = vmatpush3.bf16.xpose.msk.msra.mxu1 %vm16742_vm5, %v14569_v19 }
0x1f18   :  { %14580 = vmatprep.subr.bf16.mxu1 %v15438_v55 }
0x1f1e   :  { %14065 = vmatmul.mubr.msk.f32.vlgmr.msra.gmra.mrb[104].mxu1 %vm242_vm2, %v7985_v22 }
0x1f1f   :  { %14085 = vmatprep.mubr.msk.f32.mxu1 %vm15423_vm1, %v15422_v8 }
0x1fe6   :  { %v17164_v5 = vpop.f32.mrb[102].mxu1 }
0x1fe7   :  { %v14059_v6 = vpop.f32.mrb[103].mxu1 }
0x1ff1   :  { %v8062_v48 = vpop.f32.mrb[104].mxu1 }
0x1ff2   :  { %v14066_v37 = vpop.f32.mrb[105].mxu1  ;;  %v8066_v41 = vsel %vm6308_vm7, %v8062_v48, -inf }
0x1ff3   :  { %8067 = vmax.xlane.f32.xlu0 %v8066_v41 }
0x2009   :  { %14895 = vrot.lane.b32.xlu0 %v16899_v58, %s18107_s4 }
0x200d   :  { %8157 = vrot.lane.b32.xlu0 %v17104_v17, %s18108_s25 }
0x2080   :  { %v8068_v54 = vpop.xlane.xlu0 %8067 }
0x2081   :  { %v8069_v13 = vsub.f32 %v8062_v48, %v8068_v54 }
0x2083   :  { %v8070_v0 = vmul.f32 1.442695, %v8069_v13 }
0x2084   :  { %v14896_v63 = vpop.permute.xlu0 %14895 }
0x2085   :  { %15268 = vpow2.f32 %v8070_v0  ;;  %v14898_v27 = vunpack.i.h.bf16 %v14896_v63  ;;  %v14897_v15 = vunpack.i.l.bf16 %v14896_v63 }
0x2087   :  { %v14573_v45 = vpack.c.bf16 %v14898_v27, %v14897_v15 }
0x2088   :  { %v8158_v41 = vpop.permute.xlu0 %8157 }
0x2089   :  { %14575 = vmatpush3.bf16.msk.msra.mxu0 %vm16848_vm9, %v14573_v45 }
0x208a   :  { %14576 = vmatprep.subr.bf16.mxu0 %v15438_v55 }
0x208f   :  { %v15269_v21 = vpop.eup %15268 }
0x2090   :  { %v8072_v49 = vsel %vm6308_vm7, %v15269_v21, 0.0 }
0x2091   :  { %8073 = vadd.xlane.f32.xlu1 %v8072_v49 }
0x20a2   :  { %14900 = vrot.lane.b32.xlu1 %v16899_v58, %s18108_s25 }
0x211e   :  { %v8074_v17 = vpop.xlane.xlu1 %8073 }
0x211f   :  { %15270 = vrcp.f32 %v8074_v17 }
0x2122   :  { %v14901_v62 = vpop.permute.xlu1 %14900 }
0x2123   :  { %v14903_v19 = vunpack.i.h.bf16 %v14901_v62  ;;  %v14902_v22 = vunpack.i.l.bf16 %v14901_v62  ;;  %v17197_v62 = vld [vmem:[%s18102_s30] ss:$0 sm:$0xff] }
0x2125   :  { %v14577_v37 = vpack.c.bf16 %v14903_v19, %v14902_v22  ;;  %v17201_v19 = vadd.f32 %v17197_v62, %v16808_v36 }
0x2129   :  { %v15271_v6 = vpop.eup %15270 }
0x212a   :  { %v8076_v48 = vmul.f32 %v15271_v6, %v15269_v21 }
0x212c   :  { %14072 = vmatmul.mubr.msk.f32.vlgmr.msra.gmra.mrb[100].mxu0 %vm6308_vm7, %v8076_v48 }
0x212d   :  { %14579 = vmatpush3.bf16.xpose.msk.msra.mxu0 %vm16742_vm5, %v14577_v37  ;;  %14078 = vmatprep.mubr.msk.f32.mxu0 %vm15423_vm1, %v15422_v8 }
0x212e   :  { %14588 = vmatprep.subr.bf16.mxu0 %v15438_v55 }
0x2134   :  { %14079 = vmatmul.mubr.msk.f32.vlgmr.msra.gmra.mrb[102].mxu0 %vm242_vm2, %v8158_v41 }
0x2135   :  { %14099 = vmatprep.mubr.msk.f32.mxu0 %vm15423_vm1, %v15422_v8 }
0x21ff   :  { %v17186_v54 = vpop.f32.mrb[100].mxu0 }
0x2200   :  { %v14073_v13 = vpop.f32.mrb[101].mxu0 }
0x2207   :  { %v8235_v0 = vpop.f32.mrb[102].mxu0 }
0x2208   :  { %v14080_v63 = vpop.f32.mrb[103].mxu0  ;;  %v8239_v27 = vsel %vm6308_vm7, %v8235_v0, -inf }
0x2209   :  { %8240 = vmax.xlane.f32.xlu1 %v8239_v27 }
0x2296   :  { %v8241_v15 = vpop.xlane.xlu1 %8240 }
0x2297   :  { %v8242_v45 = vsub.f32 %v8235_v0, %v8241_v15 }
0x2299   :  { %v8243_v21 = vmul.f32 1.442695, %v8242_v45 }
0x229b   :  { %15272 = vpow2.f32 %v8243_v21 }
0x22a5   :  { %v15273_v49 = vpop.eup %15272 }
0x22a6   :  { %v8245_v17 = vsel %vm6308_vm7, %v15273_v49, 0.0 }
0x22a7   :  { %8246 = vadd.xlane.f32.xlu0 %v8245_v17 }
0x22bd   :  { %14905 = vrot.lane.b32.xlu0 %v16899_v58, %s18109_s8 }
0x22c1   :  { %14915 = vrot.lane.b32.xlu0 %v16919_v29, %s18103_s5 }
0x22c5   :  { %8517 = vrot.lane.b32.xlu0 %v17201_v19, %s18103_s5 }
0x2334   :  { %v8247_v22 = vpop.xlane.xlu0 %8246 }
0x2335   :  { %15274 = vrcp.f32 %v8247_v22 }
0x2338   :  { %v14906_v6 = vpop.permute.xlu0 %14905 }
0x2339   :  { %v14908_v48 = vunpack.i.h.bf16 %v14906_v6  ;;  %v14907_v58 = vunpack.i.l.bf16 %v14906_v6 }
0x233b   :  { %v14581_v37 = vpack.c.bf16 %v14908_v48, %v14907_v58 }
0x233c   :  { %v14916_v58 = vpop.permute.xlu0 %14915 }
0x233d   :  { %14583 = vmatpush3.bf16.msk.msra.mxu1 %vm16848_vm9, %v14581_v37 }
0x233e   :  { %14584 = vmatprep.subr.bf16.mxu1 %v15438_v55 }
0x233f   :  { %v15275_v41 = vpop.eup %15274 }
0x2340   :  { %v8249_v13 = vmul.f32 %v15275_v41, %v15273_v49  ;;  %v14918_v41 = vunpack.i.h.bf16 %v14916_v58 }
0x2342   :  { %14086 = vmatmul.mubr.msk.f32.vlgmr.msra.gmra.mrb[106].mxu1 %vm6308_vm7, %v8249_v13  ;;  %v14917_v13 = vunpack.i.l.bf16 %v14916_v58 }
0x2343   :  { %14092 = vmatprep.mubr.msk.f32.mxu1 %vm15423_vm1, %v15422_v8 }
0x2346   :  { %14587 = vmatpush3.bf16.xpose.msk.msra.mxu1 %vm16742_vm5, %v14585_v30 }
0x2347   :  { %14596 = vmatprep.subr.bf16.mxu1 %v15438_v55 }
0x234d   :  { %14093 = vmatmul.mubr.msk.f32.vlgmr.msra.gmra.mrb[108].mxu1 %vm242_vm2, %v17201_v19 }
0x234e   :  { %14113 = vmatprep.mubr.msk.f32.mxu1 %vm15423_vm1, %v15422_v8 }
0x2415   :  { %v17221_v36 = vpop.f32.mrb[106].mxu1 }
0x2416   :  { %v14087_v0 = vpop.f32.mrb[107].mxu1 }
0x2420   :  { %v8422_v63 = vpop.f32.mrb[108].mxu1 }
0x2421   :  { %v14094_v27 = vpop.f32.mrb[109].mxu1  ;;  %v8426_v15 = vsel %vm6308_vm7, %v8422_v63, -inf }
0x2422   :  { %8427 = vmax.xlane.f32.xlu1 %v8426_v15  ;;  %v8518_v27 = vpop.permute.xlu0 %8517 }
0x24af   :  { %v8428_v28 = vpop.xlane.xlu1 %8427 }
0x24b0   :  { %v8429_v7 = vsub.f32 %v8422_v63, %v8428_v28  ;;  %v14593_v63 = vpack.c.bf16 %v14918_v41, %v14917_v13 }
0x24b2   :  { %v8430_v45 = vmul.f32 1.442695, %v8429_v7 }
0x24b4   :  { %15276 = vpow2.f32 %v8430_v45 }
0x24be   :  { %v15277_v30 = vpop.eup %15276 }
0x24bf   :  { %v8432_v21 = vsel %vm6308_vm7, %v15277_v30, 0.0 }
0x24c0   :  { %8433 = vadd.xlane.f32.xlu1 %v8432_v21 }
0x24d1   :  { %14910 = vrot.lane.b32.xlu1 %v16919_v29, %s15425_s28 }
0x254d   :  { %v8434_v49 = vpop.xlane.xlu1 %8433 }
0x254e   :  { %15278 = vrcp.f32 %v8434_v49 }
0x2551   :  { %v14911_v17 = vpop.permute.xlu1 %14910 }
0x2552   :  { %v14913_v22 = vunpack.i.h.bf16 %v14911_v17  ;;  %v14912_v6 = vunpack.i.l.bf16 %v14911_v17 }
0x2554   :  { %v14589_v48 = vpack.c.bf16 %v14913_v22, %v14912_v6 }
0x2556   :  { %14591 = vmatpush3.bf16.msk.msra.mxu0 %vm16848_vm9, %v14589_v48 }
0x2557   :  { %14592 = vmatprep.subr.bf16.mxu0 %v15438_v55 }
0x2558   :  { %v15279_v37 = vpop.eup %15278 }
0x2559   :  { %v8436_v0 = vmul.f32 %v15279_v37, %v15277_v30 }
0x255b   :  { %14100 = vmatmul.mubr.msk.f32.vlgmr.msra.gmra.mrb[104].mxu0 %vm6308_vm7, %v8436_v0 }
0x255c   :  { %14106 = vmatprep.mubr.msk.f32.mxu0 %vm15423_vm1, %v15422_v8 }
0x255f   :  { %14595 = vmatpush3.bf16.xpose.msk.msra.mxu0 %vm16742_vm5, %v14593_v63 }
0x2560   :  { %14604 = vmatprep.subr.bf16.mxu0 %v15438_v55 }
0x2566   :  { %14107 = vmatmul.mubr.msk.f32.vlgmr.msra.gmra.mrb[106].mxu0 %vm242_vm2, %v8518_v27 }
0x2567   :  { %14127 = vmatprep.mubr.msk.f32.mxu0 %vm15423_vm1, %v15422_v8 }
0x262e   :  { %v17239_v15 = vpop.f32.mrb[104].mxu0 }
0x262f   :  { %v14101_v28 = vpop.f32.mrb[105].mxu0 }
0x2639   :  { %v8595_v7 = vpop.f32.mrb[106].mxu0 }
0x263a   :  { %v14108_v45 = vpop.f32.mrb[107].mxu0  ;;  %v8599_v30 = vsel %vm6308_vm7, %v8595_v7, -inf }
0x263b   :  { %8600 = vmax.xlane.f32.xlu1 %v8599_v30 }
0x264c   :  { %14925 = vrot.lane.b32.xlu1 %v16919_v29, %s18104_s29 }
0x2650   :  { %8690 = vrot.lane.b32.xlu1 %v17201_v19, %s18104_s29 }
0x26c8   :  { %v8601_v21 = vpop.xlane.xlu1 %8600 }
0x26c9   :  { %v8602_v49 = vsub.f32 %v8595_v7, %v8601_v21 }
0x26cb   :  { %v8603_v17 = vmul.f32 1.442695, %v8602_v49 }
0x26cc   :  { %v14926_v0 = vpop.permute.xlu1 %14925 }
0x26cd   :  { %15280 = vpow2.f32 %v8603_v17  ;;  %v14928_v27 = vunpack.i.h.bf16 %v14926_v0  ;;  %v14927_v28 = vunpack.i.l.bf16 %v14926_v0 }
0x26cf   :  { %v14601_v45 = vpack.c.bf16 %v14928_v27, %v14927_v28 }
0x26d0   :  { %v8691_v30 = vpop.permute.xlu1 %8690 }
0x26d7   :  { %v15281_v22 = vpop.eup %15280 }
0x26d8   :  { %v8605_v6 = vsel %vm6308_vm7, %v15281_v22, 0.0 }
0x26d9   :  { %8606 = vadd.xlane.f32.xlu0 %v8605_v6 }
0x26ef   :  { %14920 = vrot.lane.b32.xlu0 %v16919_v29, %s18092_s2 }
0x2766   :  { %v8607_v48 = vpop.xlane.xlu0 %8606 }
0x2767   :  { %15282 = vrcp.f32 %v8607_v48 }
0x276a   :  { %v14921_v58 = vpop.permute.xlu0 %14920 }
0x276b   :  { %v14923_v37 = vunpack.i.h.bf16 %v14921_v58  ;;  %v14922_v41 = vunpack.i.l.bf16 %v14921_v58 }
0x276d   :  { %v14597_v13 = vpack.c.bf16 %v14923_v37, %v14922_v41 }
0x276f   :  { %14599 = vmatpush3.bf16.msk.msra.mxu1 %vm16848_vm9, %v14597_v13 }
0x2770   :  { %14600 = vmatprep.subr.bf16.mxu1 %v15438_v55 }
0x2771   :  { %v15283_v63 = vpop.eup %15282 }
0x2772   :  { %v8609_v7 = vmul.f32 %v15283_v63, %v15281_v22 }
0x2774   :  { %14114 = vmatmul.mubr.msk.f32.vlgmr.msra.gmra.mrb[110].mxu1 %vm6308_vm7, %v8609_v7 }
0x2775   :  { %14120 = vmatprep.mubr.msk.f32.mxu1 %vm15423_vm1, %v15422_v8 }
0x2778   :  { %14603 = vmatpush3.bf16.xpose.msk.msra.mxu1 %vm16742_vm5, %v14601_v45 }
0x2779   :  { %14612 = vmatprep.subr.bf16.mxu1 %v15438_v55 }
0x277f   :  { %14121 = vmatmul.mubr.msk.f32.vlgmr.msra.gmra.mrb[112].mxu1 %vm242_vm2, %v8691_v30 }
0x2780   :  { %14141 = vmatprep.mubr.msk.f32.mxu1 %vm15423_vm1, %v15422_v8 }
0x2847   :  { %v17261_v21 = vpop.f32.mrb[110].mxu1 }
0x2848   :  { %v14115_v49 = vpop.f32.mrb[111].mxu1 }
0x2852   :  { %v8768_v17 = vpop.f32.mrb[112].mxu1 }
0x2853   :  { %v14122_v22 = vpop.f32.mrb[113].mxu1  ;;  %v8772_v6 = vsel %vm6308_vm7, %v8768_v17, -inf }
0x2854   :  { %8773 = vmax.xlane.f32.xlu0 %v8772_v6 }
0x286a   :  { %14930 = vrot.lane.b32.xlu0 %v16919_v29, %s18107_s4 }
0x286e   :  { %8863 = vrot.lane.b32.xlu0 %v17201_v19, %s18108_s25 }
0x28e1   :  { %v8774_v48 = vpop.xlane.xlu0 %8773 }
0x28e2   :  { %v8775_v58 = vsub.f32 %v8768_v17, %v8774_v48 }
0x28e4   :  { %v8776_v37 = vmul.f32 1.442695, %v8775_v58 }
0x28e5   :  { %v14931_v41 = vpop.permute.xlu0 %14930 }
0x28e6   :  { %15284 = vpow2.f32 %v8776_v37  ;;  %v14933_v13 = vunpack.i.h.bf16 %v14931_v41  ;;  %v14932_v0 = vunpack.i.l.bf16 %v14931_v41 }
0x28e8   :  { %v14605_v63 = vpack.c.bf16 %v14933_v13, %v14932_v0 }
0x28e9   :  { %v8864_v6 = vpop.permute.xlu0 %8863 }
0x28ea   :  { %14607 = vmatpush3.bf16.msk.msra.mxu0 %vm16848_vm9, %v14605_v63 }
0x28eb   :  { %14608 = vmatprep.subr.bf16.mxu0 %v15438_v55 }
0x28f0   :  { %v15285_v27 = vpop.eup %15284 }
0x28f1   :  { %v8778_v28 = vsel %vm6308_vm7, %v15285_v27, 0.0 }
0x28f2   :  { %8779 = vadd.xlane.f32.xlu1 %v8778_v28 }
0x2903   :  { %14935 = vrot.lane.b32.xlu1 %v16919_v29, %s18108_s25 }
0x297f   :  { %v8780_v19 = vpop.xlane.xlu1 %8779 }
0x2980   :  { %15286 = vrcp.f32 %v8780_v19 }
0x2983   :  { %v14936_v7 = vpop.permute.xlu1 %14935 }
0x2984   :  { %v14938_v45 = vunpack.i.h.bf16 %v14936_v7  ;;  %v14937_v30 = vunpack.i.l.bf16 %v14936_v7  ;;  %v17293_v7 = vadd.f32 %v17197_v62, %v16814_v46 }
0x2986   :  { %v14609_v22 = vpack.c.bf16 %v14938_v45, %v14937_v30 }
0x298a   :  { %v15287_v49 = vpop.eup %15286 }
0x298b   :  { %v8782_v17 = vmul.f32 %v15287_v49, %v15285_v27 }
0x298d   :  { %14128 = vmatmul.mubr.msk.f32.vlgmr.msra.gmra.mrb[108].mxu0 %vm6308_vm7, %v8782_v17 }
0x298e   :  { %14611 = vmatpush3.bf16.xpose.msk.msra.mxu0 %vm16742_vm5, %v14609_v22  ;;  %14134 = vmatprep.mubr.msk.f32.mxu0 %vm15423_vm1, %v15422_v8 }
0x298f   :  { %14620 = vmatprep.subr.bf16.mxu0 %v15438_v55 }
0x2995   :  { %14135 = vmatmul.mubr.msk.f32.vlgmr.msra.gmra.mrb[110].mxu0 %vm242_vm2, %v8864_v6 }
0x2996   :  { %14155 = vmatprep.mubr.msk.f32.mxu0 %vm15423_vm1, %v15422_v8 }
0x2a60   :  { %v17283_v48 = vpop.f32.mrb[108].mxu0 }
0x2a61   :  { %v14129_v58 = vpop.f32.mrb[109].mxu0 }
0x2a68   :  { %v8941_v37 = vpop.f32.mrb[110].mxu0 }
0x2a69   :  { %v14136_v41 = vpop.f32.mrb[111].mxu0  ;;  %v8945_v13 = vsel %vm6308_vm7, %v8941_v37, -inf }
0x2a6a   :  { %8946 = vmax.xlane.f32.xlu1 %v8945_v13 }
0x2af7   :  { %v8947_v0 = vpop.xlane.xlu1 %8946 }
0x2af8   :  { %v8948_v63 = vsub.f32 %v8941_v37, %v8947_v0 }
0x2afa   :  { %v8949_v27 = vmul.f32 1.442695, %v8948_v63 }
0x2afc   :  { %15288 = vpow2.f32 %v8949_v27 }
0x2b06   :  { %v15289_v28 = vpop.eup %15288 }
0x2b07   :  { %v8951_v19 = vsel %vm6308_vm7, %v15289_v28, 0.0 }
0x2b08   :  { %8952 = vadd.xlane.f32.xlu0 %v8951_v19 }
0x2b1e   :  { %14940 = vrot.lane.b32.xlu0 %v16919_v29, %s18109_s8 }
0x2b22   :  { %14950 = vrot.lane.b32.xlu0 %v16928_v51, %s18103_s5 }
0x2b26   :  { %9221 = vrot.lane.b32.xlu0 %v17293_v7, %s18103_s5 }
0x2b95   :  { %v8953_v45 = vpop.xlane.xlu0 %8952 }
0x2b96   :  { %15290 = vrcp.f32 %v8953_v45 }
0x2b99   :  { %v14941_v30 = vpop.permute.xlu0 %14940 }
0x2b9a   :  { %v14943_v49 = vunpack.i.h.bf16 %v14941_v30  ;;  %v14942_v17 = vunpack.i.l.bf16 %v14941_v30 }
0x2b9c   :  { %v14613_v22 = vpack.c.bf16 %v14943_v49, %v14942_v17 }
0x2b9d   :  { %v14951_v49 = vpop.permute.xlu0 %14950 }
0x2b9e   :  { %14615 = vmatpush3.bf16.msk.msra.mxu1 %vm16848_vm9, %v14613_v22  ;;  %v14953_v22 = vunpack.i.h.bf16 %v14951_v49 }
0x2b9f   :  { %14616 = vmatprep.subr.bf16.mxu1 %v15438_v55 }
0x2ba0   :  { %v15291_v29 = vpop.eup %15290 }
0x2ba1   :  { %v8955_v6 = vmul.f32 %v15291_v29, %v15289_v28  ;;  %v14952_v29 = vunpack.i.l.bf16 %v14951_v49 }
0x2ba3   :  { %14142 = vmatmul.mubr.msk.f32.vlgmr.msra.gmra.mrb[114].mxu1 %vm6308_vm7, %v8955_v6 }
0x2ba4   :  { %14148 = vmatprep.mubr.msk.f32.mxu1 %vm15423_vm1, %v15422_v8 }
0x2ba7   :  { %14619 = vmatpush3.bf16.xpose.msk.msra.mxu1 %vm16742_vm5, %v14617_v59 }
0x2ba8   :  { %14628 = vmatprep.subr.bf16.mxu1 %v15438_v55 }
0x2bae   :  { %14149 = vmatmul.mubr.msk.f32.vlgmr.msra.gmra.mrb[116].mxu1 %vm242_vm2, %v17293_v7 }
0x2baf   :  { %14169 = vmatprep.mubr.msk.f32.mxu1 %vm15423_vm1, %v15422_v8 }
0x2c76   :  { %v17313_v46 = vpop.f32.mrb[114].mxu1 }
0x2c77   :  { %v14143_v58 = vpop.f32.mrb[115].mxu1 }
0x2c78   :  { %v14625_v58 = vpack.c.bf16 %v14953_v22, %v14952_v29 }
0x2c81   :  { %v9126_v37 = vpop.f32.mrb[116].mxu1 }
0x2c82   :  { %v14150_v41 = vpop.f32.mrb[117].mxu1  ;;  %v9130_v13 = vsel %vm6308_vm7, %v9126_v37, -inf }
0x2c83   :  { %9131 = vmax.xlane.f32.xlu1 %v9130_v13 }
0x2d10   :  { %v9132_v4 = vpop.xlane.xlu1 %9131 }
0x2d11   :  { %v9133_v53 = vsub.f32 %v9126_v37, %v9132_v4  ;;  %v9222_v37 = vpop.permute.xlu0 %9221 }
0x2d13   :  { %v9134_v0 = vmul.f32 1.442695, %v9133_v53 }
0x2d15   :  { %15292 = vpow2.f32 %v9134_v0 }
0x2d1f   :  { %v15293_v59 = vpop.eup %15292 }
0x2d20   :  { %v9136_v63 = vsel %vm6308_vm7, %v15293_v59, 0.0 }
0x2d21   :  { %9137 = vadd.xlane.f32.xlu1 %v9136_v63 }
0x2d32   :  { %14945 = vrot.lane.b32.xlu1 %v16928_v51, %s15425_s28 }
0x2dae   :  { %v9138_v27 = vpop.xlane.xlu1 %9137 }
0x2daf   :  { %15294 = vrcp.f32 %v9138_v27 }
0x2db2   :  { %v14946_v28 = vpop.permute.xlu1 %14945 }
0x2db3   :  { %v14948_v19 = vunpack.i.h.bf16 %v14946_v28  ;;  %v14947_v45 = vunpack.i.l.bf16 %v14946_v28 }
0x2db5   :  { %v14621_v30 = vpack.c.bf16 %v14948_v19, %v14947_v45 }
0x2db7   :  { %14623 = vmatpush3.bf16.msk.msra.mxu0 %vm16848_vm9, %v14621_v30 }
0x2db8   :  { %14624 = vmatprep.subr.bf16.mxu0 %v15438_v55 }
0x2db9   :  { %v15295_v17 = vpop.eup %15294 }
0x2dba   :  { %v9140_v6 = vmul.f32 %v15295_v17, %v15293_v59 }
0x2dbc   :  { %14156 = vmatmul.mubr.msk.f32.vlgmr.msra.gmra.mrb[112].mxu0 %vm6308_vm7, %v9140_v6 }
0x2dbd   :  { %14162 = vmatprep.mubr.msk.f32.mxu0 %vm15423_vm1, %v15422_v8 }
0x2dc0   :  { %14627 = vmatpush3.bf16.xpose.msk.msra.mxu0 %vm16742_vm5, %v14625_v58 }
0x2dc1   :  { %14636 = vmatprep.subr.bf16.mxu0 %v15438_v55 }
0x2dc7   :  { %14163 = vmatmul.mubr.msk.f32.vlgmr.msra.gmra.mrb[114].mxu0 %vm242_vm2, %v9222_v37 }
0x2dc8   :  { %14183 = vmatprep.mubr.msk.f32.mxu0 %vm15423_vm1, %v15422_v8 }
0x2e8f   :  { %v17331_v41 = vpop.f32.mrb[112].mxu0 }
0x2e90   :  { %v14157_v13 = vpop.f32.mrb[113].mxu0 }
0x2e9a   :  { %v9299_v4 = vpop.f32.mrb[114].mxu0 }
0x2e9b   :  { %v14164_v53 = vpop.f32.mrb[115].mxu0  ;;  %v9303_v0 = vsel %vm6308_vm7, %v9299_v4, -inf }
0x2e9c   :  { %9304 = vmax.xlane.f32.xlu1 %v9303_v0 }
0x2ead   :  { %14960 = vrot.lane.b32.xlu1 %v16928_v51, %s18104_s29 }
0x2eb1   :  { %9394 = vrot.lane.b32.xlu1 %v17293_v7, %s18104_s29 }
0x2f29   :  { %v9305_v59 = vpop.xlane.xlu1 %9304 }
0x2f2a   :  { %v9306_v63 = vsub.f32 %v9299_v4, %v9305_v59 }
0x2f2c   :  { %v9307_v27 = vmul.f32 1.442695, %v9306_v63 }
0x2f2d   :  { %v14961_v29 = vpop.permute.xlu1 %14960 }
0x2f2e   :  { %15296 = vpow2.f32 %v9307_v27  ;;  %v14963_v58 = vunpack.i.h.bf16 %v14961_v29  ;;  %v14962_v37 = vunpack.i.l.bf16 %v14961_v29 }
0x2f30   :  { %v14633_v4 = vpack.c.bf16 %v14963_v58, %v14962_v37 }
0x2f31   :  { %v9395_v53 = vpop.permute.xlu1 %9394 }
0x2f38   :  { %v15297_v28 = vpop.eup %15296 }
0x2f39   :  { %v9309_v19 = vsel %vm6308_vm7, %v15297_v28, 0.0 }
0x2f3a   :  { %9310 = vadd.xlane.f32.xlu0 %v9309_v19 }
0x2f50   :  { %14955 = vrot.lane.b32.xlu0 %v16928_v51, %s18092_s2 }
0x2fc7   :  { %v9311_v45 = vpop.xlane.xlu0 %9310 }
0x2fc8   :  { %15298 = vrcp.f32 %v9311_v45 }
0x2fcb   :  { %v14956_v30 = vpop.permute.xlu0 %14955 }
0x2fcc   :  { %v14958_v49 = vunpack.i.h.bf16 %v14956_v30  ;;  %v14957_v17 = vunpack.i.l.bf16 %v14956_v30 }
0x2fce   :  { %v14629_v22 = vpack.c.bf16 %v14958_v49, %v14957_v17 }
0x2fd0   :  { %14631 = vmatpush3.bf16.msk.msra.mxu1 %vm16848_vm9, %v14629_v22 }
0x2fd1   :  { %14632 = vmatprep.subr.bf16.mxu1 %v15438_v55 }
0x2fd2   :  { %v15299_v6 = vpop.eup %15298 }
0x2fd3   :  { %v9313_v13 = vmul.f32 %v15299_v6, %v15297_v28 }
0x2fd5   :  { %14170 = vmatmul.mubr.msk.f32.vlgmr.msra.gmra.mrb[118].mxu1 %vm6308_vm7, %v9313_v13 }
0x2fd6   :  { %14176 = vmatprep.mubr.msk.f32.mxu1 %vm15423_vm1, %v15422_v8 }
0x2fd9   :  { %14635 = vmatpush3.bf16.xpose.msk.msra.mxu1 %vm16742_vm5, %v14633_v4 }
0x2fda   :  { %14644 = vmatprep.subr.bf16.mxu1 %v15438_v55 }
0x2fe0   :  { %14177 = vmatmul.mubr.msk.f32.vlgmr.msra.gmra.mrb[120].mxu1 %vm242_vm2, %v9395_v53 }
0x2fe1   :  { %14197 = vmatprep.mubr.msk.f32.mxu1 %vm15423_vm1, %v15422_v8 }
0x30a8   :  { %v17353_v0 = vpop.f32.mrb[118].mxu1 }
0x30a9   :  { %v14171_v59 = vpop.f32.mrb[119].mxu1 }
0x30b3   :  { %v9472_v63 = vpop.f32.mrb[120].mxu1 }
0x30b4   :  { %v14178_v27 = vpop.f32.mrb[121].mxu1  ;;  %v9476_v28 = vsel %vm6308_vm7, %v9472_v63, -inf }
0x30b5   :  { %9477 = vmax.xlane.f32.xlu0 %v9476_v28 }
0x30cb   :  { %14965 = vrot.lane.b32.xlu0 %v16928_v51, %s18107_s4 }
0x30cf   :  { %9567 = vrot.lane.b32.xlu0 %v17293_v7, %s18108_s25 }
0x3142   :  { %v9478_v19 = vpop.xlane.xlu0 %9477 }
0x3143   :  { %v9479_v45 = vsub.f32 %v9472_v63, %v9478_v19 }
0x3145   :  { %v9480_v30 = vmul.f32 1.442695, %v9479_v45 }
0x3146   :  { %v14966_v49 = vpop.permute.xlu0 %14965 }
0x3147   :  { %15300 = vpow2.f32 %v9480_v30  ;;  %v14968_v17 = vunpack.i.h.bf16 %v14966_v49  ;;  %v14967_v22 = vunpack.i.l.bf16 %v14966_v49 }
0x3149   :  { %v14637_v29 = vpack.c.bf16 %v14968_v17, %v14967_v22 }
0x314a   :  { %v9568_v27 = vpop.permute.xlu0 %9567 }
0x314b   :  { %14639 = vmatpush3.bf16.msk.msra.mxu0 %vm16848_vm9, %v14637_v29 }
0x314c   :  { %14640 = vmatprep.subr.bf16.mxu0 %v15438_v55 }
0x3151   :  { %v15301_v6 = vpop.eup %15300 }
0x3152   :  { %v9482_v58 = vsel %vm6308_vm7, %v15301_v6, 0.0 }
0x3153   :  { %9483 = vadd.xlane.f32.xlu1 %v9482_v58 }
0x3164   :  { %14970 = vrot.lane.b32.xlu1 %v16928_v51, %s18108_s25 }
0x31e0   :  { %v9484_v7 = vpop.xlane.xlu1 %9483 }
0x31e1   :  { %15302 = vrcp.f32 %v9484_v7  ;;  %v17385_v7 = vadd.f32 %v17197_v62, %v16812_v18 }
0x31e4   :  { %v14971_v37 = vpop.permute.xlu1 %14970 }
0x31e5   :  { %v14973_v13 = vunpack.i.h.bf16 %v14971_v37  ;;  %v14972_v4 = vunpack.i.l.bf16 %v14971_v37 }
0x31e7   :  { %v14641_v63 = vpack.c.bf16 %v14973_v13, %v14972_v4 }
0x31eb   :  { %v15303_v53 = vpop.eup %15302 }
0x31ec   :  { %v9486_v59 = vmul.f32 %v15303_v53, %v15301_v6 }
0x31ee   :  { %14184 = vmatmul.mubr.msk.f32.vlgmr.msra.gmra.mrb[116].mxu0 %vm6308_vm7, %v9486_v59 }
0x31ef   :  { %14643 = vmatpush3.bf16.xpose.msk.msra.mxu0 %vm16742_vm5, %v14641_v63  ;;  %14190 = vmatprep.mubr.msk.f32.mxu0 %vm15423_vm1, %v15422_v8 }
0x31f0   :  { %14652 = vmatprep.subr.bf16.mxu0 %v15438_v55 }
0x31f6   :  { %14191 = vmatmul.mubr.msk.f32.vlgmr.msra.gmra.mrb[118].mxu0 %vm242_vm2, %v9568_v27 }
0x31f7   :  { %14211 = vmatprep.mubr.msk.f32.mxu0 %vm15423_vm1, %v15422_v8 }
0x32c1   :  { %v17375_v28 = vpop.f32.mrb[116].mxu0 }
0x32c2   :  { %v14185_v19 = vpop.f32.mrb[117].mxu0 }
0x32c9   :  { %v9645_v45 = vpop.f32.mrb[118].mxu0 }
0x32ca   :  { %v14192_v30 = vpop.f32.mrb[119].mxu0  ;;  %v9649_v49 = vsel %vm6308_vm7, %v9645_v45, -inf }
0x32cb   :  { %9650 = vmax.xlane.f32.xlu1 %v9649_v49 }
0x3358   :  { %v9651_v17 = vpop.xlane.xlu1 %9650 }
0x3359   :  { %v9652_v22 = vsub.f32 %v9645_v45, %v9651_v17 }
0x335b   :  { %v9653_v29 = vmul.f32 1.442695, %v9652_v22 }
0x335d   :  { %15304 = vpow2.f32 %v9653_v29 }
0x3367   :  { %v15305_v6 = vpop.eup %15304 }
0x3368   :  { %v9655_v58 = vsel %vm6308_vm7, %v15305_v6, 0.0 }
0x3369   :  { %9656 = vadd.xlane.f32.xlu0 %v9655_v58 }
0x337f   :  { %14975 = vrot.lane.b32.xlu0 %v16928_v51, %s18109_s8 }
0x3383   :  { %14985 = vrot.lane.b32.xlu0 %v16947_v61, %s18103_s5 }
0x3387   :  { %9927 = vrot.lane.b32.xlu0 %v17385_v7, %s18103_s5 }
0x33f6   :  { %v9657_v37 = vpop.xlane.xlu0 %9656 }
0x33f7   :  { %15306 = vrcp.f32 %v9657_v37 }
0x33fa   :  { %v14976_v13 = vpop.permute.xlu0 %14975 }
0x33fb   :  { %v14978_v4 = vunpack.i.h.bf16 %v14976_v13  ;;  %v14977_v53 = vunpack.i.l.bf16 %v14976_v13 }
0x33fd   :  { %v14645_v59 = vpack.c.bf16 %v14978_v4, %v14977_v53 }
0x33fe   :  { %v14986_v13 = vpop.permute.xlu0 %14985 }
0x33ff   :  { %14647 = vmatpush3.bf16.msk.msra.mxu1 %vm16848_vm9, %v14645_v59  ;;  %v14988_v53 = vunpack.i.h.bf16 %v14986_v13  ;;  %v14987_v59 = vunpack.i.l.bf16 %v14986_v13 }
0x3400   :  { %14648 = vmatprep.subr.bf16.mxu1 %v15438_v55 }
0x3401   :  { %v15307_v51 = vpop.eup %15306 }
0x3402   :  { %v9659_v63 = vmul.f32 %v15307_v51, %v15305_v6 }
0x3404   :  { %14198 = vmatmul.mubr.msk.f32.vlgmr.msra.gmra.mrb[122].mxu1 %vm6308_vm7, %v9659_v63  ;;  %v14657_v63 = vpack.c.bf16 %v14988_v53, %v14987_v59 }
0x3405   :  { %14204 = vmatprep.mubr.msk.f32.mxu1 %vm15423_vm1, %v15422_v8 }
0x3408   :  { %14651 = vmatpush3.bf16.xpose.msk.msra.mxu1 %vm16742_vm5, %v14649_v3 }
0x3409   :  { %14660 = vmatprep.subr.bf16.mxu1 %v15438_v55 }
0x340f   :  { %14205 = vmatmul.mubr.msk.f32.vlgmr.msra.gmra.mrb[124].mxu1 %vm242_vm2, %v17385_v7 }
0x3410   :  { %14225 = vmatprep.mubr.msk.f32.mxu1 %vm15423_vm1, %v15422_v8 }
0x34d7   :  { %v17405_v18 = vpop.f32.mrb[122].mxu1 }
0x34d8   :  { %v14199_v27 = vpop.f32.mrb[123].mxu1 }
0x34d9   :  { %v9928_v27 = vpop.permute.xlu0 %9927 }
0x34e2   :  { %v9832_v19 = vpop.f32.mrb[124].mxu1 }
0x34e3   :  { %v14206_v45 = vpop.f32.mrb[125].mxu1  ;;  %v9836_v30 = vsel %vm6308_vm7, %v9832_v19, -inf }
0x34e4   :  { %9837 = vmax.xlane.f32.xlu1 %v9836_v30 }
0x3571   :  { %v9838_v47 = vpop.xlane.xlu1 %9837 }
0x3572   :  { %v9839_v56 = vsub.f32 %v9832_v19, %v9838_v47 }
0x3574   :  { %v9840_v49 = vmul.f32 1.442695, %v9839_v56 }
0x3576   :  { %15308 = vpow2.f32 %v9840_v49 }
0x3580   :  { %v15309_v3 = vpop.eup %15308 }
0x3581   :  { %v9842_v17 = vsel %vm6308_vm7, %v15309_v3, 0.0 }
0x3582   :  { %9843 = vadd.xlane.f32.xlu1 %v9842_v17 }
0x3593   :  { %14980 = vrot.lane.b32.xlu1 %v16947_v61, %s15425_s28 }
0x360f   :  { %v9844_v22 = vpop.xlane.xlu1 %9843 }
0x3610   :  { %15310 = vrcp.f32 %v9844_v22 }
0x3613   :  { %v14981_v29 = vpop.permute.xlu1 %14980 }
0x3614   :  { %v14983_v6 = vunpack.i.h.bf16 %v14981_v29  ;;  %v14982_v58 = vunpack.i.l.bf16 %v14981_v29 }
0x3616   :  { %v14653_v37 = vpack.c.bf16 %v14983_v6, %v14982_v58 }
0x3618   :  { %14655 = vmatpush3.bf16.msk.msra.mxu0 %vm16848_vm9, %v14653_v37 }
0x3619   :  { %14656 = vmatprep.subr.bf16.mxu0 %v15438_v55 }
0x361a   :  { %v15311_v4 = vpop.eup %15310 }
0x361b   :  { %v9846_v51 = vmul.f32 %v15311_v4, %v15309_v3 }
0x361d   :  { %14212 = vmatmul.mubr.msk.f32.vlgmr.msra.gmra.mrb[120].mxu0 %vm6308_vm7, %v9846_v51 }
0x361e   :  { %14218 = vmatprep.mubr.msk.f32.mxu0 %vm15423_vm1, %v15422_v8 }
0x3621   :  { %14659 = vmatpush3.bf16.xpose.msk.msra.mxu0 %vm16742_vm5, %v14657_v63 }
0x3622   :  { %14668 = vmatprep.subr.bf16.mxu0 %v15438_v55 }
0x3628   :  { %14219 = vmatmul.mubr.msk.f32.vlgmr.msra.gmra.mrb[122].mxu0 %vm242_vm2, %v9928_v27 }
0x3629   :  { %14239 = vmatprep.mubr.msk.f32.mxu0 %vm15423_vm1, %v15422_v8 }
0x36f0   :  { %v17423_v19 = vpop.f32.mrb[120].mxu0 }
0x36f1   :  { %v14213_v45 = vpop.f32.mrb[121].mxu0 }
0x36fb   :  { %v10005_v30 = vpop.f32.mrb[122].mxu0 }
0x36fc   :  { %v14220_v47 = vpop.f32.mrb[123].mxu0  ;;  %v10009_v56 = vsel %vm6308_vm7, %v10005_v30, -inf }
0x36fd   :  { %10010 = vmax.xlane.f32.xlu1 %v10009_v56 }
0x370e   :  { %14995 = vrot.lane.b32.xlu1 %v16947_v61, %s18104_s29 }
0x3712   :  { %10100 = vrot.lane.b32.xlu1 %v17385_v7, %s18104_s29 }
0x378a   :  { %v10011_v49 = vpop.xlane.xlu1 %10010 }
0x378b   :  { %v10012_v3 = vsub.f32 %v10005_v30, %v10011_v49 }
0x378d   :  { %v10013_v17 = vmul.f32 1.442695, %v10012_v3 }
0x378e   :  { %v14996_v53 = vpop.permute.xlu1 %14995 }
0x378f   :  { %15312 = vpow2.f32 %v10013_v17  ;;  %v14998_v51 = vunpack.i.h.bf16 %v14996_v53  ;;  %v14997_v63 = vunpack.i.l.bf16 %v14996_v53 }
0x3791   :  { %v14665_v45 = vpack.c.bf16 %v14998_v51, %v14997_v63 }
0x3792   :  { %v10101_v30 = vpop.permute.xlu1 %10100 }
0x3799   :  { %v15313_v22 = vpop.eup %15312 }
0x379a   :  { %v10015_v29 = vsel %vm6308_vm7, %v15313_v22, 0.0 }
0x379b   :  { %10016 = vadd.xlane.f32.xlu0 %v10015_v29 }
0x37b1   :  { %14990 = vrot.lane.b32.xlu0 %v16947_v61, %s18092_s2 }
0x3828   :  { %v10017_v6 = vpop.xlane.xlu0 %10016 }
0x3829   :  { %15314 = vrcp.f32 %v10017_v6 }
0x382c   :  { %v14991_v58 = vpop.permute.xlu0 %14990 }
0x382d   :  { %v14993_v37 = vunpack.i.h.bf16 %v14991_v58  ;;  %v14992_v13 = vunpack.i.l.bf16 %v14991_v58 }
0x382f   :  { %v14661_v4 = vpack.c.bf16 %v14993_v37, %v14992_v13 }
0x3831   :  { %14663 = vmatpush3.bf16.msk.msra.mxu1 %vm16848_vm9, %v14661_v4 }
0x3832   :  { %14664 = vmatprep.subr.bf16.mxu1 %v15438_v55 }
0x3833   :  { %v15315_v59 = vpop.eup %15314 }
0x3834   :  { %v10019_v27 = vmul.f32 %v15315_v59, %v15313_v22 }
0x3836   :  { %14226 = vmatmul.mubr.msk.f32.vlgmr.msra.gmra.mrb[126].mxu1 %vm6308_vm7, %v10019_v27 }
0x3837   :  { %14232 = vmatprep.mubr.msk.f32.mxu1 %vm15423_vm1, %v15422_v8 }
0x383a   :  { %14667 = vmatpush3.bf16.xpose.msk.msra.mxu1 %vm16742_vm5, %v14665_v45 }
0x383b   :  { %14676 = vmatprep.subr.bf16.mxu1 %v15438_v55 }
0x3841   :  { %14233 = vmatmul.mubr.msk.f32.vlgmr.msra.gmra.mrb[128].mxu1 %vm242_vm2, %v10101_v30 }
0x3842   :  { %14253 = vmatprep.mubr.msk.f32.mxu1 %vm15423_vm1, %v15422_v8 }
0x3909   :  { %v17445_v47 = vpop.f32.mrb[126].mxu1 }
0x390a   :  { %v14227_v56 = vpop.f32.mrb[127].mxu1 }
0x3914   :  { %v10178_v49 = vpop.f32.mrb[128].mxu1 }
0x3915   :  { %v14234_v3 = vpop.f32.mrb[129].mxu1  ;;  %v10182_v17 = vsel %vm6308_vm7, %v10178_v49, -inf }
0x3916   :  { %10183 = vmax.xlane.f32.xlu0 %v10182_v17 }
0x392c   :  { %15000 = vrot.lane.b32.xlu0 %v16947_v61, %s18107_s4 }
0x3930   :  { %10273 = vrot.lane.b32.xlu0 %v17385_v7, %s18108_s25 }
0x39a3   :  { %v10184_v22 = vpop.xlane.xlu0 %10183 }
0x39a4   :  { %v10185_v29 = vsub.f32 %v10178_v49, %v10184_v22 }
0x39a6   :  { %v10186_v6 = vmul.f32 1.442695, %v10185_v29 }
0x39a7   :  { %v15001_v58 = vpop.permute.xlu0 %15000 }
0x39a8   :  { %15316 = vpow2.f32 %v10186_v6  ;;  %v15003_v37 = vunpack.i.h.bf16 %v15001_v58  ;;  %v15002_v13 = vunpack.i.l.bf16 %v15001_v58 }
0x39aa   :  { %v14669_v4 = vpack.c.bf16 %v15003_v37, %v15002_v13 }
0x39ab   :  { %v10274_v49 = vpop.permute.xlu0 %10273 }
0x39ac   :  { %14671 = vmatpush3.bf16.msk.msra.mxu0 %vm16848_vm9, %v14669_v4 }
0x39ad   :  { %14672 = vmatprep.subr.bf16.mxu0 %v15438_v55 }
0x39b2   :  { %v15317_v53 = vpop.eup %15316 }
0x39b3   :  { %v10188_v59 = vsel %vm6308_vm7, %v15317_v53, 0.0 }
0x39b4   :  { %10189 = vadd.xlane.f32.xlu1 %v10188_v59  ;;  %v17477_v59 = vadd.f32 %v17197_v62, %v16818_v24 }
0x39c5   :  { %15005 = vrot.lane.b32.xlu1 %v16947_v61, %s18108_s25 }
0x3a41   :  { %v10190_v7 = vpop.xlane.xlu1 %10189 }
0x3a42   :  { %15318 = vrcp.f32 %v10190_v7 }
0x3a45   :  { %v15006_v51 = vpop.permute.xlu1 %15005 }
0x3a46   :  { %v15008_v63 = vunpack.i.h.bf16 %v15006_v51  ;;  %v15007_v27 = vunpack.i.l.bf16 %v15006_v51 }
0x3a48   :  { %v14673_v56 = vpack.c.bf16 %v15008_v63, %v15007_v27 }
0x3a4c   :  { %v15319_v45 = vpop.eup %15318 }
0x3a4d   :  { %v10192_v30 = vmul.f32 %v15319_v45, %v15317_v53 }
0x3a4f   :  { %14240 = vmatmul.mubr.msk.f32.vlgmr.msra.gmra.mrb[124].mxu0 %vm6308_vm7, %v10192_v30 }
0x3a50   :  { %14675 = vmatpush3.bf16.xpose.msk.msra.mxu0 %vm16742_vm5, %v14673_v56  ;;  %14246 = vmatprep.mubr.msk.f32.mxu0 %vm15423_vm1, %v15422_v8 }
0x3a51   :  { %14684 = vmatprep.subr.bf16.mxu0 %v15438_v55 }
0x3a57   :  { %14247 = vmatmul.mubr.msk.f32.vlgmr.msra.gmra.mrb[126].mxu0 %vm242_vm2, %v10274_v49 }
0x3a58   :  { %14267 = vmatprep.mubr.msk.f32.mxu0 %vm15423_vm1, %v15422_v8 }
0x3b22   :  { %v17467_v3 = vpop.f32.mrb[124].mxu0 }
0x3b23   :  { %v14241_v17 = vpop.f32.mrb[125].mxu0 }
0x3b2a   :  { %v10351_v22 = vpop.f32.mrb[126].mxu0 }
0x3b2b   :  { %v14248_v29 = vpop.f32.mrb[127].mxu0  ;;  %v10355_v6 = vsel %vm6308_vm7, %v10351_v22, -inf }
0x3b2c   :  { %10356 = vmax.xlane.f32.xlu1 %v10355_v6 }
0x3bb9   :  { %v10357_v58 = vpop.xlane.xlu1 %10356 }
0x3bba   :  { %v10358_v37 = vsub.f32 %v10351_v22, %v10357_v58 }
0x3bbc   :  { %v10359_v13 = vmul.f32 1.442695, %v10358_v37 }
0x3bbe   :  { %15320 = vpow2.f32 %v10359_v13 }
0x3bc8   :  { %v15321_v4 = vpop.eup %15320 }
0x3bc9   :  { %v10361_v53 = vsel %vm6308_vm7, %v15321_v4, 0.0 }
0x3bca   :  { %10362 = vadd.xlane.f32.xlu0 %v10361_v53 }
0x3be0   :  { %15010 = vrot.lane.b32.xlu0 %v16947_v61, %s18109_s8 }
0x3be4   :  { %15020 = vrot.lane.b32.xlu0 %v16953_v35, %s18103_s5 }
0x3be8   :  { %10631 = vrot.lane.b32.xlu0 %v17477_v59, %s18103_s5 }
0x3c57   :  { %v10363_v7 = vpop.xlane.xlu0 %10362 }
0x3c58   :  { %15322 = vrcp.f32 %v10363_v7 }
0x3c5b   :  { %v15011_v51 = vpop.permute.xlu0 %15010 }
0x3c5c   :  { %v15013_v63 = vunpack.i.h.bf16 %v15011_v51  ;;  %v15012_v27 = vunpack.i.l.bf16 %v15011_v51 }
0x3c5e   :  { %v14677_v45 = vpack.c.bf16 %v15013_v63, %v15012_v27 }
0x3c5f   :  { %v15021_v53 = vpop.permute.xlu0 %15020 }
0x3c60   :  { %14679 = vmatpush3.bf16.msk.msra.mxu1 %vm16848_vm9, %v14677_v45  ;;  %v15023_v51 = vunpack.i.h.bf16 %v15021_v53  ;;  %v15022_v63 = vunpack.i.l.bf16 %v15021_v53 }
0x3c61   :  { %14680 = vmatprep.subr.bf16.mxu1 %v15438_v55 }
0x3c62   :  { %v15323_v61 = vpop.eup %15322  ;;  %v14689_v45 = vpack.c.bf16 %v15023_v51, %v15022_v63 }
0x3c63   :  { %v10365_v30 = vmul.f32 %v15323_v61, %v15321_v4  ;;  %v10632_v61 = vpop.permute.xlu0 %10631 }
0x3c65   :  { %14254 = vmatmul.mubr.msk.f32.vlgmr.msra.gmra.mrb[130].mxu1 %vm6308_vm7, %v10365_v30 }
0x3c66   :  { %14260 = vmatprep.mubr.msk.f32.mxu1 %vm15423_vm1, %v15422_v8 }
0x3c69   :  { %14683 = vmatpush3.bf16.xpose.msk.msra.mxu1 %vm16742_vm5, %v14681_v23 }
0x3c6a   :  { %14692 = vmatprep.subr.bf16.mxu1 %v15438_v55 }
0x3c70   :  { %14261 = vmatmul.mubr.msk.f32.vlgmr.msra.gmra.mrb[132].mxu1 %vm242_vm2, %v17477_v59 }
0x3c71   :  { %14281 = vmatprep.mubr.msk.f32.mxu1 %vm15423_vm1, %v15422_v8 }
0x3d38   :  { %v17497_v24 = vpop.f32.mrb[130].mxu1 }
0x3d39   :  { %v14255_v62 = vpop.f32.mrb[131].mxu1 }
0x3d43   :  { %v10536_v56 = vpop.f32.mrb[132].mxu1 }
0x3d44   :  { %v14262_v49 = vpop.f32.mrb[133].mxu1  ;;  %v10540_v17 = vsel %vm6308_vm7, %v10536_v56, -inf }
0x3d45   :  { %10541 = vmax.xlane.f32.xlu1 %v10540_v17 }
0x3dd2   :  { %v10542_v57 = vpop.xlane.xlu1 %10541 }
0x3dd3   :  { %v10543_v1 = vsub.f32 %v10536_v56, %v10542_v57 }
0x3dd5   :  { %v10544_v22 = vmul.f32 1.442695, %v10543_v1 }
0x3dd7   :  { %15324 = vpow2.f32 %v10544_v22 }
0x3de1   :  { %v15325_v23 = vpop.eup %15324 }
0x3de2   :  { %v10546_v29 = vsel %vm6308_vm7, %v15325_v23, 0.0 }
0x3de3   :  { %10547 = vadd.xlane.f32.xlu1 %v10546_v29 }
0x3df4   :  { %15015 = vrot.lane.b32.xlu1 %v16953_v35, %s15425_s28 }
0x3e70   :  { %v10548_v6 = vpop.xlane.xlu1 %10547 }
0x3e71   :  { %15326 = vrcp.f32 %v10548_v6 }
0x3e74   :  { %v15016_v58 = vpop.permute.xlu1 %15015 }
0x3e75   :  { %v15018_v37 = vunpack.i.h.bf16 %v15016_v58  ;;  %v15017_v13 = vunpack.i.l.bf16 %v15016_v58 }
0x3e77   :  { %v14685_v4 = vpack.c.bf16 %v15018_v37, %v15017_v13 }
0x3e79   :  { %14687 = vmatpush3.bf16.msk.msra.mxu0 %vm16848_vm9, %v14685_v4 }
0x3e7a   :  { %14688 = vmatprep.subr.bf16.mxu0 %v15438_v55 }
0x3e7b   :  { %v15327_v7 = vpop.eup %15326 }
0x3e7c   :  { %v10550_v27 = vmul.f32 %v15327_v7, %v15325_v23 }
0x3e7e   :  { %14268 = vmatmul.mubr.msk.f32.vlgmr.msra.gmra.mrb[128].mxu0 %vm6308_vm7, %v10550_v27 }
0x3e7f   :  { %14274 = vmatprep.mubr.msk.f32.mxu0 %vm15423_vm1, %v15422_v8 }
0x3e82   :  { %14691 = vmatpush3.bf16.xpose.msk.msra.mxu0 %vm16742_vm5, %v14689_v45 }
0x3e83   :  { %14700 = vmatprep.subr.bf16.mxu0 %v15438_v55 }
0x3e89   :  { %14275 = vmatmul.mubr.msk.f32.vlgmr.msra.gmra.mrb[130].mxu0 %vm242_vm2, %v10632_v61 }
0x3e8a   :  { %14295 = vmatprep.mubr.msk.f32.mxu0 %vm15423_vm1, %v15422_v8 }
0x3f51   :  { %v17515_v30 = vpop.f32.mrb[128].mxu0 }
0x3f52   :  { %v14269_v62 = vpop.f32.mrb[129].mxu0 }
0x3f5c   :  { %v10709_v56 = vpop.f32.mrb[130].mxu0 }
0x3f5d   :  { %v14276_v49 = vpop.f32.mrb[131].mxu0  ;;  %v10713_v17 = vsel %vm6308_vm7, %v10709_v56, -inf }
0x3f5e   :  { %10714 = vmax.xlane.f32.xlu1 %v10713_v17 }
0x3f6f   :  { %15030 = vrot.lane.b32.xlu1 %v16953_v35, %s18104_s29 }
0x3f73   :  { %10804 = vrot.lane.b32.xlu1 %v17477_v59, %s18104_s29 }
0x3feb   :  { %v10715_v57 = vpop.xlane.xlu1 %10714 }
0x3fec   :  { %v10716_v1 = vsub.f32 %v10709_v56, %v10715_v57 }
0x3fee   :  { %v10717_v22 = vmul.f32 1.442695, %v10716_v1 }
0x3fef   :  { %v15031_v53 = vpop.permute.xlu1 %15030 }
0x3ff0   :  { %15328 = vpow2.f32 %v10717_v22  ;;  %v15033_v51 = vunpack.i.h.bf16 %v15031_v53  ;;  %v15032_v63 = vunpack.i.l.bf16 %v15031_v53 }
0x3ff2   :  { %v14697_v45 = vpack.c.bf16 %v15033_v51, %v15032_v63 }
0x3ff3   :  { %v10805_v61 = vpop.permute.xlu1 %10804 }
0x3ffa   :  { %v15329_v23 = vpop.eup %15328 }
0x3ffb   :  { %v10719_v29 = vsel %vm6308_vm7, %v15329_v23, 0.0 }
0x3ffc   :  { %10720 = vadd.xlane.f32.xlu0 %v10719_v29 }
0x4012   :  { %15025 = vrot.lane.b32.xlu0 %v16953_v35, %s18092_s2 }
0x4089   :  { %v10721_v6 = vpop.xlane.xlu0 %10720 }
0x408a   :  { %15330 = vrcp.f32 %v10721_v6 }
0x408d   :  { %v15026_v58 = vpop.permute.xlu0 %15025 }
0x408e   :  { %v15028_v37 = vunpack.i.h.bf16 %v15026_v58  ;;  %v15027_v13 = vunpack.i.l.bf16 %v15026_v58 }
0x4090   :  { %v14693_v4 = vpack.c.bf16 %v15028_v37, %v15027_v13 }
0x4092   :  { %14695 = vmatpush3.bf16.msk.msra.mxu1 %vm16848_vm9, %v14693_v4 }
0x4093   :  { %14696 = vmatprep.subr.bf16.mxu1 %v15438_v55 }
0x4094   :  { %v15331_v7 = vpop.eup %15330 }
0x4095   :  { %v10723_v27 = vmul.f32 %v15331_v7, %v15329_v23 }
0x4097   :  { %14282 = vmatmul.mubr.msk.f32.vlgmr.msra.gmra.mrb[134].mxu1 %vm6308_vm7, %v10723_v27 }
0x4098   :  { %14288 = vmatprep.mubr.msk.f32.mxu1 %vm15423_vm1, %v15422_v8 }
0x409b   :  { %14699 = vmatpush3.bf16.xpose.msk.msra.mxu1 %vm16742_vm5, %v14697_v45 }
0x409c   :  { %14708 = vmatprep.subr.bf16.mxu1 %v15438_v55 }
0x40a2   :  { %14289 = vmatmul.mubr.msk.f32.vlgmr.msra.gmra.mrb[136].mxu1 %vm242_vm2, %v10805_v61 }
0x40a3   :  { %14309 = vmatprep.mubr.msk.f32.mxu1 %vm15423_vm1, %v15422_v8 }
0x416a   :  { %v17537_v62 = vpop.f32.mrb[134].mxu1 }
0x416b   :  { %v14283_v56 = vpop.f32.mrb[135].mxu1 }
0x4175   :  { %v10882_v49 = vpop.f32.mrb[136].mxu1 }
0x4176   :  { %v14290_v17 = vpop.f32.mrb[137].mxu1  ;;  %v10886_v57 = vsel %vm6308_vm7, %v10882_v49, -inf }
0x4177   :  { %10887 = vmax.xlane.f32.xlu0 %v10886_v57 }
0x418d   :  { %15035 = vrot.lane.b32.xlu0 %v16953_v35, %s18107_s4 }
0x4191   :  { %10977 = vrot.lane.b32.xlu0 %v17477_v59, %s18108_s25 }
0x4204   :  { %v10888_v1 = vpop.xlane.xlu0 %10887 }
0x4205   :  { %v10889_v22 = vsub.f32 %v10882_v49, %v10888_v1 }
0x4207   :  { %v10890_v23 = vmul.f32 1.442695, %v10889_v22 }
0x4208   :  { %v15036_v29 = vpop.permute.xlu0 %15035 }
0x4209   :  { %15332 = vpow2.f32 %v10890_v23  ;;  %v15038_v6 = vunpack.i.h.bf16 %v15036_v29  ;;  %v15037_v58 = vunpack.i.l.bf16 %v15036_v29 }
0x420b   :  { %v14701_v37 = vpack.c.bf16 %v15038_v6, %v15037_v58 }
0x420c   :  { %v10978_v61 = vpop.permute.xlu0 %10977 }
0x420d   :  { %14703 = vmatpush3.bf16.msk.msra.mxu0 %vm16848_vm9, %v14701_v37  ;;  %v15397_v37 = vld [vmem:[%s18102_s30] ss:$0 sm:$0xff]  ;;  %s18113_s30 = smov 24  }
0x420e   :  { %14704 = vmatprep.subr.bf16.mxu0 %v15438_v55 }
0x4213   :  { %v15333_v13 = vpop.eup %15332 }
0x4214   :  { %v10892_v4 = vsel %vm6308_vm7, %v15333_v13, 0.0 }
0x4215   :  { %10893 = vadd.xlane.f32.xlu1 %v10892_v4 }
0x4226   :  { %15040 = vrot.lane.b32.xlu1 %v16953_v35, %s18108_s25 }
0x42a2   :  { %v10894_v59 = vpop.xlane.xlu1 %10893 }
0x42a3   :  { %15334 = vrcp.f32 %v10894_v59 }
0x42a6   :  { %v15041_v53 = vpop.permute.xlu1 %15040 }
0x42a7   :  { %v15043_v7 = vunpack.i.h.bf16 %v15041_v53  ;;  %v15042_v51 = vunpack.i.l.bf16 %v15041_v53 }
0x42a9   :  { %v14705_v45 = vpack.c.bf16 %v15043_v7, %v15042_v51 }
0x42ad   :  { %v15335_v63 = vpop.eup %15334 }
0x42ae   :  { %v10896_v27 = vmul.f32 %v15335_v63, %v15333_v13  ;;  %v17571_v13 = vadd.f32 %v15397_v37, %v16816_v43  ;;  %v18110_v43 = vpack.c.bf16 %v16939_v39, %v16960_v38 }
0x42b0   :  { %14296 = vmatmul.mubr.msk.f32.vlgmr.msra.gmra.mrb[132].mxu0 %vm6308_vm7, %v10896_v27 }
0x42b1   :  { %14707 = vmatpush3.bf16.xpose.msk.msra.mxu0 %vm16742_vm5, %v14705_v45  ;;  %14302 = vmatprep.mubr.msk.f32.mxu0 %vm15423_vm1, %v15422_v8 }
0x42b2   :  { %14716 = vmatprep.subr.bf16.mxu0 %v15438_v55 }
0x42b8   :  { %14303 = vmatmul.mubr.msk.f32.vlgmr.msra.gmra.mrb[134].mxu0 %vm242_vm2, %v10978_v61 }
0x42b9   :  { %14323 = vmatprep.mubr.msk.f32.mxu0 %vm15423_vm1, %v15422_v8 }
0x4383   :  { %v17559_v56 = vpop.f32.mrb[132].mxu0 }
0x4384   :  { %v14297_v49 = vpop.f32.mrb[133].mxu0 }
0x438b   :  { %v11055_v17 = vpop.f32.mrb[134].mxu0 }
0x438c   :  { %v14304_v57 = vpop.f32.mrb[135].mxu0  ;;  %v11059_v1 = vsel %vm6308_vm7, %v11055_v17, -inf }
0x438d   :  { %11060 = vmax.xlane.f32.xlu1 %v11059_v1 }
0x441a   :  { %v11061_v22 = vpop.xlane.xlu1 %11060 }
0x441b   :  { %v11062_v23 = vsub.f32 %v11055_v17, %v11061_v22 }
0x441d   :  { %v11063_v29 = vmul.f32 1.442695, %v11062_v23 }
0x441f   :  { %15336 = vpow2.f32 %v11063_v29 }
0x4429   :  { %v15337_v6 = vpop.eup %15336 }
0x442a   :  { %v11065_v58 = vsel %vm6308_vm7, %v15337_v6, 0.0 }
0x442b   :  { %11066 = vadd.xlane.f32.xlu0 %v11065_v58 }
0x4441   :  { %15045 = vrot.lane.b32.xlu0 %v16953_v35, %s18109_s8 }
0x4445   :  { %15055 = vrot.lane.b32.xlu0 %v16964_v26, %s18103_s5 }
0x4449   :  { %11337 = vrot.lane.b32.xlu0 %v17571_v13, %s18103_s5 }
0x44b8   :  { %v11067_v4 = vpop.xlane.xlu0 %11066 }
0x44b9   :  { %15338 = vrcp.f32 %v11067_v4 }
0x44bc   :  { %v15046_v59 = vpop.permute.xlu0 %15045 }
0x44bd   :  { %v15048_v53 = vunpack.i.h.bf16 %v15046_v59  ;;  %v15047_v7 = vunpack.i.l.bf16 %v15046_v59 }
0x44bf   :  { %v14709_v51 = vpack.c.bf16 %v15048_v53, %v15047_v7 }
0x44c0   :  { %v15056_v4 = vpop.permute.xlu0 %15055 }
0x44c1   :  { %14711 = vmatpush3.bf16.msk.msra.mxu1 %vm16848_vm9, %v14709_v51  ;;  %v15058_v53 = vunpack.i.h.bf16 %v15056_v4  ;;  %v15057_v7 = vunpack.i.l.bf16 %v15056_v4 }
0x44c2   :  { %14712 = vmatprep.subr.bf16.mxu1 %v15438_v55 }
0x44c3   :  { %v15339_v35 = vpop.eup %15338 }
0x44c4   :  { %v11069_v63 = vmul.f32 %v15339_v35, %v15337_v6  ;;  %v14721_v35 = vpack.c.bf16 %v15058_v53, %v15057_v7 }
0x44c6   :  { %14310 = vmatmul.mubr.msk.f32.vlgmr.msra.gmra.mrb[138].mxu1 %vm6308_vm7, %v11069_v63  ;;  %v11338_v63 = vpop.permute.xlu0 %11337 }
0x44c7   :  { %14316 = vmatprep.mubr.msk.f32.mxu1 %vm15423_vm1, %v15422_v8 }
0x44ca   :  { %14715 = vmatpush3.bf16.xpose.msk.msra.mxu1 %vm16742_vm5, %v18110_v43 }
0x44cb   :  { %14724 = vmatprep.subr.bf16.mxu1 %v15438_v55 }
0x44d1   :  { %14317 = vmatmul.mubr.msk.f32.vlgmr.msra.gmra.mrb[140].mxu1 %vm242_vm2, %v17571_v13 }
0x44d2   :  { %14337 = vmatprep.mubr.msk.f32.mxu1 %vm15423_vm1, %v15422_v8 }
0x4599   :  { %v17591_v27 = vpop.f32.mrb[138].mxu1 }
0x459a   :  { %v14311_v45 = vpop.f32.mrb[139].mxu1 }
0x45a4   :  { %v11242_v61 = vpop.f32.mrb[140].mxu1 }
0x45a5   :  { %v14318_v49 = vpop.f32.mrb[141].mxu1  ;;  %v11246_v17 = vsel %vm6308_vm7, %v11242_v61, -inf }
0x45a6   :  { %11247 = vmax.xlane.f32.xlu1 %v11246_v17 }
0x4633   :  { %v11248_v39 = vpop.xlane.xlu1 %11247 }
0x4634   :  { %v11249_v38 = vsub.f32 %v11242_v61, %v11248_v39 }
0x4636   :  { %v11250_v57 = vmul.f32 1.442695, %v11249_v38 }
0x4638   :  { %15340 = vpow2.f32 %v11250_v57 }
0x4642   :  { %v15341_v1 = vpop.eup %15340 }
0x4643   :  { %v11252_v22 = vsel %vm6308_vm7, %v15341_v1, 0.0 }
0x4644   :  { %11253 = vadd.xlane.f32.xlu1 %v11252_v22 }
0x4655   :  { %15050 = vrot.lane.b32.xlu1 %v16964_v26, %s15425_s28  ;;  %s18111_s28 = smov 8  }
0x46d1   :  { %v11254_v23 = vpop.xlane.xlu1 %11253 }
0x46d2   :  { %15342 = vrcp.f32 %v11254_v23 }
0x46d5   :  { %v15051_v29 = vpop.permute.xlu1 %15050 }
0x46d6   :  { %v15053_v6 = vunpack.i.h.bf16 %v15051_v29  ;;  %v15052_v58 = vunpack.i.l.bf16 %v15051_v29 }
0x46d8   :  { %v14717_v37 = vpack.c.bf16 %v15053_v6, %v15052_v58 }
0x46da   :  { %14719 = vmatpush3.bf16.msk.msra.mxu0 %vm16848_vm9, %v14717_v37 }
0x46db   :  { %14720 = vmatprep.subr.bf16.mxu0 %v15438_v55 }
0x46dc   :  { %v15343_v59 = vpop.eup %15342 }
0x46dd   :  { %v11256_v51 = vmul.f32 %v15343_v59, %v15341_v1 }
0x46df   :  { %14324 = vmatmul.mubr.msk.f32.vlgmr.msra.gmra.mrb[136].mxu0 %vm6308_vm7, %v11256_v51 }
0x46e0   :  { %14330 = vmatprep.mubr.msk.f32.mxu0 %vm15423_vm1, %v15422_v8 }
0x46e3   :  { %14723 = vmatpush3.bf16.xpose.msk.msra.mxu0 %vm16742_vm5, %v14721_v35 }
0x46e4   :  { %14732 = vmatprep.subr.bf16.mxu0 %v15438_v55 }
0x46ea   :  { %14331 = vmatmul.mubr.msk.f32.vlgmr.msra.gmra.mrb[138].mxu0 %vm242_vm2, %v11338_v63 }
0x46eb   :  { %14351 = vmatprep.mubr.msk.f32.mxu0 %vm15423_vm1, %v15422_v8 }
0x47b2   :  { %v17609_v43 = vpop.f32.mrb[136].mxu0 }
0x47b3   :  { %v14325_v45 = vpop.f32.mrb[137].mxu0 }
0x47bd   :  { %v11415_v61 = vpop.f32.mrb[138].mxu0 }
0x47be   :  { %v14332_v49 = vpop.f32.mrb[139].mxu0  ;;  %v11419_v17 = vsel %vm6308_vm7, %v11415_v61, -inf }
0x47bf   :  { %11420 = vmax.xlane.f32.xlu1 %v11419_v17 }
0x47d0   :  { %15065 = vrot.lane.b32.xlu1 %v16964_v26, %s18104_s29 }
0x47d4   :  { %11510 = vrot.lane.b32.xlu1 %v17571_v13, %s18104_s29 }
0x484c   :  { %v11421_v39 = vpop.xlane.xlu1 %11420 }
0x484d   :  { %v11422_v38 = vsub.f32 %v11415_v61, %v11421_v39 }
0x484f   :  { %v11423_v57 = vmul.f32 1.442695, %v11422_v38 }
0x4850   :  { %v15066_v4 = vpop.permute.xlu1 %15065 }
0x4851   :  { %15344 = vpow2.f32 %v11423_v57  ;;  %v15068_v53 = vunpack.i.h.bf16 %v15066_v4  ;;  %v15067_v7 = vunpack.i.l.bf16 %v15066_v4 }
0x4853   :  { %v14729_v35 = vpack.c.bf16 %v15068_v53, %v15067_v7 }
0x4854   :  { %v11511_v63 = vpop.permute.xlu1 %11510 }
0x485b   :  { %v15345_v1 = vpop.eup %15344 }
0x485c   :  { %v11425_v22 = vsel %vm6308_vm7, %v15345_v1, 0.0 }
0x485d   :  { %11426 = vadd.xlane.f32.xlu0 %v11425_v22 }
0x4873   :  { %15060 = vrot.lane.b32.xlu0 %v16964_v26, %s18092_s2  ;;  %s18112_s2 = smov 16  }
0x48ea   :  { %v11427_v23 = vpop.xlane.xlu0 %11426 }
0x48eb   :  { %15346 = vrcp.f32 %v11427_v23 }
0x48ee   :  { %v15061_v29 = vpop.permute.xlu0 %15060 }
0x48ef   :  { %v15063_v6 = vunpack.i.h.bf16 %v15061_v29  ;;  %v15062_v58 = vunpack.i.l.bf16 %v15061_v29 }
0x48f1   :  { %v14725_v37 = vpack.c.bf16 %v15063_v6, %v15062_v58 }
0x48f3   :  { %14727 = vmatpush3.bf16.msk.msra.mxu1 %vm16848_vm9, %v14725_v37 }
0x48f4   :  { %14728 = vmatprep.subr.bf16.mxu1 %v15438_v55 }
0x48f5   :  { %v15347_v59 = vpop.eup %15346 }
0x48f6   :  { %v11429_v51 = vmul.f32 %v15347_v59, %v15345_v1 }
0x48f8   :  { %14338 = vmatmul.mubr.msk.f32.vlgmr.msra.gmra.mrb[142].mxu1 %vm6308_vm7, %v11429_v51 }
0x48f9   :  { %14344 = vmatprep.mubr.msk.f32.mxu1 %vm15423_vm1, %v15422_v8 }
0x48fc   :  { %14731 = vmatpush3.bf16.xpose.msk.msra.mxu1 %vm16742_vm5, %v14729_v35 }
0x48fd   :  { %14740 = vmatprep.subr.bf16.mxu1 %v15438_v55 }
0x4903   :  { %14345 = vmatmul.mubr.msk.f32.vlgmr.msra.gmra.mrb[144].mxu1 %vm242_vm2, %v11511_v63 }
0x4904   :  { %14365 = vmatprep.mubr.msk.f32.mxu1 %vm15423_vm1, %v15422_v8 }
0x49cb   :  { %v17631_v45 = vpop.f32.mrb[142].mxu1 }
0x49cc   :  { %v14339_v61 = vpop.f32.mrb[143].mxu1 }
0x49d6   :  { %v11588_v49 = vpop.f32.mrb[144].mxu1 }
0x49d7   :  { %v14346_v17 = vpop.f32.mrb[145].mxu1  ;;  %v11592_v39 = vsel %vm6308_vm7, %v11588_v49, -inf }
0x49d8   :  { %11593 = vmax.xlane.f32.xlu0 %v11592_v39 }
0x49ee   :  { %15070 = vrot.lane.b32.xlu0 %v16964_v26, %s18107_s4 }
0x49f2   :  { %11683 = vrot.lane.b32.xlu0 %v17571_v13, %s18108_s25 }
0x4a65   :  { %v11594_v38 = vpop.xlane.xlu0 %11593 }
0x4a66   :  { %v11595_v57 = vsub.f32 %v11588_v49, %v11594_v38 }
0x4a68   :  { %v11596_v1 = vmul.f32 1.442695, %v11595_v57 }
0x4a69   :  { %v15071_v22 = vpop.permute.xlu0 %15070 }
0x4a6a   :  { %15348 = vpow2.f32 %v11596_v1  ;;  %v15073_v23 = vunpack.i.h.bf16 %v15071_v22  ;;  %v15072_v29 = vunpack.i.l.bf16 %v15071_v22 }
0x4a6c   :  { %v14733_v6 = vpack.c.bf16 %v15073_v23, %v15072_v29 }
0x4a6e   :  { %14735 = vmatpush3.bf16.msk.msra.mxu0 %vm16848_vm9, %v14733_v6 }
0x4a6f   :  { %14736 = vmatprep.subr.bf16.mxu0 %v15438_v55  ;;  %v11684_v55 = vpop.permute.xlu0 %11683 }
0x4a74   :  { %v15349_v58 = vpop.eup %15348 }
0x4a75   :  { %v11598_v37 = vsel %vm6308_vm7, %v15349_v58, 0.0 }
0x4a76   :  { %11599 = vadd.xlane.f32.xlu1 %v11598_v37 }
0x4a87   :  { %15075 = vrot.lane.b32.xlu1 %v16964_v26, %s18108_s25 }
0x4b03   :  { %v11600_v13 = vpop.xlane.xlu1 %11599 }
0x4b04   :  { %15350 = vrcp.f32 %v11600_v13 }
0x4b07   :  { %v15076_v4 = vpop.permute.xlu1 %15075 }
0x4b08   :  { %v15078_v59 = vunpack.i.h.bf16 %v15076_v4  ;;  %v15077_v53 = vunpack.i.l.bf16 %v15076_v4 }
0x4b0a   :  { %v14737_v35 = vpack.c.bf16 %v15078_v59, %v15077_v53 }
0x4b0e   :  { %v15351_v7 = vpop.eup %15350 }
0x4b0f   :  { %v11602_v51 = vmul.f32 %v15351_v7, %v15349_v58 }
0x4b11   :  { %14352 = vmatmul.mubr.msk.f32.vlgmr.msra.gmra.mrb[140].mxu0 %vm6308_vm7, %v11602_v51 }
0x4b12   :  { %14739 = vmatpush3.bf16.xpose.msk.msra.mxu0 %vm16742_vm5, %v14737_v35  ;;  %14358 = vmatprep.mubr.msk.f32.mxu0 %vm15423_vm1, %v15422_v8 }
0x4b19   :  { %14359 = vmatmul.mubr.msk.f32.vlgmr.msra.gmra.mrb[142].mxu0 %vm242_vm2, %v11684_v55 }
0x4be4   :  { %v11679_v63 = vpop.f32.mrb[140].mxu0 }
0x4be5   :  { %v14353_v61 = vpop.f32.mrb[141].mxu0 }
0x4bec   :  { %v11761_v49 = vpop.f32.mrb[142].mxu0 }
0x4bed   :  { %v14360_v17 = vpop.f32.mrb[143].mxu0  ;;  %v11765_v39 = vsel %vm6308_vm7, %v11761_v49, -inf }
0x4bee   :  { %11766 = vmax.xlane.f32.xlu1 %v11765_v39 }
0x4bff   :  { %6921 = vrot.lane.b32.xlu1 %v17000_v50, %s18111_s28 }
0x4c03   :  { %6925 = vrot.lane.b32.xlu1 %v17002_v40, %s18112_s2 }
0x4c07   :  { %6929 = vrot.lane.b32.xlu1 %v17032_v33, %s18113_s30 }
0x4c0b   :  { %7635 = vrot.lane.b32.xlu1 %v17124_v34, %s18113_s30 }
0x4c0f   :  { %8335 = vrot.lane.b32.xlu1 %v17186_v54, %s18112_s2 }
0x4c13   :  { %8339 = vrot.lane.b32.xlu1 %v17221_v36, %s18113_s30  ;;  %v11871_v36 = vld [vmem:[%s18036_s10] sm:$0xff] }
0x4c17   :  { %9045 = vrot.lane.b32.xlu1 %v17313_v46, %s18113_s30 }
0x4c1b   :  { %9745 = vrot.lane.b32.xlu1 %v17375_v28, %s18112_s2 }
0x4c1f   :  { %9749 = vrot.lane.b32.xlu1 %v17405_v18, %s18113_s30 }
0x4c23   :  { %10455 = vrot.lane.b32.xlu1 %v17497_v24, %s18113_s30  ;;  %v11873_v24 = vld [vmem:[%s18036_s10 + $0x10] sm:$0xff] }
0x4c27   :  { %11155 = vrot.lane.b32.xlu1 %v17559_v56, %s18112_s2 }
0x4c2b   :  { %11159 = vrot.lane.b32.xlu1 %v17591_v27, %s18113_s30 }
0x4c7b   :  { %v11767_v8 = vpop.xlane.xlu1 %11766 }
0x4c7c   :  { %v11768_v31 = vsub.f32 %v11761_v49, %v11767_v8 }
0x4c7e   :  { %v11769_v50 = vmul.f32 1.442695, %v11768_v31 }
0x4c80   :  { %15352 = vpow2.f32 %v11769_v50 }
0x4c8a   :  { %v15353_v40 = vpop.eup %15352 }
0x4c8b   :  { %v11771_v33 = vsel %vm6308_vm7, %v15353_v40, 0.0 }
0x4c8c   :  { %11772 = vadd.xlane.f32.xlu0 %v11771_v33 }
0x4ca2   :  { %15080 = vrot.lane.b32.xlu0 %v16964_v26, %s18109_s8  ;;  %v6922_v26 = vpop.permute.xlu1 %6921 }
0x4ca3   :  { %v6932_v27 = vsel %vm242_vm2, %v16969_v10, %v6922_v26 }
0x4ca6   :  { %7627 = vrot.lane.b32.xlu0 %v17072_v44, %s18111_s28  ;;  %v6926_v44 = vpop.permute.xlu1 %6925 }
0x4ca7   :  { %v6933_v52 = vsel %vm912_vm3, %v6932_v27, %v6926_v44 }
0x4caa   :  { %7631 = vrot.lane.b32.xlu0 %v17094_v9, %s18112_s2  ;;  %v6930_v9 = vpop.permute.xlu1 %6929 }
0x4cab   :  { %v6934_v22 = vsel %vm914_vm4, %v6933_v52, %v6930_v9 }
0x4cae   :  { %8331 = vrot.lane.b32.xlu0 %v17164_v5, %s18111_s28  ;;  %v7636_v34 = vpop.permute.xlu1 %7635 }
0x4cb2   :  { %9037 = vrot.lane.b32.xlu0 %v17261_v21, %s18111_s28  ;;  %v8336_v5 = vpop.permute.xlu1 %8335  ;;  %v11872_v21 = vld [vmem:[%s18036_s10 + $0x8] sm:$0xff] }
0x4cb3   :  { %v14744_v18 = vpack.c.bf16 %v11872_v21, %v11871_v36 }
0x4cb6   :  { %9041 = vrot.lane.b32.xlu0 %v17283_v48, %s18112_s2  ;;  %v8340_v28 = vpop.permute.xlu1 %8339 }
0x4cba   :  { %9741 = vrot.lane.b32.xlu0 %v17353_v0, %s18111_s28 }
0x4cbe   :  { %10447 = vrot.lane.b32.xlu0 %v17445_v47, %s18111_s28 }
0x4cc2   :  { %10451 = vrot.lane.b32.xlu0 %v17467_v3, %s18112_s2 }
0x4cc6   :  { %11151 = vrot.lane.b32.xlu0 %v17537_v62, %s18111_s28  ;;  %v11874_v62 = vld [vmem:[%s18036_s10 + $0x18] sm:$0xff] }
0x4cc7   :  { %v14748_v1 = vpack.c.bf16 %v11874_v62, %v11873_v24 }
0x4cca   :  { %11857 = vrot.lane.b32.xlu0 %v17631_v45, %s18111_s28  ;;  %v9046_v45 = vpop.permute.xlu1 %9045 }
0x4cce   :  { %11861 = vrot.lane.b32.xlu0 %v11679_v63, %s18112_s2  ;;  %v9746_v6 = vpop.permute.xlu1 %9745 }
0x4cd2   :  { %v9750_v53 = vpop.permute.xlu1 %9749 }
0x4cd6   :  { %v10456_v63 = vpop.permute.xlu1 %10455 }
0x4d19   :  { %v11773_v54 = vpop.xlane.xlu0 %11772 }
0x4d1a   :  { %15354 = vrcp.f32 %v11773_v54 }
0x4d1d   :  { %v15081_v48 = vpop.permute.xlu0 %15080 }
0x4d1e   :  { %v15083_v46 = vunpack.i.h.bf16 %v15081_v48  ;;  %v15082_v0 = vunpack.i.l.bf16 %v15081_v48 }
0x4d20   :  { %v14741_v47 = vpack.c.bf16 %v15083_v46, %v15082_v0 }
0x4d21   :  { %v7628_v3 = vpop.permute.xlu0 %7627 }
0x4d22   :  { %14743 = vmatpush3.bf16.msk.msra.mxu1 %vm16848_vm9, %v14741_v47  ;;  %v7638_v29 = vsel %vm242_vm2, %v17050_v11, %v7628_v3 }
0x4d23   :  { %14745 = vmatprep.subr.bf16.mxu1 %v14744_v18 }
0x4d24   :  { %v15355_v56 = vpop.eup %15354 }
0x4d25   :  { %v11775_v38 = vmul.f32 %v15355_v56, %v15353_v40  ;;  %v7632_v57 = vpop.permute.xlu0 %7631 }
0x4d26   :  { %v7639_v58 = vsel %vm912_vm3, %v7638_v29, %v7632_v57 }
0x4d27   :  { %14366 = vmatmul.mubr.msk.f32.vlgmr.msra.gmra.mrb[146].mxu1 %vm6308_vm7, %v11775_v38  ;;  %v7640_v4 = vsel %vm914_vm4, %v7639_v58, %v7636_v34  ;;  %v13050_v34 = vld [vmem:[%s18037_s11] ss:$0 sm:$0xff] }
0x4d28   :  { %14747 = vmatpush3.bf16.msra.mxu1 %v14744_v18  ;;  %14376 = vmatprep.mubr.msk.f32.mxu1 %vm109_vm0, %v6934_v22 }
0x4d29   :  { %v8332_v23 = vpop.permute.xlu0 %8331  ;;  %14749 = vmatprep.subr.bf16.mxu1 %v14748_v1 }
0x4d2a   :  { %v8342_v10 = vsel %vm242_vm2, %v17142_v2, %v8332_v23 }
0x4d2b   :  { %v8343_v37 = vsel %vm912_vm3, %v8342_v10, %v8336_v5 }
0x4d2c   :  { %14751 = vmatpush3.bf16.msra.mxu1 %v14748_v1  ;;  %v8344_v59 = vsel %vm914_vm4, %v8343_v37, %v8340_v28 }
0x4d2d   :  { %v9038_v13 = vpop.permute.xlu0 %9037 }
0x4d2e   :  { %v9048_v11 = vsel %vm242_vm2, %v17239_v15, %v9038_v13  ;;  %v11156_v15 = vpop.permute.xlu1 %11155 }
0x4d2f   :  { %14377 = vmatmul.mubr.msk.f32.vlgmr.msra.gmra.mrb[148].mxu1 %vm109_vm0, %v7640_v4 }
0x4d30   :  { %14379 = vmatprep.mubr.msk.f32.mxu1 %vm109_vm0, %v8344_v59 }
0x4d31   :  { %v9042_v2 = vpop.permute.xlu0 %9041 }
0x4d32   :  { %v9049_v7 = vsel %vm912_vm3, %v9048_v11, %v9042_v2  ;;  %v11160_v33 = vpop.permute.xlu1 %11159 }
0x4d33   :  { %v9050_v51 = vsel %vm914_vm4, %v9049_v7, %v9046_v45 }
0x4d34   :  { %14380 = vmatmul.mubr.msk.f32.gmra.mrb[150].mxu1 %vm109_vm0, %v9050_v51 }
0x4d35   :  { %v9742_v35 = vpop.permute.xlu0 %9741 }
0x4d36   :  { %v9752_v55 = vsel %vm242_vm2, %v17331_v41, %v9742_v35 }
0x4d37   :  { %v9753_v61 = vsel %vm912_vm3, %v9752_v55, %v9746_v6 }
0x4d38   :  { %v9754_v49 = vsel %vm914_vm4, %v9753_v61, %v9750_v53 }
0x4d39   :  { %v10448_v17 = vpop.permute.xlu0 %10447  ;;  %14382 = vmatprep.mubr.msk.f32.mxu1 %vm109_vm0, %v9754_v49 }
0x4d3a   :  { %v10458_v39 = vsel %vm242_vm2, %v17423_v19, %v10448_v17 }
0x4d3d   :  { %v10452_v8 = vpop.permute.xlu0 %10451 }
0x4d3e   :  { %v10459_v31 = vsel %vm912_vm3, %v10458_v39, %v10452_v8 }
0x4d3f   :  { %v10460_v50 = vsel %vm914_vm4, %v10459_v31, %v10456_v63 }
0x4d40   :  { %14383 = vmatmul.mubr.msk.f32.gmra.mrb[152].mxu1 %vm109_vm0, %v10460_v50 }
0x4d41   :  { %v11152_v41 = vpop.permute.xlu0 %11151 }
0x4d42   :  { %v11162_v40 = vsel %vm242_vm2, %v17515_v30, %v11152_v41 }
0x4d43   :  { %v11163_v26 = vsel %vm912_vm3, %v11162_v40, %v11156_v15 }
0x4d44   :  { %v11164_v44 = vsel %vm914_vm4, %v11163_v26, %v11160_v33 }
0x4d45   :  { %14385 = vmatprep.mubr.msk.f32.mxu1 %vm109_vm0, %v11164_v44  ;;  %v11858_v22 = vpop.permute.xlu0 %11857 }
0x4d46   :  { %v11868_v29 = vsel %vm242_vm2, %v17609_v43, %v11858_v22 }
0x4d49   :  { %v11862_v23 = vpop.permute.xlu0 %11861 }
0x4dfa   :  { %v11852_v9 = vpop.f32.mrb[146].mxu1 }
0x4dfb   :  { %11865 = vrot.lane.b32.xlu1 %v11852_v9, %s18113_s30  ;;  %v14367_v19 = vpop.f32.mrb[147].mxu1 }
0x4e02   :  { %v14378_v5 = vpop.f32.mrb[148].mxu1 }
0x4e03   :  { %v11972_v54 = vpop.f32.mrb[149].mxu1  ;;  %v11978_v27 = vadd.f32 %v14378_v5, %v13050_v34 }
0x4e04   :  { %v11973_v36 = vadd.f32 %v13050_v34, %v11972_v54 }
0x4e05   :  { %v12012_v57 = vadd.f32 %v11978_v27, %v16690_v20 }
0x4e06   :  { %v12011_v30 = vadd.f32 %v11973_v36, %v16684_v12 }
0x4e07   :  { %v14381_v21 = vpop.f32.mrb[150].mxu1  ;;  %v12022_v1 = vsel %vm109_vm0, %v12012_v57, 0.0 }
0x4e08   :  { %v11982_v48 = vpop.f32.mrb[151].mxu1  ;;  %v12019_v46 = vsel %vm109_vm0, %v12011_v30, 0.0  ;;  %v11988_v0 = vadd.f32 %v14381_v21, %v13050_v34  ;;  %v12153_v21 = vld [vmem:[%s18038_s12] sm:$0xff] }
0x4e09   :  { %v11983_v28 = vadd.f32 %v13050_v34, %v11982_v48  ;;  %12020 = vadd.xlane.f32.xlu0 %v12019_v46  ;;  %v12154_v48 = vld [vmem:[%s18038_s12 + $0x8] sm:$0xff] }
0x4e0a   :  { %v12014_v47 = vadd.f32 %v11988_v0, %v16723_v16  ;;  %v14752_v46 = vpack.c.bf16 %v12154_v48, %v12153_v21  ;;  %v12155_v0 = vld [vmem:[%s18038_s12 + $0x10] sm:$0xff]  ;;  %v12304_v21 = vld [vmem:[%s18040_s14 + $0x18] sm:$0xff] }
0x4e0b   :  { %v12013_v18 = vadd.f32 %v11983_v28, %v16720_v14  ;;  %v12156_v28 = vld [vmem:[%s18038_s12 + $0x18] sm:$0xff] }
0x4e0c   :  { %v12028_v24 = vsel %vm109_vm0, %v12014_v47, 0.0  ;;  %14753 = vmatprep.subr.bf16.mxu0 %v14752_v46 }
0x4e0d   :  { %v12025_v3 = vsel %vm109_vm0, %v12013_v18, 0.0  ;;  %14755 = vmatpush3.bf16.msra.mxu0 %v14752_v46  ;;  %v12305_v46 = vld [vmem:[%s18040_s14 + $0x20] sm:$0xff] }
0x4e0e   :  { %12026 = vadd.xlane.f32.xlu0 %v12025_v3 }
0x4e12   :  { %12029 = vadd.xlane.f32.xlu0 %v12028_v24 }
0x4e13   :  { %v14384_v62 = vpop.f32.mrb[152].mxu1 }
0x4e14   :  { %v11998_v56 = vadd.f32 %v14384_v62, %v13050_v34  ;;  %v11992_v12 = vpop.f32.mrb[153].mxu1 }
0x4e15   :  { %v11993_v14 = vadd.f32 %v13050_v34, %v11992_v12 }
0x4e16   :  { %v12016_v45 = vadd.f32 %v11998_v56, %v16772_v42  ;;  %v11869_v42 = vsel %vm912_vm3, %v11868_v29, %v11862_v23 }
0x4e17   :  { %v12015_v16 = vadd.f32 %v11993_v14, %v16769_v60 }
0x4e18   :  { %v12034_v38 = vsel %vm109_vm0, %v12016_v45, 0.0 }
0x4e19   :  { %12035 = vadd.xlane.f32.xlu0 %v12034_v38  ;;  %v12031_v52 = vsel %vm109_vm0, %v12015_v16, 0.0 }
0x4e1f   :  { %12023 = vadd.xlane.f32.xlu1 %v12022_v1 }
0x4e23   :  { %12032 = vadd.xlane.f32.xlu1 %v12031_v52 }
0x4e6d   :  { %v11866_v10 = vpop.permute.xlu1 %11865 }
0x4e6e   :  { %v11870_v6 = vsel %vm914_vm4, %v11869_v42, %v11866_v10 }
0x4e6f   :  { %14386 = vmatmul.mubr.msk.f32.gmra.mrb[154].mxu1 %vm109_vm0, %v11870_v6 }
0x4e96   :  { %v12021_v20 = vpop.xlane.xlu0 %12020 }
0x4e97   :  { %v12043_v13 = vmul.f32 0.03125, %v12021_v20 }
0x4e99   :  { %v17772_v43 = vsub.f32 %v12011_v30, %v12043_v13 }
0x4e9b   :  { %v12027_v60 = vpop.xlane.xlu0 %12026  ;;  %v12059_v40 = vmul.f32 %v17772_v43, %v17772_v43 }
0x4e9c   :  { %v12045_v51 = vmul.f32 0.03125, %v12027_v60 }
0x4e9d   :  { %v12067_v44 = vsel %vm109_vm0, %v12059_v40, 0.0 }
0x4e9e   :  { %v17781_v31 = vsub.f32 %v12013_v18, %v12045_v51  ;;  %v14756_v18 = vpack.c.bf16 %v12156_v28, %v12155_v0  ;;  %v12306_v0 = vld [vmem:[%s18040_s14 + $0x28] sm:$0xff] }
0x4e9f   :  { %v12030_v4 = vpop.xlane.xlu0 %12029  ;;  %v14768_v28 = vpack.c.bf16 %v12306_v0, %v12305_v46 }
0x4ea0   :  { %v12046_v53 = vmul.f32 0.03125, %v12030_v4  ;;  %v12061_v9 = vmul.f32 %v17781_v31, %v17781_v31  ;;  %14757 = vmatprep.subr.bf16.mxu0 %v14756_v18 }
0x4ea1   :  { %14759 = vmatpush3.bf16.msra.mxu0 %v14756_v18  ;;  %v12307_v18 = vld [vmem:[%s18040_s14 + $0x30] sm:$0xff] }
0x4ea2   :  { %v17776_v17 = vsub.f32 %v12014_v47, %v12046_v53  ;;  %v12073_v5 = vsel %vm109_vm0, %v12061_v9, 0.0 }
0x4ea4   :  { %v12062_v33 = vmul.f32 %v17776_v17, %v17776_v17 }
0x4ea6   :  { %v12036_v35 = vpop.xlane.xlu0 %12035  ;;  %v12076_v19 = vsel %vm109_vm0, %v12062_v33, 0.0 }
0x4ea7   :  { %v12048_v15 = vmul.f32 0.03125, %v12036_v35 }
0x4eac   :  { %v12024_v58 = vpop.xlane.xlu1 %12023 }
0x4ead   :  { %v12044_v37 = vmul.f32 0.03125, %v12024_v58 }
0x4eaf   :  { %v17770_v11 = vsub.f32 %v12012_v57, %v12044_v37 }
0x4eb0   :  { %v12033_v63 = vpop.xlane.xlu1 %12032 }
0x4eb1   :  { %v12060_v8 = vmul.f32 %v17770_v11, %v17770_v11  ;;  %v12047_v50 = vmul.f32 0.03125, %v12033_v63  ;;  %v13060_v63 = vld [vmem:[%s18045_s19] ss:$0 sm:$0xff] }
0x4eb3   :  { %v17791_v26 = vsub.f32 %v12015_v16, %v12047_v50 }
0x4eb5   :  { %v12063_v54 = vmul.f32 %v17791_v26, %v17791_v26 }
0x4eb7   :  { %v12079_v30 = vsel %vm109_vm0, %v12063_v54, 0.0 }
0x4f42   :  { %v14387_v59 = vpop.f32.mrb[154].mxu1 }
0x4f43   :  { %v12008_v2 = vadd.f32 %v14387_v59, %v13050_v34  ;;  %v12002_v7 = vpop.f32.mrb[155].mxu1 }
0x4f44   :  { %v12003_v55 = vadd.f32 %v13050_v34, %v12002_v7  ;;  %v17829_v7 = vld [vmem:[%s18044_s18] ss:$0 sm:$0xff] }
0x4f45   :  { %v12018_v61 = vadd.f32 %v12008_v2, %v16788_v25  ;;  %v17786_v25 = vsub.f32 %v12016_v45, %v12048_v15 }
0x4f46   :  { %v12017_v49 = vadd.f32 %v12003_v55, %v16785_v32  ;;  %v12070_v32 = vsel %vm109_vm0, %v12060_v8, 0.0 }
0x4f47   :  { %v12040_v39 = vsel %vm109_vm0, %v12018_v61, 0.0  ;;  %v12064_v34 = vmul.f32 %v17786_v25, %v17786_v25 }
0x4f48   :  { %12041 = vadd.xlane.f32.xlu0 %v12040_v39  ;;  %v12037_v41 = vsel %vm109_vm0, %v12017_v49, 0.0 }
0x4f49   :  { %12038 = vadd.xlane.f32.xlu1 %v12037_v41  ;;  %v12082_v36 = vsel %vm109_vm0, %v12064_v34, 0.0 }
0x4f4c   :  { %12071 = vadd.xlane.f32.xlu0 %v12070_v32 }
0x4f4d   :  { %12068 = vadd.xlane.f32.xlu1 %v12067_v44 }
0x4f50   :  { %12077 = vadd.xlane.f32.xlu0 %v12076_v19 }
0x4f51   :  { %12074 = vadd.xlane.f32.xlu1 %v12073_v5 }
0x4f54   :  { %12083 = vadd.xlane.f32.xlu0 %v12082_v36  ;;  %v12303_v36 = vld [vmem:[%s18040_s14 + $0x10] sm:$0xff] }
0x4f55   :  { %12080 = vadd.xlane.f32.xlu1 %v12079_v30  ;;  %v14764_v48 = vpack.c.bf16 %v12304_v21, %v12303_v36 }
0x4fd5   :  { %v12042_v47 = vpop.xlane.xlu0 %12041 }
0x4fd6   :  { %v12050_v3 = vmul.f32 0.03125, %v12042_v47  ;;  %v12039_v24 = vpop.xlane.xlu1 %12038  ;;  %v12308_v47 = vld [vmem:[%s18040_s14 + $0x38] sm:$0xff] }
0x4fd7   :  { %v12049_v62 = vmul.f32 0.03125, %v12039_v24 }
0x4fd8   :  { %v17816_v56 = vsub.f32 %v12018_v61, %v12050_v3  ;;  %v14772_v3 = vpack.c.bf16 %v12308_v47, %v12307_v18 }
0x4fd9   :  { %v17818_v12 = vsub.f32 %v12017_v49, %v12049_v62  ;;  %v12072_v27 = vpop.xlane.xlu0 %12071 }
0x4fda   :  { %v12092_v45 = vmul.f32 0.03125, %v12072_v27  ;;  %v12069_v38 = vpop.xlane.xlu1 %12068  ;;  %v12066_v57 = vmul.f32 %v17816_v56, %v17816_v56 }
0x4fdb   :  { %v12091_v14 = vmul.f32 0.03125, %v12069_v38  ;;  %v12065_v16 = vmul.f32 %v17818_v12, %v17818_v12 }
0x4fdc   :  { %v12100_v1 = vadd.f32 1e-05, %v12092_v45  ;;  %v12088_v52 = vsel %vm109_vm0, %v12066_v57, 0.0 }
0x4fdd   :  { %v12099_v22 = vadd.f32 1e-05, %v12091_v14  ;;  %12089 = vadd.xlane.f32.xlu0 %v12088_v52  ;;  %v12078_v23 = vpop.xlane.xlu0 %12077  ;;  %v12085_v29 = vsel %vm109_vm0, %v12065_v16, 0.0 }
0x4fde   :  { %15356 = vrsqrt.f32 %v12100_v1  ;;  %v12094_v42 = vmul.f32 0.03125, %v12078_v23  ;;  %12086 = vadd.xlane.f32.xlu1 %v12085_v29  ;;  %v12075_v10 = vpop.xlane.xlu1 %12074 }
0x4fdf   :  { %15358 = vrsqrt.f32 %v12099_v22  ;;  %v12093_v6 = vmul.f32 0.03125, %v12075_v10 }
0x4fe0   :  { %v12102_v20 = vadd.f32 1e-05, %v12094_v42 }
0x4fe1   :  { %v12101_v60 = vadd.f32 1e-05, %v12093_v6  ;;  %v12084_v58 = vpop.xlane.xlu0 %12083 }
0x4fe2   :  { %15360 = vrsqrt.f32 %v12102_v20  ;;  %v12096_v37 = vmul.f32 0.03125, %v12084_v58  ;;  %v12081_v13 = vpop.xlane.xlu1 %12080 }
0x4fe3   :  { %15362 = vrsqrt.f32 %v12101_v60  ;;  %v12095_v4 = vmul.f32 0.03125, %v12081_v13 }
0x4fe4   :  { %v12104_v59 = vadd.f32 1e-05, %v12096_v37 }
0x4fe5   :  { %v12103_v53 = vadd.f32 1e-05, %v12095_v4 }
0x4fe6   :  { %15364 = vrsqrt.f32 %v12104_v59 }
0x4fe7   :  { %15366 = vrsqrt.f32 %v12103_v53 }
0x4fe8   :  { %v15357_v2 = vpop.eup %15356 }
0x4fe9   :  { %v15359_v51 = vpop.eup %15358  ;;  %v12116_v35 = vmul.f32 %v15357_v2, %v17770_v11 }
0x4fea   :  { %v12115_v55 = vmul.f32 %v15359_v51, %v17772_v43 }
0x4feb   :  { %v12131_v61 = vmul.f32 %v17829_v7, %v12116_v35 }
0x4fec   :  { %v15361_v49 = vpop.eup %15360  ;;  %v12130_v15 = vmul.f32 %v17829_v7, %v12115_v55 }
0x4fed   :  { %v15363_v39 = vpop.eup %15362  ;;  %v12118_v8 = vmul.f32 %v15361_v49, %v17776_v17  ;;  %v17842_v40 = vadd.f32 %v13060_v63, %v12131_v61 }
0x4fee   :  { %v17839_v50 = vadd.f32 %v13060_v63, %v12130_v15  ;;  %v12117_v41 = vmul.f32 %v15363_v39, %v17781_v31 }
0x4fef   :  { %v12133_v11 = vmul.f32 %v17829_v7, %v12118_v8 }
0x4ff0   :  { %v15365_v43 = vpop.eup %15364  ;;  %14396 = vmatprep.mubr.msk.f32.mxu0 %vm109_vm0, %v17839_v50  ;;  %v12132_v32 = vmul.f32 %v17829_v7, %v12117_v41 }
0x4ff1   :  { %v15367_v33 = vpop.eup %15366  ;;  %14397 = vmatmul.mubr.msk.f32.vlgmr.msra.gmra.mrb[144].mxu0 %vm109_vm0, %v17842_v40  ;;  %v12120_v17 = vmul.f32 %v15365_v43, %v17786_v25  ;;  %v17854_v9 = vadd.f32 %v13060_v63, %v12133_v11  ;;  %v12301_v25 = vld [vmem:[%s18040_s14] sm:$0xff] }
0x4ff2   :  { %v17851_v44 = vadd.f32 %v13060_v63, %v12132_v32  ;;  %v12119_v31 = vmul.f32 %v15367_v33, %v17791_v26  ;;  %v12302_v26 = vld [vmem:[%s18040_s14 + $0x8] sm:$0xff]  ;;  %v13070_v43 = vld [vmem:[%s18041_s15] ss:$0 sm:$0xff] }
0x4ff3   :  { %v12135_v19 = vmul.f32 %v17829_v7, %v12120_v17  ;;  %v14760_v30 = vpack.c.bf16 %v12302_v26, %v12301_v25 }
0x4ff4   :  { %14399 = vmatprep.mubr.msk.f32.mxu0 %vm109_vm0, %v17851_v44  ;;  %v12134_v34 = vmul.f32 %v17829_v7, %v12119_v31 }
0x4ff5   :  { %14400 = vmatmul.mubr.msk.f32.gmra.mrb[146].mxu0 %vm109_vm0, %v17854_v9  ;;  %v17864_v54 = vadd.f32 %v13060_v63, %v12135_v19  ;;  %14761 = vmatprep.subr.bf16.mxu1 %v14760_v30 }
0x4ff6   :  { %v17862_v5 = vadd.f32 %v13060_v63, %v12134_v34  ;;  %14763 = vmatpush3.bf16.msra.mxu1 %v14760_v30 }
0x4ff7   :  { %14765 = vmatprep.subr.bf16.mxu1 %v14764_v48 }
0x4ff8   :  { %14402 = vmatprep.mubr.msk.f32.mxu0 %vm109_vm0, %v17862_v5 }
0x4ff9   :  { %14403 = vmatmul.mubr.msk.f32.gmra.mrb[148].mxu0 %vm109_vm0, %v17864_v54 }
0x4ffa   :  { %14767 = vmatpush3.bf16.msra.mxu1 %v14764_v48 }
0x4ffb   :  { %14769 = vmatprep.subr.bf16.mxu1 %v14768_v28 }
0x4ffe   :  { %14771 = vmatpush3.bf16.msra.mxu1 %v14768_v28 }
0x4fff   :  { %14773 = vmatprep.subr.bf16.mxu1 %v14772_v3 }
0x5002   :  { %14775 = vmatpush3.bf16.msra.mxu1 %v14772_v3 }
0x506a   :  { %v12090_v24 = vpop.xlane.xlu0 %12089 }
0x506b   :  { %v12098_v62 = vmul.f32 0.03125, %v12090_v24  ;;  %v12087_v27 = vpop.xlane.xlu1 %12086 }
0x506c   :  { %v12097_v45 = vmul.f32 0.03125, %v12087_v27 }
0x506d   :  { %v12106_v38 = vadd.f32 1e-05, %v12098_v62 }
0x506e   :  { %v12105_v57 = vadd.f32 1e-05, %v12097_v45 }
0x506f   :  { %15368 = vrsqrt.f32 %v12106_v38 }
0x5070   :  { %15370 = vrsqrt.f32 %v12105_v57 }
0x5079   :  { %v15369_v14 = vpop.eup %15368 }
0x507a   :  { %v15371_v16 = vpop.eup %15370  ;;  %v12122_v1 = vmul.f32 %v15369_v14, %v17816_v56  ;;  %v13061_v56 = vld [vmem:[%s18039_s13] ss:$0 sm:$0xff] }
0x507b   :  { %v12121_v52 = vmul.f32 %v15371_v16, %v17818_v12 }
0x507c   :  { %v12137_v22 = vmul.f32 %v17829_v7, %v12122_v1 }
0x507d   :  { %v12136_v23 = vmul.f32 %v17829_v7, %v12121_v52 }
0x507e   :  { %v17900_v42 = vadd.f32 %v13060_v63, %v12137_v22 }
0x507f   :  { %v17898_v29 = vadd.f32 %v13060_v63, %v12136_v23 }
0x5081   :  { %14405 = vmatprep.mubr.msk.f32.mxu0 %vm109_vm0, %v17898_v29 }
0x5082   :  { %14406 = vmatmul.mubr.msk.f32.gmra.mrb[150].mxu0 %vm109_vm0, %v17900_v42 }
0x50c4   :  { %v14398_v10 = vpop.f32.mrb[144].mxu0 }
0x50c5   :  { %v12260_v12 = vadd.f32 %v14398_v10, %v13061_v56  ;;  %v12254_v6 = vpop.f32.mrb[145].mxu0 }
0x50c6   :  { %v12255_v20 = vadd.f32 %v13061_v56, %v12254_v6 }
0x50c7   :  { %v12294_v37 = vmax.f32 %v12260_v12, 0.0 }
0x50c8   :  { %v12293_v60 = vmax.f32 %v12255_v20, 0.0  ;;  %v14401_v58 = vpop.f32.mrb[146].mxu0 }
0x50c9   :  { %v12270_v13 = vadd.f32 %v14401_v58, %v13061_v56  ;;  %v12264_v4 = vpop.f32.mrb[147].mxu0 }
0x50ca   :  { %v12265_v59 = vadd.f32 %v13061_v56, %v12264_v4  ;;  %14424 = vmatprep.mubr.msk.f32.mxu1 %vm12316_vm10, %v12293_v60 }
0x50cb   :  { %14425 = vmatmul.mubr.msk.f32.vlgmr.msra.gmra.mrb[156].mxu1 %vm12316_vm10, %v12294_v37  ;;  %v12296_v7 = vmax.f32 %v12270_v13, 0.0 }
0x50cc   :  { %v12295_v53 = vmax.f32 %v12265_v59, 0.0  ;;  %v14404_v2 = vpop.f32.mrb[148].mxu0 }
0x50cd   :  { %v12280_v51 = vadd.f32 %v14404_v2, %v13061_v56  ;;  %v12274_v35 = vpop.f32.mrb[149].mxu0 }
0x50ce   :  { %v12275_v55 = vadd.f32 %v13061_v56, %v12274_v35  ;;  %14427 = vmatprep.mubr.msk.f32.mxu1 %vm12316_vm10, %v12295_v53 }
0x50cf   :  { %14428 = vmatmul.mubr.msk.f32.gmra.mrb[158].mxu1 %vm12316_vm10, %v12296_v7  ;;  %v12298_v61 = vmax.f32 %v12280_v51, 0.0 }
0x50d0   :  { %v12297_v63 = vmax.f32 %v12275_v55, 0.0 }
0x50d2   :  { %14430 = vmatprep.mubr.msk.f32.mxu1 %vm12316_vm10, %v12297_v63 }
0x50d3   :  { %14431 = vmatmul.mubr.msk.f32.gmra.mrb[160].mxu1 %vm12316_vm10, %v12298_v61 }
0x5155   :  { %v14407_v49 = vpop.f32.mrb[150].mxu0 }
0x5156   :  { %v12290_v15 = vadd.f32 %v14407_v49, %v13061_v56  ;;  %v12284_v39 = vpop.f32.mrb[151].mxu0 }
0x5157   :  { %v12285_v8 = vadd.f32 %v13061_v56, %v12284_v39 }
0x5158   :  { %v12300_v11 = vmax.f32 %v12290_v15, 0.0 }
0x5159   :  { %v12299_v41 = vmax.f32 %v12285_v8, 0.0 }
0x515b   :  { %14433 = vmatprep.mubr.msk.f32.mxu1 %vm12316_vm10, %v12299_v41 }
0x515c   :  { %14434 = vmatmul.mubr.msk.f32.gmra.mrb[162].mxu1 %vm12316_vm10, %v12300_v11  ;;  %v12588_v11 = vld [vmem:[%s18048_s22] sm:$0xff] }
0x519e   :  { %v14426_v32 = vpop.f32.mrb[156].mxu1 }
0x519f   :  { %v12413_v33 = vadd.f32 %v14426_v32, %v13070_v43  ;;  %v12407_v17 = vpop.f32.mrb[157].mxu1 }
0x51a0   :  { %v12408_v31 = vadd.f32 %v13070_v43, %v12407_v17  ;;  %v12591_v17 = vld [vmem:[%s18048_s22 + $0x18] sm:$0xff] }
0x51a1   :  { %v12447_v19 = vadd.f32 %v12413_v33, %v17842_v40  ;;  %v12590_v33 = vld [vmem:[%s18048_s22 + $0x10] sm:$0xff] }
0x51a2   :  { %v12446_v34 = vadd.f32 %v12408_v31, %v17839_v50  ;;  %v14429_v25 = vpop.f32.mrb[158].mxu1  ;;  %v14780_v31 = vpack.c.bf16 %v12591_v17, %v12590_v33 }
0x51a3   :  { %v12423_v26 = vadd.f32 %v14429_v25, %v13070_v43  ;;  %v12417_v36 = vpop.f32.mrb[159].mxu1  ;;  %v12457_v30 = vsel %vm109_vm0, %v12447_v19, 0.0 }
0x51a4   :  { %v12418_v21 = vadd.f32 %v13070_v43, %v12417_v36  ;;  %12458 = vadd.xlane.f32.xlu0 %v12457_v30  ;;  %v12454_v48 = vsel %vm109_vm0, %v12446_v34, 0.0 }
0x51a5   :  { %v12449_v46 = vadd.f32 %v12423_v26, %v17854_v9  ;;  %12455 = vadd.xlane.f32.xlu1 %v12454_v48 }
0x51a6   :  { %v12448_v0 = vadd.f32 %v12418_v21, %v17851_v44  ;;  %v14432_v28 = vpop.f32.mrb[160].mxu1 }
0x51a7   :  { %v12433_v18 = vadd.f32 %v14432_v28, %v13070_v43  ;;  %v12427_v47 = vpop.f32.mrb[161].mxu1  ;;  %v12463_v40 = vsel %vm109_vm0, %v12449_v46, 0.0 }
0x51a8   :  { %v12428_v50 = vadd.f32 %v13070_v43, %v12427_v47  ;;  %12464 = vadd.xlane.f32.xlu0 %v12463_v40  ;;  %v12460_v3 = vsel %vm109_vm0, %v12448_v0, 0.0 }
0x51a9   :  { %v12451_v24 = vadd.f32 %v12433_v18, %v17864_v54  ;;  %12461 = vadd.xlane.f32.xlu1 %v12460_v3 }
0x51aa   :  { %v12450_v62 = vadd.f32 %v12428_v50, %v17862_v5 }
0x51ab   :  { %v12469_v27 = vsel %vm109_vm0, %v12451_v24, 0.0 }
0x51ac   :  { %12470 = vadd.xlane.f32.xlu0 %v12469_v27  ;;  %v12466_v9 = vsel %vm109_vm0, %v12450_v62, 0.0 }
0x51ad   :  { %12467 = vadd.xlane.f32.xlu1 %v12466_v9 }
0x522f   :  { %v14435_v44 = vpop.f32.mrb[162].mxu1 }
0x5230   :  { %v12443_v45 = vadd.f32 %v14435_v44, %v13070_v43  ;;  %v12437_v38 = vpop.f32.mrb[163].mxu1 }
0x5231   :  { %v12438_v57 = vadd.f32 %v13070_v43, %v12437_v38  ;;  %v12459_v14 = vpop.xlane.xlu0 %12458  ;;  %v12589_v43 = vld [vmem:[%s18048_s22 + $0x8] sm:$0xff] }
0x5232   :  { %v12453_v16 = vadd.f32 %v12443_v45, %v17900_v42  ;;  %v12479_v1 = vmul.f32 0.03125, %v12459_v14  ;;  %v12456_v52 = vpop.xlane.xlu1 %12455  ;;  %v14776_v32 = vpack.c.bf16 %v12589_v43, %v12588_v11 }
0x5233   :  { %v12452_v54 = vadd.f32 %v12438_v57, %v17898_v29  ;;  %v12478_v22 = vmul.f32 0.03125, %v12456_v52 }
0x5234   :  { %v17934_v23 = vsub.f32 %v12447_v19, %v12479_v1  ;;  %v12475_v5 = vsel %vm109_vm0, %v12453_v16, 0.0  ;;  %14777 = vmatprep.subr.bf16.mxu0 %v14776_v32 }
0x5235   :  { %v17937_v56 = vsub.f32 %v12446_v34, %v12478_v22  ;;  %12476 = vadd.xlane.f32.xlu0 %v12475_v5  ;;  %v12465_v10 = vpop.xlane.xlu0 %12464  ;;  %v12472_v12 = vsel %vm109_vm0, %v12452_v54, 0.0  ;;  %14779 = vmatpush3.bf16.msra.mxu0 %v14776_v32  ;;  %v13079_v22 = vld [vmem:[%s18046_s20] ss:$0 sm:$0xff] }
0x5236   :  { %v12481_v6 = vmul.f32 0.03125, %v12465_v10  ;;  %v12462_v20 = vpop.xlane.xlu1 %12461  ;;  %12473 = vadd.xlane.f32.xlu1 %v12472_v12  ;;  %v12495_v42 = vmul.f32 %v17934_v23, %v17934_v23  ;;  %14781 = vmatprep.subr.bf16.mxu0 %v14780_v31 }
0x5237   :  { %v12480_v60 = vmul.f32 0.03125, %v12462_v20  ;;  %v12494_v29 = vmul.f32 %v17937_v56, %v17937_v56 }
0x5238   :  { %v17944_v58 = vsub.f32 %v12449_v46, %v12481_v6  ;;  %v12505_v37 = vsel %vm109_vm0, %v12495_v42, 0.0  ;;  %v13080_v6 = vld [vmem:[%s18047_s21] ss:$0 sm:$0xff] }
0x5239   :  { %v17947_v13 = vsub.f32 %v12448_v0, %v12480_v60  ;;  %12506 = vadd.xlane.f32.xlu0 %v12505_v37  ;;  %v12471_v4 = vpop.xlane.xlu0 %12470  ;;  %v12502_v59 = vsel %vm109_vm0, %v12494_v29, 0.0  ;;  %14783 = vmatpush3.bf16.msra.mxu0 %v14780_v31 }
0x523a   :  { %v12483_v53 = vmul.f32 0.03125, %v12471_v4  ;;  %v12468_v2 = vpop.xlane.xlu1 %12467  ;;  %12503 = vadd.xlane.f32.xlu1 %v12502_v59  ;;  %v12497_v7 = vmul.f32 %v17944_v58, %v17944_v58 }
0x523b   :  { %v12482_v51 = vmul.f32 0.03125, %v12468_v2  ;;  %v12496_v35 = vmul.f32 %v17947_v13, %v17947_v13 }
0x523c   :  { %v17954_v55 = vsub.f32 %v12451_v24, %v12483_v53  ;;  %v12511_v63 = vsel %vm109_vm0, %v12497_v7, 0.0 }
0x523d   :  { %v17957_v61 = vsub.f32 %v12450_v62, %v12482_v51  ;;  %12512 = vadd.xlane.f32.xlu0 %v12511_v63  ;;  %v12508_v49 = vsel %vm109_vm0, %v12496_v35, 0.0 }
0x523e   :  { %12509 = vadd.xlane.f32.xlu1 %v12508_v49  ;;  %v12499_v15 = vmul.f32 %v17954_v55, %v17954_v55 }
0x523f   :  { %v12498_v39 = vmul.f32 %v17957_v61, %v17957_v61 }
0x5240   :  { %v12517_v8 = vsel %vm109_vm0, %v12499_v15, 0.0 }
0x5241   :  { %12518 = vadd.xlane.f32.xlu0 %v12517_v8  ;;  %v12514_v41 = vsel %vm109_vm0, %v12498_v39, 0.0 }
0x5242   :  { %12515 = vadd.xlane.f32.xlu1 %v12514_v41 }
0x52c2   :  { %v12477_v19 = vpop.xlane.xlu0 %12476 }
0x52c3   :  { %v12485_v34 = vmul.f32 0.03125, %v12477_v19  ;;  %v12474_v25 = vpop.xlane.xlu1 %12473 }
0x52c4   :  { %v12484_v26 = vmul.f32 0.03125, %v12474_v25 }
0x52c5   :  { %v17978_v36 = vsub.f32 %v12453_v16, %v12485_v34 }
0x52c6   :  { %v17980_v30 = vsub.f32 %v12452_v54, %v12484_v26  ;;  %v12507_v21 = vpop.xlane.xlu0 %12506 }
0x52c7   :  { %v12527_v48 = vmul.f32 0.03125, %v12507_v21  ;;  %v12504_v46 = vpop.xlane.xlu1 %12503  ;;  %v12501_v0 = vmul.f32 %v17978_v36, %v17978_v36  ;;  %v13081_v21 = vld [vmem:[%s18049_s23] ss:$0 sm:$0xff]  ;;  %s12741_s23 = sshll.u32 %s15440_s6, 4  ;;  %s12742_s23 = int_to_ptr.vmem [resolvable:$true] %s12741_s23 }
0x52c8   :  { %v12526_v28 = vmul.f32 0.03125, %v12504_v46  ;;  %v12500_v18 = vmul.f32 %v17980_v30, %v17980_v30  ;;  %s15398_s3 = scalar_lea.vmem %s12742_s23, 1024  ;;  %p15403_p1 = scmp.lt.s32.totalorder %s12742_s23, %s12742_s23 }
0x52c9   :  { %v12535_v47 = vadd.f32 1e-05, %v12527_v48  ;;  %v12523_v40 = vsel %vm109_vm0, %v12501_v0, 0.0  ;;  %p15399_p0 = scmp.ne.s32.totalorder %s12742_s23, %s15398_s3  ;;  %p15404_p2 = scmp.lt.s32.totalorder %s15398_s3, %s15398_s3 }
0x52ca   :  { %v12534_v50 = vadd.f32 1e-05, %v12526_v28  ;;  %12524 = vadd.xlane.f32.xlu0 %v12523_v40  ;;  %v12513_v3 = vpop.xlane.xlu0 %12512  ;;  %v12520_v24 = vsel %vm109_vm0, %v12500_v18, 0.0 }
0x52cb   :  { %15372 = vrsqrt.f32 %v12535_v47  ;;  %v12529_v62 = vmul.f32 0.03125, %v12513_v3  ;;  %12521 = vadd.xlane.f32.xlu1 %v12520_v24  ;;  %v12510_v27 = vpop.xlane.xlu1 %12509  ;;  %p15405_p3 = por %p15404_p2, %p15403_p1 }
0x52cc   :  { %15374 = vrsqrt.f32 %v12534_v50  ;;  %v12528_v9 = vmul.f32 0.03125, %v12510_v27 }
0x52cd   :  { %v12537_v44 = vadd.f32 1e-05, %v12529_v62  ;;  %p15406_p4 = pnand %p15405_p3, %p15399_p0 }
0x52ce   :  { %v12536_v45 = vadd.f32 1e-05, %v12528_v9  ;;  %v12519_v38 = vpop.xlane.xlu0 %12518 }
0x52cf   :  { %15376 = vrsqrt.f32 %v12537_v44  ;;  %v12531_v57 = vmul.f32 0.03125, %v12519_v38  ;;  %v12516_v14 = vpop.xlane.xlu1 %12515 }
0x52d0   :  { %15378 = vrsqrt.f32 %v12536_v45  ;;  %v12530_v16 = vmul.f32 0.03125, %v12516_v14 }
0x52d1   :  { %v12539_v1 = vadd.f32 1e-05, %v12531_v57 }
0x52d2   :  { %v12538_v52 = vadd.f32 1e-05, %v12530_v16 }
0x52d3   :  { %15380 = vrsqrt.f32 %v12539_v1 }
0x52d4   :  { %15382 = vrsqrt.f32 %v12538_v52 }
0x52d5   :  { %v15373_v54 = vpop.eup %15372 }
0x52d6   :  { %v15375_v5 = vpop.eup %15374  ;;  %v12551_v10 = vmul.f32 %v15373_v54, %v17934_v23 }
0x52d7   :  { %v12550_v12 = vmul.f32 %v15375_v5, %v17937_v56 }
0x52d8   :  { %v12566_v20 = vmul.f32 %v13079_v22, %v12551_v10 }
0x52d9   :  { %v15377_v42 = vpop.eup %15376  ;;  %v12565_v60 = vmul.f32 %v13079_v22, %v12550_v12 }
0x52da   :  { %v15379_v29 = vpop.eup %15378  ;;  %v12553_v37 = vmul.f32 %v15377_v42, %v17944_v58  ;;  %v12581_v53 = vadd.f32 %v13080_v6, %v12566_v20 }
0x52db   :  { %v12580_v4 = vadd.f32 %v13080_v6, %v12565_v60  ;;  %v12552_v59 = vmul.f32 %v15379_v29, %v17947_v13 }
0x52dc   :  { %v12568_v2 = vmul.f32 %v13079_v22, %v12553_v37 }
0x52dd   :  { %v15381_v7 = vpop.eup %15380  ;;  %14444 = vmatprep.mubr.msk.f32.mxu0 %vm109_vm0, %v12580_v4  ;;  %v12567_v23 = vmul.f32 %v13079_v22, %v12552_v59 }
0x52de   :  { %v15383_v56 = vpop.eup %15382  ;;  %14445 = vmatmul.mubr.msk.f32.vlgmr.msra.gmra.mrb[152].mxu0 %vm109_vm0, %v12581_v53  ;;  %v12555_v51 = vmul.f32 %v15381_v7, %v17954_v55  ;;  %v12583_v49 = vadd.f32 %v13080_v6, %v12568_v2 }
0x52df   :  { %v12582_v35 = vadd.f32 %v13080_v6, %v12567_v23  ;;  %v12554_v63 = vmul.f32 %v15383_v56, %v17957_v61 }
0x52e0   :  { %v12570_v15 = vmul.f32 %v13079_v22, %v12555_v51 }
0x52e1   :  { %14447 = vmatprep.mubr.msk.f32.mxu0 %vm109_vm0, %v12582_v35  ;;  %v12569_v58 = vmul.f32 %v13079_v22, %v12554_v63 }
0x52e2   :  { %14448 = vmatmul.mubr.msk.f32.gmra.mrb[154].mxu0 %vm109_vm0, %v12583_v49  ;;  %v12585_v39 = vadd.f32 %v13080_v6, %v12570_v15 }
0x52e3   :  { %v12584_v13 = vadd.f32 %v13080_v6, %v12569_v58 }
0x52e5   :  { %14450 = vmatprep.mubr.msk.f32.mxu0 %vm109_vm0, %v12584_v13 }
0x52e6   :  { %14451 = vmatmul.mubr.msk.f32.gmra.mrb[156].mxu0 %vm109_vm0, %v12585_v39 }
0x5357   :  { %v12525_v8 = vpop.xlane.xlu0 %12524 }
0x5358   :  { %v12533_v41 = vmul.f32 0.03125, %v12525_v8  ;;  %v12522_v11 = vpop.xlane.xlu1 %12521 }
0x5359   :  { %v12532_v55 = vmul.f32 0.03125, %v12522_v11 }
0x535a   :  { %v12541_v43 = vadd.f32 1e-05, %v12533_v41 }
0x535b   :  { %v12540_v32 = vadd.f32 1e-05, %v12532_v55 }
0x535c   :  { %15384 = vrsqrt.f32 %v12541_v43 }
0x535d   :  { %15386 = vrsqrt.f32 %v12540_v32 }
0x5366   :  { %v15385_v61 = vpop.eup %15384 }
0x5367   :  { %v15387_v33 = vpop.eup %15386  ;;  %v12557_v17 = vmul.f32 %v15385_v61, %v17978_v36 }
0x5368   :  { %v12556_v31 = vmul.f32 %v15387_v33, %v17980_v30 }
0x5369   :  { %v12572_v19 = vmul.f32 %v13079_v22, %v12557_v17 }
0x536a   :  { %v12571_v34 = vmul.f32 %v13079_v22, %v12556_v31 }
0x536b   :  { %v12587_v26 = vadd.f32 %v13080_v6, %v12572_v19 }
0x536c   :  { %v12586_v25 = vadd.f32 %v13080_v6, %v12571_v34 }
0x536e   :  { %14453 = vmatprep.mubr.msk.f32.mxu0 %vm109_vm0, %v12586_v25 }
0x536f   :  { %14454 = vmatmul.mubr.msk.f32.gmra.mrb[158].mxu0 %vm109_vm0, %v12587_v26 }
0x53b1   :  { %v14446_v48 = vpop.f32.mrb[152].mxu0 }
0x53b2   :  { %v12695_v46 = vadd.f32 %v14446_v48, %v13081_v21  ;;  %v12689_v0 = vpop.f32.mrb[153].mxu0 }
0x53b3   :  { %v12690_v28 = vadd.f32 %v13081_v21, %v12689_v0 }
0x53b4   :  { %12729 = vst [vmem:[#allocation2 + $0x8] sm:$0xff] %v12695_v46 }
0x53b5   :  { %12728 = vst [vmem:[#allocation2] sm:$0xff] %v12690_v28  ;;  %v14449_v36 = vpop.f32.mrb[154].mxu0 }
0x53b6   :  { %v12705_v30 = vadd.f32 %v14449_v36, %v13081_v21  ;;  %v12699_v18 = vpop.f32.mrb[155].mxu0 }
0x53b7   :  { %v12700_v47 = vadd.f32 %v13081_v21, %v12699_v18 }
0x53b8   :  { %12731 = vst [vmem:[#allocation2 + $0x18] sm:$0xff] %v12705_v30 }
0x53b9   :  { %12730 = vst [vmem:[#allocation2 + $0x10] sm:$0xff] %v12700_v47  ;;  %v14452_v40 = vpop.f32.mrb[156].mxu0 }
0x53ba   :  { %v12715_v50 = vadd.f32 %v14452_v40, %v13081_v21  ;;  %v12709_v3 = vpop.f32.mrb[157].mxu0 }
0x53bb   :  { %v12710_v24 = vadd.f32 %v13081_v21, %v12709_v3 }
0x53bc   :  { %12733 = vst [vmem:[#allocation2 + $0x28] sm:$0xff] %v12715_v50 }
0x53bd   :  { %12732 = vst [vmem:[#allocation2 + $0x20] sm:$0xff] %v12710_v24 }
0x5442   :  { %v14455_v62 = vpop.f32.mrb[158].mxu0 }
0x5443   :  { %v12725_v27 = vadd.f32 %v14455_v62, %v13081_v21  ;;  %v12719_v9 = vpop.f32.mrb[159].mxu0 }
0x5444   :  { %v12720_v44 = vadd.f32 %v13081_v21, %v12719_v9 }
0x5445   :  { %12735 = vst [vmem:[#allocation2 + $0x38] sm:$0xff] %v12725_v27 }
0x5446   :  { %12734 = vst [vmem:[#allocation2 + $0x30] sm:$0xff] %v12720_v44 }
0x5447   :  { %15409 = shalt.err (!%p15406_p4)
}
0x5448   :  { %s15410_s11 = scalar_lea.hbm %s18050_s24, 1024 }
0x5449   :  { %p15411_p5 = scmp.ne.s32.totalorder %s18050_s24, %s15410_s11  ;;  %p15414_p6 = scmp.lt.u32.totalorder %s15410_s11, %s18050_s24 }
0x544b   :  { %p15416_p7 = pnand %p15414_p6, %p15411_p5 }
0x544d   :  { %15419 = shalt.err (!%p15416_p7)
}
0x544e   :  { %s15441_s16 = smov 128  }
0x544f   :  { %12747 = dma.vmem_to_hbm [thread:$0]  %s12742_s23, 1024, %s18050_s24, [#allocation3], %s15441_s16, %s15441_s16, %s18111_s28  }
0x5450   :  { %15420 = dma.done.wait [#allocation3], 1024  }
0x5451   :  { %15421 = vsyncadd [#allocation3], 4294966272 }
0x5452   :  { %12751 = vsyncpa [#allocation3], 1 }

</bundles_post_ra>
